<compile_context>
chip_gen: v6e
topology: v6e:2x2x1
jax: 0.10.0
libtpu: 0.0.40
codegen_flags: <defaults>
</compile_context>

<pallas_src>
import functools

import jax
import jax.numpy as jnp
from jax.experimental import pallas as pl
from jax.experimental.pallas import tpu as pltpu

EPS = 1e-5


# ----------------------------------------------------------------------------
# Fused BasicBlock Pallas kernel
# ----------------------------------------------------------------------------
def _basic_block_kernel(x_ref, w1_ref, b1_ref, w2_ref, b2_ref, *rest,
                        h, w, has_projection):
    if has_projection:
        ws_ref, bs_ref, o_ref, xpad_ref = rest
    else:
        o_ref, xpad_ref = rest

    hp, wp = h + 2, w + 2          # padded spatial extents
    n = hp * wp                    # flat padded grid size
    row = wp                       # flat-index stride of one padded row
    c_in = xpad_ref.shape[-1]
    planes = w1_ref.shape[-1]

    # ---- in-kernel zero padding (VMEM scratch): zero the halo, store interior.
    xpad_ref[0:1, :, :] = jnp.zeros((1, wp, c_in), jnp.float32)
    xpad_ref[hp - 1:hp, :, :] = jnp.zeros((1, wp, c_in), jnp.float32)
    xpad_ref[:, 0:1, :] = jnp.zeros((hp, 1, c_in), jnp.float32)
    xpad_ref[:, wp - 1:wp, :] = jnp.zeros((hp, 1, c_in), jnp.float32)
    xpad_ref[1:h + 1, 1:w + 1, :] = x_ref[0].astype(jnp.float32)   # one upcast pass

    xf = xpad_ref[...].reshape(n, c_in)        # contiguous (leading-dim) reshape, f32

    def roll_flat(v, k):
        """result[i] = v[(i - k) % n]  (numpy roll semantics, static k, XLU slot)."""
        k = k % n
        return v if k == 0 else pltpu.roll(v, k, axis=0)

    def window3(v):
        """[v_i, v_{i+1}, v_{i+2}] stacked along channels: dw taps folded into K."""
        return jnp.concatenate([v, roll_flat(v, -1), roll_flat(v, -2)], axis=-1)

    def conv3x3_dense(lhs_bf16, w_pack_ref):
        """Dense (stride-1) 3x3 conv over the padded grid: 3 MXU matmuls with
        K = 3*C; dh contributions combined with XLU rolls of the matmul output."""
        cout = w_pack_ref.shape[-1]
        acc = jnp.zeros((n, cout), jnp.float32)
        for dh in range(3):
            y = jnp.dot(lhs_bf16, w_pack_ref[dh], preferred_element_type=jnp.float32)
            acc = acc + roll_flat(y, -dh * row)
        return acc

    # ---- conv1 (3x3) + folded BN1 + ReLU.
    xw = window3(xf).astype(jnp.bfloat16)              # single bf16 cast of conv1 lhs
    h1 = jnp.maximum(conv3x3_dense(xw, w1_ref) + b1_ref[...], 0.0)

    # ---- re-pad h1 on the same flat padded grid (roll + halo mask, no concats).
    ri = jax.lax.broadcasted_iota(jnp.int32, (hp, wp, 1), 0)
    ci = jax.lax.broadcasted_iota(jnp.int32, (hp, wp, 1), 1)
    interior = ((ri >= 1) & (ri <= h) & (ci >= 1) & (ci <= w)).astype(jnp.float32)
    h1p = (roll_flat(h1, row + 1).reshape(hp, wp, planes) * interior).reshape(n, planes)

    # ---- conv2 (3x3, stride 1) + folded BN2 (ReLU deferred past the residual).
    h1w = window3(h1p).astype(jnp.bfloat16)            # single bf16 cast of conv2 lhs
    out = conv3x3_dense(h1w, w2_ref) + b2_ref[...]

    # ---- fused residual branch.
    x_center = roll_flat(xf, -(row + 1))               # x aligned with the output grid
    if has_projection:                                 # 1x1 projection conv + folded BN
        out = out + jnp.dot(x_center.astype(jnp.bfloat16), ws_ref[...],
                            preferred_element_type=jnp.float32) + bs_ref[...]
    else:                                              # identity shortcut (f32 add)
        out = out + x_center

    out = jnp.maximum(out, 0.0).reshape(hp, wp, planes)[0:h, 0:w, :]
    # TODO(synk): lane-dense / bf16 output store (v6e masked-vst lever) for planes < 128.
    o_ref[...] = out.reshape(1, h, w, planes)


def basic_block_apply_nhwc(x_nhwc, params, *, stride=1):
    """Fused BasicBlock on NHWC input. Returns [B, H, W, planes] f32."""
    if stride != 1:
        # TODO(synk): stride>1 (spatial downsampling) path not implemented in the
        # fused kernel yet; requires a strided subsample of the dense conv1 output.
        raise NotImplementedError("BasicBlock Pallas kernel currently supports stride=1")
    x = x_nhwc.astype(jnp.bfloat16)                    # bf16 DMA (half input HBM bytes)
    b, h, w, c_in = x.shape
    planes = params["w1"].shape[-1]
    has_projection = "ws" in params
    assert has_projection == (stride != 1 or c_in != planes)
    if not has_projection and c_in != planes:
        raise ValueError("identity shortcut requires in_planes == planes")

    kern = functools.partial(_basic_block_kernel, h=h, w=w,
                             has_projection=has_projection)

    in_specs = [
        pl.BlockSpec((1, h, w, c_in), lambda i: (i, 0, 0, 0)),
        pl.BlockSpec((3, 3 * c_in, planes), lambda i: (0, 0, 0)),
        pl.BlockSpec((1, planes), lambda i: (0, 0)),
        pl.BlockSpec((3, 3 * planes, planes), lambda i: (0, 0, 0)),
        pl.BlockSpec((1, planes), lambda i: (0, 0)),
    ]
    args = [x, params["w1"], params["b1"], params["w2"], params["b2"]]
    if has_projection:
        in_specs += [pl.BlockSpec((c_in, planes), lambda i: (0, 0)),
                     pl.BlockSpec((1, planes), lambda i: (0, 0))]
        args += [params["ws"], params["bs"]]

    return pl.pallas_call(
        kern,
        out_shape=jax.ShapeDtypeStruct((b, h, w, planes), jnp.float32),
        grid=(b,),
        in_specs=in_specs,
        out_specs=pl.BlockSpec((1, h, w, planes), lambda i: (i, 0, 0, 0)),
        scratch_shapes=[pltpu.VMEM((h + 2, w + 2, c_in), jnp.float32)],
        compiler_params=pltpu.CompilerParams(dimension_semantics=("parallel",)),
    )(*args)


def basic_block_forward(x_nchw, params, *, stride=1):
    """PyTorch-interface wrapper: [B, Cin, H, W] f32 -> [B, planes, H, W] f32.
    (Layout conversion happens only here; stacked blocks should use the NHWC API.)"""
    x = jnp.transpose(x_nchw, (0, 2, 3, 1))
    y = basic_block_apply_nhwc(x, params, stride=stride)
    return jnp.transpose(y, (0, 3, 1, 2))


# ----------------------------------------------------------------------------
# Parameters: synthetic PyTorch-like raw params + BN-folded kernel-ready params
# ----------------------------------------------------------------------------
def _make_bn(key, c):
    k1, k2, k3, k4 = jax.random.split(key, 4)
    return dict(
        gamma=1.0 + 0.1 * jax.random.normal(k1, (c,), jnp.float32),
        beta=0.1 * jax.random.normal(k2, (c,), jnp.float32),
        mean=0.1 * jax.random.normal(k3, (c,), jnp.float32),
        var=0.9 + 0.1 * jnp.abs(jax.random.normal(k4, (c,), jnp.float32)),
    )


def make_raw_params(key, in_planes, planes, stride):
    """Synthetic parameters mirroring the PyTorch BasicBlock (HWIO conv weights)."""
    ks = jax.random.split(key, 6)

    def conv_w(k, kh, kw, cin, cout):
        fan_in = kh * kw * cin
        return jax.random.normal(k, (kh, kw, cin, cout), jnp.float32) / jnp.sqrt(fan_in)

    raw = dict(
        conv1_w=conv_w(ks[0], 3, 3, in_planes, planes), bn1=_make_bn(ks[1], planes),
        conv2_w=conv_w(ks[2], 3, 3, planes, planes), bn2=_make_bn(ks[3], planes),
    )
    if stride != 1 or in_planes != planes:
        raw["shortcut_w"] = conv_w(ks[4], 1, 1, in_planes, planes)
        raw["shortcut_bn"] = _make_bn(ks[5], planes)
    return raw


def _fold_bn(w_hwio, bn):
    """Fold eval-mode BN into the bias-free conv: w' = w*scale (bf16), b' = beta - mean*scale."""
    scale = bn["gamma"] / jnp.sqrt(bn["var"] + EPS)
    w = (w_hwio * scale).astype(jnp.bfloat16)
    b = (bn["beta"] - bn["mean"] * scale).reshape(1, -1).astype(jnp.float32)
    return w, b


def prepare_params(raw):
    """Kernel-ready params: BN folded, 3x3 weights packed as [3, 3*Cin, Cout]
    (first axis = dh, contraction axis = dw*Cin + ci -> K = 3*Cin per matmul)."""
    kh, kw, c_in, planes = raw["conv1_w"].shape
    w1, b1 = _fold_bn(raw["conv1_w"], raw["bn1"])
    w2, b2 = _fold_bn(raw["conv2_w"], raw["bn2"])
    prep = dict(w1=w1.reshape(kh, kw * c_in, planes), b1=b1,
                w2=w2.reshape(kh, kw * planes, planes), b2=b2)
    if "shortcut_w" in raw:
        ws, bs = _fold_bn(raw["shortcut_w"], raw["shortcut_bn"])
        prep["ws"] = ws.reshape(c_in, planes)
        prep["bs"] = bs
    return prep


# ----------------------------------------------------------------------------
# Pure-JAX references for the self-test
# ----------------------------------------------------------------------------
def _conv_nhwc(x, w_hwio, stride, padding):
    return jax.lax.conv_general_dilated(
        x, w_hwio, window_strides=(stride, stride), padding=padding,
        dimension_numbers=("NHWC", "HWIO", "NHWC"),
        precision=jax.lax.Precision.HIGHEST,
        preferred_element_type=jnp.float32)


def _round_bf16(x):
    return x.astype(jnp.bfloat16).astype(jnp.float32)


def reference_folded(x_nchw, prep, *, stride=1):
    """Mimics the kernel numerics (bf16 input / folded bf16 weights / bf16 conv lhs)."""
    x = _round_bf16(jnp.transpose(x_nchw, (0, 2, 3, 1)).astype(jnp.float32))
    c_in = x.shape[-1]
    planes = prep["w1"].shape[-1]
    w1 = prep["w1"].astype(jnp.float32).reshape(3, 3, c_in, planes)
    w2 = prep["w2"].astype(jnp.float32).reshape(3, 3, planes, planes)
    pad1 = ((1, 1), (1, 1))

    h1 = jnp.maximum(_conv_nhwc(x, w1, stride, pad1) + prep["b1"], 0.0)
    out = _conv_nhwc(_round_bf16(h1), w2, 1, pad1) + prep["b2"]
    if "ws" in prep:
        ws = prep["ws"].astype(jnp.float32).reshape(1, 1, c_in, planes)
        out = out + _conv_nhwc(x, ws, stride, ((0, 0), (0, 0))) + prep["bs"]
    else:
        out = out + x
    return jnp.transpose(jnp.maximum(out, 0.0), (0, 3, 1, 2))


def reference_raw(x_nchw, raw, *, stride=1):
    """PyTorch-faithful f32 eval-mode BasicBlock forward from the raw parameters."""
    x = jnp.transpose(x_nchw, (0, 2, 3, 1)).astype(jnp.float32)

    def bn(v, p):
        return (v - p["mean"]) / jnp.sqrt(p["var"] + EPS) * p["gamma"] + p["beta"]

    pad1 = ((1, 1), (1, 1))
    h = jnp.maximum(bn(_conv_nhwc(x, raw["conv1_w"], stride, pad1), raw["bn1"]), 0.0)
    out = bn(_conv_nhwc(h, raw["conv2_w"], 1, pad1), raw["bn2"])
    if "shortcut_w" in raw:
        out = out + bn(_conv_nhwc(x, raw["shortcut_w"], stride, ((0, 0), (0, 0))),
                       raw["shortcut_bn"])
    else:
        out = out + x
    return jnp.transpose(jnp.maximum(out, 0.0), (0, 3, 1, 2))


# ----------------------------------------------------------------------------
# Self-test
# ----------------------------------------------------------------------------
if __name__ == "__main__":
    key = jax.random.PRNGKey(0)
    kp1, kp2, kx = jax.random.split(key, 3)

    # Block 1: projection shortcut (in_planes != planes).  Block 2: identity.
    raw1 = make_raw_params(kp1, in_planes=4, planes=8, stride=1)
    raw2 = make_raw_params(kp2, in_planes=8, planes=8, stride=1)
    prep1, prep2 = prepare_params(raw1), prepare_params(raw2)

    x = jax.random.normal(kx, (2, 4, 16, 16), jnp.float32)

    fwd = jax.jit(basic_block_forward, static_argnames=("stride",))
    y1 = fwd(x, prep1, stride=1)        # [2, 8, 16, 16]  (projection shortcut)
    y2 = fwd(y1, prep2, stride=1)       # [2, 8, 16, 16]  (identity shortcut)
    jax.block_until_ready(y2)

    assert y1.shape == (2, 8, 16, 16) and y2.shape == (2, 8, 16, 16)
    assert bool(jnp.all(jnp.isfinite(y2)))

    # Tight check vs. a pure-JAX forward using the same bf16 inputs / folded bf16
    # weights (residual differences: f32 accumulation order only).
    for y, xin, prep in ((y1, x, prep1), (y2, y1, prep2)):
        r = reference_folded(xin, prep, stride=1)
        err = float(jnp.max(jnp.abs(y - r)))
        assert err < 2e-2, err

    # Loose check vs. the PyTorch-faithful f32 eval-mode forward on raw params
    # (covers BN folding; slack accounts for bf16 weight/activation rounding).
    for y, xin, raw in ((y1, x, raw1), (y2, y1, raw2)):
        f = reference_raw(xin, raw, stride=1)
        rel = float(jnp.linalg.norm(y - f) / (jnp.linalg.norm(f) + 1e-6))
        assert rel < 4e-2, rel

    print("KERNEL_OK")
</pallas_src>

<mosaic_0001>
module attributes {stable_mosaic.version = 11 : i64} {
  func.func @_basic_block_kernel(%arg0: i32, %arg1: memref<1x16x16x4xbf16, #tpu.memory_space<vmem>>, %arg2: memref<3x12x8xbf16, #tpu.memory_space<vmem>>, %arg3: memref<1x8xf32, #tpu.memory_space<vmem>>, %arg4: memref<3x24x8xbf16, #tpu.memory_space<vmem>>, %arg5: memref<1x8xf32, #tpu.memory_space<vmem>>, %arg6: memref<4x8xbf16, #tpu.memory_space<vmem>>, %arg7: memref<1x8xf32, #tpu.memory_space<vmem>>, %arg8: memref<1x16x16x8xf32, #tpu.memory_space<vmem>>, %arg9: memref<18x18x4xf32, #tpu.memory_space<vmem>>) attributes {dimension_semantics = [#tpu.dimension_semantics<parallel>], iteration_bounds = array<i64: 2>, scalar_prefetch = 0 : i64, scratch_operands = 1 : i64, tpu.core_type = #tpu.core_type<tc>, window_params = [{transform_indices = @transform_0, window_bounds = array<i64: 1, 16, 16, 4>}, {pipeline_mode = #tpu.pipeline_mode<synchronous>, transform_indices = @transform_1, window_bounds = array<i64: 3, 12, 8>}, {pipeline_mode = #tpu.pipeline_mode<synchronous>, transform_indices = @transform_2, window_bounds = array<i64: 1, 8>}, {pipeline_mode = #tpu.pipeline_mode<synchronous>, transform_indices = @transform_3, window_bounds = array<i64: 3, 24, 8>}, {pipeline_mode = #tpu.pipeline_mode<synchronous>, transform_indices = @transform_4, window_bounds = array<i64: 1, 8>}, {pipeline_mode = #tpu.pipeline_mode<synchronous>, transform_indices = @transform_5, window_bounds = array<i64: 4, 8>}, {pipeline_mode = #tpu.pipeline_mode<synchronous>, transform_indices = @transform_6, window_bounds = array<i64: 1, 8>}, {transform_indices = @transform_7, window_bounds = array<i64: 1, 16, 16, 8>}]} {
    %cst = arith.constant 0.000000e+00 : f32
    %0 = vector.broadcast %cst : f32 to vector<1x18x4xf32>
    %c0 = arith.constant 0 : index
    %c0_0 = arith.constant 0 : index
    %c0_1 = arith.constant 0 : index
    %1 = vector.load %arg9[%c0, %c0_0, %c0_1] : memref<18x18x4xf32, #tpu.memory_space<vmem>>, vector<1x18x4xf32>
    tpu.vector_store %arg9[%c0, %c0_0, %c0_1], %0 {strides = array<i32>} : memref<18x18x4xf32, #tpu.memory_space<vmem>>, vector<1x18x4xf32>,
    %cst_2 = arith.constant 0.000000e+00 : f32
    %2 = vector.broadcast %cst_2 : f32 to vector<1x18x4xf32>
    %c17 = arith.constant 17 : index
    %c0_3 = arith.constant 0 : index
    %c0_4 = arith.constant 0 : index
    %3 = vector.load %arg9[%c17, %c0_3, %c0_4] : memref<18x18x4xf32, #tpu.memory_space<vmem>>, vector<1x18x4xf32>
    tpu.vector_store %arg9[%c17, %c0_3, %c0_4], %2 {strides = array<i32>} : memref<18x18x4xf32, #tpu.memory_space<vmem>>, vector<1x18x4xf32>,
    %cst_5 = arith.constant 0.000000e+00 : f32
    %4 = vector.broadcast %cst_5 : f32 to vector<18x1x4xf32>
    %c0_6 = arith.constant 0 : index
    %c0_7 = arith.constant 0 : index
    %c0_8 = arith.constant 0 : index
    %5 = vector.load %arg9[%c0_6, %c0_7, %c0_8] : memref<18x18x4xf32, #tpu.memory_space<vmem>>, vector<18x1x4xf32>
    tpu.vector_store %arg9[%c0_6, %c0_7, %c0_8], %4 {strides = array<i32>} : memref<18x18x4xf32, #tpu.memory_space<vmem>>, vector<18x1x4xf32>,
    %cst_9 = arith.constant 0.000000e+00 : f32
    %6 = vector.broadcast %cst_9 : f32 to vector<18x1x4xf32>
    %c0_10 = arith.constant 0 : index
    %c17_11 = arith.constant 17 : index
    %c0_12 = arith.constant 0 : index
    %7 = vector.load %arg9[%c0_10, %c17_11, %c0_12] : memref<18x18x4xf32, #tpu.memory_space<vmem>>, vector<18x1x4xf32>
    tpu.vector_store %arg9[%c0_10, %c17_11, %c0_12], %6 {strides = array<i32>} : memref<18x18x4xf32, #tpu.memory_space<vmem>>, vector<18x1x4xf32>,
    %c0_13 = arith.constant 0 : index
    %c0_14 = arith.constant 0 : index
    %c0_15 = arith.constant 0 : index
    %c0_16 = arith.constant 0 : index
    %8 = vector.load %arg1[%c0_13, %c0_14, %c0_15, %c0_16] : memref<1x16x16x4xbf16, #tpu.memory_space<vmem>>, vector<1x16x16x4xbf16>
    %9 = vector.shape_cast %8 : vector<1x16x16x4xbf16> to vector<16x16x4xbf16>
    %10 = arith.extf %9 : vector<16x16x4xbf16> to vector<16x16x4xf32>
    %c1 = arith.constant 1 : index
    %c1_17 = arith.constant 1 : index
    %c0_18 = arith.constant 0 : index
    %11 = vector.load %arg9[%c1, %c1_17, %c0_18] : memref<18x18x4xf32, #tpu.memory_space<vmem>>, vector<16x16x4xf32>
    tpu.vector_store %arg9[%c1, %c1_17, %c0_18], %10 {strides = array<i32>} : memref<18x18x4xf32, #tpu.memory_space<vmem>>, vector<16x16x4xf32>,
    %c0_19 = arith.constant 0 : index
    %c0_20 = arith.constant 0 : index
    %c0_21 = arith.constant 0 : index
    %12 = vector.load %arg9[%c0_19, %c0_20, %c0_21] : memref<18x18x4xf32, #tpu.memory_space<vmem>>, vector<18x18x4xf32>
    %13 = vector.shape_cast %12 : vector<18x18x4xf32> to vector<324x4xf32>
    %c323_i32 = arith.constant 323 : i32
    %14 = tpu.dynamic_rotate %13 by %c323_i32 dim 0 : vector<324x4xf32>, i32 -> vector<324x4xf32>
    %c322_i32 = arith.constant 322 : i32
    %15 = tpu.dynamic_rotate %13 by %c322_i32 dim 0 : vector<324x4xf32>, i32 -> vector<324x4xf32>
    %16 = tpu.concatenate %13, %14, %15 in 1 : vector<324x4xf32>, vector<324x4xf32>, vector<324x4xf32> -> vector<324x12xf32>
    %17 = arith.truncf %16 : vector<324x12xf32> to vector<324x12xbf16>
    %cst_22 = arith.constant 0.000000e+00 : f32
    %18 = vector.broadcast %cst_22 : f32 to vector<324x8xf32>
    %c0_23 = arith.constant 0 : index
    %c0_24 = arith.constant 0 : index
    %c0_25 = arith.constant 0 : index
    %19 = vector.load %arg2[%c0_23, %c0_24, %c0_25] : memref<3x12x8xbf16, #tpu.memory_space<vmem>>, vector<1x12x8xbf16>
    %20 = vector.shape_cast %19 : vector<1x12x8xbf16> to vector<12x8xbf16>
    %cst_26 = arith.constant dense<0.000000e+00> : vector<324x8xf32>
    %21 = tpu.matmul %17, %20, %cst_26 {dimension_numbers = #tpu.dot_dimension_numbers<[1], [0], [0], [1], [0, 0, 1, 1], [], []>} : vector<324x12xbf16>, vector<12x8xbf16>, vector<324x8xf32> -> vector<324x8xf32>
    %22 = arith.addf %18, %21 : vector<324x8xf32>
    %c1_27 = arith.constant 1 : index
    %c0_28 = arith.constant 0 : index
    %c0_29 = arith.constant 0 : index
    %23 = vector.load %arg2[%c1_27, %c0_28, %c0_29] : memref<3x12x8xbf16, #tpu.memory_space<vmem>>, vector<1x12x8xbf16>
    %24 = vector.shape_cast %23 : vector<1x12x8xbf16> to vector<12x8xbf16>
    %cst_30 = arith.constant dense<0.000000e+00> : vector<324x8xf32>
    %25 = tpu.matmul %17, %24, %cst_30 {dimension_numbers = #tpu.dot_dimension_numbers<[1], [0], [0], [1], [0, 0, 1, 1], [], []>} : vector<324x12xbf16>, vector<12x8xbf16>, vector<324x8xf32> -> vector<324x8xf32>
    %c306_i32 = arith.constant 306 : i32
    %26 = tpu.dynamic_rotate %25 by %c306_i32 dim 0 : vector<324x8xf32>, i32 -> vector<324x8xf32>
    %27 = arith.addf %22, %26 : vector<324x8xf32>
    %c2 = arith.constant 2 : index
    %c0_31 = arith.constant 0 : index
    %c0_32 = arith.constant 0 : index
    %28 = vector.load %arg2[%c2, %c0_31, %c0_32] : memref<3x12x8xbf16, #tpu.memory_space<vmem>>, vector<1x12x8xbf16>
    %29 = vector.shape_cast %28 : vector<1x12x8xbf16> to vector<12x8xbf16>
    %cst_33 = arith.constant dense<0.000000e+00> : vector<324x8xf32>
    %30 = tpu.matmul %17, %29, %cst_33 {dimension_numbers = #tpu.dot_dimension_numbers<[1], [0], [0], [1], [0, 0, 1, 1], [], []>} : vector<324x12xbf16>, vector<12x8xbf16>, vector<324x8xf32> -> vector<324x8xf32>
    %c288_i32 = arith.constant 288 : i32
    %31 = tpu.dynamic_rotate %30 by %c288_i32 dim 0 : vector<324x8xf32>, i32 -> vector<324x8xf32>
    %32 = arith.addf %27, %31 : vector<324x8xf32>
    %c0_34 = arith.constant 0 : index
    %c0_35 = arith.constant 0 : index
    %33 = vector.load %arg3[%c0_34, %c0_35] : memref<1x8xf32, #tpu.memory_space<vmem>>, vector<1x8xf32>
    %34 = vector.broadcast %33 : vector<1x8xf32> to vector<324x8xf32>
    %35 = arith.addf %32, %34 : vector<324x8xf32>
    %cst_36 = arith.constant 0.000000e+00 : f32
    %36 = vector.broadcast %cst_36 : f32 to vector<324x8xf32>
    %37 = arith.maximumf %35, %36 : vector<324x8xf32>
    %38 = tpu.iota {dimensions = array<i32: 0>} : vector<18x18x1xi32>
    %39 = tpu.iota {dimensions = array<i32: 1>} : vector<18x18x1xi32>
    %c1_i32 = arith.constant 1 : i32
    %40 = vector.broadcast %c1_i32 : i32 to vector<18x18x1xi32>
    %41 = arith.cmpi sge, %38, %40 : vector<18x18x1xi32>
    %c16_i32 = arith.constant 16 : i32
    %42 = vector.broadcast %c16_i32 : i32 to vector<18x18x1xi32>
    %43 = arith.cmpi sle, %38, %42 : vector<18x18x1xi32>
    %44 = arith.andi %41, %43 : vector<18x18x1xi1>
    %c1_i32_37 = arith.constant 1 : i32
    %45 = vector.broadcast %c1_i32_37 : i32 to vector<18x18x1xi32>
    %46 = arith.cmpi sge, %39, %45 : vector<18x18x1xi32>
    %47 = arith.andi %44, %46 : vector<18x18x1xi1>
    %c16_i32_38 = arith.constant 16 : i32
    %48 = vector.broadcast %c16_i32_38 : i32 to vector<18x18x1xi32>
    %49 = arith.cmpi sle, %39, %48 : vector<18x18x1xi32>
    %50 = arith.andi %47, %49 : vector<18x18x1xi1>
    %51 = arith.extui %50 : vector<18x18x1xi1> to vector<18x18x1xi32>
    %52 = arith.sitofp %51 : vector<18x18x1xi32> to vector<18x18x1xf32>
    %c19_i32 = arith.constant 19 : i32
    %53 = tpu.dynamic_rotate %37 by %c19_i32 dim 0 : vector<324x8xf32>, i32 -> vector<324x8xf32>
    %54 = vector.shape_cast %53 : vector<324x8xf32> to vector<18x18x8xf32>
    %55 = vector.broadcast %52 : vector<18x18x1xf32> to vector<18x18x8xf32>
    %56 = arith.mulf %54, %55 : vector<18x18x8xf32>
    %57 = vector.shape_cast %56 : vector<18x18x8xf32> to vector<324x8xf32>
    %c323_i32_39 = arith.constant 323 : i32
    %58 = tpu.dynamic_rotate %57 by %c323_i32_39 dim 0 : vector<324x8xf32>, i32 -> vector<324x8xf32>
    %c322_i32_40 = arith.constant 322 : i32
    %59 = tpu.dynamic_rotate %57 by %c322_i32_40 dim 0 : vector<324x8xf32>, i32 -> vector<324x8xf32>
    %60 = tpu.concatenate %57, %58, %59 in 1 : vector<324x8xf32>, vector<324x8xf32>, vector<324x8xf32> -> vector<324x24xf32>
    %61 = arith.truncf %60 : vector<324x24xf32> to vector<324x24xbf16>
    %cst_41 = arith.constant 0.000000e+00 : f32
    %62 = vector.broadcast %cst_41 : f32 to vector<324x8xf32>
    %c0_42 = arith.constant 0 : index
    %c0_43 = arith.constant 0 : index
    %c0_44 = arith.constant 0 : index
    %63 = vector.load %arg4[%c0_42, %c0_43, %c0_44] : memref<3x24x8xbf16, #tpu.memory_space<vmem>>, vector<1x24x8xbf16>
    %64 = vector.shape_cast %63 : vector<1x24x8xbf16> to vector<24x8xbf16>
    %cst_45 = arith.constant dense<0.000000e+00> : vector<324x8xf32>
    %65 = tpu.matmul %61, %64, %cst_45 {dimension_numbers = #tpu.dot_dimension_numbers<[1], [0], [0], [1], [0, 0, 1, 1], [], []>} : vector<324x24xbf16>, vector<24x8xbf16>, vector<324x8xf32> -> vector<324x8xf32>
    %66 = arith.addf %62, %65 : vector<324x8xf32>
    %c1_46 = arith.constant 1 : index
    %c0_47 = arith.constant 0 : index
    %c0_48 = arith.constant 0 : index
    %67 = vector.load %arg4[%c1_46, %c0_47, %c0_48] : memref<3x24x8xbf16, #tpu.memory_space<vmem>>, vector<1x24x8xbf16>
    %68 = vector.shape_cast %67 : vector<1x24x8xbf16> to vector<24x8xbf16>
    %cst_49 = arith.constant dense<0.000000e+00> : vector<324x8xf32>
    %69 = tpu.matmul %61, %68, %cst_49 {dimension_numbers = #tpu.dot_dimension_numbers<[1], [0], [0], [1], [0, 0, 1, 1], [], []>} : vector<324x24xbf16>, vector<24x8xbf16>, vector<324x8xf32> -> vector<324x8xf32>
    %c306_i32_50 = arith.constant 306 : i32
    %70 = tpu.dynamic_rotate %69 by %c306_i32_50 dim 0 : vector<324x8xf32>, i32 -> vector<324x8xf32>
    %71 = arith.addf %66, %70 : vector<324x8xf32>
    %c2_51 = arith.constant 2 : index
    %c0_52 = arith.constant 0 : index
    %c0_53 = arith.constant 0 : index
    %72 = vector.load %arg4[%c2_51, %c0_52, %c0_53] : memref<3x24x8xbf16, #tpu.memory_space<vmem>>, vector<1x24x8xbf16>
    %73 = vector.shape_cast %72 : vector<1x24x8xbf16> to vector<24x8xbf16>
    %cst_54 = arith.constant dense<0.000000e+00> : vector<324x8xf32>
    %74 = tpu.matmul %61, %73, %cst_54 {dimension_numbers = #tpu.dot_dimension_numbers<[1], [0], [0], [1], [0, 0, 1, 1], [], []>} : vector<324x24xbf16>, vector<24x8xbf16>, vector<324x8xf32> -> vector<324x8xf32>
    %c288_i32_55 = arith.constant 288 : i32
    %75 = tpu.dynamic_rotate %74 by %c288_i32_55 dim 0 : vector<324x8xf32>, i32 -> vector<324x8xf32>
    %76 = arith.addf %71, %75 : vector<324x8xf32>
    %c0_56 = arith.constant 0 : index
    %c0_57 = arith.constant 0 : index
    %77 = vector.load %arg5[%c0_56, %c0_57] : memref<1x8xf32, #tpu.memory_space<vmem>>, vector<1x8xf32>
    %78 = vector.broadcast %77 : vector<1x8xf32> to vector<324x8xf32>
    %79 = arith.addf %76, %78 : vector<324x8xf32>
    %c305_i32 = arith.constant 305 : i32
    %80 = tpu.dynamic_rotate %13 by %c305_i32 dim 0 : vector<324x4xf32>, i32 -> vector<324x4xf32>
    %81 = arith.truncf %80 : vector<324x4xf32> to vector<324x4xbf16>
    %c0_58 = arith.constant 0 : index
    %c0_59 = arith.constant 0 : index
    %82 = vector.load %arg6[%c0_58, %c0_59] : memref<4x8xbf16, #tpu.memory_space<vmem>>, vector<4x8xbf16>
    %cst_60 = arith.constant dense<0.000000e+00> : vector<324x8xf32>
    %83 = tpu.matmul %81, %82, %cst_60 {dimension_numbers = #tpu.dot_dimension_numbers<[1], [0], [0], [1], [0, 0, 1, 1], [], []>} : vector<324x4xbf16>, vector<4x8xbf16>, vector<324x8xf32> -> vector<324x8xf32>
    %84 = arith.addf %79, %83 : vector<324x8xf32>
    %c0_61 = arith.constant 0 : index
    %c0_62 = arith.constant 0 : index
    %85 = vector.load %arg7[%c0_61, %c0_62] : memref<1x8xf32, #tpu.memory_space<vmem>>, vector<1x8xf32>
    %86 = vector.broadcast %85 : vector<1x8xf32> to vector<324x8xf32>
    %87 = arith.addf %84, %86 : vector<324x8xf32>
    %cst_63 = arith.constant 0.000000e+00 : f32
    %88 = vector.broadcast %cst_63 : f32 to vector<324x8xf32>
    %89 = arith.maximumf %87, %88 : vector<324x8xf32>
    %90 = vector.shape_cast %89 : vector<324x8xf32> to vector<18x18x8xf32>
    %91 = vector.extract_strided_slice %90 {offsets = [0, 0, 0], sizes = [16, 16, 8], strides = [1, 1, 1]} : vector<18x18x8xf32> to vector<16x16x8xf32>
    %92 = vector.shape_cast %91 : vector<16x16x8xf32> to vector<1x16x16x8xf32>
    %c0_64 = arith.constant 0 : index
    %c0_65 = arith.constant 0 : index
    %c0_66 = arith.constant 0 : index
    %c0_67 = arith.constant 0 : index
    %93 = vector.load %arg8[%c0_64, %c0_65, %c0_66, %c0_67] : memref<1x16x16x8xf32, #tpu.memory_space<vmem>>, vector<1x16x16x8xf32>
    tpu.vector_store %arg8[%c0_64, %c0_65, %c0_66, %c0_67], %92 {strides = array<i32>} : memref<1x16x16x8xf32, #tpu.memory_space<vmem>>, vector<1x16x16x8xf32>,
    return
  }
  func.func @transform_0(%arg0: i32) -> (i32, i32, i32, i32) {
    %c0_i32 = arith.constant 0 : i32
    %c0_i32_0 = arith.constant 0 : i32
    %c0_i32_1 = arith.constant 0 : i32
    %c0_i32_2 = arith.constant 0 : i32
    return %arg0, %c0_i32, %c0_i32_0, %c0_i32_1 : i32, i32, i32, i32
  }
  func.func @transform_1(%arg0: i32) -> (i32, i32, i32) {
    %c0_i32 = arith.constant 0 : i32
    %c0_i32_0 = arith.constant 0 : i32
    %c0_i32_1 = arith.constant 0 : i32
    %c0_i32_2 = arith.constant 0 : i32
    return %c0_i32, %c0_i32_0, %c0_i32_1 : i32, i32, i32
  }
  func.func @transform_2(%arg0: i32) -> (i32, i32) {
    %c0_i32 = arith.constant 0 : i32
    %c0_i32_0 = arith.constant 0 : i32
    %c0_i32_1 = arith.constant 0 : i32
    return %c0_i32, %c0_i32_0 : i32, i32
  }
  func.func @transform_3(%arg0: i32) -> (i32, i32, i32) {
    %c0_i32 = arith.constant 0 : i32
    %c0_i32_0 = arith.constant 0 : i32
    %c0_i32_1 = arith.constant 0 : i32
    %c0_i32_2 = arith.constant 0 : i32
    return %c0_i32, %c0_i32_0, %c0_i32_1 : i32, i32, i32
  }
  func.func @transform_4(%arg0: i32) -> (i32, i32) {
    %c0_i32 = arith.constant 0 : i32
    %c0_i32_0 = arith.constant 0 : i32
    %c0_i32_1 = arith.constant 0 : i32
    return %c0_i32, %c0_i32_0 : i32, i32
  }
  func.func @transform_5(%arg0: i32) -> (i32, i32) {
    %c0_i32 = arith.constant 0 : i32
    %c0_i32_0 = arith.constant 0 : i32
    %c0_i32_1 = arith.constant 0 : i32
    return %c0_i32, %c0_i32_0 : i32, i32
  }
  func.func @transform_6(%arg0: i32) -> (i32, i32) {
    %c0_i32 = arith.constant 0 : i32
    %c0_i32_0 = arith.constant 0 : i32
    %c0_i32_1 = arith.constant 0 : i32
    return %c0_i32, %c0_i32_0 : i32, i32
  }
  func.func @transform_7(%arg0: i32) -> (i32, i32, i32, i32) {
    %c0_i32 = arith.constant 0 : i32
    %c0_i32_0 = arith.constant 0 : i32
    %c0_i32_1 = arith.constant 0 : i32
    %c0_i32_2 = arith.constant 0 : i32
    return %arg0, %c0_i32, %c0_i32_0, %c0_i32_1 : i32, i32, i32, i32
  }
}

</mosaic_0001>

<bundles_post_ra>
// kernel: basic_block_forward.1
= control target key start
LH: loop header
LB: loop body
LE: loop exit
PB: predicated region body
PF: predicated region fallthrough
CT: control target
= control target key end

     0   :  { %s11446_s24 = smov 0   ;;  %s16804_s0 = inlined_call_operand.vmem [shape: bf16[2,16,16,4], index: 0, kind: input, shape index: {}]   ;;  %s16805_s1 = inlined_call_operand.vmem [shape: bf16[3,12,8], index: 1, kind: input, shape index: {}]   ;;  %s16806_s2 = inlined_call_operand.vmem [shape: f32[1,8], index: 2, kind: input, shape index: {}]   ;;  %s16807_s3 = inlined_call_operand.vmem [shape: bf16[3,24,8], index: 3, kind: input, shape index: {}]   ;;  %s16808_s4 = inlined_call_operand.vmem [shape: f32[1,8], index: 4, kind: input, shape index: {}]   ;;  %s16809_s5 = inlined_call_operand.vmem [shape: bf16[4,8], index: 5, kind: input, shape index: {}]   ;;  %s16810_s6 = inlined_call_operand.vmem [shape: f32[1,8], index: 6, kind: input, shape index: {}]   ;;  %s16811_s7 = inlined_call_operand.vmem [shape: f32[2,16,16,8], index: 7, kind: output, shape index: {}]  }
   0x1 LB: > { %s9875_s25 = sadd.s32 4294967295, %s11393_s24   ;;  %p9879_p0 = scmp.ge.s32.totalorder %s11393_s24, 1  ;;  %s11393_s24 = sphi %s11446_s24, %s17_s24  }
   0x2   : > { %p237_p1 = scmp.lt.s32.totalorder %s11393_s24, 3 }
   0x4   : > { %p238_p2 = pnand %p9879_p0, %p237_p1 }
   0x6   : > { %241 = sbr.rel (%p238_p2) target bundleno = 1541 (0x605), region = 48 }
   0xb   : > { %p11456_p3 = scmp.lt.s32.totalorder %s9875_s25, 1  ;;  %vm280_vm0 = vcmask 31744   ;;  %vm289_vm1 = vcmask 24576   ;;  %v16826_v0 = vmov 0.0   ;;  %v11396_v1 = vmov 1983009808  }
   0xc   : > { %300 = vst.msk [vmem:[#allocation2 + $0xf0] sm:$0x1] %vm289_vm1, %v16826_v0  ;;  %301 = vst.msk [vmem:[#allocation2 + $0x108] sm:$0x1] %vm289_vm1, %v16826_v0  ;;  %v533_v2 = vunpack.c.l.s4 %v11396_v1  ;;  %v535_v3 = vlaneseq  ;;  %10922 = vmatprep.subr.bf16.mxu1 %v16826_v0  ;;  %10314 = vmatprep.subr.bf16.mxu0 %v16826_v0  ;;  %vm283_vm2 = vcmask 25600   ;;  %vm2002_vm3 = vcmask 1046528  }
   0xd   : > { %317 = vst.msk [vmem:[#allocation2 + $0xe9] sm:$0x1] %vm289_vm1, %v16826_v0  ;;  %318 = vst.msk [vmem:[#allocation2 + $0x101] sm:$0x1] %vm289_vm1, %v16826_v0  ;;  %s17977_s25 = smov (!%p11456_p3, %s9875_s25), 1  ;;  %vm2207_vm4 = vcmask 1045504  }
   0xe   : > { %281 = vst.msk [vmem:[#allocation2] sm:$0xff] %vm280_vm0, %v16826_v0  ;;  %282 = vst.msk [vmem:[#allocation2 + $0x8] sm:$0xff] %vm280_vm0, %v16826_v0  ;;  %v534_v4 = vunpack.c.0.s8 %v533_v2  ;;  %v11544_v5 = vshrl.u32 %v535_v3, 7  ;;  %s10076_s27 = sshll.u32 %s17977_s25, 7  ;;  %s11397_s8 = smov 4   ;;  %vm1959_vm5 = vcmask 1047556  }
   0xf   : > { %286 = vst.msk [vmem:[#allocation2 + $0x198] sm:$0xff] %vm280_vm0, %v16826_v0  ;;  %287 = vst.msk [vmem:[#allocation2 + $0x1a0] sm:$0xff] %vm280_vm0, %v16826_v0  ;;  %s11556_s30 = scalar_lea.vmem %s16804_s0, %s10076_s27  ;;  %s11398_s9 = smov 8   ;;  %vm11399_vm6 = vmmov 0   ;;  %vm2453_vm7 = vcmask 64512   ;;  %vm2526_vm8 = vcmask 97280  }
  0x10   : > { %291 = vst.msk [vmem:[#allocation2 + $0x18] sm:$0x1] %vm289_vm1, %v16826_v0  ;;  %292 = vst.msk [vmem:[#allocation2 + $0x30] sm:$0x1] %vm289_vm1, %v16826_v0  ;;  %v10149_v6 = vld [vmem:[%s11556_s30 + $0x40] sm:$0xff]   ;;  %v10150_v7 = vld [vmem:[%s11556_s30 + $0x48] sm:$0xff]   ;;  %v11562_v9 = vsub.s32 %v534_v4, %v11544_v5  ;;  %10360 = vmatprep.mubr.msk.bf16.mxu1 %vm11399_vm6, %v16826_v0  ;;  %10316 = vmatprep.mubr.msk.bf16.mxu0 %vm11399_vm6, %v16826_v0 }
  0x11   : > { %293 = vst.msk [vmem:[#allocation2 + $0x48] sm:$0x1] %vm289_vm1, %v16826_v0  ;;  %294 = vst.msk [vmem:[#allocation2 + $0x60] sm:$0x1] %vm289_vm1, %v16826_v0  ;;  %v10151_v8 = vld [vmem:[%s11556_s30 + $0x50] sm:$0xff]   ;;  %v10112_v10 = vunpack.c.l.bf16 %v10149_v6  ;;  %v10113_v11 = vunpack.c.h.bf16 %v10149_v6  ;;  %v10116_v12 = vunpack.c.l.bf16 %v10150_v7  ;;  %v10117_v13 = vunpack.c.h.bf16 %v10150_v7  ;;  %v10152_v14 = vld [vmem:[%s11556_s30 + $0x58] sm:$0xff]  }
  0x12   : > { %295 = vst.msk [vmem:[#allocation2 + $0x78] sm:$0x1] %vm289_vm1, %v16826_v0  ;;  %296 = vst.msk [vmem:[#allocation2 + $0x90] sm:$0x1] %vm289_vm1, %v16826_v0  ;;  %v10153_v15 = vld [vmem:[%s11556_s30 + $0x60] sm:$0xff]   ;;  %v10154_v16 = vld [vmem:[%s11556_s30 + $0x68] sm:$0xff]   ;;  %v10120_v17 = vunpack.c.l.bf16 %v10151_v8  ;;  %v10121_v18 = vunpack.c.h.bf16 %v10151_v8  ;;  %v10124_v19 = vunpack.c.l.bf16 %v10152_v14  ;;  %v10125_v20 = vunpack.c.h.bf16 %v10152_v14 }
  0x13   : > { %297 = vst.msk [vmem:[#allocation2 + $0xa8] sm:$0x1] %vm289_vm1, %v16826_v0  ;;  %298 = vst.msk [vmem:[#allocation2 + $0xc0] sm:$0x1] %vm289_vm1, %v16826_v0  ;;  %v10155_v21 = vld [vmem:[%s11556_s30 + $0x70] sm:$0xff]   ;;  %v10156_v22 = vld [vmem:[%s11556_s30 + $0x78] sm:$0xff]   ;;  %v10128_v24 = vunpack.c.l.bf16 %v10153_v15  ;;  %v10129_v25 = vunpack.c.h.bf16 %v10153_v15  ;;  %v10132_v26 = vunpack.c.l.bf16 %v10154_v16  ;;  %v10133_v27 = vunpack.c.h.bf16 %v10154_v16 }
  0x14   : > { %299 = vst.msk [vmem:[#allocation2 + $0xd8] sm:$0x1] %vm289_vm1, %v16826_v0  ;;  %302 = vst.msk [vmem:[#allocation2 + $0x120] sm:$0x1] %vm289_vm1, %v16826_v0  ;;  %v10136_v31 = vunpack.c.l.bf16 %v10155_v21  ;;  %v10137_v32 = vunpack.c.h.bf16 %v10155_v21  ;;  %v10140_v33 = vunpack.c.l.bf16 %v10156_v22  ;;  %v10141_v34 = vunpack.c.h.bf16 %v10156_v22  ;;  %s11405_s28 = smov 16   ;;  %s10077_s20 = sshll.u32 %s17977_s25, 8 }
  0x15   : > { %303 = vst.msk [vmem:[#allocation2 + $0x138] sm:$0x1] %vm289_vm1, %v16826_v0  ;;  %304 = vst.msk [vmem:[#allocation2 + $0x150] sm:$0x1] %vm289_vm1, %v16826_v0  ;;  %v424_v23 = vld [vmem:[#allocation2 + $0x8] sm:$0xff]  ;;  %vm3432_vm9 = vcmask 1043456   ;;  %s16363_s22 = scalar_lea.vmem %s16811_s7, %s10077_s20 }
  0x16   : > { %305 = vst.msk [vmem:[#allocation2 + $0x168] sm:$0x1] %vm289_vm1, %v16826_v0  ;;  %306 = vst.msk [vmem:[#allocation2 + $0x180] sm:$0x1] %vm289_vm1, %v16826_v0  ;;  %v475_v30 = vld [vmem:[#allocation2 + $0x1a0] sm:$0xff]  ;;  %v548_v39 = vcombine.high %v424_v23, %v424_v23  ;;  %v555_v40 = vrot.slane %v424_v23, %v11562_v9  ;;  %vm4534_vm12 = vcmask 1040384  }
  0x17   : > { %309 = vst.msk [vmem:[#allocation2 + $0x29] sm:$0x1] %vm289_vm1, %v16826_v0  ;;  %310 = vst.msk [vmem:[#allocation2 + $0x41] sm:$0x1] %vm289_vm1, %v16826_v0  ;;  %v1245_v41 = vcombine.high %v475_v30, %v475_v30  ;;  %v11591_v42 = vrot.slane %v475_v30, %v11562_v9  ;;  %vm4535_vm13 = vcmask 1042434   ;;  %vm4537_vm14 = vcmask 1044484  }
  0x18   : > { %311 = vst.msk [vmem:[#allocation2 + $0x59] sm:$0x1] %vm289_vm1, %v16826_v0  ;;  %312 = vst.msk [vmem:[#allocation2 + $0x71] sm:$0x1] %vm289_vm1, %v16826_v0  ;;  %v11602_v47 = vrot.slane %v548_v39, %v11562_v9  ;;  %v563_v48 = vcombine.high %v555_v40, %v555_v40  ;;  %vm4539_vm15 = vcmask 1046534  }
  0x19   : > { %313 = vst.msk [vmem:[#allocation2 + $0x89] sm:$0x1] %vm289_vm1, %v16826_v0  ;;  %314 = vst.msk [vmem:[#allocation2 + $0xa1] sm:$0x1] %vm289_vm1, %v16826_v0  ;;  %v11605_v49 = vrot.slane %v1245_v41, %v11562_v9  ;;  %v1260_v50 = vcombine.high %v11591_v42, %v11591_v42 }
  0x1a   : > { %315 = vst.msk [vmem:[#allocation2 + $0xb9] sm:$0x1] %vm289_vm1, %v16826_v0  ;;  %316 = vst.msk [vmem:[#allocation2 + $0xd1] sm:$0x1] %vm289_vm1, %v16826_v0  ;;  %v564_v57 = vcombine.high %v11602_v47, %v11602_v47  ;;  %v11622_v59 = vcombine.low %v555_v40, %v563_v48 }
  0x1b   : > { %319 = vst.msk [vmem:[#allocation2 + $0x119] sm:$0x1] %vm289_vm1, %v16826_v0  ;;  %320 = vst.msk [vmem:[#allocation2 + $0x131] sm:$0x1] %vm289_vm1, %v16826_v0  ;;  %v1261_v58 = vcombine.high %v11605_v49, %v11605_v49  ;;  %v11625_v60 = vcombine.low %v1260_v50, %v11605_v49 }
  0x1c   : > { %321 = vst.msk [vmem:[#allocation2 + $0x149] sm:$0x1] %vm289_vm1, %v16826_v0  ;;  %322 = vst.msk [vmem:[#allocation2 + $0x161] sm:$0x1] %vm289_vm1, %v16826_v0 }
  0x1d   : > { %323 = vst.msk [vmem:[#allocation2 + $0x179] sm:$0x1] %vm289_vm1, %v16826_v0  ;;  %324 = vst.msk [vmem:[#allocation2 + $0x191] sm:$0x1] %vm289_vm1, %v16826_v0 }
  0x1e   : > { %290 = vst.msk [vmem:[#allocation2] sm:$0x1] %vm289_vm1, %v16826_v0  ;;  %307 = vst.msk [vmem:[#allocation2 + $0x198] sm:$0x1] %vm289_vm1, %v16826_v0 }
  0x1f   : > { %17128 = vst [vmem:[#allocation3_spill] sm:$0xff] %v11544_v5  ;;  %284 = vst.msk [vmem:[#allocation2 + $0x10] sm:$0x3] %vm283_vm2, %v16826_v0 }
  0x20   : > { %288 = vst.msk [vmem:[#allocation2 + $0x1a8] sm:$0x3] %vm283_vm2, %v16826_v0 }
  0x21   : > { %308 = vst.msk [vmem:[#allocation2 + $0x11] sm:$0x1] %vm289_vm1, %v16826_v0  ;;  %325 = vst.msk [vmem:[#allocation2 + $0x1a9] sm:$0x1] %vm289_vm1, %v16826_v0 }
  0x22   : > { %407 = vst.msk [vmem:[#allocation2 + $0xd9] sm:$0xff] %vm280_vm0, %v10112_v10  ;;  %408 = vst.msk [vmem:[#allocation2 + $0xe1] sm:$0xff] %vm280_vm0, %v10113_v11 }
  0x23   : > { %409 = vst.msk [vmem:[#allocation2 + $0xf1] sm:$0xff] %vm280_vm0, %v10116_v12  ;;  %410 = vst.msk [vmem:[#allocation2 + $0xf9] sm:$0xff] %vm280_vm0, %v10117_v13 }
  0x24   : > { %411 = vst.msk [vmem:[#allocation2 + $0x109] sm:$0xff] %vm280_vm0, %v10120_v17  ;;  %412 = vst.msk [vmem:[#allocation2 + $0x111] sm:$0xff] %vm280_vm0, %v10121_v18 }
  0x25   : > { %v474_v28 = vld [vmem:[#allocation2 + $0x198] sm:$0xff]  ;;  %v423_v29 = vld [vmem:[#allocation2] sm:$0xff]  ;;  %413 = vst.msk [vmem:[#allocation2 + $0x121] sm:$0xff] %vm280_vm0, %v10124_v19  ;;  %414 = vst.msk [vmem:[#allocation2 + $0x129] sm:$0xff] %vm280_vm0, %v10125_v20 }
  0x26   : > { %415 = vst.msk [vmem:[#allocation2 + $0x139] sm:$0xff] %vm280_vm0, %v10128_v24  ;;  %416 = vst.msk [vmem:[#allocation2 + $0x141] sm:$0xff] %vm280_vm0, %v10129_v25  ;;  %v1228_v35 = vcombine.high %v474_v28, %v474_v28  ;;  %v11582_v36 = vrot.slane %v474_v28, %v11562_v9  ;;  %v531_v37 = vcombine.high %v423_v29, %v423_v29 }
  0x27   : > { %417 = vst.msk [vmem:[#allocation2 + $0x151] sm:$0xff] %vm280_vm0, %v10132_v26  ;;  %418 = vst.msk [vmem:[#allocation2 + $0x159] sm:$0xff] %vm280_vm0, %v10133_v27  ;;  %v538_v38 = vrot.slane %v423_v29, %v11562_v9 }
  0x28   : > { %419 = vst.msk [vmem:[#allocation2 + $0x169] sm:$0xff] %vm280_vm0, %v10136_v31  ;;  %420 = vst.msk [vmem:[#allocation2 + $0x171] sm:$0xff] %vm280_vm0, %v10137_v32  ;;  %v11594_v43 = vrot.slane %v1228_v35, %v11562_v9  ;;  %v1243_v44 = vcombine.high %v11582_v36, %v11582_v36  ;;  %v11599_v45 = vrot.slane %v531_v37, %v11562_v9 }
  0x29   : > { %421 = vst.msk [vmem:[#allocation2 + $0x181] sm:$0xff] %vm280_vm0, %v10140_v33  ;;  %422 = vst.msk [vmem:[#allocation2 + $0x189] sm:$0xff] %vm280_vm0, %v10141_v34  ;;  %v546_v46 = vcombine.high %v538_v38, %v538_v38  ;;  %v451_v55 = vld [vmem:[#allocation2 + $0xe0] sm:$0xff] }
  0x2a   : > { %v11610_v51 = vcombine.low %v1243_v44, %v11594_v43  ;;  %v547_v52 = vcombine.high %v11599_v45, %v11599_v45  ;;  %v1244_v53 = vcombine.high %v11594_v43, %v11594_v43  ;;  %v453_v56 = vld [vmem:[#allocation2 + $0xf0] sm:$0xff]  ;;  %v454_v61 = vld [vmem:[#allocation2 + $0xf8] sm:$0xff]  ;;  %v9894_v62 = vld.sshfl [vmem:[#allocation2 + $0x100] sm:$0x3 pattern:$0x76325410]  ;;  %v917_v1 = vcombine.high %v451_v55, %v451_v55 }
  0x2b   : > { %v11616_v54 = vcombine.low %v538_v38, %v546_v46  ;;  %v456_v63 = vld [vmem:[#allocation2 + $0x108] sm:$0xff]  ;;  %v941_v2 = vcombine.high %v453_v56, %v453_v56  ;;  %v948_v3 = vrot.slane %v453_v56, %v11562_v9  ;;  %v958_v6 = vcombine.high %v454_v61, %v454_v61  ;;  %v457_v10 = vld [vmem:[#allocation2 + $0x110] sm:$0xff]  ;;  %v9895_v41 = vld.sshfl [vmem:[#allocation2 + $0x118] sm:$0x3 pattern:$0x76325410] }
  0x2c   : > { %v1930_v4 = vrot.slane %v11610_v51, %v11562_v9  ;;  %v965_v7 = vrot.slane %v454_v61, %v11562_v9  ;;  %v989_v8 = vrot.slane %v456_v63, %v11562_v9  ;;  %v982_v11 = vcombine.high %v456_v63, %v456_v63  ;;  %v9893_v16 = vld.sshfl [vmem:[#allocation2 + $0xe8] sm:$0x3 pattern:$0x76325410]  ;;  %v459_v33 = vld [vmem:[#allocation2 + $0x120] sm:$0xff]  ;;  %vm4536_vm1 = vmor %vm4534_vm12, %vm4535_vm13 }
  0x2d   : > { %v11633_v12 = vrot.slane %v917_v1, %v11562_v9  ;;  %v955_v13 = vrot.slane %v941_v2, %v11562_v9  ;;  %v956_v14 = vcombine.high %v948_v3, %v948_v3  ;;  %v999_v15 = vcombine.high %v457_v10, %v457_v10  ;;  %vm4538_vm2 = vmor %vm4536_vm1, %vm4537_vm14 }
  0x2e   : > { %v972_v17 = vrot.slane %v958_v6, %v11562_v9  ;;  %v973_v18 = vcombine.high %v965_v7, %v965_v7  ;;  %v1678_v19 = vcombine.low %v9894_v62, %v989_v8  ;;  %v996_v20 = vrot.slane %v982_v11, %v11562_v9 }
  0x2f   : > { %v933_v21 = vcombine.high %v11633_v12, %v11633_v12  ;;  %v957_v22 = vcombine.high %v955_v13, %v955_v13  ;;  %v1644_v23 = vcombine.low %v948_v3, %v956_v14  ;;  %v997_v24 = vcombine.high %v989_v8, %v989_v8 }
  0x30   : > { %v974_v25 = vcombine.high %v972_v17, %v972_v17  ;;  %v1661_v26 = vcombine.low %v965_v7, %v973_v18  ;;  %v1692_v27 = vrot.slane %v1678_v19, %v11562_v9  ;;  %v998_v28 = vcombine.high %v996_v20, %v996_v20 }
  0x31   : > { %v1643_v29 = vcombine.low %v933_v21, %v9893_v16  ;;  %v1658_v30 = vrot.slane %v1644_v23, %v11562_v9  ;;  %v1660_v31 = vcombine.low %v955_v13, %v957_v22  ;;  %v1006_v32 = vrot.slane %v457_v10, %v11562_v9 }
  0x32   : > { %v1675_v34 = vrot.slane %v1661_v26, %v11562_v9  ;;  %v1677_v35 = vcombine.low %v972_v17, %v974_v25  ;;  %v1013_v37 = vrot.slane %v999_v15, %v11562_v9  ;;  %v1694_v38 = vcombine.low %v997_v24, %v996_v20  ;;  %v460_v25 = vld [vmem:[#allocation2 + $0x128] sm:$0xff] }
  0x33   : > { %v1651_v39 = vrot.slane %v1643_v29, %v11562_v9  ;;  %v1668_v40 = vrot.slane %v1660_v31, %v11562_v9  ;;  %v1014_v44 = vcombine.high %v1006_v32, %v1006_v32  ;;  %v1695_v46 = vcombine.low %v998_v28, %v1006_v32 }
  0x34   : > { %v1685_v48 = vrot.slane %v1677_v35, %v11562_v9  ;;  %v1015_v50 = vcombine.high %v1013_v37, %v1013_v37  ;;  %v1702_v55 = vrot.slane %v1694_v38, %v11562_v9  ;;  %v1023_v56 = vcombine.high %v459_v33, %v459_v33 }
  0x35   : > { %v11649_v61 = vcombine.low %v1651_v39, %v1658_v30  ;;  %v11651_v62 = vcombine.low %v1668_v40, %v1675_v34  ;;  %v1709_v63 = vrot.slane %v1695_v46, %v11562_v9  ;;  %v1711_v1 = vcombine.low %v1014_v44, %v1013_v37 }
  0x36   : > { %v11654_v2 = vcombine.low %v1685_v48, %v1692_v27  ;;  %v1712_v3 = vcombine.low %v1015_v50, %v9895_v41  ;;  %v1030_v6 = vrot.slane %v459_v33, %v11562_v9  ;;  %v1037_v7 = vrot.slane %v1023_v56, %v11562_v9  ;;  %v462_v27 = vld [vmem:[#allocation2 + $0x138] sm:$0xff]  ;;  %v463_v48 = vld [vmem:[#allocation2 + $0x140] sm:$0xff] }
  0x37   : > { %17129 = vst [vmem:[#allocation4_spill] sm:$0xff] %v11649_v61  ;;  %17130 = vst [vmem:[#allocation5_spill] sm:$0xff] %v11651_v62  ;;  %v16814_v8 = vrot.slane %v11649_v61, 1  ;;  %v2048_v10 = vrot.slane %v11651_v62, 1  ;;  %v11660_v11 = vcombine.low %v1702_v55, %v1709_v63  ;;  %v1719_v13 = vrot.slane %v1711_v1, %v11562_v9  ;;  %v11690_v55 = vld [vmem:[%s11556_s30] sm:$0xff]  }
  0x38   : > { %17131 = vst [vmem:[#allocation6_spill] sm:$0xff] %v11654_v2  ;;  %v2050_v14 = vrot.slane %v11654_v2, 1  ;;  %v1726_v15 = vrot.slane %v1712_v3, %v11562_v9  ;;  %v16813_v16 = vrot.slane %v11649_v61, 2  ;;  %v2253_v17 = vrot.slane %v11651_v62, 2 }
  0x39   : > { %17132 = vst [vmem:[#allocation7_spill] sm:$0xff] %v11660_v11  ;;  %v2049_v18 = vsel %vm2002_vm3, %v16814_v8, %v2048_v10  ;;  %v2052_v19 = vrot.slane %v11660_v11, 1  ;;  %v2255_v20 = vrot.slane %v11654_v2, 2  ;;  %v2257_v21 = vrot.slane %v11660_v11, 2 }
  0x3a   : > { %v2051_v22 = vsel %vm2002_vm3, %v2048_v10, %v2050_v14  ;;  %v11674_v23 = vcombine.low %v1719_v13, %v1726_v15  ;;  %v2254_v24 = vsel %vm2207_vm4, %v16813_v16, %v2253_v17  ;;  %v1038_v26 = vcombine.high %v1030_v6, %v1030_v6  ;;  %v9896_v10 = vld.sshfl [vmem:[#allocation2 + $0x130] sm:$0x3 pattern:$0x76325410] }
  0x3b   : > { %v10943_v28 = vpack.i.bf16 %v2051_v22, %v2049_v18  ;;  %v2053_v29 = vsel %vm2002_vm3, %v2050_v14, %v2052_v19  ;;  %v2256_v30 = vsel %vm2207_vm4, %v2253_v17, %v2255_v20  ;;  %v2258_v31 = vsel %vm2207_vm4, %v2255_v20, %v2257_v21 }
  0x3c   : > { %17133 = vst [vmem:[#allocation8_spill] sm:$0xff] %v11674_v23  ;;  %v2054_v32 = vrot.slane %v11674_v23, 1  ;;  %v10948_v33 = vpack.i.bf16 %v2256_v30, %v2254_v24  ;;  %v2259_v34 = vrot.slane %v11674_v23, 2  ;;  %v1039_v35 = vcombine.high %v1037_v7, %v1037_v7 }
  0x3d   : > { %10944 = vrot.lane.b32.xlu0 %v10943_v28, %s11397_s8  ;;  %v1040_v37 = vcombine.high %v460_v25, %v460_v25  ;;  %v1047_v38 = vrot.slane %v460_v25, %v11562_v9  ;;  %v1728_v39 = vcombine.low %v1030_v6, %v1038_v26  ;;  %v1064_v40 = vcombine.high %v462_v27, %v462_v27 }
  0x3e   : > { %v2055_v41 = vsel %vm2002_vm3, %v2052_v19, %v2054_v32  ;;  %v2260_v44 = vsel %vm2207_vm4, %v2257_v21, %v2259_v34  ;;  %v1729_v46 = vcombine.low %v1037_v7, %v1039_v35  ;;  %v1071_v50 = vrot.slane %v462_v27, %v11562_v9 }
  0x3f   : > { %v10953_v56 = vpack.i.bf16 %v2055_v41, %v2053_v29  ;;  %v10958_v63 = vpack.i.bf16 %v2260_v44, %v2258_v31  ;;  %v1054_v1 = vrot.slane %v1040_v37, %v11562_v9  ;;  %v1055_v3 = vcombine.high %v1047_v38, %v1047_v38  ;;  %v465_v29 = vld [vmem:[#allocation2 + $0x150] sm:$0xff]  ;;  %v466_v41 = vld [vmem:[#allocation2 + $0x158] sm:$0xff] }
  0x40   : > { %v1736_v13 = vrot.slane %v1728_v39, %v11562_v9  ;;  %v1743_v6 = vrot.slane %v1729_v46, %v11562_v9  ;;  %v1078_v14 = vrot.slane %v1064_v40, %v11562_v9  ;;  %v1079_v15 = vcombine.high %v1071_v50, %v1071_v50  ;;  %v9897_v40 = vld.sshfl [vmem:[#allocation2 + $0x148] sm:$0x3 pattern:$0x76325410] }
  0x41   : > { %10954 = vrot.lane.b32.xlu1 %v10953_v56, %s11397_s8  ;;  %10949 = vrot.lane.b32.xlu0 %v10948_v33, %s11398_s9  ;;  %v1056_v7 = vcombine.high %v1054_v1, %v1054_v1  ;;  %v1745_v17 = vcombine.low %v1047_v38, %v1055_v3  ;;  %v1081_v18 = vcombine.high %v463_v48, %v463_v48  ;;  %v10080_v19 = vunpack.c.l.bf16 %v11690_v55 }
  0x42   : > { %v11699_v20 = vcombine.low %v1736_v13, %v1743_v6  ;;  %v1080_v21 = vcombine.high %v1078_v14, %v1078_v14  ;;  %v1088_v22 = vrot.slane %v463_v48, %v11562_v9  ;;  %v1762_v24 = vcombine.low %v9896_v10, %v1071_v50 }
  0x43   : > { %v1746_v25 = vcombine.low %v1054_v1, %v1056_v7  ;;  %v1753_v26 = vrot.slane %v1745_v17, %v11562_v9  ;;  %v1095_v27 = vrot.slane %v1081_v18, %v11562_v9  ;;  %v1763_v28 = vcombine.low %v1079_v15, %v1078_v14  ;;  %391 = vst.msk [vmem:[#allocation2 + $0x19] sm:$0xff] %vm280_vm0, %v10080_v19 }
  0x44   : > { %17134 = vst [vmem:[#allocation9_spill] sm:$0xff] %v11699_v20  ;;  %v2056_v30 = vrot.slane %v11699_v20, 1  ;;  %v2261_v31 = vrot.slane %v11699_v20, 2  ;;  %v1096_v33 = vcombine.high %v1088_v22, %v1088_v22  ;;  %v1770_v35 = vrot.slane %v1762_v24, %v11562_v9 }
  0x45   : > { %10959 = vrot.lane.b32.xlu1 %v10958_v63, %s11398_s9  ;;  %v1760_v37 = vrot.slane %v1746_v25, %v11562_v9  ;;  %v1777_v38 = vrot.slane %v1763_v28, %v11562_v9  ;;  %v1779_v39 = vcombine.low %v1080_v21, %v1088_v22  ;;  %v1097_v44 = vcombine.high %v1095_v27, %v1095_v27 }
  0x46   : > { %v2057_v46 = vsel %vm2002_vm3, %v2054_v32, %v2056_v30  ;;  %v2262_v48 = vsel %vm2207_vm4, %v2259_v34, %v2261_v31  ;;  %v1780_v50 = vcombine.low %v1096_v33, %v1095_v27  ;;  %v1105_v56 = vcombine.high %v465_v29, %v465_v29 }
  0x47   : > { %v11713_v1 = vcombine.low %v1753_v26, %v1760_v37  ;;  %v11715_v3 = vcombine.low %v1770_v35, %v1777_v38  ;;  %v1787_v63 = vrot.slane %v1779_v39, %v11562_v9  ;;  %v1112_v10 = vrot.slane %v465_v29, %v11562_v9 }
  0x48   : > { %v1794_v13 = vrot.slane %v1780_v50, %v11562_v9  ;;  %v1119_v6 = vrot.slane %v1105_v56, %v11562_v9  ;;  %v1129_v14 = vrot.slane %v466_v41, %v11562_v9  ;;  %v1796_v15 = vcombine.low %v1097_v44, %v9897_v40  ;;  %v468_v44 = vld [vmem:[#allocation2 + $0x168] sm:$0xff]  ;;  %v471_v50 = vld [vmem:[#allocation2 + $0x180] sm:$0xff] }
  0x49   : > { %17135 = vst [vmem:[#allocation10_spill] sm:$0xff] %v11713_v1  ;;  %17136 = vst [vmem:[#allocation11_spill] sm:$0xff] %v11715_v3  ;;  %v2058_v32 = vrot.slane %v11713_v1, 1  ;;  %v2263_v34 = vrot.slane %v11713_v1, 2  ;;  %v2060_v7 = vrot.slane %v11715_v3, 1  ;;  %v2265_v17 = vrot.slane %v11715_v3, 2 }
  0x4a   : > { %v11726_v18 = vcombine.low %v1787_v63, %v1794_v13  ;;  %v1120_v19 = vcombine.high %v1112_v10, %v1112_v10  ;;  %v1121_v21 = vcombine.high %v1119_v6, %v1119_v6  ;;  %v1137_v22 = vcombine.high %v1129_v14, %v1129_v14 }
  0x4b   : > { %v2059_v24 = vsel %vm2002_vm3, %v2056_v30, %v2058_v32  ;;  %v2264_v25 = vsel %vm2207_vm4, %v2261_v31, %v2263_v34  ;;  %v2061_v26 = vsel %vm2002_vm3, %v2058_v32, %v2060_v7  ;;  %v2266_v27 = vsel %vm2207_vm4, %v2263_v34, %v2265_v17  ;;  %v9898_v32 = vld.sshfl [vmem:[#allocation2 + $0x160] sm:$0x3 pattern:$0x76325410] }
  0x4c   : > { %17137 = vst [vmem:[#allocation12_spill] sm:$0xff] %v11726_v18  ;;  %v10963_v28 = vpack.i.bf16 %v2059_v24, %v2057_v46  ;;  %v10968_v29 = vpack.i.bf16 %v2264_v25, %v2262_v48  ;;  %v2062_v33 = vrot.slane %v11726_v18, 1  ;;  %v2267_v35 = vrot.slane %v11726_v18, 2  ;;  %v469_v46 = vld [vmem:[#allocation2 + $0x170] sm:$0xff] }
  0x4d   : > { %v1797_v37 = vcombine.low %v1112_v10, %v1120_v19  ;;  %v1804_v38 = vrot.slane %v1796_v15, %v11562_v9  ;;  %v1813_v39 = vcombine.low %v1119_v6, %v1121_v21  ;;  %v1814_v40 = vcombine.low %v1129_v14, %v1137_v22  ;;  %v10142_v14 = vld [vmem:[%s11556_s30 + $0x8] sm:$0xff]  }
  0x4e   : > { %10964 = vrot.lane.b32.xlu0 %v10963_v28, %s11397_s8  ;;  %10969 = vrot.lane.b32.xlu1 %v10968_v29, %s11398_s9  ;;  %v2063_v30 = vsel %vm2002_vm3, %v2060_v7, %v2062_v33  ;;  %v2268_v31 = vsel %vm2207_vm4, %v2265_v17, %v2267_v35  ;;  %v1122_v48 = vcombine.high %v466_v41, %v466_v41  ;;  %v10081_v56 = vunpack.c.h.bf16 %v11690_v55 }
  0x4f   : > { %v10973_v63 = vpack.i.bf16 %v2063_v30, %v2061_v26  ;;  %v10978_v10 = vpack.i.bf16 %v2268_v31, %v2266_v27  ;;  %v1811_v13 = vrot.slane %v1797_v37, %v11562_v9  ;;  %v1821_v6 = vrot.slane %v1813_v39, %v11562_v9 }
  0x50   : > { %v1828_v15 = vrot.slane %v1814_v40, %v11562_v9  ;;  %v1136_v34 = vrot.slane %v1122_v48, %v11562_v9  ;;  %v1146_v7 = vcombine.high %v468_v44, %v468_v44  ;;  %v1153_v17 = vrot.slane %v468_v44, %v11562_v9  ;;  %392 = vst.msk [vmem:[#allocation2 + $0x21] sm:$0xff] %vm280_vm0, %v10081_v56 }
  0x51   : > { %v11747_v41 = vcombine.low %v1804_v38, %v1811_v13  ;;  %v1170_v55 = vrot.slane %v469_v46, %v11562_v9  ;;  %v1163_v19 = vcombine.high %v469_v46, %v469_v46  ;;  %v1187_v21 = vcombine.high %v471_v50, %v471_v50 }
  0x52   : > { %10974 = vrot.lane.b32.xlu0 %v10973_v63, %s11397_s8  ;;  %10979 = vrot.lane.b32.xlu1 %v10978_v10, %s11398_s9  ;;  %v11752_v22 = vcombine.low %v1821_v6, %v1828_v15  ;;  %v1138_v24 = vcombine.high %v1136_v34, %v1136_v34  ;;  %v1160_v25 = vrot.slane %v1146_v7, %v11562_v9  ;;  %v10084_v26 = vunpack.c.l.bf16 %v10142_v14  ;;  %v472_v6 = vld [vmem:[#allocation2 + $0x188] sm:$0xff] }
  0x53   : > { %17138 = vst [vmem:[#allocation13_spill] sm:$0xff] %v11747_v41  ;;  %v2064_v27 = vrot.slane %v11747_v41, 1  ;;  %v2269_v28 = vrot.slane %v11747_v41, 2  ;;  %v1161_v29 = vcombine.high %v1153_v17, %v1153_v17  ;;  %v1831_v37 = vcombine.low %v9898_v32, %v1153_v17 }
  0x54   : > { %17139 = vst [vmem:[#allocation14_spill] sm:$0xff] %v11752_v22  ;;  %v2066_v38 = vrot.slane %v11752_v22, 1  ;;  %v2271_v39 = vrot.slane %v11752_v22, 2  ;;  %v1162_v40 = vcombine.high %v1160_v25, %v1160_v25  ;;  %v1830_v44 = vcombine.low %v1136_v34, %v1138_v24  ;;  %393 = vst.msk [vmem:[#allocation2 + $0x31] sm:$0xff] %vm280_vm0, %v10084_v26 }
  0x55   : > { %v2065_v30 = vsel %vm2002_vm3, %v2062_v33, %v2064_v27  ;;  %v2270_v31 = vsel %vm2207_vm4, %v2267_v35, %v2269_v28  ;;  %v1845_v46 = vrot.slane %v1831_v37, %v11562_v9  ;;  %v1847_v48 = vcombine.low %v1161_v29, %v1160_v25  ;;  %v9899_v17 = vld.sshfl [vmem:[#allocation2 + $0x178] sm:$0x3 pattern:$0x76325410] }
  0x56   : > { %v2067_v56 = vsel %vm2002_vm3, %v2064_v27, %v2066_v38  ;;  %v2272_v63 = vsel %vm2207_vm4, %v2269_v28, %v2271_v39  ;;  %v1838_v10 = vrot.slane %v1830_v44, %v11562_v9  ;;  %v1848_v13 = vcombine.low %v1162_v40, %v1170_v55 }
  0x57   : > { %v10983_v15 = vpack.i.bf16 %v2067_v56, %v2065_v30  ;;  %v10988_v32 = vpack.i.bf16 %v2272_v63, %v2270_v31  ;;  %v1855_v34 = vrot.slane %v1847_v48, %v11562_v9  ;;  %v1177_v7 = vrot.slane %v1163_v19, %v11562_v9 }
  0x58   : > { %v11768_v33 = vcombine.low %v1838_v10, %v1845_v46  ;;  %v1862_v35 = vrot.slane %v1848_v13, %v11562_v9  ;;  %v1178_v24 = vcombine.high %v1170_v55, %v1170_v55  ;;  %v1194_v25 = vrot.slane %v471_v50, %v11562_v9 }
  0x59   : > { %10984 = vrot.lane.b32.xlu0 %v10983_v15, %s11397_s8  ;;  %10989 = vrot.lane.b32.xlu1 %v10988_v32, %s11398_s9  ;;  %v1179_v26 = vcombine.high %v1177_v7, %v1177_v7  ;;  %v1201_v27 = vrot.slane %v1187_v21, %v11562_v9  ;;  %v1204_v28 = vcombine.high %v472_v6, %v472_v6  ;;  %v10085_v29 = vunpack.c.h.bf16 %v10142_v14  ;;  %v9900_v15 = vld.sshfl [vmem:[#allocation2 + $0x190] sm:$0x3 pattern:$0x76325410] }
  0x5a   : > { %17140 = vst [vmem:[#allocation15_spill] sm:$0xff] %v11768_v33  ;;  %v11775_v37 = vcombine.low %v1855_v34, %v1862_v35  ;;  %v2068_v19 = vrot.slane %v11768_v33, 1  ;;  %v2273_v40 = vrot.slane %v11768_v33, 2  ;;  %v1202_v44 = vcombine.high %v1194_v25, %v1194_v25 }
  0x5b   : > { %v1203_v30 = vcombine.high %v1201_v27, %v1201_v27  ;;  %v1864_v55 = vcombine.low %v1178_v24, %v1177_v7  ;;  %v1865_v31 = vcombine.low %v1179_v26, %v9899_v17  ;;  %v1211_v50 = vrot.slane %v472_v6, %v11562_v9  ;;  %394 = vst.msk [vmem:[#allocation2 + $0x39] sm:$0xff] %vm280_vm0, %v10085_v29 }
  0x5c   : > { %17141 = vst [vmem:[#allocation16_spill] sm:$0xff] %v11775_v37  ;;  %v2069_v46 = vsel %vm2002_vm3, %v2066_v38, %v2068_v19  ;;  %v2070_v21 = vrot.slane %v11775_v37, 1  ;;  %v2274_v14 = vsel %vm2207_vm4, %v2271_v39, %v2273_v40  ;;  %v2275_v48 = vrot.slane %v11775_v37, 2 }
  0x5d   : > { %v1872_v56 = vrot.slane %v1864_v55, %v11562_v9  ;;  %v1879_v63 = vrot.slane %v1865_v31, %v11562_v9  ;;  %v1881_v10 = vcombine.low %v1194_v25, %v1202_v44  ;;  %v1882_v13 = vcombine.low %v1201_v27, %v1203_v30 }
  0x5e   : > { %v2071_v32 = vsel %vm2002_vm3, %v2068_v19, %v2070_v21  ;;  %v2276_v6 = vsel %vm2207_vm4, %v2273_v40, %v2275_v48  ;;  %v1218_v34 = vrot.slane %v1204_v28, %v11562_v9  ;;  %v1219_v38 = vcombine.high %v1211_v50, %v1211_v50 }
  0x5f   : > { %v10993_v7 = vpack.i.bf16 %v2071_v32, %v2069_v46  ;;  %v10998_v35 = vpack.i.bf16 %v2276_v6, %v2274_v14  ;;  %v11790_v17 = vcombine.low %v1872_v56, %v1879_v63  ;;  %v1889_v39 = vrot.slane %v1881_v10, %v11562_v9 }
  0x60   : > { %v1896_v24 = vrot.slane %v1882_v13, %v11562_v9  ;;  %v1220_v26 = vcombine.high %v1218_v34, %v1218_v34  ;;  %v1898_v29 = vcombine.low %v1211_v50, %v1219_v38  ;;  %v1915_v25 = vcombine.low %v9900_v15, %v11582_v36  ;;  %v426_v15 = vld [vmem:[#allocation2 + $0x18] sm:$0xff] }
  0x61   : > { %17142 = vst [vmem:[#allocation17_spill] sm:$0xff] %v11790_v17  ;;  %10994 = vrot.lane.b32.xlu0 %v10993_v7, %s11397_s8  ;;  %10999 = vrot.lane.b32.xlu1 %v10998_v35, %s11398_s9  ;;  %v2072_v27 = vrot.slane %v11790_v17, 1  ;;  %v2277_v28 = vrot.slane %v11790_v17, 2  ;;  %v1270_v19 = vcombine.low %v11599_v45, %v547_v52  ;;  %v1277_v40 = vrot.slane %v11616_v54, %v11562_v9 }
  0x62   : > { %v11805_v44 = vcombine.low %v1889_v39, %v1896_v24  ;;  %v1899_v30 = vcombine.low %v1218_v34, %v1220_v26  ;;  %v1906_v36 = vrot.slane %v1898_v29, %v11562_v9  ;;  %v1923_v55 = vrot.slane %v1915_v25, %v11562_v9 }
  0x63   : > { %v2073_v31 = vsel %vm2002_vm3, %v2070_v21, %v2072_v27  ;;  %v2278_v50 = vsel %vm2207_vm4, %v2275_v48, %v2277_v28  ;;  %v1284_v46 = vrot.slane %v1270_v19, %v11562_v9  ;;  %v1287_v45 = vcombine.low %v11602_v47, %v564_v57 }
  0x64   : > { %17143 = vst [vmem:[#allocation18_spill] sm:$0xff] %v11805_v44  ;;  %v2074_v52 = vrot.slane %v11805_v44, 1  ;;  %v2279_v54 = vrot.slane %v11805_v44, 2  ;;  %v1913_v14 = vrot.slane %v1899_v30, %v11562_v9  ;;  %v11822_v56 = vcombine.low %v1923_v55, %v1930_v4 }
  0x65   : > { %v11824_v21 = vcombine.low %v1277_v40, %v1284_v46  ;;  %v1294_v48 = vrot.slane %v11622_v59, %v11562_v9  ;;  %v1301_v63 = vrot.slane %v1287_v45, %v11562_v9  ;;  %v1932_v47 = vcombine.low %v1244_v53, %v11591_v42  ;;  %v9901_v4 = vld.sshfl [vmem:[#allocation2 + $0x1a8] sm:$0x3 pattern:$0x76325410] }
  0x66   : > { %17144 = vst [vmem:[#allocation19_spill] sm:$0xff] %v11822_v56  ;;  %v2075_v57 = vsel %vm2002_vm3, %v2072_v27, %v2074_v52  ;;  %v2280_v10 = vsel %vm2207_vm4, %v2277_v28, %v2279_v54  ;;  %v11835_v13 = vcombine.low %v1906_v36, %v1913_v14  ;;  %v2078_v51 = vrot.slane %v11822_v56, 1  ;;  %v9884_v40 = vld.sshfl [vmem:[#allocation2 + $0x10] sm:$0x3 pattern:$0x76325410] }
  0x67   : > { %v11003_v32 = vpack.i.bf16 %v2075_v57, %v2073_v31  ;;  %v11008_v6 = vpack.i.bf16 %v2280_v10, %v2278_v50  ;;  %v2283_v59 = vrot.slane %v11822_v56, 2  ;;  %v11839_v34 = vcombine.low %v1294_v48, %v1301_v63 }
  0x68   : > { %17145 = vst [vmem:[#allocation20_spill] sm:$0xff] %v11835_v13  ;;  %v2076_v38 = vrot.slane %v11835_v13, 1  ;;  %v2281_v42 = vrot.slane %v11835_v13, 2  ;;  %v1940_v43 = vrot.slane %v1932_v47, %v11562_v9  ;;  %v1947_v53 = vrot.slane %v11625_v60, %v11562_v9 }
  0x69   : > { %17146 = vst [vmem:[#allocation21_spill] sm:$0xff] %v11839_v34  ;;  %11004 = vrot.lane.b32.xlu0 %v11003_v32, %s11397_s8  ;;  %11009 = vrot.lane.b32.xlu1 %v11008_v6, %s11398_s9  ;;  %v1949_v7 = vcombine.low %v1261_v58, %v9901_v4  ;;  %v1960_v35 = vrot.slane %v11824_v21, 4  ;;  %v16812_v39 = vrot.slane %v11839_v34, 4  ;;  %v572_v24 = vcombine.high %v426_v15, %v426_v15  ;;  %v427_v4 = vld [vmem:[#allocation2 + $0x20] sm:$0xff] }
  0x6a   : > { %v2077_v26 = vsel %vm2002_vm3, %v2074_v52, %v2076_v38  ;;  %v2079_v29 = vsel %vm2002_vm3, %v2076_v38, %v2078_v51  ;;  %v2282_v25 = vsel %vm2207_vm4, %v2279_v54, %v2281_v42  ;;  %v2284_v60 = vsel %vm2207_vm4, %v2281_v42, %v2283_v59  ;;  %v429_v42 = vld [vmem:[#allocation2 + $0x30] sm:$0xff] }
  0x6b   : > { %v11013_v27 = vpack.i.bf16 %v2079_v29, %v2077_v26  ;;  %v11018_v28 = vpack.i.bf16 %v2284_v60, %v2282_v25  ;;  %v11857_v19 = vcombine.low %v1940_v43, %v1947_v53  ;;  %v11860_v49 = vrot.slane %v1949_v7, %v11562_v9  ;;  %v10143_v43 = vld [vmem:[%s11556_s30 + $0x10] sm:$0xff]   ;;  %v430_v25 = vld [vmem:[#allocation2 + $0x38] sm:$0xff] }
  0x6c   : > { %v7982_v58 = vsel %vm1959_vm5, %v16812_v39, %v1960_v35  ;;  %v579_v30 = vrot.slane %v426_v15, %v11562_v9  ;;  %v586_v36 = vrot.slane %v572_v24, %v11562_v9  ;;  %v2003_v55 = vrot.slane %v11824_v21, 1 }
  0x6d   : > { %17147 = vst [vmem:[#allocation22_spill] sm:$0xff] %v11857_v19  ;;  %11014 = vrot.lane.b32.xlu0 %v11013_v27, %s11397_s8  ;;  %11019 = vrot.lane.b32.xlu1 %v11018_v28, %s11398_s9  ;;  %v1961_v31 = vsel %vm1959_vm5, %v1960_v35, %v11860_v49  ;;  %v2080_v50 = vrot.slane %v11857_v19, 1  ;;  %v2285_v46 = vrot.slane %v11857_v19, 2  ;;  %v2004_v45 = vrot.slane %v11839_v34, 1 }
  0x6e   : > { %v2082_v52 = vrot.slane %v1961_v31, 1  ;;  %v11875_v54 = vpack.c.bf16 %v7982_v58, %v1961_v31  ;;  %v2287_v14 = vrot.slane %v1961_v31, 2  ;;  %v587_v48 = vcombine.high %v579_v30, %v579_v30  ;;  %v9885_v31 = vld.sshfl [vmem:[#allocation2 + $0x28] sm:$0x3 pattern:$0x76325410] }
  0x6f   : > { %v2081_v63 = vsel %vm2002_vm3, %v2078_v51, %v2080_v50  ;;  %v2286_v47 = vsel %vm2207_vm4, %v2283_v59, %v2285_v46  ;;  %v1303_v57 = vcombine.low %v9884_v40, %v579_v30  ;;  %v2005_v10 = vsel %vm2002_vm3, %v2003_v55, %v2004_v45 }
  0x70   : > { %17148 = vst [vmem:[#allocation23_spill] sm:$0xff] %v11875_v54  ;;  %v2083_v15 = vsel %vm2002_vm3, %v2080_v50, %v2082_v52  ;;  %v2288_v32 = vsel %vm2207_vm4, %v2285_v46, %v2287_v14  ;;  %v1304_v6 = vcombine.low %v587_v48, %v586_v36  ;;  %v2208_v38 = vrot.slane %v11824_v21, 2 }
  0x71   : > { %v11023_v53 = vpack.i.bf16 %v2083_v15, %v2081_v63  ;;  %v11028_v7 = vpack.i.bf16 %v2288_v32, %v2286_v47  ;;  %v1311_v35 = vrot.slane %v1303_v57, %v11562_v9  ;;  %v2209_v51 = vrot.slane %v11839_v34, 2 }
  0x72   : > { %v1318_v59 = vrot.slane %v1304_v6, %v11562_v9  ;;  %v588_v24 = vcombine.high %v586_v36, %v586_v36  ;;  %v589_v26 = vcombine.high %v427_v4, %v427_v4  ;;  %v596_v29 = vrot.slane %v427_v4, %v11562_v9 }
  0x73   : > { %11024 = vrot.lane.b32.xlu0 %v11023_v53, %s11397_s8  ;;  %11029 = vrot.lane.b32.xlu1 %v11028_v7, %s11398_s9  ;;  %v2210_v60 = vsel %vm2207_vm4, %v2208_v38, %v2209_v51  ;;  %v620_v27 = vrot.slane %v429_v42, %v11562_v9  ;;  %v10088_v28 = vunpack.c.l.bf16 %v10143_v43  ;;  %v613_v58 = vcombine.high %v429_v42, %v429_v42 }
  0x74   : > { %v11892_v40 = vcombine.low %v1311_v35, %v1318_v59  ;;  %v603_v30 = vrot.slane %v589_v26, %v11562_v9  ;;  %v604_v55 = vcombine.high %v596_v29, %v596_v29  ;;  %v1320_v36 = vcombine.low %v588_v24, %v596_v29  ;;  %v10144_v24 = vld [vmem:[%s11556_s30 + $0x18] sm:$0xff]   ;;  %v10145_v26 = vld [vmem:[%s11556_s30 + $0x20] sm:$0xff]  }
  0x75   : > { %v628_v50 = vcombine.high %v620_v27, %v620_v27  ;;  %395 = vst.msk [vmem:[#allocation2 + $0x49] sm:$0xff] %vm280_vm0, %v10088_v28  ;;  %v627_v46 = vrot.slane %v613_v58, %v11562_v9  ;;  %v630_v48 = vcombine.high %v430_v25, %v430_v25  ;;  %v637_v63 = vrot.slane %v430_v25, %v11562_v9 }
  0x76   : > { %17149 = vst [vmem:[#allocation24_spill] sm:$0xff] %v11892_v40  ;;  %v2006_v47 = vrot.slane %v11892_v40, 1  ;;  %v2211_v57 = vrot.slane %v11892_v40, 2  ;;  %v605_v4 = vcombine.high %v603_v30, %v603_v30  ;;  %v1321_v15 = vcombine.low %v604_v55, %v603_v30 }
  0x77   : > { %2164 = vrot.lane.b32.xlu0 %v2082_v52, %s11397_s8  ;;  %2369 = vrot.lane.b32.xlu1 %v2287_v14, %s11398_s9  ;;  %v1328_v32 = vrot.slane %v1320_v36, %v11562_v9  ;;  %v1338_v6 = vcombine.low %v620_v27, %v628_v50  ;;  %v629_v38 = vcombine.high %v627_v46, %v627_v46  ;;  %v10089_v42 = vunpack.c.h.bf16 %v10143_v43 }
  0x78   : > { %v2007_v53 = vsel %vm2002_vm3, %v2004_v45, %v2006_v47  ;;  %v2212_v7 = vsel %vm2207_vm4, %v2209_v51, %v2211_v57  ;;  %v1335_v35 = vrot.slane %v1321_v15, %v11562_v9  ;;  %v1337_v59 = vcombine.low %v605_v4, %v9885_v31  ;;  %v9886_v51 = vld.sshfl [vmem:[#allocation2 + $0x40] sm:$0x3 pattern:$0x76325410] }
  0x79   : > { %v11033_v29 = vpack.i.bf16 %v2007_v53, %v2005_v10  ;;  %v11038_v25 = vpack.i.bf16 %v2212_v7, %v2210_v60  ;;  %v1352_v52 = vrot.slane %v1338_v6, %v11562_v9  ;;  %v644_v14 = vrot.slane %v630_v48, %v11562_v9  ;;  %396 = vst.msk [vmem:[#allocation2 + $0x51] sm:$0xff] %vm280_vm0, %v10089_v42 }
  0x7a   : > { %v11911_v27 = vcombine.low %v1328_v32, %v1335_v35  ;;  %v1345_v43 = vrot.slane %v1337_v59, %v11562_v9  ;;  %v645_v45 = vcombine.high %v637_v63, %v637_v63  ;;  %v1354_v28 = vcombine.low %v627_v46, %v629_v38 }
  0x7b   : > { %11034 = vrot.lane.b32.xlu0 %v11033_v29, %s11397_s8  ;;  %11039 = vrot.lane.b32.xlu1 %v11038_v25, %s11398_s9  ;;  %v646_v58 = vcombine.high %v644_v14, %v644_v14  ;;  %v10092_v10 = vunpack.c.l.bf16 %v10144_v24  ;;  %v10093_v60 = vunpack.c.h.bf16 %v10144_v24  ;;  %v10096_v30 = vunpack.c.l.bf16 %v10145_v26 }
  0x7c   : > { %17150 = vst [vmem:[#allocation25_spill] sm:$0xff] %v11911_v27  ;;  %v11916_v55 = vcombine.low %v1345_v43, %v1352_v52  ;;  %v2008_v36 = vrot.slane %v11911_v27, 1  ;;  %v2213_v31 = vrot.slane %v11911_v27, 2  ;;  %v432_v50 = vld [vmem:[#allocation2 + $0x48] sm:$0xff]  ;;  %v1355_v48 = vcombine.low %v637_v63, %v645_v45 }
  0x7d   : > { %v661_v4 = vrot.slane %v432_v50, %v11562_v9  ;;  %v1362_v46 = vrot.slane %v1354_v28, %v11562_v9  ;;  %v1371_v15 = vcombine.low %v644_v14, %v646_v58  ;;  %v654_v32 = vcombine.high %v432_v50, %v432_v50  ;;  %397 = vst.msk [vmem:[#allocation2 + $0x61] sm:$0xff] %vm280_vm0, %v10092_v10  ;;  %v11935_v14 = vld [vmem:[%s11556_s30 + $0x28] sm:$0xff]  }
  0x7e   : > { %17151 = vst [vmem:[#allocation26_spill] sm:$0xff] %v11916_v55  ;;  %398 = vst.msk [vmem:[#allocation2 + $0x69] sm:$0xff] %vm280_vm0, %v10093_v60  ;;  %v2009_v6 = vsel %vm2002_vm3, %v2006_v47, %v2008_v36  ;;  %v2010_v38 = vrot.slane %v11916_v55, 1  ;;  %v2214_v42 = vsel %vm2207_vm4, %v2211_v57, %v2213_v31  ;;  %v2215_v63 = vrot.slane %v11916_v55, 2 }
  0x7f   : > { %399 = vst.msk [vmem:[#allocation2 + $0x79] sm:$0xff] %vm280_vm0, %v10096_v30  ;;  %v1369_v53 = vrot.slane %v1355_v48, %v11562_v9  ;;  %v1372_v7 = vcombine.low %v9886_v51, %v661_v4  ;;  %v1379_v35 = vrot.slane %v1371_v15, %v11562_v9  ;;  %v668_v59 = vrot.slane %v654_v32, %v11562_v9 }
  0x80   : > { %v2011_v24 = vsel %vm2002_vm3, %v2008_v36, %v2010_v38  ;;  %v2216_v29 = vsel %vm2207_vm4, %v2213_v31, %v2215_v63  ;;  %v433_v25 = vld [vmem:[#allocation2 + $0x50] sm:$0xff]  ;;  %v669_v52 = vcombine.high %v661_v4, %v661_v4  ;;  %v10097_v47 = vunpack.c.h.bf16 %v10145_v26 }
  0x81   : > { %v11043_v43 = vpack.i.bf16 %v2011_v24, %v2009_v6  ;;  %v11048_v57 = vpack.i.bf16 %v2216_v29, %v2214_v42  ;;  %v11937_v45 = vcombine.low %v1362_v46, %v1369_v53  ;;  %v1386_v28 = vrot.slane %v1372_v7, %v11562_v9 }
  0x82   : > { %v670_v51 = vcombine.high %v668_v59, %v668_v59  ;;  %v671_v58 = vcombine.high %v433_v25, %v433_v25  ;;  %v678_v10 = vrot.slane %v433_v25, %v11562_v9  ;;  %v1388_v60 = vcombine.low %v669_v52, %v668_v59  ;;  %400 = vst.msk [vmem:[#allocation2 + $0x81] sm:$0xff] %vm280_vm0, %v10097_v47 }
  0x83   : > { %17152 = vst [vmem:[#allocation27_spill] sm:$0xff] %v11937_v45  ;;  %11044 = vrot.lane.b32.xlu0 %v11043_v43, %s11397_s8  ;;  %11049 = vrot.lane.b32.xlu1 %v11048_v57, %s11398_s9  ;;  %v11944_v26 = vcombine.low %v1379_v35, %v1386_v28  ;;  %v2012_v30 = vrot.slane %v11937_v45, 1  ;;  %v2217_v36 = vrot.slane %v11937_v45, 2  ;;  %v10100_v31 = vunpack.c.l.bf16 %v11935_v14 }
  0x84   : > { %v685_v50 = vrot.slane %v671_v58, %v11562_v9  ;;  %v686_v48 = vcombine.high %v678_v10, %v678_v10  ;;  %v1389_v4 = vcombine.low %v670_v51, %v678_v10  ;;  %v1396_v46 = vrot.slane %v1388_v60, %v11562_v9  ;;  %v435_v15 = vld [vmem:[#allocation2 + $0x60] sm:$0xff]  ;;  %v9887_v35 = vld.sshfl [vmem:[#allocation2 + $0x58] sm:$0x3 pattern:$0x76325410] }
  0x85   : > { %17153 = vst [vmem:[#allocation28_spill] sm:$0xff] %v11944_v26  ;;  %v436_v32 = vld [vmem:[#allocation2 + $0x68] sm:$0xff]  ;;  %v2013_v6 = vsel %vm2002_vm3, %v2010_v38, %v2012_v30  ;;  %v2014_v42 = vrot.slane %v11944_v26, 1  ;;  %v2218_v53 = vsel %vm2207_vm4, %v2215_v63, %v2217_v36  ;;  %v2219_v7 = vrot.slane %v11944_v26, 2  ;;  %401 = vst.msk [vmem:[#allocation2 + $0x91] sm:$0xff] %vm280_vm0, %v10100_v31 }
  0x86   : > { %v687_v59 = vcombine.high %v685_v50, %v685_v50  ;;  %v1403_v24 = vrot.slane %v1389_v4, %v11562_v9  ;;  %v1405_v29 = vcombine.low %v686_v48, %v685_v50  ;;  %v695_v25 = vcombine.high %v435_v15, %v435_v15  ;;  %v438_v58 = vld [vmem:[#allocation2 + $0x78] sm:$0xff] }
  0x87   : > { %v2015_v52 = vsel %vm2002_vm3, %v2012_v30, %v2014_v42  ;;  %v2220_v47 = vsel %vm2207_vm4, %v2217_v36, %v2219_v7  ;;  %v702_v38 = vrot.slane %v435_v15, %v11562_v9  ;;  %v712_v43 = vcombine.high %v436_v32, %v436_v32 }
  0x88   : > { %v11053_v57 = vpack.i.bf16 %v2015_v52, %v2013_v6  ;;  %v11058_v28 = vpack.i.bf16 %v2220_v47, %v2218_v53  ;;  %v11960_v63 = vcombine.low %v1396_v46, %v1403_v24  ;;  %v1406_v51 = vcombine.low %v687_v59, %v9887_v35 }
  0x89   : > { %v1413_v10 = vrot.slane %v1405_v29, %v11562_v9  ;;  %v709_v60 = vrot.slane %v695_v25, %v11562_v9  ;;  %v710_v31 = vcombine.high %v702_v38, %v702_v38  ;;  %v719_v50 = vrot.slane %v436_v32, %v11562_v9  ;;  %v439_v29 = vld [vmem:[#allocation2 + $0x80] sm:$0xff] }
  0x8a   : > { %17154 = vst [vmem:[#allocation29_spill] sm:$0xff] %v11960_v63  ;;  %11054 = vrot.lane.b32.xlu0 %v11053_v57, %s11397_s8  ;;  %11059 = vrot.lane.b32.xlu1 %v11058_v28, %s11398_s9  ;;  %v1420_v30 = vrot.slane %v1406_v51, %v11562_v9  ;;  %v2016_v36 = vrot.slane %v11960_v63, 1  ;;  %v2221_v48 = vrot.slane %v11960_v63, 2  ;;  %v726_v4 = vrot.slane %v712_v43, %v11562_v9 }
  0x8b   : > { %v711_v46 = vcombine.high %v709_v60, %v709_v60  ;;  %v727_v15 = vcombine.high %v719_v50, %v719_v50  ;;  %v1422_v6 = vcombine.low %v702_v38, %v710_v31  ;;  %v736_v53 = vcombine.high %v438_v58, %v438_v58 }
  0x8c   : > { %v11971_v35 = vcombine.low %v1413_v10, %v1420_v30  ;;  %v2017_v32 = vsel %vm2002_vm3, %v2014_v42, %v2016_v36  ;;  %v2222_v59 = vsel %vm2207_vm4, %v2219_v7, %v2221_v48  ;;  %v728_v24 = vcombine.high %v726_v4, %v726_v4  ;;  %v9888_v7 = vld.sshfl [vmem:[#allocation2 + $0x70] sm:$0x3 pattern:$0x76325410] }
  0x8d   : > { %v1423_v25 = vcombine.low %v709_v60, %v711_v46  ;;  %v1430_v52 = vrot.slane %v1422_v6, %v11562_v9  ;;  %v1439_v47 = vcombine.low %v719_v50, %v727_v15  ;;  %v743_v57 = vrot.slane %v438_v58, %v11562_v9 }
  0x8e   : > { %17155 = vst [vmem:[#allocation30_spill] sm:$0xff] %v11971_v35  ;;  %v2018_v43 = vrot.slane %v11971_v35, 1  ;;  %v2223_v28 = vrot.slane %v11971_v35, 2  ;;  %v1440_v38 = vcombine.low %v726_v4, %v728_v24  ;;  %v750_v51 = vrot.slane %v736_v53, %v11562_v9 }
  0x8f   : > { %v1437_v10 = vrot.slane %v1423_v25, %v11562_v9  ;;  %v1447_v42 = vrot.slane %v1439_v47, %v11562_v9  ;;  %v751_v31 = vcombine.high %v743_v57, %v743_v57  ;;  %v753_v30 = vcombine.high %v439_v29, %v439_v29 }
  0x90   : > { %v2019_v60 = vsel %vm2002_vm3, %v2016_v36, %v2018_v43  ;;  %v2224_v50 = vsel %vm2207_vm4, %v2221_v48, %v2223_v28  ;;  %v1454_v58 = vrot.slane %v1440_v38, %v11562_v9  ;;  %v752_v46 = vcombine.high %v750_v51, %v750_v51 }
  0x91   : > { %v11063_v15 = vpack.i.bf16 %v2019_v60, %v2017_v32  ;;  %v11068_v6 = vpack.i.bf16 %v2224_v50, %v2222_v59  ;;  %v11985_v39 = vcombine.low %v1430_v52, %v1437_v10  ;;  %v760_v4 = vrot.slane %v439_v29, %v11562_v9 }
  0x92   : > { %v11988_v53 = vcombine.low %v1447_v42, %v1454_v58  ;;  %v767_v24 = vrot.slane %v753_v30, %v11562_v9  ;;  %v1456_v25 = vcombine.low %v9888_v7, %v743_v57  ;;  %v1457_v47 = vcombine.low %v751_v31, %v750_v51  ;;  %v441_v31 = vld [vmem:[#allocation2 + $0x90] sm:$0xff] }
  0x93   : > { %17156 = vst [vmem:[#allocation31_spill] sm:$0xff] %v11985_v39  ;;  %11064 = vrot.lane.b32.xlu0 %v11063_v15, %s11397_s8  ;;  %11069 = vrot.lane.b32.xlu1 %v11068_v6, %s11398_s9  ;;  %v2020_v36 = vrot.slane %v11985_v39, 1  ;;  %v2225_v48 = vrot.slane %v11985_v39, 2  ;;  %v768_v32 = vcombine.high %v760_v4, %v760_v4  ;;  %v1473_v59 = vcombine.low %v752_v46, %v760_v4  ;;  %v10147_v15 = vld [vmem:[%s11556_s30 + $0x30] sm:$0xff]  }
  0x94   : > { %17157 = vst [vmem:[#allocation32_spill] sm:$0xff] %v11988_v53  ;;  %v2022_v52 = vrot.slane %v11988_v53, 1  ;;  %v2227_v29 = vrot.slane %v11988_v53, 2  ;;  %v1464_v38 = vrot.slane %v1456_v25, %v11562_v9  ;;  %v1471_v57 = vrot.slane %v1457_v47, %v11562_v9 }
  0x95   : > { %v2021_v51 = vsel %vm2002_vm3, %v2018_v43, %v2020_v36  ;;  %v2226_v10 = vsel %vm2207_vm4, %v2223_v28, %v2225_v48  ;;  %v1474_v42 = vcombine.low %v768_v32, %v767_v24  ;;  %v1481_v7 = vrot.slane %v1473_v59, %v11562_v9  ;;  %v9889_v46 = vld.sshfl [vmem:[#allocation2 + $0x88] sm:$0x3 pattern:$0x76325410]  ;;  %v10148_v32 = vld [vmem:[%s11556_s30 + $0x38] sm:$0xff]  }
  0x96   : > { %v2023_v30 = vsel %vm2002_vm3, %v2020_v36, %v2022_v52  ;;  %v2228_v60 = vsel %vm2207_vm4, %v2225_v48, %v2227_v29  ;;  %v12004_v50 = vcombine.low %v1464_v38, %v1471_v57  ;;  %v10101_v58 = vunpack.c.h.bf16 %v11935_v14 }
  0x97   : > { %v11073_v6 = vpack.i.bf16 %v2023_v30, %v2021_v51  ;;  %v11078_v4 = vpack.i.bf16 %v2228_v60, %v2226_v10  ;;  %v1488_v43 = vrot.slane %v1474_v42, %v11562_v9  ;;  %v769_v28 = vcombine.high %v767_v24, %v767_v24  ;;  %v450_v24 = vld [vmem:[#allocation2 + $0xd8] sm:$0xff] }
  0x98   : > { %17158 = vst [vmem:[#allocation33_spill] sm:$0xff] %v12004_v50  ;;  %v2024_v25 = vrot.slane %v12004_v50, 1  ;;  %v2229_v47 = vrot.slane %v12004_v50, 2  ;;  %402 = vst.msk [vmem:[#allocation2 + $0x99] sm:$0xff] %vm280_vm0, %v10101_v58  ;;  %v777_v36 = vcombine.high %v441_v31, %v441_v31  ;;  %v784_v48 = vrot.slane %v441_v31, %v11562_v9 }
  0x99   : > { %11074 = vrot.lane.b32.xlu0 %v11073_v6, %s11397_s8  ;;  %11079 = vrot.lane.b32.xlu1 %v11078_v4, %s11398_s9  ;;  %v12016_v14 = vcombine.low %v1481_v7, %v1488_v43  ;;  %v1490_v59 = vcombine.low %v769_v28, %v9889_v46  ;;  %v10104_v38 = vunpack.c.l.bf16 %v10147_v15  ;;  %v10105_v57 = vunpack.c.h.bf16 %v10147_v15 }
  0x9a   : > { %v2025_v51 = vsel %vm2002_vm3, %v2022_v52, %v2024_v25  ;;  %v2230_v10 = vsel %vm2207_vm4, %v2227_v29, %v2229_v47  ;;  %v791_v42 = vrot.slane %v777_v36, %v11562_v9  ;;  %v792_v30 = vcombine.high %v784_v48, %v784_v48  ;;  %v11372_v52 = vld [vmem:[%s16805_s1 + $0x8] sm:$0x3f]  }
  0x9b   : > { %17159 = vst [vmem:[#allocation34_spill] sm:$0xff] %v12016_v14  ;;  %v2026_v31 = vrot.slane %v12016_v14, 1  ;;  %v2231_v60 = vrot.slane %v12016_v14, 2  ;;  %v1498_v58 = vrot.slane %v1490_v59, %v11562_v9  ;;  %403 = vst.msk [vmem:[#allocation2 + $0xa9] sm:$0xff] %vm280_vm0, %v10104_v38  ;;  %v10108_v7 = vunpack.c.l.bf16 %v10148_v32 }
  0x9c   : > { %404 = vst.msk [vmem:[#allocation2 + $0xb1] sm:$0xff] %vm280_vm0, %v10105_v57  ;;  %v793_v46 = vcombine.high %v791_v42, %v791_v42  ;;  %v1491_v29 = vcombine.low %v784_v48, %v792_v30  ;;  %v10109_v15 = vunpack.c.h.bf16 %v10148_v32  ;;  %v900_v6 = vcombine.high %v450_v24, %v450_v24  ;;  %v12049_v30 = vld.sshfl [vmem:[#allocation2 + $0xe0] sm:$0xff pattern:$0x76325410] }
  0x9d   : > { %v2027_v4 = vsel %vm2002_vm3, %v2024_v25, %v2026_v31  ;;  %v2232_v43 = vsel %vm2207_vm4, %v2229_v47, %v2231_v60  ;;  %405 = vst.msk [vmem:[#allocation2 + $0xc1] sm:$0xff] %vm280_vm0, %v10108_v7  ;;  %v12033_v28 = vrot.slane %v450_v24, %v11562_v9  ;;  %v2591_v47 = vsel %vm2207_vm4, %v11372_v52, 0 }
  0x9e   : > { %v11083_v36 = vpack.i.bf16 %v2027_v4, %v2025_v51  ;;  %v11088_v59 = vpack.i.bf16 %v2232_v43, %v2230_v10  ;;  %v1505_v38 = vrot.slane %v1491_v29, %v11562_v9  ;;  %v1507_v57 = vcombine.low %v791_v42, %v793_v46  ;;  %406 = vst.msk [vmem:[#allocation2 + $0xc9] sm:$0xff] %vm280_vm0, %v10109_v15 }
  0x9f   : > { %v442_v16 = vld [vmem:[#allocation2 + $0x98] sm:$0xff]  ;;  %v12038_v48 = vrot.slane %v900_v6, %v11562_v9  ;;  %v915_v25 = vcombine.high %v12033_v28, %v12033_v28  ;;  %v9890_v10 = vld.sshfl [vmem:[#allocation2 + $0xa0] sm:$0x3 pattern:$0x76325410]  ;;  %10923 = vmatpush3.bf16.msra.mxu1 %v2591_v47  ;;  %10315 = vmatpush3.bf16.msra.mxu0 %v2591_v47 }
  0xa0   : > { %11084 = vrot.lane.b32.xlu0 %v11083_v36, %s11397_s8  ;;  %11089 = vrot.lane.b32.xlu1 %v11088_v59, %s11398_s9  ;;  %v801_v32 = vrot.slane %v442_v16, %v11562_v9  ;;  %v12046_v24 = vcombine.low %v1498_v58, %v1505_v38  ;;  %v1515_v51 = vrot.slane %v1507_v57, %v11562_v9  ;;  %vm8006_vm12 = vsmask.f32 6400 }
  0xa1   : > { %v794_v42 = vcombine.high %v442_v16, %v442_v16  ;;  %v12054_v6 = vcombine.low %v915_v25, %v12038_v48  ;;  %10400 = vmatprep.subr.bf16.mxu1 %v16826_v0  ;;  %10486 = vmatprep.subr.bf16.mxu0 %v16826_v0 }
  0xa2   : > { %17160 = vst [vmem:[#allocation35_spill] sm:$0xff] %v12046_v24  ;;  %v809_v7 = vcombine.high %v801_v32, %v801_v32  ;;  %v2028_v46 = vrot.slane %v12046_v24, 1  ;;  %v2233_v52 = vrot.slane %v12046_v24, 2  ;;  %v444_v29 = vld [vmem:[#allocation2 + $0xa8] sm:$0xff] }
  0xa3   : > { %v445_v15 = vld [vmem:[#allocation2 + $0xb0] sm:$0xff]  ;;  %v808_v16 = vrot.slane %v794_v42, %v11562_v9  ;;  %v818_v58 = vcombine.high %v444_v29, %v444_v29  ;;  %v825_v4 = vrot.slane %v444_v29, %v11562_v9  ;;  %v9891_v53 = vld.sshfl [vmem:[#allocation2 + $0xb8] sm:$0x3 pattern:$0x76325410] }
  0xa4   : > { %v842_v43 = vrot.slane %v445_v15, %v11562_v9  ;;  %v1508_v36 = vcombine.low %v801_v32, %v809_v7  ;;  %v2029_v59 = vsel %vm2002_vm3, %v2026_v31, %v2028_v46  ;;  %v2234_v38 = vsel %vm2207_vm4, %v2231_v60, %v2233_v52  ;;  %v447_v57 = vld [vmem:[#allocation2 + $0xc0] sm:$0xff] }
  0xa5   : > { %v835_v25 = vcombine.high %v445_v15, %v445_v15  ;;  %v810_v8 = vcombine.high %v808_v16, %v808_v16  ;;  %v832_v54 = vrot.slane %v818_v58, %v11562_v9  ;;  %v833_v42 = vcombine.high %v825_v4, %v825_v4 }
  0xa6   : > { %v1525_v5 = vcombine.low %v9890_v10, %v825_v4  ;;  %v1522_v29 = vrot.slane %v1508_v36, %v11562_v9  ;;  %v850_v32 = vcombine.high %v842_v43, %v842_v43  ;;  %v859_v31 = vcombine.high %v447_v57, %v447_v57 }
  0xa7   : > { %v849_v47 = vrot.slane %v835_v25, %v11562_v9  ;;  %v834_v7 = vcombine.high %v832_v54, %v832_v54  ;;  %v1524_v60 = vcombine.low %v808_v16, %v810_v8  ;;  %v1541_v14 = vcombine.low %v833_v42, %v832_v54 }
  0xa8   : > { %v1539_v15 = vrot.slane %v1525_v5, %v11562_v9  ;;  %v12071_v24 = vcombine.low %v1515_v51, %v1522_v29  ;;  %v866_v58 = vrot.slane %v447_v57, %v11562_v9  ;;  %v873_v10 = vrot.slane %v859_v31, %v11562_v9 }
  0xa9   : > { %v851_v50 = vcombine.high %v849_v47, %v849_v47  ;;  %v1532_v4 = vrot.slane %v1524_v60, %v11562_v9  ;;  %v1542_v36 = vcombine.low %v834_v7, %v842_v43  ;;  %v1549_v25 = vrot.slane %v1541_v14, %v11562_v9 }
  0xaa   : > { %17161 = vst [vmem:[#allocation36_spill] sm:$0xff] %v12071_v24  ;;  %v1558_v0 = vcombine.low %v850_v32, %v849_v47  ;;  %v2030_v35 = vrot.slane %v12071_v24, 1  ;;  %v2235_v8 = vrot.slane %v12071_v24, 2  ;;  %v874_v5 = vcombine.high %v866_v58, %v866_v58  ;;  %v448_v47 = vld [vmem:[#allocation2 + $0xc8] sm:$0xff] }
  0xab   : > { %v875_v54 = vcombine.high %v873_v10, %v873_v10  ;;  %v12079_v51 = vcombine.low %v1532_v4, %v1539_v15  ;;  %v1556_v16 = vrot.slane %v1542_v36, %v11562_v9  ;;  %v1559_v42 = vcombine.low %v851_v50, %v9891_v53  ;;  %v9892_v50 = vld.sshfl [vmem:[#allocation2 + $0xd0] sm:$0x3 pattern:$0x76325410] }
  0xac   : > { %v1566_v57 = vrot.slane %v1558_v0, %v11562_v9  ;;  %v2031_v29 = vsel %vm2002_vm3, %v2028_v46, %v2030_v35  ;;  %v2236_v43 = vsel %vm2207_vm4, %v2233_v52, %v2235_v8  ;;  %v1575_v31 = vcombine.low %v866_v58, %v874_v5 }
  0xad   : > { %17162 = vst [vmem:[#allocation37_spill] sm:$0xff] %v12079_v51  ;;  %v1576_v14 = vcombine.low %v873_v10, %v875_v54  ;;  %v11093_v32 = vpack.i.bf16 %v2031_v29, %v2029_v59  ;;  %v11098_v7 = vpack.i.bf16 %v2236_v43, %v2234_v38  ;;  %v12085_v60 = vcombine.low %v1549_v25, %v1556_v16 }
  0xae   : > { %v2032_v24 = vrot.slane %v12079_v51, 1  ;;  %v2237_v15 = vrot.slane %v12079_v51, 2  ;;  %v1573_v4 = vrot.slane %v1559_v42, %v11562_v9  ;;  %v1583_v53 = vrot.slane %v1575_v31, %v11562_v9 }
  0xaf   : > { %17163 = vst [vmem:[#allocation38_spill] sm:$0xff] %v12085_v60  ;;  %v1590_v0 = vrot.slane %v1576_v14, %v11562_v9  ;;  %11094 = vrot.lane.b32.xlu0 %v11093_v32, %s11397_s8  ;;  %11099 = vrot.lane.b32.xlu1 %v11098_v7, %s11398_s9  ;;  %v2034_v52 = vrot.slane %v12085_v60, 1  ;;  %v2239_v59 = vrot.slane %v12085_v60, 2  ;;  %v876_v38 = vcombine.high %v448_v47, %v448_v47  ;;  %v10945_v58 = vpop.permute.xlu0 %10944 }
  0xb0   : > { %v2033_v46 = vsel %vm2002_vm3, %v2030_v35, %v2032_v24  ;;  %v2238_v10 = vsel %vm2207_vm4, %v2235_v8, %v2237_v15  ;;  %v12098_v36 = vcombine.low %v1566_v57, %v1573_v4  ;;  %v883_v5 = vrot.slane %v448_v47, %v11562_v9 }
  0xb1   : > { %v12100_v25 = vcombine.low %v1583_v53, %v1590_v0  ;;  %v2035_v54 = vsel %vm2002_vm3, %v2032_v24, %v2034_v52  ;;  %v2240_v16 = vsel %vm2207_vm4, %v2237_v15, %v2239_v59  ;;  %v890_v35 = vrot.slane %v876_v38, %v11562_v9 }
  0xb2   : > { %17164 = vst [vmem:[#allocation39_spill] sm:$0xff] %v12098_v36  ;;  %v1609_v42 = vcombine.low %v9892_v50, %v12033_v28  ;;  %v11103_v29 = vpack.i.bf16 %v2035_v54, %v2033_v46  ;;  %v11108_v43 = vpack.i.bf16 %v2240_v16, %v2238_v10  ;;  %v2036_v31 = vrot.slane %v12098_v36, 1 }
  0xb3   : > { %17165 = vst [vmem:[#allocation40_spill] sm:$0xff] %v12100_v25  ;;  %v2038_v8 = vrot.slane %v12100_v25, 1  ;;  %v2241_v57 = vrot.slane %v12098_v36, 2  ;;  %v2243_v14 = vrot.slane %v12100_v25, 2  ;;  %v891_v32 = vcombine.high %v883_v5, %v883_v5  ;;  %v10955_v4 = vpop.permute.xlu1 %10954  ;;  %v10950_v38 = vpop.permute.xlu0 %10949 }
  0xb4   : > { %v892_v47 = vcombine.high %v890_v35, %v890_v35  ;;  %11104 = vrot.lane.b32.xlu0 %v11103_v29, %s11397_s8  ;;  %11109 = vrot.lane.b32.xlu1 %v11108_v43, %s11398_s9  ;;  %v2037_v24 = vsel %vm2002_vm3, %v2034_v52, %v2036_v31  ;;  %v1617_v7 = vrot.slane %v1609_v42, %v11562_v9  ;;  %v10947_v15 = vunpack.i.h.bf16 %v10945_v58 }
  0xb5   : > { %v2039_v28 = vsel %vm2002_vm3, %v2036_v31, %v2038_v8  ;;  %v2242_v0 = vsel %vm2207_vm4, %v2239_v59, %v2241_v57  ;;  %v2244_v50 = vsel %vm2207_vm4, %v2241_v57, %v2243_v14  ;;  %v1592_v46 = vcombine.low %v883_v5, %v891_v32  ;;  %v11373_v32 = vld [vmem:[%s16805_s1] sm:$0x3f]  }
  0xb6   : > { %v11113_v53 = vpack.i.bf16 %v2039_v28, %v2037_v24  ;;  %v11118_v10 = vpack.i.bf16 %v2244_v50, %v2242_v0  ;;  %v1593_v54 = vcombine.low %v890_v35, %v892_v47  ;;  %v1624_v16 = vrot.slane %v12054_v6, %v11562_v9 }
  0xb7   : > { %v916_v52 = vcombine.high %v12038_v48, %v12038_v48  ;;  %v1600_v29 = vrot.slane %v1592_v46, %v11562_v9  ;;  %v10946_v42 = vunpack.i.l.bf16 %v10945_v58  ;;  %v10957_v43 = vunpack.i.h.bf16 %v10955_v4 }
  0xb8   : > { %v932_v31 = vcombine.high %v12049_v30, %v12049_v30  ;;  %11114 = vrot.lane.b32.xlu0 %v11113_v53, %s11397_s8  ;;  %11119 = vrot.lane.b32.xlu1 %v11118_v10, %s11398_s9  ;;  %v1607_v59 = vrot.slane %v1593_v54, %v11562_v9  ;;  %v12128_v5 = vcombine.low %v1617_v7, %v1624_v16  ;;  %v10952_v35 = vunpack.i.h.bf16 %v10950_v38  ;;  %v10960_v53 = vpop.permute.xlu1 %10959 }
  0xb9   : > { %v10951_v6 = vunpack.i.l.bf16 %v10950_v38  ;;  %v2435_v48 = vsel %vm280_vm0, %v11651_v62, %v10947_v15  ;;  %v2434_v58 = vsel %vm280_vm0, %v11649_v61, %v10946_v42  ;;  %v10956_v57 = vunpack.i.l.bf16 %v10955_v4 }
  0xba   : > { %17166 = vst [vmem:[#allocation41_spill] sm:$0xff] %v12128_v5  ;;  %v12137_v47 = vcombine.low %v1600_v29, %v1607_v59  ;;  %v2042_v24 = vrot.slane %v12128_v5, 1  ;;  %v2247_v28 = vrot.slane %v12128_v5, 2  ;;  %v2437_v15 = vsel %vm280_vm0, %v11660_v11, %v10957_v43 }
  0xbb   : > { %v2476_v7 = vsel %vm2453_vm7, %v2434_v58, %v10951_v6  ;;  %v2477_v0 = vsel %vm2453_vm7, %v2435_v48, %v10952_v35  ;;  %v10962_v4 = vunpack.i.h.bf16 %v10960_v53  ;;  %v1626_v50 = vcombine.low %v916_v52, %v12049_v30 }
  0xbc   : > { %17167 = vst [vmem:[#allocation42_spill] sm:$0xff] %v12137_v47  ;;  %v2040_v46 = vrot.slane %v12137_v47, 1  ;;  %v2245_v38 = vrot.slane %v12137_v47, 2  ;;  %v12148_v10 = vpack.c.bf16 %v2477_v0, %v2476_v7  ;;  %v1627_v54 = vcombine.low %v932_v31, %v11633_v12 }
  0xbd   : > { %v2436_v16 = vsel %vm280_vm0, %v11654_v2, %v10956_v57  ;;  %v10961_v29 = vunpack.i.l.bf16 %v10960_v53  ;;  %v1634_v42 = vrot.slane %v1626_v50, %v11562_v9  ;;  %v2968_v43 = vsel %vm2207_vm4, %v11373_v32, 0 }
  0xbe   : > { %v2041_v59 = vsel %vm2002_vm3, %v2038_v8, %v2040_v46  ;;  %v2043_v30 = vsel %vm2002_vm3, %v2040_v46, %v2042_v24  ;;  %v2246_v52 = vsel %vm2207_vm4, %v2243_v14, %v2245_v38  ;;  %v2248_v35 = vsel %vm2207_vm4, %v2245_v38, %v2247_v28  ;;  %10361 = vmatmul.mubr.msk.bf16.vlgmr.msra.gmra.mxu1 %vm2526_vm8, %v12148_v10 }
  0xbf   : > { %v11123_v12 = vpack.i.bf16 %v2043_v30, %v2041_v59  ;;  %v11128_v31 = vpack.i.bf16 %v2248_v35, %v2246_v52  ;;  %v1641_v6 = vrot.slane %v1627_v54, %v11562_v9  ;;  %10401 = vmatpush3.bf16.msra.mxu1 %v2968_v43  ;;  %v2479_v48 = vsel %vm2453_vm7, %v2437_v15, %v10962_v4 }
  0xc0   : > { %v10965_v58 = vpop.permute.xlu0 %10964  ;;  %v17168_v57 = vmov 0.0   ;;  %v2478_v8 = vsel %vm2453_vm7, %v2436_v16, %v10961_v29  ;;  %v10970_v53 = vpop.permute.xlu1 %10969  ;;  %v17170_v29 = vrot.slane %v11649_v61, 1  ;;  %v17171_v59 = vrot.slane %v11649_v61, 2 }
  0xc1   : > { %10364 = vmatprep.mubr.msk.bf16.mxu1 %vm11399_vm6, %v17168_v57  ;;  %10572 = vmatprep.subr.bf16.mxu1 %v17168_v57  ;;  %v12169_v14 = vcombine.low %v1634_v42, %v1641_v6  ;;  %v10967_v32 = vunpack.i.h.bf16 %v10965_v58  ;;  %v10966_v7 = vunpack.i.l.bf16 %v10965_v58  ;;  %v10972_v4 = vunpack.i.h.bf16 %v10970_v53 }
  0xc2   : > { %11124 = vrot.lane.b32.xlu0 %v11123_v12, %s11397_s8  ;;  %11129 = vrot.lane.b32.xlu1 %v11128_v31, %s11398_s9  ;;  %v10971_v50 = vunpack.i.l.bf16 %v10970_v53  ;;  %v12173_v46 = vpack.c.bf16 %v2479_v48, %v2478_v8 }
  0xc3   : > { %17169 = vst [vmem:[#allocation43_spill] sm:$0xff] %v12169_v14  ;;  %v2044_v0 = vrot.slane %v12169_v14, 1  ;;  %v2249_v15 = vrot.slane %v12169_v14, 2  ;;  %v2439_v38 = vsel %vm280_vm0, %v11699_v20, %v10967_v32  ;;  %v2438_v54 = vsel %vm280_vm0, %v11674_v23, %v10966_v7 }
  0xc4   : > { %v2480_v12 = vsel %vm2453_vm7, %v2438_v54, %v10971_v50  ;;  %v2481_v31 = vsel %vm2453_vm7, %v2439_v38, %v10972_v4  ;;  %v10980_v48 = vpop.permute.xlu1 %10979 }
  0xc5   : > { %v2045_v16 = vsel %vm2002_vm3, %v2042_v24, %v2044_v0  ;;  %v2047_v42 = vsel %vm2002_vm3, %v2044_v0, %v17170_v29  ;;  %v2250_v43 = vsel %vm2207_vm4, %v2247_v28, %v2249_v15  ;;  %v2252_v30 = vsel %vm2207_vm4, %v2249_v15, %v17171_v59  ;;  %v10975_v24 = vpop.permute.xlu0 %10974 }
  0xc6   : > { %v11133_v52 = vpack.i.bf16 %v2047_v42, %v2045_v16  ;;  %v11138_v35 = vpack.i.bf16 %v2252_v30, %v2250_v43  ;;  %10365 = vmatmul.mubr.msk.bf16.gmra.mxu1 %vm2526_vm8, %v12173_v46  ;;  %v10977_v28 = vunpack.i.h.bf16 %v10975_v24  ;;  %v10976_v6 = vunpack.i.l.bf16 %v10975_v24 }
  0xc7   : > { %10368 = vmatprep.mubr.msk.bf16.mxu1 %vm11399_vm6, %v17168_v57  ;;  %v12195_v58 = vpack.c.bf16 %v2481_v31, %v2480_v12  ;;  %v10982_v8 = vunpack.i.h.bf16 %v10980_v48  ;;  %v10981_v32 = vunpack.i.l.bf16 %v10980_v48 }
  0xc8   : > { %11134 = vrot.lane.b32.xlu0 %v11133_v52, %s11397_s8  ;;  %11139 = vrot.lane.b32.xlu1 %v11138_v35, %s11398_s9  ;;  %v2441_v7 = vsel %vm280_vm0, %v11715_v3, %v10977_v28  ;;  %v2440_v53 = vsel %vm280_vm0, %v11713_v1, %v10976_v6 }
  0xc9   : > { %v2482_v0 = vsel %vm2453_vm7, %v2440_v53, %v10981_v32  ;;  %v2483_v15 = vsel %vm2453_vm7, %v2441_v7, %v10982_v8 }
  0xca   : > { %v12207_v16 = vpack.c.bf16 %v2483_v15, %v2482_v0 }
  0xcb   : > { %v10985_v4 = vpop.permute.xlu0 %10984  ;;  %v10990_v50 = vpop.permute.xlu1 %10989 }
  0xcc   : > { %v10987_v38 = vunpack.i.h.bf16 %v10985_v4  ;;  %v10986_v54 = vunpack.i.l.bf16 %v10985_v4  ;;  %v10992_v29 = vunpack.i.h.bf16 %v10990_v50  ;;  %v10991_v42 = vunpack.i.l.bf16 %v10990_v50 }
  0xce   : > { %10369 = vmatmul.mubr.msk.bf16.gmra.mxu1 %vm2526_vm8, %v12195_v58  ;;  %v2443_v43 = vsel %vm280_vm0, %v11747_v41, %v10987_v38  ;;  %v2442_v59 = vsel %vm280_vm0, %v11726_v18, %v10986_v54 }
  0xcf   : > { %10372 = vmatprep.mubr.msk.bf16.mxu1 %vm11399_vm6, %v17168_v57  ;;  %v2484_v35 = vsel %vm2453_vm7, %v2442_v59, %v10991_v42  ;;  %v2485_v12 = vsel %vm2453_vm7, %v2443_v43, %v10992_v29 }
  0xd0   : > { %v12219_v28 = vpack.c.bf16 %v2485_v12, %v2484_v35 }
  0xd3   : > { %v10995_v30 = vpop.permute.xlu0 %10994  ;;  %v11000_v52 = vpop.permute.xlu1 %10999 }
  0xd4   : > { %v10997_v31 = vunpack.i.h.bf16 %v10995_v30  ;;  %v10996_v24 = vunpack.i.l.bf16 %v10995_v30  ;;  %v11002_v6 = vunpack.i.h.bf16 %v11000_v52  ;;  %v11001_v48 = vunpack.i.l.bf16 %v11000_v52 }
  0xd6   : > { %10373 = vmatmul.mubr.msk.bf16.gmra.mxu1 %vm2526_vm8, %v12207_v16  ;;  %v2445_v7 = vsel %vm280_vm0, %v11768_v33, %v10997_v31  ;;  %v2444_v53 = vsel %vm280_vm0, %v11752_v22, %v10996_v24 }
  0xd7   : > { %10376 = vmatprep.mubr.msk.bf16.mxu1 %vm11399_vm6, %v17168_v57  ;;  %v2486_v0 = vsel %vm2453_vm7, %v2444_v53, %v11001_v48  ;;  %v2487_v15 = vsel %vm2453_vm7, %v2445_v7, %v11002_v6 }
  0xd8   : > { %v12231_v29 = vpack.c.bf16 %v2487_v15, %v2486_v0 }
  0xdb   : > { %v11005_v8 = vpop.permute.xlu0 %11004  ;;  %v11010_v32 = vpop.permute.xlu1 %11009 }
  0xdc   : > { %v11007_v38 = vunpack.i.h.bf16 %v11005_v8  ;;  %v11006_v54 = vunpack.i.l.bf16 %v11005_v8  ;;  %v11012_v42 = vunpack.i.h.bf16 %v11010_v32  ;;  %v11011_v43 = vunpack.i.l.bf16 %v11010_v32 }
  0xde   : > { %10377 = vmatmul.mubr.msk.bf16.gmra.mxu1 %vm2526_vm8, %v12219_v28  ;;  %v2447_v59 = vsel %vm280_vm0, %v11790_v17, %v11007_v38  ;;  %v2446_v30 = vsel %vm280_vm0, %v11775_v37, %v11006_v54 }
  0xdf   : > { %v11015_v4 = vpop.permute.xlu0 %11014  ;;  %v11020_v50 = vpop.permute.xlu1 %11019  ;;  %10380 = vmatprep.mubr.msk.bf16.mxu1 %vm11399_vm6, %v17168_v57  ;;  %v2488_v12 = vsel %vm2453_vm7, %v2446_v30, %v11011_v43  ;;  %v2489_v31 = vsel %vm2453_vm7, %v2447_v59, %v11012_v42 }
  0xe0   : > { %v11017_v24 = vunpack.i.h.bf16 %v11015_v4  ;;  %v11016_v6 = vunpack.i.l.bf16 %v11015_v4  ;;  %v12243_v32 = vpack.c.bf16 %v2489_v31, %v2488_v12  ;;  %v11022_v7 = vunpack.i.h.bf16 %v11020_v50  ;;  %v11374_v4 = vld [vmem:[%s16805_s1 + $0x10] sm:$0x3f]  }
  0xe1   : > { %v11021_v53 = vunpack.i.l.bf16 %v11020_v50 }
  0xe2   : > { %v2449_v0 = vsel %vm280_vm0, %v11835_v13, %v11017_v24  ;;  %v2448_v15 = vsel %vm280_vm0, %v11805_v44, %v11016_v6 }
  0xe3   : > { %v2490_v50 = vsel %vm2453_vm7, %v2448_v15, %v11021_v53  ;;  %v2491_v12 = vsel %vm2453_vm7, %v2449_v0, %v11022_v7  ;;  %v3179_v7 = vsel %vm2207_vm4, %v11374_v4, 0 }
  0xe4   : > { %v12264_v44 = vpack.c.bf16 %v2491_v12, %v2490_v50 }
  0xe5   : > { %v11025_v52 = vpop.permute.xlu0 %11024  ;;  %v11030_v35 = vpop.permute.xlu1 %11029 }
  0xe6   : > { %10381 = vmatmul.mubr.msk.bf16.gmra.mxu1 %vm2526_vm8, %v12231_v29  ;;  %v11027_v31 = vunpack.i.h.bf16 %v11025_v52  ;;  %v11026_v24 = vunpack.i.l.bf16 %v11025_v52  ;;  %v11032_v0 = vunpack.i.h.bf16 %v11030_v35  ;;  %v11031_v15 = vunpack.i.l.bf16 %v11030_v35 }
  0xe7   : > { %10384 = vmatprep.mubr.msk.bf16.mxu1 %vm11399_vm6, %v17168_v57 }
  0xe8   : > { %v2451_v52 = vsel %vm280_vm0, %v11857_v19, %v11027_v31 }
  0xe9   : > { %v2165_v48 = vpop.permute.xlu0 %2164  ;;  %v2370_v8 = vpop.permute.xlu1 %2369  ;;  %v2493_v50 = vsel %vm2453_vm7, %v2451_v52, %v11032_v0 }
  0xed   : > { %v11035_v38 = vpop.permute.xlu0 %11034  ;;  %v11040_v54 = vpop.permute.xlu1 %11039 }
  0xee   : > { %v11037_v42 = vunpack.i.h.bf16 %v11035_v38  ;;  %v11036_v43 = vunpack.i.l.bf16 %v11035_v38  ;;  %v11042_v59 = vunpack.i.h.bf16 %v11040_v54  ;;  %v11041_v30 = vunpack.i.l.bf16 %v11040_v54  ;;  %10385 = vmatmul.mubr.msk.bf16.gmra.mxu1 %vm2526_vm8, %v12243_v32 }
  0xef   : > { %10388 = vmatprep.mubr.msk.bf16.mxu1 %vm11399_vm6, %v17168_v57 }
  0xf0   : > { %v2413_v6 = vsel %vm280_vm0, %v11839_v34, %v11037_v42  ;;  %v2412_v38 = vsel %vm280_vm0, %v11824_v21, %v11036_v43  ;;  %v2450_v42 = vsel %vm280_vm0, %v11822_v56, %v11026_v24 }
  0xf1   : > { %v2454_v54 = vsel %vm2453_vm7, %v2412_v38, %v11041_v30  ;;  %v2455_v13 = vsel %vm2453_vm7, %v2413_v6, %v11042_v59  ;;  %v2492_v35 = vsel %vm2453_vm7, %v2450_v42, %v11031_v15 }
  0xf2   : > { %v12266_v53 = vpack.c.bf16 %v2455_v13, %v2454_v54  ;;  %v12290_v38 = vpack.c.bf16 %v2493_v50, %v2492_v35 }
  0xf4   : > { %10317 = vmatmul.mubr.msk.bf16.vlgmr.msra.gmra.mxu0 %vm2526_vm8, %v12266_v53 }
  0xf5   : > { %v11045_v21 = vpop.permute.xlu0 %11044  ;;  %v11050_v43 = vpop.permute.xlu1 %11049  ;;  %10320 = vmatprep.mubr.msk.bf16.mxu0 %vm11399_vm6, %v17168_v57  ;;  %10487 = vmatpush3.bf16.msra.mxu0 %v3179_v7  ;;  %v2452_v7 = vsel %vm280_vm0, %v11860_v49, %v2165_v48 }
  0xf6   : > { %v11047_v13 = vunpack.i.h.bf16 %v11045_v21  ;;  %v11046_v59 = vunpack.i.l.bf16 %v11045_v21  ;;  %v11052_v30 = vunpack.i.h.bf16 %v11050_v43  ;;  %v11051_v4 = vunpack.i.l.bf16 %v11050_v43  ;;  %10389 = vmatmul.mubr.msk.bf16.gmra.mxu1 %vm2526_vm8, %v12264_v44  ;;  %10660 = vmatprep.subr.bf16.mxu0 %v17168_v57 }
  0xf7   : > { %10392 = vmatprep.mubr.msk.bf16.mxu1 %vm11399_vm6, %v17168_v57 }
  0xf8   : > { %v2415_v12 = vsel %vm280_vm0, %v11911_v27, %v11047_v13  ;;  %v2414_v31 = vsel %vm280_vm0, %v11892_v40, %v11046_v59  ;;  %v2494_v13 = vsel %vm2453_vm7, %v2452_v7, %v2370_v8  ;;  %v11401_v40 = vmov 842150450  }
  0xf9   : > { %v2456_v24 = vsel %vm2453_vm7, %v2414_v31, %v11051_v4  ;;  %v2457_v6 = vsel %vm2453_vm7, %v2415_v12, %v11052_v30  ;;  %v12313_v35 = vpack.c.bf16 %v2494_v13, %v2494_v13 }
  0xfa   : > { %v12292_v54 = vpack.c.bf16 %v2457_v6, %v2456_v24 }
  0xfc   : > { %10321 = vmatmul.mubr.msk.bf16.gmra.mxu0 %vm2526_vm8, %v12292_v54  ;;  %v11055_v0 = vpop.permute.xlu0 %11054  ;;  %v11060_v15 = vpop.permute.xlu1 %11059 }
  0xfd   : > { %v11057_v52 = vunpack.i.h.bf16 %v11055_v0  ;;  %v11056_v42 = vunpack.i.l.bf16 %v11055_v0  ;;  %v11062_v21 = vunpack.i.h.bf16 %v11060_v15  ;;  %v11061_v43 = vunpack.i.l.bf16 %v11060_v15  ;;  %10324 = vmatprep.mubr.msk.bf16.mxu0 %vm11399_vm6, %v17168_v57 }
  0xfe   : > { %10393 = vmatmul.mubr.msk.bf16.gmra.mxu1 %vm2526_vm8, %v12290_v38 }
  0xff   : > { %v2417_v49 = vsel %vm280_vm0, %v11937_v45, %v11057_v52  ;;  %v2416_v48 = vsel %vm280_vm0, %v11916_v55, %v11056_v42  ;;  %10396 = vmatprep.mubr.msk.bf16.mxu1 %vm11399_vm6, %v17168_v57 }
 0x100   : > { %v2458_v59 = vsel %vm2453_vm7, %v2416_v48, %v11061_v43  ;;  %v2459_v30 = vsel %vm2453_vm7, %v2417_v49, %v11062_v21 }
 0x101   : > { %v12311_v4 = vpack.c.bf16 %v2459_v30, %v2458_v59 }
 0x104   : > { %10325 = vmatmul.mubr.msk.bf16.gmra.mxu0 %vm2526_vm8, %v12311_v4 }
 0x105   : > { %v11065_v8 = vpop.permute.xlu0 %11064  ;;  %v11070_v50 = vpop.permute.xlu1 %11069  ;;  %10328 = vmatprep.mubr.msk.bf16.mxu0 %vm11399_vm6, %v17168_v57 }
 0x106   : > { %v11067_v12 = vunpack.i.h.bf16 %v11065_v8  ;;  %v11066_v31 = vunpack.i.l.bf16 %v11065_v8  ;;  %v11072_v24 = vunpack.i.h.bf16 %v11070_v50  ;;  %v11071_v6 = vunpack.i.l.bf16 %v11070_v50  ;;  %10397 = vmatmul.mubr.msk.bf16.gmra.mxu1 %vm2526_vm8, %v12313_v35  ;;  %v17172_v8 = vld [vmem:[#allocation30_spill] sm:$0xff] }
 0x107   : > { %10402 = vmatprep.mubr.msk.bf16.mxu1 %vm11399_vm6, %v17168_v57 }
 0x108   : > { %v2419_v7 = vsel %vm280_vm0, %v11960_v63, %v11067_v12  ;;  %v2418_v0 = vsel %vm280_vm0, %v11944_v26, %v11066_v31 }
 0x109   : > { %v2460_v15 = vsel %vm2453_vm7, %v2418_v0, %v11071_v6  ;;  %v2461_v52 = vsel %vm2453_vm7, %v2419_v7, %v11072_v24 }
 0x10a   : > { %v12329_v42 = vpack.c.bf16 %v2461_v52, %v2460_v15 }
 0x10b   : > { %v11075_v21 = vpop.permute.xlu0 %11074  ;;  %v11080_v43 = vpop.permute.xlu1 %11079 }
 0x10c   : > { %10329 = vmatmul.mubr.msk.bf16.gmra.mxu0 %vm2526_vm8, %v12329_v42  ;;  %v11077_v13 = vunpack.i.h.bf16 %v11075_v21  ;;  %v11076_v49 = vunpack.i.l.bf16 %v11075_v21  ;;  %v11082_v48 = vunpack.i.h.bf16 %v11080_v43  ;;  %v11081_v59 = vunpack.i.l.bf16 %v11080_v43  ;;  %v17173_v43 = vld [vmem:[#allocation33_spill] sm:$0xff] }
 0x10d   : > { %10332 = vmatprep.mubr.msk.bf16.mxu0 %vm11399_vm6, %v17168_v57 }
 0x10e   : > { %v2421_v30 = vsel %vm280_vm0, %v11985_v39, %v11077_v13  ;;  %v2420_v50 = vsel %vm280_vm0, %v17172_v8, %v11076_v49  ;;  %10403 = vmatmul.mubr.msk.bf16.vlgmr.msra.gmra.mxu1 %vm2526_vm8, %v12266_v53  ;;  %v17174_v49 = vld [vmem:[#allocation32_spill] sm:$0xff] }
 0x10f   : > { %v2462_v12 = vsel %vm2453_vm7, %v2420_v50, %v11081_v59  ;;  %v2463_v31 = vsel %vm2453_vm7, %v2421_v30, %v11082_v48  ;;  %10406 = vmatprep.mubr.msk.bf16.mxu1 %vm11399_vm6, %v17168_v57 }
 0x110   : > { %v12345_v24 = vpack.c.bf16 %v2463_v31, %v2462_v12 }
 0x112   : > { %v11085_v6 = vpop.permute.xlu0 %11084  ;;  %v11090_v7 = vpop.permute.xlu1 %11089 }
 0x113   : > { %v11087_v0 = vunpack.i.h.bf16 %v11085_v6  ;;  %v11086_v15 = vunpack.i.l.bf16 %v11085_v6  ;;  %v11092_v52 = vunpack.i.h.bf16 %v11090_v7  ;;  %v11091_v21 = vunpack.i.l.bf16 %v11090_v7 }
 0x114   : > { %10333 = vmatmul.mubr.msk.bf16.gmra.mxu0 %vm2526_vm8, %v12345_v24 }
 0x115   : > { %v2423_v13 = vsel %vm280_vm0, %v17173_v43, %v11087_v0  ;;  %v2422_v48 = vsel %vm280_vm0, %v17174_v49, %v11086_v15  ;;  %10336 = vmatprep.mubr.msk.bf16.mxu0 %vm11399_vm6, %v17168_v57 }
 0x116   : > { %v2464_v59 = vsel %vm2453_vm7, %v2422_v48, %v11091_v21  ;;  %v2465_v30 = vsel %vm2453_vm7, %v2423_v13, %v11092_v52  ;;  %10407 = vmatmul.mubr.msk.bf16.gmra.mxu1 %vm2526_vm8, %v12292_v54  ;;  %v17175_v52 = vld [vmem:[#allocation35_spill] sm:$0xff]  ;;  %v17176_v13 = vld [vmem:[#allocation34_spill] sm:$0xff] }
 0x117   : > { %10410 = vmatprep.mubr.msk.bf16.mxu1 %vm11399_vm6, %v17168_v57  ;;  %v12361_v50 = vpack.c.bf16 %v2465_v30, %v2464_v59 }
 0x11c   : > { %10337 = vmatmul.mubr.msk.bf16.gmra.mxu0 %vm2526_vm8, %v12361_v50 }
 0x11d   : > { %10340 = vmatprep.mubr.msk.bf16.mxu0 %vm11399_vm6, %v17168_v57 }
 0x11e   : > { %10411 = vmatmul.mubr.msk.bf16.gmra.mxu1 %vm2526_vm8, %v12311_v4 }
 0x11f   : > { %10414 = vmatprep.mubr.msk.bf16.mxu1 %vm11399_vm6, %v17168_v57 }
 0x121   : > { %v11095_v12 = vpop.permute.xlu0 %11094  ;;  %v11100_v31 = vpop.permute.xlu1 %11099 }
 0x122   : > { %v11097_v6 = vunpack.i.h.bf16 %v11095_v12  ;;  %v11096_v7 = vunpack.i.l.bf16 %v11095_v12  ;;  %v11102_v0 = vunpack.i.h.bf16 %v11100_v31  ;;  %v11101_v15 = vunpack.i.l.bf16 %v11100_v31 }
 0x124   : > { %v2425_v21 = vsel %vm280_vm0, %v17175_v52, %v11097_v6  ;;  %v2424_v48 = vsel %vm280_vm0, %v17176_v13, %v11096_v7  ;;  %v17177_v7 = vld [vmem:[#allocation36_spill] sm:$0xff] }
 0x125   : > { %v2466_v59 = vsel %vm2453_vm7, %v2424_v48, %v11101_v15  ;;  %v2467_v30 = vsel %vm2453_vm7, %v2425_v21, %v11102_v0 }
 0x126   : > { %v12377_v34 = vpack.c.bf16 %v2467_v30, %v2466_v59  ;;  %v11105_v19 = vpop.permute.xlu0 %11104  ;;  %v11110_v56 = vpop.permute.xlu1 %11109  ;;  %10415 = vmatmul.mubr.msk.bf16.gmra.mxu1 %vm2526_vm8, %v12329_v42 }
 0x127   : > { %v11107_v12 = vunpack.i.h.bf16 %v11105_v19  ;;  %v11106_v17 = vunpack.i.l.bf16 %v11105_v19  ;;  %v11112_v31 = vunpack.i.h.bf16 %v11110_v56  ;;  %v11111_v37 = vunpack.i.l.bf16 %v11110_v56  ;;  %10418 = vmatprep.mubr.msk.bf16.mxu1 %vm11399_vm6, %v17168_v57 }
 0x128   : > { %10341 = vmatmul.mubr.msk.bf16.gmra.mxu0 %vm2526_vm8, %v12377_v34 }
 0x129   : > { %v2427_v6 = vsel %vm280_vm0, %v12079_v51, %v11107_v12  ;;  %v2426_v0 = vsel %vm280_vm0, %v17177_v7, %v11106_v17  ;;  %10344 = vmatprep.mubr.msk.bf16.mxu0 %vm11399_vm6, %v17168_v57 }
 0x12a   : > { %v2468_v15 = vsel %vm2453_vm7, %v2426_v0, %v11111_v37  ;;  %v2469_v19 = vsel %vm2453_vm7, %v2427_v6, %v11112_v31  ;;  %v11115_v56 = vpop.permute.xlu0 %11114  ;;  %v11120_v21 = vpop.permute.xlu1 %11119 }
 0x12b   : > { %v11117_v48 = vunpack.i.h.bf16 %v11115_v56  ;;  %v11116_v59 = vunpack.i.l.bf16 %v11115_v56  ;;  %v12393_v30 = vpack.c.bf16 %v2469_v19, %v2468_v15  ;;  %v11122_v33 = vunpack.i.h.bf16 %v11120_v21 }
 0x12c   : > { %v11121_v22 = vunpack.i.l.bf16 %v11120_v21 }
 0x12d   : > { %v2429_v12 = vsel %vm280_vm0, %v12098_v36, %v11117_v48  ;;  %v2428_v17 = vsel %vm280_vm0, %v12085_v60, %v11116_v59 }
 0x12e   : > { %10419 = vmatmul.mubr.msk.bf16.gmra.mxu1 %vm2526_vm8, %v12345_v24  ;;  %v2470_v37 = vsel %vm2453_vm7, %v2428_v17, %v11121_v22  ;;  %v2471_v31 = vsel %vm2453_vm7, %v2429_v12, %v11122_v33 }
 0x12f   : > { %10422 = vmatprep.mubr.msk.bf16.mxu1 %vm11399_vm6, %v17168_v57  ;;  %v12409_v15 = vpack.c.bf16 %v2471_v31, %v2470_v37 }
 0x130   : > { %10345 = vmatmul.mubr.msk.bf16.gmra.mxu0 %vm2526_vm8, %v12393_v30 }
 0x131   : > { %10348 = vmatprep.mubr.msk.bf16.mxu0 %vm11399_vm6, %v17168_v57 }
 0x134   : > { %v11125_v6 = vpop.permute.xlu0 %11124  ;;  %v11130_v0 = vpop.permute.xlu1 %11129 }
 0x135   : > { %v11127_v19 = vunpack.i.h.bf16 %v11125_v6  ;;  %v11126_v56 = vunpack.i.l.bf16 %v11125_v6  ;;  %v11132_v21 = vunpack.i.h.bf16 %v11130_v0  ;;  %v11131_v48 = vunpack.i.l.bf16 %v11130_v0 }
 0x136   : > { %10423 = vmatmul.mubr.msk.bf16.gmra.mxu1 %vm2526_vm8, %v12361_v50 }
 0x137   : > { %v2431_v59 = vsel %vm280_vm0, %v12137_v47, %v11127_v19  ;;  %v2430_v41 = vsel %vm280_vm0, %v12100_v25, %v11126_v56  ;;  %10426 = vmatprep.mubr.msk.bf16.mxu1 %vm11399_vm6, %v17168_v57 }
 0x138   : > { %10349 = vmatmul.mubr.msk.bf16.gmra.mxu0 %vm2526_vm8, %v12409_v15  ;;  %v2472_v22 = vsel %vm2453_vm7, %v2430_v41, %v11131_v48  ;;  %v2473_v33 = vsel %vm2453_vm7, %v2431_v59, %v11132_v21 }
 0x139   : > { %10352 = vmatprep.mubr.msk.bf16.mxu0 %vm11399_vm6, %v17168_v57  ;;  %v12425_v6 = vpack.c.bf16 %v2473_v33, %v2472_v22 }
 0x13a   : > { %v11135_v12 = vpop.permute.xlu0 %11134  ;;  %v11140_v17 = vpop.permute.xlu1 %11139 }
 0x13b   : > { %v11137_v37 = vunpack.i.h.bf16 %v11135_v12  ;;  %v11136_v31 = vunpack.i.l.bf16 %v11135_v12  ;;  %v11142_v0 = vunpack.i.h.bf16 %v11140_v17  ;;  %v11141_v19 = vunpack.i.l.bf16 %v11140_v17 }
 0x13d   : > { %v2433_v56 = vsel %vm280_vm0, %v12169_v14, %v11137_v37  ;;  %v2432_v18 = vsel %vm280_vm0, %v12128_v5, %v11136_v31 }
 0x13e   : > { %10427 = vmatmul.mubr.msk.bf16.gmra.mxu1 %vm2526_vm8, %v12377_v34  ;;  %v2474_v41 = vsel %vm2453_vm7, %v2432_v18, %v11141_v19  ;;  %v2475_v21 = vsel %vm2453_vm7, %v2433_v56, %v11142_v0 }
 0x13f   : > { %10430 = vmatprep.mubr.msk.bf16.mxu1 %vm11399_vm6, %v17168_v57  ;;  %v12441_v48 = vpack.c.bf16 %v2475_v21, %v2474_v41 }
 0x140   : > { %10353 = vmatmul.mubr.msk.bf16.gmra.mxu0 %vm2526_vm8, %v12425_v6 }
 0x141   : > { %10356 = vmatprep.mubr.msk.bf16.mxu0 %vm11399_vm6, %v17168_v57 }
 0x146   : > { %10431 = vmatmul.mubr.msk.bf16.gmra.mxu1 %vm2526_vm8, %v12393_v30 }
 0x147   : > { %10434 = vmatprep.mubr.msk.bf16.mxu1 %vm11399_vm6, %v17168_v57 }
 0x148   : > { %10357 = vmatmul.mubr.msk.bf16.gmra.mxu0 %vm2526_vm8, %v12441_v48 }
 0x149   : > { %10488 = vmatprep.mubr.msk.bf16.mxu0 %vm11399_vm6, %v17168_v57 }
 0x14e   : > { %10435 = vmatmul.mubr.msk.bf16.gmra.mxu1 %vm2526_vm8, %v12409_v15 }
 0x14f   : > { %10438 = vmatprep.mubr.msk.bf16.mxu1 %vm11399_vm6, %v17168_v57 }
 0x150   : > { %10489 = vmatmul.mubr.msk.bf16.vlgmr.msra.gmra.mxu0 %vm2526_vm8, %v12266_v53 }
 0x151   : > { %10492 = vmatprep.mubr.msk.bf16.mxu0 %vm11399_vm6, %v17168_v57 }
 0x156   : > { %10439 = vmatmul.mubr.msk.bf16.gmra.mxu1 %vm2526_vm8, %v12425_v6 }
 0x157   : > { %10442 = vmatprep.mubr.msk.bf16.mxu1 %vm11399_vm6, %v17168_v57 }
 0x158   : > { %10493 = vmatmul.mubr.msk.bf16.gmra.mxu0 %vm2526_vm8, %v12292_v54 }
 0x159   : > { %10496 = vmatprep.mubr.msk.bf16.mxu0 %vm11399_vm6, %v17168_v57 }
 0x15e   : > { %10443 = vmatmul.mubr.msk.bf16.gmra.mxu1 %vm2526_vm8, %v12441_v48 }
 0x15f   : > { %10446 = vmatprep.mubr.msk.bf16.mxu1 %vm11399_vm6, %v17168_v57 }
 0x160   : > { %10497 = vmatmul.mubr.msk.bf16.gmra.mxu0 %vm2526_vm8, %v12311_v4 }
 0x161   : > { %10500 = vmatprep.mubr.msk.bf16.mxu0 %vm11399_vm6, %v17168_v57 }
 0x166   : > { %10447 = vmatmul.mubr.msk.bf16.gmra.mxu1 %vm2526_vm8, %v12148_v10 }
 0x167   : > { %10450 = vmatprep.mubr.msk.bf16.mxu1 %vm11399_vm6, %v17168_v57 }
 0x168   : > { %10501 = vmatmul.mubr.msk.bf16.gmra.mxu0 %vm2526_vm8, %v12329_v42 }
 0x169   : > { %10504 = vmatprep.mubr.msk.bf16.mxu0 %vm11399_vm6, %v17168_v57 }
 0x16e   : > { %10451 = vmatmul.mubr.msk.bf16.gmra.mxu1 %vm2526_vm8, %v12173_v46 }
 0x16f   : > { %10454 = vmatprep.mubr.msk.bf16.mxu1 %vm11399_vm6, %v17168_v57 }
 0x170   : > { %10505 = vmatmul.mubr.msk.bf16.gmra.mxu0 %vm2526_vm8, %v12345_v24 }
 0x171   : > { %10508 = vmatprep.mubr.msk.bf16.mxu0 %vm11399_vm6, %v17168_v57 }
 0x176   : > { %10455 = vmatmul.mubr.msk.bf16.gmra.mxu1 %vm2526_vm8, %v12195_v58 }
 0x177   : > { %10458 = vmatprep.mubr.msk.bf16.mxu1 %vm11399_vm6, %v17168_v57 }
 0x178   : > { %10509 = vmatmul.mubr.msk.bf16.gmra.mxu0 %vm2526_vm8, %v12361_v50 }
 0x179   : > { %10512 = vmatprep.mubr.msk.bf16.mxu0 %vm11399_vm6, %v17168_v57 }
 0x17e   : > { %v12499_v18 = vpop.f32.mrf.mxu1  ;;  %10459 = vmatmul.mubr.msk.bf16.gmra.mxu1 %vm2526_vm8, %v12207_v16 }
 0x17f   : > { %10462 = vmatprep.mubr.msk.bf16.mxu1 %vm11399_vm6, %v17168_v57  ;;  %v16843_v4 = vrot.slane %v12499_v18, 2 }
 0x180   : > { %10513 = vmatmul.mubr.msk.bf16.gmra.mxu0 %vm2526_vm8, %v12377_v34  ;;  %v10362_v53 = vpop.f32.mrf.mxu1 }
 0x181   : > { %10516 = vmatprep.mubr.msk.bf16.mxu0 %vm11399_vm6, %v17168_v57 }
 0x182   : > { %v2718_v54 = vpop.f32.mrf.mxu1 }
 0x183   : > { %v2886_v42 = vrot.slane %v2718_v54, 2 }
 0x184   : > { %v10363_v24 = vpop.f32.mrf.mxu1 }
 0x185   : > { %v12513_v50 = vsel %vm2207_vm4, %v16843_v4, %v2886_v42 }
 0x186   : > { %v2723_v59 = vpop.f32.mrf.mxu1  ;;  %10463 = vmatmul.mubr.msk.bf16.gmra.mxu1 %vm2526_vm8, %v12219_v28 }
 0x187   : > { %v2888_v22 = vrot.slane %v2723_v59, 2  ;;  %10466 = vmatprep.mubr.msk.bf16.mxu1 %vm11399_vm6, %v17168_v57 }
 0x188   : > { %10517 = vmatmul.mubr.msk.bf16.gmra.mxu0 %vm2526_vm8, %v12393_v30  ;;  %v10366_v34 = vpop.f32.mrf.mxu1 }
 0x189   : > { %10520 = vmatprep.mubr.msk.bf16.mxu0 %vm11399_vm6, %v17168_v57  ;;  %v12524_v33 = vsel %vm2207_vm4, %v2886_v42, %v2888_v22 }
 0x18a   : > { %v2726_v12 = vpop.f32.mrf.mxu1 }
 0x18b   : > { %v2890_v17 = vrot.slane %v2726_v12, 2 }
 0x18c   : > { %v10367_v37 = vpop.f32.mrf.mxu1 }
 0x18d   : > { %v12527_v31 = vsel %vm2207_vm4, %v2888_v22, %v2890_v17 }
 0x18e   : > { %v2731_v0 = vpop.f32.mrf.mxu1  ;;  %10467 = vmatmul.mubr.msk.bf16.gmra.mxu1 %vm2526_vm8, %v12231_v29 }
 0x18f   : > { %v2892_v19 = vrot.slane %v2731_v0, 2  ;;  %10470 = vmatprep.mubr.msk.bf16.mxu1 %vm11399_vm6, %v17168_v57 }
 0x190   : > { %10521 = vmatmul.mubr.msk.bf16.gmra.mxu0 %vm2526_vm8, %v12409_v15  ;;  %v10370_v30 = vpop.f32.mrf.mxu1 }
 0x191   : > { %10524 = vmatprep.mubr.msk.bf16.mxu0 %vm11399_vm6, %v17168_v57  ;;  %v12538_v56 = vsel %vm2207_vm4, %v2890_v17, %v2892_v19 }
 0x192   : > { %v2734_v41 = vpop.f32.mrf.mxu1 }
 0x193   : > { %v2894_v21 = vrot.slane %v2734_v41, 2 }
 0x194   : > { %v10371_v53 = vpop.f32.mrf.mxu1 }
 0x195   : > { %v12541_v54 = vsel %vm2207_vm4, %v2892_v19, %v2894_v21 }
 0x196   : > { %v2739_v42 = vpop.f32.mrf.mxu1  ;;  %10471 = vmatmul.mubr.msk.bf16.gmra.mxu1 %vm2526_vm8, %v12243_v32 }
 0x197   : > { %v2896_v24 = vrot.slane %v2739_v42, 2  ;;  %10474 = vmatprep.mubr.msk.bf16.mxu1 %vm11399_vm6, %v17168_v57 }
 0x198   : > { %10525 = vmatmul.mubr.msk.bf16.gmra.mxu0 %vm2526_vm8, %v12425_v6  ;;  %v10374_v15 = vpop.f32.mrf.mxu1 }
 0x199   : > { %10528 = vmatprep.mubr.msk.bf16.mxu0 %vm11399_vm6, %v17168_v57  ;;  %v12552_v59 = vsel %vm2207_vm4, %v2894_v21, %v2896_v24 }
 0x19a   : > { %v2742_v22 = vpop.f32.mrf.mxu1 }
 0x19b   : > { %v2898_v34 = vrot.slane %v2742_v22, 2 }
 0x19c   : > { %v10375_v12 = vpop.f32.mrf.mxu1 }
 0x19d   : > { %v12555_v17 = vsel %vm2207_vm4, %v2896_v24, %v2898_v34 }
 0x19e   : > { %v2747_v37 = vpop.f32.mrf.mxu1  ;;  %10475 = vmatmul.mubr.msk.bf16.gmra.mxu1 %vm2526_vm8, %v12264_v44 }
 0x19f   : > { %v2900_v0 = vrot.slane %v2747_v37, 2  ;;  %10478 = vmatprep.mubr.msk.bf16.mxu1 %vm11399_vm6, %v17168_v57 }
 0x1a0   : > { %10529 = vmatmul.mubr.msk.bf16.gmra.mxu0 %vm2526_vm8, %v12441_v48  ;;  %v10378_v6 = vpop.f32.mrf.mxu1 }
 0x1a1   : > { %10532 = vmatprep.mubr.msk.bf16.mxu0 %vm11399_vm6, %v17168_v57  ;;  %v12566_v19 = vsel %vm2207_vm4, %v2898_v34, %v2900_v0 }
 0x1a2   : > { %v2750_v30 = vpop.f32.mrf.mxu1 }
 0x1a3   : > { %v2902_v41 = vrot.slane %v2750_v30, 2 }
 0x1a4   : > { %v10379_v21 = vpop.f32.mrf.mxu1 }
 0x1a5   : > { %v12569_v53 = vsel %vm2207_vm4, %v2900_v0, %v2902_v41 }
 0x1a6   : > { %v2755_v42 = vpop.f32.mrf.mxu1  ;;  %10479 = vmatmul.mubr.msk.bf16.gmra.mxu1 %vm2526_vm8, %v12290_v38 }
 0x1a7   : > { %v2904_v24 = vrot.slane %v2755_v42, 2  ;;  %10482 = vmatprep.mubr.msk.bf16.mxu1 %vm11399_vm6, %v17168_v57 }
 0x1a8   : > { %10533 = vmatmul.mubr.msk.bf16.gmra.mxu0 %vm2526_vm8, %v12148_v10  ;;  %v10382_v48 = vpop.f32.mrf.mxu1 }
 0x1a9   : > { %10536 = vmatprep.mubr.msk.bf16.mxu0 %vm11399_vm6, %v17168_v57  ;;  %v12580_v15 = vsel %vm2207_vm4, %v2902_v41, %v2904_v24 }
 0x1aa   : > { %v2758_v22 = vpop.f32.mrf.mxu1 }
 0x1ab   : > { %v2906_v34 = vrot.slane %v2758_v22, 2 }
 0x1ac   : > { %v10383_v12 = vpop.f32.mrf.mxu1 }
 0x1ad   : > { %v12583_v37 = vsel %vm2207_vm4, %v2904_v24, %v2906_v34 }
 0x1ae   : > { %v2763_v0 = vpop.f32.mrf.mxu1  ;;  %10483 = vmatmul.mubr.msk.bf16.gmra.mxu1 %vm2526_vm8, %v12313_v35 }
 0x1af   : > { %v2908_v6 = vrot.slane %v2763_v0, 2  ;;  %10576 = vmatprep.mubr.msk.bf16.mxu1 %vm11399_vm6, %v17168_v57 }
 0x1b0   : > { %10537 = vmatmul.mubr.msk.bf16.gmra.mxu0 %vm2526_vm8, %v12173_v46  ;;  %v10386_v10 = vpop.f32.mrf.mxu1 }
 0x1b1   : > { %10540 = vmatprep.mubr.msk.bf16.mxu0 %vm11399_vm6, %v17168_v57  ;;  %v12594_v30 = vsel %vm2207_vm4, %v2906_v34, %v2908_v6 }
 0x1b2   : > { %v2766_v41 = vpop.f32.mrf.mxu1 }
 0x1b3   : > { %v2910_v21 = vrot.slane %v2766_v41, 2 }
 0x1b4   : > { %v2627_v42 = vpop.f32.mrf.mxu0  ;;  %v10387_v24 = vpop.f32.mrf.mxu1 }
 0x1b5   : > { %v12597_v48 = vsel %vm2207_vm4, %v2908_v6, %v2910_v21  ;;  %v2793_v0 = vrot.slane %v2627_v42, 4 }
 0x1b6   : > { %v10318_v22 = vpop.f32.mrf.mxu0  ;;  %v2771_v12 = vpop.f32.mrf.mxu1 }
 0x1b7   : > { %v2912_v4 = vrot.slane %v2771_v12, 2 }
 0x1b8   : > { %10541 = vmatmul.mubr.msk.bf16.gmra.mxu0 %vm2526_vm8, %v12195_v58  ;;  %v2630_v46 = vpop.f32.mrf.mxu0  ;;  %v10390_v10 = vpop.f32.mrf.mxu1 }
 0x1b9   : > { %v2794_v3 = vrot.slane %v2630_v46, 4  ;;  %10544 = vmatprep.mubr.msk.bf16.mxu0 %vm11399_vm6, %v17168_v57  ;;  %v12604_v34 = vsel %vm2207_vm4, %v2910_v21, %v2912_v4 }
 0x1ba   : > { %v10319_v41 = vpop.f32.mrf.mxu0  ;;  %v2774_v24 = vpop.f32.mrf.mxu1 }
 0x1bb   : > { %v2797_v6 = vsel %vm1959_vm5, %v2794_v3, %v2793_v0  ;;  %v2914_v22 = vrot.slane %v2774_v24, 2 }
 0x1bc   : > { %v2635_v1 = vpop.f32.mrf.mxu0  ;;  %v10391_v42 = vpop.f32.mrf.mxu1  ;;  %v2922_v21 = vrot.slane %v2797_v6, 2 }
 0x1bd   : > { %v2795_v12 = vrot.slane %v2635_v1, 4  ;;  %v12608_v20 = vsel %vm2207_vm4, %v2912_v4, %v2914_v22  ;;  %v2845_v46 = vrot.slane %v2635_v1, 2 }
 0x1be   : > { %v10322_v58 = vpop.f32.mrf.mxu0  ;;  %v2779_v10 = vpop.f32.mrf.mxu1 }
 0x1bf   : > { %v2916_v23 = vrot.slane %v2779_v10, 2  ;;  %v12611_v11 = vsel %vm1959_vm5, %v2795_v12, %v2794_v3 }
 0x1c0   : > { %17178 = vst [vmem:[#allocation44_spill] sm:$0xff] %v12611_v11  ;;  %10545 = vmatmul.mubr.msk.bf16.gmra.mxu0 %vm2526_vm8, %v12207_v16  ;;  %v2638_v41 = vpop.f32.mrf.mxu0  ;;  %v10394_v2 = vpop.f32.mrf.mxu1  ;;  %v16852_v24 = vrot.slane %v12611_v11, 2  ;;  %v17188_v11 = vld [vmem:[#allocation3_spill] sm:$0xff] }
 0x1c1   : > { %v2846_v42 = vrot.slane %v2638_v41, 2  ;;  %10548 = vmatprep.mubr.msk.bf16.mxu0 %vm11399_vm6, %v17168_v57  ;;  %v12619_v4 = vsel %vm2207_vm4, %v2914_v22, %v2916_v23  ;;  %vm3689_vm11 = vcmp.ge.s32.totalorder %v17188_v11, 1 }
 0x1c2   : > { %v10323_v1 = vpop.f32.mrf.mxu0  ;;  %v2782_v58 = vpop.f32.mrf.mxu1  ;;  %v12624_v3 = vsel %vm2207_vm4, %v2922_v21, %v16852_v24 }
 0x1c3   : > { %17179 = vst [vmem:[#allocation45_spill] sm:$0xff] %v12624_v3  ;;  %v2918_v6 = vrot.slane %v2782_v58, 2  ;;  %v2847_v16 = vsel %vm2207_vm4, %v2845_v46, %v2846_v42 }
 0x1c4   : > { %v2643_v2 = vpop.f32.mrf.mxu0  ;;  %v10395_v12 = vpop.f32.mrf.mxu1 }
 0x1c5   : > { %v2848_v10 = vrot.slane %v2643_v2, 2  ;;  %v12628_v41 = vsel %vm2207_vm4, %v2916_v23, %v2918_v6 }
 0x1c6   : > { %v10326_v62 = vpop.f32.mrf.mxu0  ;;  %v2787_v61 = vpop.f32.mrf.mxu1 }
 0x1c7   : > { %v2796_v22 = vsel %vm1959_vm5, %v2793_v0, %v2787_v61  ;;  %v2849_v1 = vsel %vm2207_vm4, %v2846_v42, %v2848_v10 }
 0x1c8   : > { %10549 = vmatmul.mubr.msk.bf16.gmra.mxu0 %vm2526_vm8, %v12219_v28  ;;  %v2646_v24 = vpop.f32.mrf.mxu0  ;;  %v2920_v14 = vrot.slane %v2796_v22, 2  ;;  %v10398_v58 = vpop.f32.mrf.mxu1 }
 0x1c9   : > { %v2850_v5 = vrot.slane %v2646_v24, 2  ;;  %10552 = vmatprep.mubr.msk.bf16.mxu0 %vm11399_vm6, %v17168_v57 }
 0x1ca   : > { %v10327_v46 = vpop.f32.mrf.mxu0  ;;  %v2790_v2 = vpop.f32.mrf.mxu1  ;;  %v12637_v23 = vsel %vm2207_vm4, %v2918_v6, %v2920_v14  ;;  %v12640_v62 = vsel %vm2207_vm4, %v2920_v14, %v2922_v21 }
 0x1cb   : > { %v2851_v61 = vsel %vm2207_vm4, %v2848_v10, %v2850_v5 }
 0x1cc   : > { %v2651_v0 = vpop.f32.mrf.mxu0  ;;  %v10399_v42 = vpop.f32.mrf.mxu1 }
 0x1cd   : > { %v2852_v28 = vrot.slane %v2651_v0, 2 }
 0x1ce   : > { %v10330_v12 = vpop.f32.mrf.mxu0  ;;  %v3004_v22 = vpop.f32.mrf.mxu1 }
 0x1cf   : > { %v12643_v58 = vadd.f32 %v3004_v22, %v2847_v16  ;;  %v2853_v24 = vsel %vm2207_vm4, %v2850_v5, %v2852_v28 }
 0x1d0   : > { %10553 = vmatmul.mubr.msk.bf16.gmra.mxu0 %vm2526_vm8, %v12231_v29  ;;  %v2654_v46 = vpop.f32.mrf.mxu0  ;;  %v10404_v6 = vpop.f32.mrf.mxu1 }
 0x1d1   : > { %v2854_v2 = vrot.slane %v2654_v46, 2  ;;  %10556 = vmatprep.mubr.msk.bf16.mxu0 %vm11399_vm6, %v17168_v57 }
 0x1d2   : > { %v10331_v14 = vpop.f32.mrf.mxu0  ;;  %v3007_v21 = vpop.f32.mrf.mxu1 }
 0x1d3   : > { %v12650_v10 = vadd.f32 %v3007_v21, %v2849_v1  ;;  %v2855_v0 = vsel %vm2207_vm4, %v2852_v28, %v2854_v2 }
 0x1d4   : > { %v2659_v42 = vpop.f32.mrf.mxu0  ;;  %v10405_v16 = vpop.f32.mrf.mxu1 }
 0x1d5   : > { %v2856_v12 = vrot.slane %v2659_v42, 2 }
 0x1d6   : > { %v10334_v22 = vpop.f32.mrf.mxu0  ;;  %v3012_v5 = vpop.f32.mrf.mxu1 }
 0x1d7   : > { %v12653_v47 = vadd.f32 %v3012_v5, %v2851_v61  ;;  %v2857_v29 = vsel %vm2207_vm4, %v2854_v2, %v2856_v12 }
 0x1d8   : > { %10557 = vmatmul.mubr.msk.bf16.gmra.mxu0 %vm2526_vm8, %v12243_v32  ;;  %v2662_v46 = vpop.f32.mrf.mxu0  ;;  %v10408_v6 = vpop.f32.mrf.mxu1 }
 0x1d9   : > { %v2858_v14 = vrot.slane %v2662_v46, 2  ;;  %10560 = vmatprep.mubr.msk.bf16.mxu0 %vm11399_vm6, %v17168_v57 }
 0x1da   : > { %v10335_v1 = vpop.f32.mrf.mxu0  ;;  %v3015_v28 = vpop.f32.mrf.mxu1 }
 0x1db   : > { %v12660_v21 = vadd.f32 %v3015_v28, %v2853_v24  ;;  %v2859_v42 = vsel %vm2207_vm4, %v2856_v12, %v2858_v14 }
 0x1dc   : > { %v2667_v16 = vpop.f32.mrf.mxu0  ;;  %v10409_v61 = vpop.f32.mrf.mxu1 }
 0x1dd   : > { %v2860_v22 = vrot.slane %v2667_v16, 2 }
 0x1de   : > { %v10338_v5 = vpop.f32.mrf.mxu0  ;;  %v3020_v2 = vpop.f32.mrf.mxu1 }
 0x1df   : > { %v12663_v25 = vadd.f32 %v3020_v2, %v2855_v0  ;;  %v2861_v32 = vsel %vm2207_vm4, %v2858_v14, %v2860_v22 }
 0x1e0   : > { %10561 = vmatmul.mubr.msk.bf16.gmra.mxu0 %vm2526_vm8, %v12264_v44  ;;  %v2670_v46 = vpop.f32.mrf.mxu0  ;;  %v10412_v6 = vpop.f32.mrf.mxu1 }
 0x1e1   : > { %v2862_v1 = vrot.slane %v2670_v46, 2  ;;  %10564 = vmatprep.mubr.msk.bf16.mxu0 %vm11399_vm6, %v17168_v57 }
 0x1e2   : > { %v10339_v24 = vpop.f32.mrf.mxu0  ;;  %v3023_v12 = vpop.f32.mrf.mxu1 }
 0x1e3   : > { %v12670_v28 = vadd.f32 %v3023_v12, %v2857_v29  ;;  %v2863_v16 = vsel %vm2207_vm4, %v2860_v22, %v2862_v1 }
 0x1e4   : > { %v10413_v61 = vpop.f32.mrf.mxu1 }
 0x1e6   : > { %v3028_v0 = vpop.f32.mrf.mxu1 }
 0x1e7   : > { %v12673_v5 = vadd.f32 %v3028_v0, %v2859_v42 }
 0x1e8   : > { %v2675_v14 = vpop.f32.mrf.mxu0  ;;  %10565 = vmatmul.mubr.msk.bf16.gmra.mxu0 %vm2526_vm8, %v12290_v38  ;;  %v10416_v44 = vpop.f32.mrf.mxu1 }
 0x1e9   : > { %v2864_v2 = vrot.slane %v2675_v14, 2  ;;  %10568 = vmatprep.mubr.msk.bf16.mxu0 %vm11399_vm6, %v17168_v57 }
 0x1ea   : > { %v10342_v46 = vpop.f32.mrf.mxu0  ;;  %v3031_v6 = vpop.f32.mrf.mxu1 }
 0x1eb   : > { %v12679_v24 = vadd.f32 %v3031_v6, %v2861_v32  ;;  %v2865_v29 = vsel %vm2207_vm4, %v2862_v1, %v2864_v2 }
 0x1ec   : > { %v2678_v22 = vpop.f32.mrf.mxu0  ;;  %v10417_v12 = vpop.f32.mrf.mxu1 }
 0x1ed   : > { %v2866_v61 = vrot.slane %v2678_v22, 2 }
 0x1ee   : > { %v10343_v42 = vpop.f32.mrf.mxu0  ;;  %v3036_v0 = vpop.f32.mrf.mxu1 }
 0x1ef   : > { %v12682_v36 = vadd.f32 %v3036_v0, %v2863_v16  ;;  %v2867_v38 = vsel %vm2207_vm4, %v2864_v2, %v2866_v61 }
 0x1f0   : > { %v2683_v44 = vpop.f32.mrf.mxu0  ;;  %10569 = vmatmul.mubr.msk.bf16.gmra.mxu0 %vm2526_vm8, %v12313_v35  ;;  %v10420_v14 = vpop.f32.mrf.mxu1  ;;  %vm13693_vm8 = vmor %vm4538_vm2, %vm4539_vm15 }
 0x1f1   : > { %v2868_v46 = vrot.slane %v2683_v44, 2  ;;  %10664 = vmatprep.mubr.msk.bf16.mxu0 %vm11399_vm6, %v17168_v57 }
 0x1f2   : > { %v10346_v32 = vpop.f32.mrf.mxu0  ;;  %v3039_v1 = vpop.f32.mrf.mxu1 }
 0x1f3   : > { %v12689_v6 = vadd.f32 %v3039_v1, %v2865_v29  ;;  %v2869_v22 = vsel %vm2207_vm4, %v2866_v61, %v2868_v46 }
 0x1f4   : > { %v2686_v12 = vpop.f32.mrf.mxu0  ;;  %v10421_v16 = vpop.f32.mrf.mxu1 }
 0x1f5   : > { %v2870_v42 = vrot.slane %v2686_v12, 2 }
 0x1f6   : > { %v10347_v0 = vpop.f32.mrf.mxu0  ;;  %v3044_v2 = vpop.f32.mrf.mxu1 }
 0x1f7   : > { %v12692_v60 = vadd.f32 %v3044_v2, %v2867_v38  ;;  %v2871_v35 = vsel %vm2207_vm4, %v2868_v46, %v2870_v42 }
 0x1f8   : > { %v2691_v14 = vpop.f32.mrf.mxu0  ;;  %v10424_v44 = vpop.f32.mrf.mxu1 }
 0x1f9   : > { %v2872_v51 = vrot.slane %v2691_v14, 2 }
 0x1fa   : > { %v10350_v7 = vpop.f32.mrf.mxu0  ;;  %v3047_v52 = vpop.f32.mrf.mxu1 }
 0x1fb   : > { %v12695_v32 = vadd.f32 %v3047_v52, %v2869_v22  ;;  %v2873_v29 = vsel %vm2207_vm4, %v2870_v42, %v2872_v51 }
 0x1fc   : > { %v2694_v1 = vpop.f32.mrf.mxu0  ;;  %v10425_v61 = vpop.f32.mrf.mxu1 }
 0x1fd   : > { %v2874_v13 = vrot.slane %v2694_v1, 2 }
 0x1fe   : > { %v10351_v16 = vpop.f32.mrf.mxu0  ;;  %v3052_v12 = vpop.f32.mrf.mxu1 }
 0x1ff   : > { %v12698_v0 = vadd.f32 %v3052_v12, %v2871_v35  ;;  %v2875_v38 = vsel %vm2207_vm4, %v2872_v51, %v2874_v13 }
 0x200   : > { %v2699_v2 = vpop.f32.mrf.mxu0  ;;  %v10428_v46 = vpop.f32.mrf.mxu1 }
 0x201   : > { %v2876_v43 = vrot.slane %v2699_v2, 2 }
 0x202   : > { %v10354_v44 = vpop.f32.mrf.mxu0  ;;  %v3055_v14 = vpop.f32.mrf.mxu1 }
 0x203   : > { %v12701_v7 = vadd.f32 %v3055_v14, %v2873_v29  ;;  %v2877_v52 = vsel %vm2207_vm4, %v2874_v13, %v2876_v43 }
 0x204   : > { %v2702_v22 = vpop.f32.mrf.mxu0  ;;  %v10429_v42 = vpop.f32.mrf.mxu1 }
 0x205   : > { %v2878_v49 = vrot.slane %v2702_v22, 2 }
 0x206   : > { %v10355_v61 = vpop.f32.mrf.mxu0  ;;  %v3060_v1 = vpop.f32.mrf.mxu1 }
 0x207   : > { %v12704_v16 = vadd.f32 %v3060_v1, %v2875_v38  ;;  %v2879_v35 = vsel %vm2207_vm4, %v2876_v43, %v2878_v49  ;;  %v17180_v43 = vrot.slane %v12499_v18, 2 }
 0x208   : > { %v2707_v12 = vpop.f32.mrf.mxu0  ;;  %v10432_v51 = vpop.f32.mrf.mxu1 }
 0x209   : > { %v2880_v39 = vrot.slane %v2707_v12, 2 }
 0x20a   : > { %v10358_v46 = vpop.f32.mrf.mxu0  ;;  %v3063_v2 = vpop.f32.mrf.mxu1 }
 0x20b   : > { %v12707_v44 = vadd.f32 %v3063_v2, %v2877_v52  ;;  %v2881_v29 = vsel %vm2207_vm4, %v2878_v49, %v2880_v39 }
 0x20c   : > { %v2710_v14 = vpop.f32.mrf.mxu0  ;;  %v10433_v13 = vpop.f32.mrf.mxu1 }
 0x20d   : > { %v2882_v8 = vrot.slane %v2710_v14, 2 }
 0x20e   : > { %v10359_v42 = vpop.f32.mrf.mxu0  ;;  %v3068_v22 = vpop.f32.mrf.mxu1 }
 0x20f   : > { %v12710_v61 = vadd.f32 %v3068_v22, %v2879_v35  ;;  %v2883_v38 = vsel %vm2207_vm4, %v2880_v39, %v2882_v8  ;;  %v2885_v1 = vsel %vm2207_vm4, %v2882_v8, %v17180_v43 }
 0x210   : > { %v12716_v12 = vpop.f32.mrf.mxu0  ;;  %v10436_v51 = vpop.f32.mrf.mxu1 }
 0x211   : > { %17181 = vst [vmem:[#allocation46_spill] sm:$0xff] %v12716_v12  ;;  %v16864_v14 = vrot.slane %v12716_v12, 4 }
 0x212   : > { %v10490_v52 = vpop.f32.mrf.mxu0  ;;  %v3071_v46 = vpop.f32.mrf.mxu1 }
 0x213   : > { %v12718_v2 = vadd.f32 %v3071_v46, %v2881_v29 }
 0x214   : > { %v3218_v49 = vpop.f32.mrf.mxu0  ;;  %v10437_v13 = vpop.f32.mrf.mxu1 }
 0x215   : > { %v3382_v42 = vrot.slane %v3218_v49, 4 }
 0x216   : > { %v10491_v35 = vpop.f32.mrf.mxu0  ;;  %v3076_v22 = vpop.f32.mrf.mxu1 }
 0x217   : > { %v12724_v39 = vsel %vm1959_vm5, %v3382_v42, %v16864_v14  ;;  %v12726_v8 = vadd.f32 %v3076_v22, %v2883_v38 }
 0x218   : > { %17182 = vst [vmem:[#allocation47_spill] sm:$0xff] %v12724_v39  ;;  %v3223_v18 = vpop.f32.mrf.mxu0  ;;  %v10440_v43 = vpop.f32.mrf.mxu1  ;;  %v16866_v49 = vrot.slane %v12724_v39, 4 }
 0x219   : > { %v3383_v51 = vrot.slane %v3223_v18, 4 }
 0x21a   : > { %v10494_v52 = vpop.f32.mrf.mxu0  ;;  %v3079_v29 = vpop.f32.mrf.mxu1 }
 0x21b   : > { %v3388_v46 = vsel %vm1959_vm5, %v3383_v51, %v3382_v42  ;;  %v12729_v13 = vadd.f32 %v3079_v29, %v2885_v1  ;;  %v11375_v1 = vld [vmem:[%s16807_s3 + $0x14] ss:$0 sps:$4 sm:$0xff]  }
 0x21c   : > { %v3508_v35 = vrot.slane %v3388_v46, 4  ;;  %v3226_v63 = vpop.f32.mrf.mxu0  ;;  %v10441_v26 = vpop.f32.mrf.mxu1 }
 0x21d   : > { %v3384_v45 = vrot.slane %v3226_v63, 4 }
 0x21e   : > { %v10495_v14 = vpop.f32.mrf.mxu0  ;;  %v3084_v55 = vpop.f32.mrf.mxu1  ;;  %v12735_v38 = vsel %vm3432_vm9, %v16866_v49, %v3508_v35 }
 0x21f   : > { %v3389_v22 = vsel %vm1959_vm5, %v3384_v45, %v3383_v51  ;;  %v12739_v42 = vadd.f32 %v3084_v55, %v12513_v50  ;;  %v6989_v14 = vsel %vm3432_vm9, %v11375_v1, 0 }
 0x220   : > { %v3510_v18 = vrot.slane %v3389_v22, 4  ;;  %v3231_v43 = vpop.f32.mrf.mxu0  ;;  %v10444_v26 = vpop.f32.mrf.mxu1  ;;  %10573 = vmatpush3.bf16.msra.mxu1 %v6989_v14 }
 0x221   : > { %v3385_v63 = vrot.slane %v3231_v43, 4  ;;  %10574 = vmatprep.subr.bf16.mxu1 %v17168_v57 }
 0x222   : > { %v10498_v52 = vpop.f32.mrf.mxu0  ;;  %v3087_v29 = vpop.f32.mrf.mxu1  ;;  %v12746_v46 = vsel %vm3432_vm9, %v3508_v35, %v3510_v18 }
 0x223   : > { %17183 = vst [vmem:[#allocation48_spill] sm:$0xff] %v12746_v46  ;;  %v12749_v51 = vsel %vm1959_vm5, %v3385_v63, %v3384_v45  ;;  %v12752_v55 = vadd.f32 %v3087_v29, %v12524_v33  ;;  %v12765_v33 = vld [vmem:[%s16806_s2] ss:$0 sm:$0xff] }
 0x224   : > { %17184 = vst [vmem:[#allocation49_spill] sm:$0xff] %v12749_v51  ;;  %v16870_v50 = vrot.slane %v12749_v51, 4  ;;  %v3234_v22 = vpop.f32.mrf.mxu0  ;;  %v10445_v43 = vpop.f32.mrf.mxu1 }
 0x225   : > { %17185 = vst [vmem:[#allocation50_spill] sm:$0xff] %v12752_v55  ;;  %v3434_v26 = vrot.slane %v3234_v22, 4 }
 0x226   : > { %v10499_v1 = vpop.f32.mrf.mxu0  ;;  %v3092_v52 = vpop.f32.mrf.mxu1  ;;  %v12759_v35 = vsel %vm3432_vm9, %v3510_v18, %v16870_v50  ;;  %v5204_v18 = vunpack.c.l.s4 %v11401_v40  ;;  %v11402_v50 = vmov 1987475062  }
 0x227   : > { %17186 = vst [vmem:[#allocation51_spill] sm:$0xff] %v12759_v35  ;;  %v3435_v45 = vsel %vm3432_vm9, %v3385_v63, %v3434_v26  ;;  %v12768_v14 = vadd.f32 %v3092_v52, %v12527_v31  ;;  %v11400_v1 = vmov 269488144   ;;  %v5218_v39 = vunpack.c.l.s4 %v11402_v50 }
 0x228   : > { %v3555_v29 = vadd.f32 %v3435_v45, %v12643_v58  ;;  %v3239_v22 = vpop.f32.mrf.mxu0  ;;  %v10448_v43 = vpop.f32.mrf.mxu1  ;;  %v5197_v49 = vunpack.c.l.s4 %v11400_v1  ;;  %v3688_v35 = vadd.s32 16, %v17188_v11  ;;  %v11403_v58 = vmov 1414812756  }
 0x229   : > { %17187 = vst [vmem:[#allocation52_spill] sm:$0xff] %v12768_v14  ;;  %v3436_v27 = vrot.slane %v3239_v22, 4  ;;  %v5211_v45 = vunpack.c.l.s4 %v11403_v58  ;;  %v5205_v50 = vunpack.c.0.s8 %v5204_v18  ;;  %v5219_v46 = vunpack.c.0.s8 %v5218_v39 }
 0x22a   : > { %v3603_v63 = vadd.f32 %v12765_v33, %v3555_v29  ;;  %v10502_v12 = vpop.f32.mrf.mxu0  ;;  %v3095_v51 = vpop.f32.mrf.mxu1  ;;  %v5198_v40 = vunpack.c.0.s8 %v5197_v49  ;;  %vm3700_vm10 = vcmp.le.s32.totalorder %v3688_v35, 16 }
 0x22b   : > { %v3437_v31 = vsel %vm3432_vm9, %v3434_v26, %v3436_v27  ;;  %v12775_v52 = vadd.f32 %v3095_v51, %v12538_v56  ;;  %v12790_v35 = vsub.s32 %v5205_v50, %v17188_v11 }
 0x22c   : > { %v3556_v43 = vadd.f32 %v3437_v31, %v12650_v10  ;;  %v3242_v22 = vpop.f32.mrf.mxu0  ;;  %v10449_v1 = vpop.f32.mrf.mxu1  ;;  %v3644_v29 = vmax.f32 %v3603_v63, 0.0  ;;  %v5212_v10 = vunpack.c.0.s8 %v5211_v45  ;;  %v12786_v39 = vsub.s32 %v5198_v40, %v17188_v11 }
 0x22d   : > { %v3438_v14 = vrot.slane %v3242_v22, 4 }
 0x22e   : > { %v3604_v12 = vadd.f32 %v12765_v33, %v3556_v43  ;;  %v10503_v55 = vpop.f32.mrf.mxu0  ;;  %v3100_v3 = vpop.f32.mrf.mxu1  ;;  %v9973_v43 = vsel %vm3689_vm11, 1.0, %v17168_v57  ;;  %v5215_v40 = vsub.s32 %v5212_v10, %v17188_v11  ;;  %vm6924_vm11 = vcmask 195584  }
 0x22f   : > { %v3439_v26 = vsel %vm3432_vm9, %v3436_v27, %v3438_v14  ;;  %v12781_v56 = vadd.f32 %v3100_v3, %v12541_v54  ;;  %v9974_v55 = vsel %vm3700_vm10, 1.0, %v17168_v57  ;;  %v12793_v27 = vsub.s32 %v5219_v46, %v17188_v11 }
 0x230   : > { %v3645_v51 = vmax.f32 %v3604_v12, 0.0  ;;  %v3557_v49 = vadd.f32 %v3439_v26, %v12653_v47  ;;  %v3247_v31 = vpop.f32.mrf.mxu0  ;;  %v10452_v18 = vpop.f32.mrf.mxu1  ;;  %v12795_v54 = vrot.slane %v3644_v29, 4  ;;  %vm6845_vm10 = vcmask 130048  }
 0x231   : > { %17189 = vst [vmem:[#allocation3_spill] sm:$0xff] %v12781_v56  ;;  %v3440_v63 = vrot.slane %v3247_v31, 4  ;;  %v12819_v11 = vrot.slane %v9973_v43, %v12793_v27 }
 0x232   : > { %17190 = vst [vmem:[#allocation53_spill] sm:$0xff] %v12795_v54  ;;  %v3720_v3 = vrot.slane %v3645_v51, 4  ;;  %v3605_v58 = vadd.f32 %v12765_v33, %v3557_v49  ;;  %v10506_v47 = vpop.f32.mrf.mxu0  ;;  %v3103_v45 = vpop.f32.mrf.mxu1  ;;  %v12812_v51 = vrot.slane %v9974_v55, %v12786_v39 }
 0x233   : > { %v3441_v22 = vsel %vm3432_vm9, %v3438_v14, %v3440_v63  ;;  %v12803_v1 = vadd.f32 %v3103_v45, %v12552_v59  ;;  %17194 = vst [vmem:[#allocation57_spill] sm:$0xff] %v12819_v11 }
 0x234   : > { %v3759_v46 = vsel %vm1959_vm5, %v3720_v3, %v12795_v54  ;;  %v3646_v50 = vmax.f32 %v3605_v58, 0.0  ;;  %v3558_v29 = vadd.f32 %v3441_v22, %v12660_v21  ;;  %v12809_v12 = vpop.f32.mrf.mxu0  ;;  %v10453_v26 = vpop.f32.mrf.mxu1  ;;  %17192 = vst [vmem:[#allocation55_spill] sm:$0xff] %v12812_v51  ;;  %v11404_v58 = vmov 1.0  }
 0x235   : > { %17191 = vst [vmem:[#allocation54_spill] sm:$0xff] %v12803_v1  ;;  %v3889_v49 = vcombine.high %v3759_v46, %v3759_v46  ;;  %v12815_v14 = vrot.slane %v3759_v46, %v11562_v9  ;;  %v3442_v59 = vrot.slane %v12809_v12, 4  ;;  %v12823_v47 = vrot.slane %v11404_v58, %v12786_v39 }
 0x236   : > { %v3721_v10 = vrot.slane %v3646_v50, 4  ;;  %v3606_v31 = vadd.f32 %v12765_v33, %v3558_v29  ;;  %v10507_v18 = vpop.f32.mrf.mxu0  ;;  %v3108_v21 = vpop.f32.mrf.mxu1  ;;  %v12826_v55 = vrot.slane %v11404_v58, %v12790_v35  ;;  %v12834_v50 = vrot.slane %v11404_v58, %v5215_v40 }
 0x237   : > { %17193 = vst [vmem:[#allocation56_spill] sm:$0xff] %v12815_v14  ;;  %17195 = vst [vmem:[#allocation58_spill] sm:$0xff] %v12823_v47  ;;  %v12829_v45 = vrot.slane %v3889_v49, %v11562_v9  ;;  %v3904_v22 = vcombine.high %v12815_v14, %v12815_v14  ;;  %v3443_v46 = vsel %vm3432_vm9, %v3440_v63, %v3442_v59 }
 0x238   : > { %17196 = vst [vmem:[#allocation59_spill] sm:$0xff] %v12826_v55  ;;  %17198 = vst [vmem:[#allocation61_spill] sm:$0xff] %v12834_v50  ;;  %v3760_v29 = vsel %vm1959_vm5, %v3721_v10, %v3720_v3  ;;  %v3647_v12 = vmax.f32 %v3606_v31, 0.0  ;;  %v3559_v26 = vadd.f32 %v3443_v46, %v12663_v25  ;;  %v3255_v18 = vpop.f32.mrf.mxu0  ;;  %v12839_v51 = vadd.f32 %v3108_v21, %v12555_v17  ;;  %v10456_v55 = vpop.f32.mrf.mxu1 }
 0x239   : > { %17197 = vst [vmem:[#allocation60_spill] sm:$0xff] %v12829_v45  ;;  %v3905_v49 = vcombine.high %v12829_v45, %v12829_v45  ;;  %v12844_v47 = vrot.slane %v9973_v43, %v12786_v39  ;;  %v12847_v63 = vrot.slane %v9973_v43, %v12790_v35  ;;  %v12850_v50 = vrot.slane %v11404_v58, %v12793_v27 }
 0x23a   : > { %17199 = vst [vmem:[#allocation62_spill] sm:$0xff] %v12839_v51  ;;  %v3906_v3 = vcombine.high %v3760_v29, %v3760_v29  ;;  %v12853_v25 = vrot.slane %v3760_v29, %v11562_v9  ;;  %v3722_v31 = vrot.slane %v3647_v12, 4  ;;  %v3607_v17 = vadd.f32 %v12765_v33, %v3559_v26  ;;  %v10510_v21 = vpop.f32.mrf.mxu0  ;;  %v12856_v55 = vpop.f32.mrf.mxu1 }
 0x23b   : > { %17200 = vst [vmem:[#allocation63_spill] sm:$0xff] %v12844_v47  ;;  %17201 = vst [vmem:[#allocation64_spill] sm:$0xff] %v12847_v63  ;;  %v12859_v11 = vrot.slane %v3904_v22, 7  ;;  %v12862_v63 = vrot.slane %v9973_v43, %v5215_v40  ;;  %v3444_v26 = vrot.slane %v3255_v18, 4  ;;  %v12870_v51 = vrot.slane %v3905_v49, 7 }
 0x23c   : > { %17202 = vst [vmem:[#allocation65_spill] sm:$0xff] %v12850_v50  ;;  %17203 = vst [vmem:[#allocation66_spill] sm:$0xff] %v12853_v25  ;;  %v12865_v58 = vrot.slane %v3906_v3, %v11562_v9  ;;  %v3921_v29 = vcombine.high %v12853_v25, %v12853_v25  ;;  %v3761_v12 = vsel %vm1959_vm5, %v3722_v31, %v3721_v10  ;;  %v3258_v21 = vpop.f32.mrf.mxu0  ;;  %v10457_v50 = vpop.f32.mrf.mxu1  ;;  %v3648_v47 = vmax.f32 %v3607_v17, 0.0 }
 0x23d   : > { %17204 = vst [vmem:[#allocation67_spill] sm:$0xff] %v12859_v11  ;;  %17205 = vst [vmem:[#allocation68_spill] sm:$0xff] %v12862_v63  ;;  %v3923_v46 = vcombine.high %v3761_v12, %v3761_v12  ;;  %v12873_v22 = vrot.slane %v3761_v12, %v11562_v9  ;;  %v12879_v3 = vrot.slane %v17168_v57, %v12786_v39 }
 0x23e   : > { %17206 = vst [vmem:[#allocation69_spill] sm:$0xff] %v12865_v58  ;;  %17207 = vst [vmem:[#allocation70_spill] sm:$0xff] %v12870_v51  ;;  %v10511_v43 = vpop.f32.mrf.mxu0  ;;  %v12875_v63 = vpop.f32.mrf.mxu1  ;;  %v12883_v10 = vrot.slane %v17168_v57, %v12790_v35  ;;  %v12886_v50 = vrot.slane %v17168_v57, %v5215_v40  ;;  %v12890_v18 = vrot.slane %v17168_v57, %v12793_v27  ;;  %v12895_v12 = vrot.slane %v3921_v29, 7 }
 0x23f   : > { %17208 = vst [vmem:[#allocation71_spill] sm:$0xff] %v12873_v22  ;;  %17209 = vst [vmem:[#allocation72_spill] sm:$0xff] %v12879_v3  ;;  %v3922_v49 = vcombine.high %v12865_v58, %v12865_v58  ;;  %v3723_v39 = vrot.slane %v3648_v47, 4  ;;  %v17214_v43 = vrot.slane %v12815_v14, 7  ;;  %v3938_v40 = vcombine.high %v12873_v22, %v12873_v22 }
 0x240   : > { %17210 = vst [vmem:[#allocation73_spill] sm:$0xff] %v12883_v10  ;;  %17211 = vst [vmem:[#allocation74_spill] sm:$0xff] %v12886_v50  ;;  %v3445_v27 = vsel %vm3432_vm9, %v3442_v59, %v3444_v26  ;;  %v3263_v54 = vpop.f32.mrf.mxu0  ;;  %v10460_v56 = vpop.f32.mrf.mxu1  ;;  %v3446_v59 = vrot.slane %v3258_v21, 4 }
 0x241   : > { %17212 = vst [vmem:[#allocation75_spill] sm:$0xff] %v12890_v18  ;;  %17213 = vst [vmem:[#allocation76_spill] sm:$0xff] %v12895_v12  ;;  %v12899_v1 = vrot.slane %v17214_v43, 2  ;;  %v17216_v18 = vrot.slane %v12829_v45, 7  ;;  %v12912_v43 = vrot.slane %v3923_v46, %v11562_v9  ;;  %v3762_v17 = vsel %vm1959_vm5, %v3723_v39, %v3722_v31 }
 0x242   : > { %v10514_v11 = vpop.f32.mrf.mxu0  ;;  %v12917_v56 = vpop.f32.mrf.mxu1  ;;  %v12924_v47 = vrot.slane %v3922_v49, 7  ;;  %v3940_v46 = vcombine.high %v3762_v17, %v3762_v17  ;;  %v12926_v51 = vrot.slane %v3938_v40, 7  ;;  %v3447_v31 = vsel %vm3432_vm9, %v3444_v26, %v3446_v59 }
 0x243   : > { %17215 = vst [vmem:[#allocation77_spill] sm:$0xff] %v12899_v1  ;;  %v12907_v50 = vrot.slane %v17216_v18, 2  ;;  %17218 = vst [vmem:[#allocation79_spill] sm:$0xff] %v12912_v43  ;;  %v3560_v1 = vadd.f32 %v3445_v27, %v12670_v28  ;;  %v17219_v18 = vrot.slane %v12853_v25, 7  ;;  %v3448_v28 = vrot.slane %v3263_v54, 4 }
 0x244   : > { %17221 = vst [vmem:[#allocation81_spill] sm:$0xff] %v12924_v47  ;;  %17222 = vst [vmem:[#allocation82_spill] sm:$0xff] %v12926_v51  ;;  %v3266_v21 = vpop.f32.mrf.mxu0  ;;  %v10461_v11 = vpop.f32.mrf.mxu1  ;;  %v3939_v27 = vcombine.high %v12912_v43, %v12912_v43  ;;  %v3561_v29 = vadd.f32 %v3447_v31, %v12673_v5  ;;  %v12949_v45 = vrot.slane %v3940_v46, %v11562_v9 }
 0x245   : > { %17217 = vst [vmem:[#allocation78_spill] sm:$0xff] %v12907_v50  ;;  %v12921_v50 = vrot.slane %v17219_v18, 2  ;;  %v3608_v35 = vadd.f32 %v12765_v33, %v3560_v1  ;;  %v12933_v18 = vrot.slane %v3762_v17, %v11562_v9  ;;  %v3450_v49 = vrot.slane %v3266_v21, 4 }
 0x246   : > { %v17226_v1 = vrot.slane %v12873_v22, 7  ;;  %v3449_v26 = vsel %vm3432_vm9, %v3446_v59, %v3448_v28  ;;  %v10515_v11 = vpop.f32.mrf.mxu0  ;;  %v12945_v25 = vpop.f32.mrf.mxu1  ;;  %17228 = vst [vmem:[#allocation86_spill] sm:$0xff] %v12949_v45  ;;  %v3609_v5 = vadd.f32 %v12765_v33, %v3561_v29 }
 0x247   : > { %17220 = vst [vmem:[#allocation80_spill] sm:$0xff] %v12921_v50  ;;  %17223 = vst [vmem:[#allocation83_spill] sm:$0xff] %v12933_v18  ;;  %v17224_v50 = vrot.slane %v12865_v58, 7  ;;  %v3649_v54 = vmax.f32 %v3608_v35, 0.0  ;;  %v3451_v35 = vsel %vm3432_vm9, %v3448_v28, %v3450_v49  ;;  %v3955_v46 = vcombine.high %v12933_v18, %v12933_v18 }
 0x248   : > { %v12942_v12 = vrot.slane %v17226_v1, 2  ;;  %v12956_v59 = vpop.f32.mrf.mxu0  ;;  %v10464_v11 = vpop.f32.mrf.mxu1  ;;  %v3650_v17 = vmax.f32 %v3609_v5, 0.0  ;;  %v3563_v21 = vadd.f32 %v3451_v35, %v12682_v36  ;;  %v12982_v35 = vadd.f32 %v12856_v55, %v12566_v19 }
 0x249   : > { %v12938_v40 = vrot.slane %v17224_v50, 2  ;;  %v3562_v50 = vadd.f32 %v3449_v26, %v12679_v24  ;;  %v3724_v1 = vrot.slane %v3649_v54, 4  ;;  %v16898_v54 = vrot.slane %v12956_v59, 4 }
 0x24a   : > { %17227 = vst [vmem:[#allocation85_spill] sm:$0xff] %v12942_v12  ;;  %v12958_v12 = vrot.slane %v3939_v27, 7  ;;  %v10518_v28 = vpop.f32.mrf.mxu0  ;;  %v12967_v31 = vpop.f32.mrf.mxu1  ;;  %v3956_v27 = vcombine.high %v12949_v45, %v12949_v45  ;;  %v3725_v5 = vrot.slane %v3650_v17, 4  ;;  %v3611_v24 = vadd.f32 %v12765_v33, %v3563_v21  ;;  %17231 = vst [vmem:[#allocation89_spill] sm:$0xff] %v12982_v35 }
 0x24b   : > { %17225 = vst [vmem:[#allocation84_spill] sm:$0xff] %v12938_v40  ;;  %v3610_v29 = vadd.f32 %v12765_v33, %v3562_v50  ;;  %v3763_v26 = vsel %vm1959_vm5, %v3724_v1, %v3723_v39  ;;  %v3453_v36 = vsel %vm3432_vm9, %v3450_v49, %v16898_v54 }
 0x24c   : > { %17229 = vst [vmem:[#allocation87_spill] sm:$0xff] %v12958_v12  ;;  %v3957_v11 = vcombine.high %v3763_v26, %v3763_v26  ;;  %v12972_v51 = vrot.slane %v3763_v26, %v11562_v9  ;;  %v12978_v39 = vpop.f32.mrf.mxu0  ;;  %v10465_v28 = vpop.f32.mrf.mxu1  ;;  %v3764_v21 = vsel %vm1959_vm5, %v3725_v5, %v3724_v1  ;;  %v3652_v1 = vmax.f32 %v3611_v24, 0.0 }
 0x24d   : > { %v3651_v50 = vmax.f32 %v3610_v29, 0.0  ;;  %v12991_v29 = vrot.slane %v3955_v46, 7  ;;  %v3974_v49 = vcombine.high %v3764_v21, %v3764_v21  ;;  %v12994_v54 = vrot.slane %v3764_v21, %v11562_v9 }
 0x24e   : > { %17230 = vst [vmem:[#allocation88_spill] sm:$0xff] %v12972_v51  ;;  %v12986_v26 = vrot.slane %v3957_v11, %v11562_v9  ;;  %v3972_v17 = vcombine.high %v12972_v51, %v12972_v51  ;;  %v10519_v19 = vpop.f32.mrf.mxu0  ;;  %v12996_v55 = vpop.f32.mrf.mxu1  ;;  %v17235_v28 = vrot.slane %v12912_v43, 7  ;;  %v13002_v11 = vrot.slane %v3956_v27, 7 }
 0x24f   : > { %17233 = vst [vmem:[#allocation91_spill] sm:$0xff] %v12991_v29  ;;  %17234 = vst [vmem:[#allocation92_spill] sm:$0xff] %v12994_v54  ;;  %v3726_v40 = vrot.slane %v3651_v50, 4  ;;  %v13010_v21 = vrot.slane %v3974_v49, %v11562_v9  ;;  %v17246_v49 = vrot.slane %v12972_v51, 7 }
 0x250   : > { %17232 = vst [vmem:[#allocation90_spill] sm:$0xff] %v12986_v26  ;;  %v13000_v22 = vrot.slane %v17235_v28, 2  ;;  %17237 = vst [vmem:[#allocation94_spill] sm:$0xff] %v13002_v11  ;;  %v3973_v47 = vcombine.high %v12986_v26, %v12986_v26  ;;  %v13007_v58 = vrot.slane %v3972_v17, 7  ;;  %v13013_v19 = vpop.f32.mrf.mxu0  ;;  %v10468_v43 = vpop.f32.mrf.mxu1  ;;  %v17240_v17 = vrot.slane %v12933_v18, 7 }
 0x251   : > { %17239 = vst [vmem:[#allocation96_spill] sm:$0xff] %v13010_v21  ;;  %v3765_v50 = vsel %vm1959_vm5, %v3726_v40, %v3725_v5  ;;  %v17242_v5 = vrot.slane %v12949_v45, 7  ;;  %v3990_v12 = vcombine.high %v13010_v21, %v13010_v21  ;;  %v13041_v45 = vrot.slane %v17246_v49, 2 }
 0x252   : > { %17236 = vst [vmem:[#allocation93_spill] sm:$0xff] %v13000_v22  ;;  %17238 = vst [vmem:[#allocation95_spill] sm:$0xff] %v13007_v58  ;;  %v3989_v22 = vcombine.high %v12994_v54, %v12994_v54  ;;  %v13022_v46 = vrot.slane %v17240_v17, 2  ;;  %v3991_v43 = vcombine.high %v3765_v50, %v3765_v50  ;;  %v10522_v35 = vpop.f32.mrf.mxu0  ;;  %v13029_v28 = vpop.f32.mrf.mxu1  ;;  %v13031_v27 = vrot.slane %v3973_v47, 7 }
 0x253   : > { %v13027_v14 = vrot.slane %v17242_v5, 2  ;;  %v13036_v24 = vrot.slane %v3765_v50, %v11562_v9  ;;  %v3727_v17 = vrot.slane %v3652_v1, 4  ;;  %17247 = vst [vmem:[#allocation101_spill] sm:$0xff] %v13041_v45  ;;  %v3564_v35 = vadd.f32 %v3453_v36, %v12689_v6 }
 0x254   : > { %17241 = vst [vmem:[#allocation97_spill] sm:$0xff] %v13022_v46  ;;  %17244 = vst [vmem:[#allocation99_spill] sm:$0xff] %v13031_v27  ;;  %v10469_v47 = vpop.f32.mrf.mxu1  ;;  %v17248_v29 = vrot.slane %v12986_v26, 7  ;;  %v17250_v50 = vrot.slane %v12994_v54, 7  ;;  %v13055_v46 = vrot.slane %v3989_v22, 7  ;;  %v13059_v45 = vrot.slane %v3991_v43, %v11562_v9 }
 0x255   : > { %17243 = vst [vmem:[#allocation98_spill] sm:$0xff] %v13027_v14  ;;  %17245 = vst [vmem:[#allocation100_spill] sm:$0xff] %v13036_v24  ;;  %v13045_v14 = vpop.f32.mrf.mxu0  ;;  %v3766_v6 = vsel %vm1959_vm5, %v3727_v17, %v3726_v40  ;;  %v3612_v36 = vadd.f32 %v12765_v33, %v3564_v35  ;;  %v3454_v47 = vrot.slane %v12978_v39, 4  ;;  %v4006_v22 = vcombine.high %v13036_v24, %v13036_v24 }
 0x256   : > { %v13049_v18 = vrot.slane %v17248_v29, 2  ;;  %v13053_v1 = vrot.slane %v17250_v50, 2  ;;  %17252 = vst [vmem:[#allocation104_spill] sm:$0xff] %v13055_v46  ;;  %17253 = vst [vmem:[#allocation105_spill] sm:$0xff] %v13059_v45  ;;  %v13064_v29 = vpop.f32.mrf.mxu1  ;;  %v13067_v50 = vrot.slane %v3990_v12, 7  ;;  %v4008_v43 = vcombine.high %v3766_v6, %v3766_v6 }
 0x257   : > { %v10523_v5 = vpop.f32.mrf.mxu0  ;;  %v3653_v40 = vmax.f32 %v3612_v36, 0.0  ;;  %v17256_v35 = vrot.slane %v12956_v59, 4  ;;  %v3456_v27 = vrot.slane %v13013_v19, 4  ;;  %v16921_v19 = vrot.slane %v13045_v14, 4 }
 0x258   : > { %17249 = vst [vmem:[#allocation102_spill] sm:$0xff] %v13049_v18  ;;  %17251 = vst [vmem:[#allocation103_spill] sm:$0xff] %v13053_v1  ;;  %v13073_v1 = vrot.slane %v3766_v6, %v11562_v9  ;;  %v10472_v26 = vpop.f32.mrf.mxu1  ;;  %v17257_v18 = vrot.slane %v13010_v21, 7  ;;  %v4007_v6 = vcombine.high %v13059_v45, %v13059_v45  ;;  %v13091_v36 = vrot.slane %v4008_v43, %v11562_v9 }
 0x259   : > { %17254 = vst [vmem:[#allocation106_spill] sm:$0xff] %v13067_v50  ;;  %v3455_v39 = vsel %vm3432_vm9, %v17256_v35, %v3454_v47  ;;  %v13078_v5 = vpop.f32.mrf.mxu0  ;;  %v3728_v35 = vrot.slane %v3653_v40, 4  ;;  %v17261_v59 = vrot.slane %v13036_v24, 7  ;;  %v13107_v40 = vrot.slane %v4006_v22, 7 }
 0x25a   : > { %17255 = vst [vmem:[#allocation107_spill] sm:$0xff] %v13073_v1  ;;  %v13083_v58 = vrot.slane %v17257_v18, 2  ;;  %v3565_v49 = vadd.f32 %v3455_v39, %v12692_v60  ;;  %17259 = vst [vmem:[#allocation109_spill] sm:$0xff] %v13091_v36  ;;  %v13093_v54 = vpop.f32.mrf.mxu1  ;;  %v3457_v18 = vsel %vm3432_vm9, %v3454_v47, %v3456_v27  ;;  %v13099_v60 = vadd.f32 %v12875_v63, %v12569_v53 }
 0x25b   : > { %v10526_v26 = vpop.f32.mrf.mxu0  ;;  %v13105_v43 = vrot.slane %v17261_v59, 2  ;;  %17263 = vst [vmem:[#allocation112_spill] sm:$0xff] %v13107_v40  ;;  %v3566_v63 = vadd.f32 %v3457_v18, %v12695_v32  ;;  %v3459_v39 = vsel %vm3432_vm9, %v3456_v27, %v16921_v19  ;;  %v13118_v21 = vrot.slane %v4007_v6, 7 }
 0x25c   : > { %17258 = vst [vmem:[#allocation108_spill] sm:$0xff] %v13083_v58  ;;  %v3613_v12 = vadd.f32 %v12765_v33, %v3565_v49  ;;  %17260 = vst [vmem:[#allocation110_spill] sm:$0xff] %v13099_v60  ;;  %v4023_v26 = vcombine.high %v13073_v1, %v13073_v1  ;;  %v10473_v47 = vpop.f32.mrf.mxu1  ;;  %v3767_v58 = vsel %vm1959_vm5, %v3728_v35, %v3727_v17  ;;  %v17265_v6 = vrot.slane %v13059_v45, 7 }
 0x25d   : > { %17262 = vst [vmem:[#allocation111_spill] sm:$0xff] %v13105_v43  ;;  %v13111_v49 = vpop.f32.mrf.mxu0  ;;  %17264 = vst [vmem:[#allocation113_spill] sm:$0xff] %v13118_v21  ;;  %v4024_v22 = vcombine.high %v13091_v36, %v13091_v36  ;;  %v4025_v43 = vcombine.high %v3767_v58, %v3767_v58  ;;  %v13126_v17 = vrot.slane %v3767_v58, %v11562_v9  ;;  %v17279_v24 = vrot.slane %v13078_v5, 4 }
 0x25e   : > { %v3654_v53 = vmax.f32 %v3613_v12, 0.0  ;;  %v13123_v50 = vpop.f32.mrf.mxu1  ;;  %v3614_v32 = vadd.f32 %v12765_v33, %v3566_v63  ;;  %v3567_v18 = vadd.f32 %v3459_v39, %v12698_v0  ;;  %v13133_v47 = vrot.slane %v17265_v6, 2 }
 0x25f   : > { %v10527_v46 = vpop.f32.mrf.mxu0  ;;  %v13136_v19 = vrot.slane %v4025_v43, %v11562_v9  ;;  %v13144_v59 = vrot.slane %v4023_v26, 7  ;;  %v13149_v27 = vrot.slane %v4024_v22, 7  ;;  %v4040_v0 = vcombine.high %v13126_v17, %v13126_v17 }
 0x260   : > { %v3729_v12 = vrot.slane %v3654_v53, 4  ;;  %17266 = vst [vmem:[#allocation114_spill] sm:$0xff] %v13133_v47  ;;  %v13140_v46 = vadd.f32 %v12917_v56, %v12580_v15  ;;  %v10476_v53 = vpop.f32.mrf.mxu1  ;;  %v3655_v63 = vmax.f32 %v3614_v32, 0.0  ;;  %v3615_v32 = vadd.f32 %v12765_v33, %v3567_v18 }
 0x261   : > { %17267 = vst [vmem:[#allocation115_spill] sm:$0xff] %v13136_v19  ;;  %v13142_v58 = vpop.f32.mrf.mxu0  ;;  %17269 = vst [vmem:[#allocation117_spill] sm:$0xff] %v13144_v59  ;;  %v17271_v53 = vrot.slane %v13073_v1, 7  ;;  %v4041_v22 = vcombine.high %v13136_v19, %v13136_v19 }
 0x262   : > { %17268 = vst [vmem:[#allocation116_spill] sm:$0xff] %v13140_v46  ;;  %v3768_v39 = vsel %vm1959_vm5, %v3729_v12, %v3728_v35  ;;  %17270 = vst [vmem:[#allocation118_spill] sm:$0xff] %v13149_v27  ;;  %v13154_v56 = vpop.f32.mrf.mxu1  ;;  %v3730_v35 = vrot.slane %v3655_v63, 4  ;;  %v17274_v63 = vrot.slane %v13091_v36, 7  ;;  %v3656_v45 = vmax.f32 %v3615_v32, 0.0 }
 0x263   : > { %v4042_v43 = vcombine.high %v3768_v39, %v3768_v39  ;;  %v13152_v47 = vrot.slane %v3768_v39, %v11562_v9  ;;  %v10530_v15 = vpop.f32.mrf.mxu0  ;;  %v13158_v26 = vrot.slane %v17271_v53, 2  ;;  %v13191_v32 = vrot.slane %v4041_v22, 7 }
 0x264   : > { %v10477_v53 = vpop.f32.mrf.mxu1  ;;  %v13176_v21 = vrot.slane %v17274_v63, 2  ;;  %v3769_v18 = vsel %vm1959_vm5, %v3730_v35, %v3729_v12  ;;  %v3731_v12 = vrot.slane %v3656_v45, 4  ;;  %v17284_v46 = vrot.slane %v13136_v19, 7 }
 0x265   : > { %17272 = vst [vmem:[#allocation119_spill] sm:$0xff] %v13158_v26  ;;  %v13166_v6 = vrot.slane %v4042_v43, %v11562_v9  ;;  %v4057_v39 = vcombine.high %v13152_v47, %v13152_v47  ;;  %v13171_v1 = vpop.f32.mrf.mxu0  ;;  %v13186_v26 = vrot.slane %v4040_v0, 7  ;;  %v4059_v36 = vcombine.high %v3769_v18, %v3769_v18  ;;  %17277 = vst [vmem:[#allocation123_spill] sm:$0xff] %v13191_v32 }
 0x266   : > { %17275 = vst [vmem:[#allocation121_spill] sm:$0xff] %v13176_v21  ;;  %v13184_v53 = vpop.f32.mrf.mxu1  ;;  %v13189_v63 = vrot.slane %v3769_v18, %v11562_v9  ;;  %v17280_v21 = vrot.slane %v13045_v14, 4  ;;  %v3770_v22 = vsel %vm1959_vm5, %v3731_v12, %v3730_v35  ;;  %v13223_v60 = vrot.slane %v17284_v46, 2 }
 0x267   : > { %17273 = vst [vmem:[#allocation120_spill] sm:$0xff] %v13166_v6  ;;  %v4058_v15 = vcombine.high %v13166_v6, %v13166_v6  ;;  %v10531_v11 = vpop.f32.mrf.mxu0  ;;  %v13194_v40 = vrot.slane %v4057_v39, 7  ;;  %v13205_v18 = vrot.slane %v4059_v36, %v11562_v9  ;;  %v4076_v14 = vcombine.high %v3770_v22, %v3770_v22 }
 0x268   : > { %17276 = vst [vmem:[#allocation122_spill] sm:$0xff] %v13189_v63  ;;  %v3461_v11 = vsel %vm3432_vm9, %v17280_v21, %v17279_v24  ;;  %v10480_v0 = vpop.f32.mrf.mxu1  ;;  %v4074_v45 = vcombine.high %v13189_v63, %v13189_v63  ;;  %17285 = vst [vmem:[#allocation127_spill] sm:$0xff] %v13223_v60  ;;  %v13226_v35 = vrot.slane %v3770_v22, %v11562_v9  ;;  %v17288_v36 = vrot.slane %v13152_v47, 7 }
 0x269   : > { %17278 = vst [vmem:[#allocation124_spill] sm:$0xff] %v13194_v40  ;;  %v13201_v27 = vpop.f32.mrf.mxu0  ;;  %17281 = vst [vmem:[#allocation125_spill] sm:$0xff] %v13205_v18  ;;  %v13210_v39 = vrot.slane %v4058_v15, 7  ;;  %v3568_v21 = vadd.f32 %v3461_v11, %v12701_v7  ;;  %v17283_v0 = vrot.slane %v13126_v17, 7  ;;  %v4075_v7 = vcombine.high %v13205_v18, %v13205_v18 }
 0x26a   : > { %v13214_v51 = vpop.f32.mrf.mxu1  ;;  %17286 = vst [vmem:[#allocation128_spill] sm:$0xff] %v13226_v35  ;;  %v13231_v11 = vrot.slane %v4074_v45, 7  ;;  %v13238_v19 = vrot.slane %v17288_v36, 2  ;;  %v17290_v22 = vrot.slane %v13166_v6, 7  ;;  %v13247_v15 = vadd.f32 %v12945_v25, %v12583_v37 }
 0x26b   : > { %17282 = vst [vmem:[#allocation126_spill] sm:$0xff] %v13210_v39  ;;  %v10534_v24 = vpop.f32.mrf.mxu0  ;;  %v13218_v59 = vrot.slane %v17283_v0, 2  ;;  %v13256_v36 = vrot.slane %v4076_v14, %v11562_v9  ;;  %v3462_v37 = vrot.slane %v13111_v49, 4  ;;  %v13265_v25 = vadd.f32 %v12967_v31, %v12594_v30  ;;  %v17399_v39 = vld [vmem:[#allocation3_spill] sm:$0xff] }
 0x26c   : > { %17287 = vst [vmem:[#allocation129_spill] sm:$0xff] %v13231_v11  ;;  %v3616_v24 = vadd.f32 %v12765_v33, %v3568_v21  ;;  %v10481_v43 = vpop.f32.mrf.mxu1  ;;  %17289 = vst [vmem:[#allocation130_spill] sm:$0xff] %v13238_v19  ;;  %v13243_v60 = vrot.slane %v17290_v22, 2  ;;  %v17292_v21 = vrot.slane %v13189_v63, 7  ;;  %v4091_v22 = vcombine.high %v13226_v35, %v13226_v35 }
 0x26d   : > { %v13234_v0 = vpop.f32.mrf.mxu0  ;;  %17294 = vst [vmem:[#allocation133_spill] sm:$0xff] %v13256_v36  ;;  %v13268_v45 = vrot.slane %v4075_v7, 7  ;;  %v13279_v30 = vadd.f32 %v12996_v55, %v12597_v48  ;;  %v3466_v31 = vrot.slane %v13171_v1, 4  ;;  %v4092_v7 = vcombine.high %v13256_v36, %v13256_v36 }
 0x26e   : > { %17291 = vst [vmem:[#allocation131_spill] sm:$0xff] %v13243_v60  ;;  %v13252_v32 = vrot.slane %v17292_v21, 2  ;;  %v13258_v19 = vpop.f32.mrf.mxu1  ;;  %v3657_v60 = vmax.f32 %v3616_v24, 0.0  ;;  %v17296_v24 = vrot.slane %v13078_v5, 4  ;;  %v3468_v1 = vrot.slane %v13201_v27, 4 }
 0x26f   : > { %v10535_v46 = vpop.f32.mrf.mxu0  ;;  %17295 = vst [vmem:[#allocation134_spill] sm:$0xff] %v13268_v45  ;;  %v13294_v14 = vrot.slane %v4091_v22, 7  ;;  %v16944_v27 = vrot.slane %v13234_v0, 4  ;;  %v16943_v22 = vrot.slane %v13256_v36, 7 }
 0x270   : > { %17293 = vst [vmem:[#allocation132_spill] sm:$0xff] %v13252_v32  ;;  %v3464_v46 = vrot.slane %v13142_v58, 4  ;;  %v10484_v32 = vpop.f32.mrf.mxu1  ;;  %v3732_v63 = vrot.slane %v3657_v60, 4  ;;  %v3463_v49 = vsel %vm3432_vm9, %v17296_v24, %v3462_v37  ;;  %v13288_v60 = vadd.f32 %v13029_v28, %v12604_v34 }
 0x271   : > { %v13272_v43 = vpop.f32.mrf.mxu0  ;;  %v3569_v21 = vadd.f32 %v3463_v49, %v12704_v16  ;;  %17297 = vst [vmem:[#allocation135_spill] sm:$0xff] %v13294_v14 }
 0x272   : > { %v3465_v58 = vsel %vm3432_vm9, %v3462_v37, %v3464_v46  ;;  %v3167_v32 = vpop.f32.mrf.mxu1  ;;  %v3771_v24 = vsel %vm1959_vm5, %v3732_v63, %v3731_v12  ;;  %v3467_v55 = vsel %vm3432_vm9, %v3464_v46, %v3466_v31  ;;  %v3469_v12 = vsel %vm3432_vm9, %v3466_v31, %v3468_v1 }
 0x273   : > { %v10538_v5 = vpop.f32.mrf.mxu0  ;;  %v3570_v48 = vadd.f32 %v3465_v58, %v12707_v44  ;;  %v4093_v11 = vcombine.high %v3771_v24, %v3771_v24  ;;  %v3617_v16 = vadd.f32 %v12765_v33, %v3569_v21  ;;  %v3571_v37 = vadd.f32 %v3467_v55, %v12710_v61 }
 0x274   : > { %v10485_v34 = vpop.f32.mrf.mxu1  ;;  %v13304_v44 = vadd.f32 %v13064_v29, %v12608_v20  ;;  %v13309_v46 = vrot.slane %v3771_v24, %v11562_v9  ;;  %v3572_v31 = vadd.f32 %v3469_v12, %v12718_v2  ;;  %v3471_v20 = vsel %vm3432_vm9, %v3468_v1, %v16944_v27 }
 0x275   : > { %v13298_v49 = vpop.f32.mrf.mxu0  ;;  %v3618_v28 = vadd.f32 %v12765_v33, %v3570_v48  ;;  %v13312_v61 = vrot.slane %v4093_v11, %v11562_v9  ;;  %v3658_v21 = vmax.f32 %v3617_v16, 0.0  ;;  %v3619_v32 = vadd.f32 %v12765_v33, %v3571_v37 }
 0x276   : > { %17298 = vst [vmem:[#allocation136_spill] sm:$0xff] %v13309_v46  ;;  %v17300_v29 = vrot.slane %v13205_v18, 7  ;;  %v17302_v11 = vrot.slane %v13226_v35, 7  ;;  %v13328_v16 = vrot.slane %v4092_v7, 7  ;;  %v3620_v12 = vadd.f32 %v12765_v33, %v3572_v31 }
 0x277   : > { %17299 = vst [vmem:[#allocation137_spill] sm:$0xff] %v13312_v61  ;;  %v10539_v58 = vpop.f32.mrf.mxu0  ;;  %v3659_v5 = vmax.f32 %v3618_v28, 0.0  ;;  %v3733_v37 = vrot.slane %v3658_v21, 4  ;;  %v3660_v28 = vmax.f32 %v3619_v32, 0.0  ;;  %v4109_v24 = vcombine.high %v13312_v61, %v13312_v61 }
 0x278   : > { %v13321_v48 = vrot.slane %v17300_v29, 2  ;;  %v13326_v55 = vrot.slane %v17302_v11, 2  ;;  %17304 = vst [vmem:[#allocation140_spill] sm:$0xff] %v13328_v16  ;;  %v13336_v58 = vrot.slane %v16943_v22, 2  ;;  %v4108_v29 = vcombine.high %v13309_v46, %v13309_v46 }
 0x279   : > { %v13330_v34 = vpop.f32.mrf.mxu0  ;;  %v3734_v2 = vrot.slane %v3659_v5, 4  ;;  %v3573_v11 = vadd.f32 %v3471_v20, %v12726_v8  ;;  %v3772_v21 = vsel %vm1959_vm5, %v3733_v37, %v3732_v63  ;;  %v3735_v32 = vrot.slane %v3660_v28, 4 }
 0x27a   : > { %17301 = vst [vmem:[#allocation138_spill] sm:$0xff] %v13321_v48  ;;  %17303 = vst [vmem:[#allocation139_spill] sm:$0xff] %v13326_v55  ;;  %v4110_v1 = vcombine.high %v3772_v21, %v3772_v21  ;;  %v13347_v22 = vrot.slane %v3772_v21, %v11562_v9  ;;  %v3661_v63 = vmax.f32 %v3620_v12, 0.0  ;;  %v13356_v36 = vrot.slane %v4108_v29, 7 }
 0x27b   : > { %17305 = vst [vmem:[#allocation141_spill] sm:$0xff] %v13336_v58  ;;  %v10542_v7 = vpop.f32.mrf.mxu0  ;;  %v3773_v5 = vsel %vm1959_vm5, %v3734_v2, %v3733_v37  ;;  %v13367_v16 = vrot.slane %v4109_v24, 7  ;;  %v3621_v8 = vadd.f32 %v12765_v33, %v3573_v11  ;;  %v17314_v35 = vrot.slane %v13309_v46, 7 }
 0x27c   : > { %17306 = vst [vmem:[#allocation142_spill] sm:$0xff] %v13347_v22  ;;  %v4127_v27 = vcombine.high %v3773_v5, %v3773_v5  ;;  %v13353_v20 = vrot.slane %v3773_v5, %v11562_v9  ;;  %v3774_v7 = vsel %vm1959_vm5, %v3735_v32, %v3734_v2  ;;  %17308 = vst [vmem:[#allocation144_spill] sm:$0xff] %v13356_v36 }
 0x27d   : > { %v13349_v58 = vpop.f32.mrf.mxu0  ;;  %v13359_v37 = vrot.slane %v4110_v1, %v11562_v9  ;;  %v4125_v28 = vcombine.high %v13347_v22, %v13347_v22  ;;  %17311 = vst [vmem:[#allocation147_spill] sm:$0xff] %v13367_v16  ;;  %v4144_v12 = vcombine.high %v3774_v7, %v3774_v7  ;;  %v13381_v24 = vrot.slane %v3774_v7, %v11562_v9 }
 0x27e   : > { %17307 = vst [vmem:[#allocation143_spill] sm:$0xff] %v13353_v20  ;;  %v13364_v21 = vrot.slane %v4127_v27, %v11562_v9  ;;  %v4142_v2 = vcombine.high %v13353_v20, %v13353_v20  ;;  %v13386_v29 = vrot.slane %v17314_v35, 2  ;;  %v17318_v7 = vrot.slane %v13312_v61, 7 }
 0x27f   : > { %17309 = vst [vmem:[#allocation145_spill] sm:$0xff] %v13359_v37  ;;  %v10543_v31 = vpop.f32.mrf.mxu0  ;;  %v13372_v5 = vrot.slane %v4125_v28, 7  ;;  %v4126_v27 = vcombine.high %v13359_v37, %v13359_v37  ;;  %17313 = vst [vmem:[#allocation149_spill] sm:$0xff] %v13381_v24  ;;  %v13392_v55 = vrot.slane %v4144_v12, %v11562_v9  ;;  %v17322_v12 = vrot.slane %v13359_v37, 7 }
 0x280   : > { %17310 = vst [vmem:[#allocation146_spill] sm:$0xff] %v13364_v21  ;;  %v3736_v31 = vrot.slane %v3661_v63, 4  ;;  %17315 = vst [vmem:[#allocation150_spill] sm:$0xff] %v13386_v29  ;;  %v13388_v28 = vrot.slane %v4142_v2, 7  ;;  %v13397_v18 = vrot.slane %v17318_v7, 2  ;;  %v4143_v35 = vcombine.high %v13364_v21, %v13364_v21  ;;  %v17397_v29 = vld [vmem:[#allocation75_spill] sm:$0xff] }
 0x281   : > { %17312 = vst [vmem:[#allocation148_spill] sm:$0xff] %v13372_v5  ;;  %v13376_v14 = vpop.f32.mrf.mxu0  ;;  %17317 = vst [vmem:[#allocation152_spill] sm:$0xff] %v13392_v55  ;;  %v17320_v63 = vrot.slane %v13347_v22, 7  ;;  %v17324_v45 = vrot.slane %v13353_v20, 7  ;;  %v13417_v11 = vrot.slane %v4126_v27, 7  ;;  %v17327_v37 = vrot.slane %v13364_v21, 7 }
 0x282   : > { %17316 = vst [vmem:[#allocation151_spill] sm:$0xff] %v13388_v28  ;;  %17319 = vst [vmem:[#allocation153_spill] sm:$0xff] %v13397_v18  ;;  %v4159_v18 = vcombine.high %v13381_v24, %v13381_v24  ;;  %v3472_v1 = vrot.slane %v13272_v43, 4  ;;  %v17336_v21 = vrot.slane %v13381_v24, 7 }
 0x283   : > { %v10546_v48 = vpop.f32.mrf.mxu0  ;;  %v13404_v2 = vrot.slane %v17320_v63, 2  ;;  %v13413_v61 = vrot.slane %v17324_v45, 2  ;;  %17326 = vst [vmem:[#allocation157_spill] sm:$0xff] %v13417_v11  ;;  %v3775_v63 = vsel %vm1959_vm5, %v3736_v31, %v3735_v32  ;;  %v4160_v45 = vcombine.high %v13392_v55, %v13392_v55 }
 0x284   : > { %v13409_v48 = vrot.slane %v17322_v12, 2  ;;  %v13425_v12 = vrot.slane %v17327_v37, 2  ;;  %v13432_v27 = vrot.slane %v3775_v63, %v11562_v9  ;;  %v13438_v32 = vadd.f32 %v13093_v54, %v12619_v4 }
 0x285   : > { %17321 = vst [vmem:[#allocation154_spill] sm:$0xff] %v13404_v2  ;;  %17325 = vst [vmem:[#allocation156_spill] sm:$0xff] %v13413_v61  ;;  %v13415_v7 = vpop.f32.mrf.mxu0  ;;  %v3662_v2 = vmax.f32 %v3621_v8, 0.0  ;;  %v4161_v61 = vcombine.high %v3775_v63, %v3775_v63  ;;  %v13451_v63 = vrot.slane %v4159_v18, 7  ;;  %v3474_v54 = vrot.slane %v13298_v49, 4 }
 0x286   : > { %17323 = vst [vmem:[#allocation155_spill] sm:$0xff] %v13409_v48  ;;  %17328 = vst [vmem:[#allocation158_spill] sm:$0xff] %v13425_v12  ;;  %v13429_v48 = vrot.slane %v4143_v35, 7  ;;  %v13457_v8 = vrot.slane %v4160_v45, 7  ;;  %v4176_v43 = vcombine.high %v13432_v27, %v13432_v27  ;;  %v13473_v28 = vrot.slane %v17336_v21, 2 }
 0x287   : > { %v10547_v20 = vpop.f32.mrf.mxu0  ;;  %17330 = vst [vmem:[#allocation160_spill] sm:$0xff] %v13432_v27  ;;  %v13434_v5 = vrot.slane %v3662_v2, 4  ;;  %v13442_v37 = vrot.slane %v4161_v61, %v11562_v9  ;;  %17332 = vst [vmem:[#allocation162_spill] sm:$0xff] %v13451_v63  ;;  %v17335_v2 = vrot.slane %v13234_v0, 4  ;;  %v3475_v49 = vsel %vm3432_vm9, %v3472_v1, %v3474_v54 }
 0x288   : > { %17329 = vst [vmem:[#allocation159_spill] sm:$0xff] %v13429_v48  ;;  %v13447_v20 = vadd.f32 %v13123_v50, %v12628_v41  ;;  %17333 = vst [vmem:[#allocation163_spill] sm:$0xff] %v13457_v8  ;;  %v17338_v0 = vrot.slane %v13392_v55, 7  ;;  %v3575_v45 = vadd.f32 %v3475_v49, %v12739_v42  ;;  %v13492_v48 = vrot.slane %v4176_v43, 7 }
 0x289   : > { %17331 = vst [vmem:[#allocation161_spill] sm:$0xff] %v13442_v37  ;;  %v13449_v35 = vpop.f32.mrf.mxu0  ;;  %v3776_v4 = vsel %vm1959_vm5, %v13434_v5, %v3736_v31  ;;  %v3473_v31 = vsel %vm3432_vm9, %v17335_v2, %v3472_v1  ;;  %17337 = vst [vmem:[#allocation165_spill] sm:$0xff] %v13473_v28  ;;  %v17340_v28 = vrot.slane %v13432_v27, 7  ;;  %v3152_v42 = vadd.f32 %v13154_v56, %v12637_v23 }
 0x28a   : > { %v4178_v41 = vcombine.high %v3776_v4, %v3776_v4  ;;  %v13464_v18 = vrot.slane %v3776_v4, %v11562_v9  ;;  %v13483_v2 = vrot.slane %v17338_v0, 2  ;;  %v3574_v1 = vadd.f32 %v3473_v31, %v12729_v13  ;;  %17342 = vst [vmem:[#allocation168_spill] sm:$0xff] %v13492_v48 }
 0x28b   : > { %v10550_v50 = vpop.f32.mrf.mxu0  ;;  %v13490_v24 = vrot.slane %v17340_v28, 2  ;;  %v3623_v13 = vadd.f32 %v12765_v33, %v3575_v45  ;;  %v17344_v31 = vrot.slane %v13442_v37, 7  ;;  %v3476_v49 = vrot.slane %v13330_v34, 4 }
 0x28c   : > { %17334 = vst [vmem:[#allocation164_spill] sm:$0xff] %v13464_v18  ;;  %v4177_v50 = vcombine.high %v13442_v37, %v13442_v37  ;;  %17339 = vst [vmem:[#allocation166_spill] sm:$0xff] %v13483_v2  ;;  %v13495_v12 = vrot.slane %v4178_v41, %v11562_v9  ;;  %v4193_v0 = vcombine.high %v13464_v18, %v13464_v18  ;;  %v16965_v45 = vrot.slane %v13349_v58, 4  ;;  %v17355_v37 = vld [vmem:[#allocation52_spill] sm:$0xff] }
 0x28d   : > { %v13478_v61 = vpop.f32.mrf.mxu0  ;;  %17341 = vst [vmem:[#allocation167_spill] sm:$0xff] %v13490_v24  ;;  %v3622_v2 = vadd.f32 %v12765_v33, %v3574_v1  ;;  %v13505_v28 = vrot.slane %v17344_v31, 2  ;;  %v3664_v24 = vmax.f32 %v3623_v13, 0.0  ;;  %v3592_v1 = vadd.f32 %v12735_v38, %v3152_v42 }
 0x28e   : > { %17343 = vst [vmem:[#allocation169_spill] sm:$0xff] %v13495_v12  ;;  %v13507_v43 = vrot.slane %v4177_v50, 7  ;;  %v3157_v33 = vadd.f32 %v13184_v53, %v12640_v62  ;;  %v4194_v23 = vcombine.high %v13495_v12, %v13495_v12  ;;  %v3477_v56 = vsel %vm3432_vm9, %v3474_v54, %v3476_v49  ;;  %v17347_v50 = vld [vmem:[#allocation45_spill] sm:$0xff]  ;;  %v17350_v54 = vld [vmem:[#allocation48_spill] sm:$0xff] }
 0x28f   : > { %v10551_v4 = vpop.f32.mrf.mxu0  ;;  %17345 = vst [vmem:[#allocation170_spill] sm:$0xff] %v13505_v28  ;;  %v3663_v21 = vmax.f32 %v3622_v2, 0.0  ;;  %v3160_v31 = vadd.f32 %v13214_v51, %v17347_v50  ;;  %v13522_v41 = vrot.slane %v4193_v0, 7  ;;  %v3739_v13 = vrot.slane %v3664_v24, 4  ;;  %v17349_v28 = vld [vmem:[#allocation50_spill] sm:$0xff]  ;;  %v17351_v50 = vld [vmem:[#allocation51_spill] sm:$0xff] }
 0x290   : > { %17346 = vst [vmem:[#allocation171_spill] sm:$0xff] %v13507_v43  ;;  %v3576_v38 = vadd.f32 %v3477_v56, %v17349_v28  ;;  %v13528_v62 = vld [vmem:[%s16806_s2] ss:$0 sm:$0xff]  ;;  %v3593_v42 = vadd.f32 %v17350_v54, %v3157_v33  ;;  %v3479_v51 = vsel %vm3432_vm9, %v3476_v49, %v16965_v45 }
 0x291   : > { %v13511_v4 = vpop.f32.mrf.mxu0  ;;  %17348 = vst [vmem:[#allocation45_spill] sm:$0xff] %v13522_v41  ;;  %v3738_v2 = vrot.slane %v3663_v21, 4  ;;  %v3640_v53 = vadd.f32 %v13528_v62, %v3592_v1  ;;  %v13536_v0 = vadd.f32 %v17351_v50, %v3160_v31  ;;  %v13551_v50 = vrot.slane %v4194_v23, 7 }
 0x292   : > { %v3624_v1 = vadd.f32 %v13528_v62, %v3576_v38  ;;  %v3641_v24 = vadd.f32 %v13528_v62, %v3593_v42 }
 0x293   : > { %v10554_v34 = vpop.f32.mrf.mxu0  ;;  %v3777_v28 = vsel %vm1959_vm5, %v3738_v2, %v13434_v5  ;;  %v3778_v56 = vsel %vm1959_vm5, %v3739_v13, %v3738_v2  ;;  %17354 = vst [vmem:[#allocation51_spill] sm:$0xff] %v13551_v50  ;;  %v3577_v5 = vadd.f32 %v3479_v51, %v17355_v37  ;;  %v3681_v27 = vmax.f32 %v3640_v53, 0.0 }
 0x294   : > { %v4195_v34 = vcombine.high %v3777_v28, %v3777_v28  ;;  %v13546_v33 = vrot.slane %v3777_v28, %v11562_v9  ;;  %v4212_v54 = vcombine.high %v3778_v56, %v3778_v56  ;;  %v13549_v49 = vrot.slane %v3778_v56, %v11562_v9 }
 0x295   : > { %v13538_v21 = vpop.f32.mrf.mxu0  ;;  %v3665_v45 = vmax.f32 %v3624_v1, 0.0  ;;  %v17358_v37 = vrot.slane %v13464_v18, 7  ;;  %v17360_v56 = vrot.slane %v13495_v12, 7  ;;  %v3625_v11 = vadd.f32 %v13528_v62, %v3577_v5 }
 0x296   : > { %17352 = vst [vmem:[#allocation50_spill] sm:$0xff] %v13546_v33  ;;  %17353 = vst [vmem:[#allocation48_spill] sm:$0xff] %v13549_v49  ;;  %v13557_v38 = vrot.slane %v4195_v34, %v11562_v9  ;;  %v4210_v28 = vcombine.high %v13546_v33, %v13546_v33  ;;  %v13566_v1 = vrot.slane %v4212_v54, %v11562_v9  ;;  %v13588_v34 = vrot.slane %v3681_v27, 4 }
 0x297   : > { %v10555_v31 = vpop.f32.mrf.mxu0  ;;  %v13568_v42 = vrot.slane %v3665_v45, 4  ;;  %v13572_v51 = vrot.slane %v17358_v37, 2  ;;  %v13578_v23 = vrot.slane %v17360_v56, 2  ;;  %v4227_v45 = vcombine.high %v13549_v49, %v13549_v49 }
 0x298   : > { %17356 = vst [vmem:[#allocation52_spill] sm:$0xff] %v13557_v38  ;;  %17357 = vst [vmem:[#allocation172_spill] sm:$0xff] %v13566_v1  ;;  %v3682_v31 = vmax.f32 %v3641_v24, 0.0  ;;  %v4211_v37 = vcombine.high %v13557_v38, %v13557_v38  ;;  %v17363_v56 = vrot.slane %v13546_v33, 7  ;;  %v4228_v43 = vcombine.high %v13566_v1, %v13566_v1 }
 0x299   : > { %v13561_v8 = vpop.f32.mrf.mxu0  ;;  %17359 = vst [vmem:[#allocation173_spill] sm:$0xff] %v13572_v51  ;;  %17361 = vst [vmem:[#allocation174_spill] sm:$0xff] %v13578_v23  ;;  %v13586_v51 = vrot.slane %v4210_v28, 7  ;;  %v3779_v24 = vsel %vm1959_vm5, %v13568_v42, %v3739_v13  ;;  %v17365_v28 = vrot.slane %v13549_v49, 7  ;;  %v13608_v18 = vrot.slane %v4227_v45, 7 }
 0x29a   : > { %v13596_v54 = vrot.slane %v17363_v56, 2  ;;  %v4229_v23 = vcombine.high %v3779_v24, %v3779_v24  ;;  %v13606_v50 = vrot.slane %v3779_v24, %v11562_v9  ;;  %v3757_v13 = vrot.slane %v3682_v31, 4 }
 0x29b   : > { %v10558_v2 = vpop.f32.mrf.mxu0  ;;  %17362 = vst [vmem:[#allocation175_spill] sm:$0xff] %v13586_v51  ;;  %v13603_v27 = vrot.slane %v17365_v28, 2  ;;  %v3838_v12 = vcombine.high %v3682_v31, %v3682_v31  ;;  %17368 = vst [vmem:[#allocation179_spill] sm:$0xff] %v13608_v18  ;;  %v13625_v56 = vrot.slane %v4211_v37, 7  ;;  %v13631_v28 = vrot.slane %v4228_v43, 7 }
 0x29c   : > { %17364 = vst [vmem:[#allocation176_spill] sm:$0xff] %v13596_v54  ;;  %17367 = vst [vmem:[#allocation178_spill] sm:$0xff] %v13606_v50  ;;  %v13612_v53 = vrot.slane %v4229_v23, %v11562_v9  ;;  %v13615_v54 = vrot.slane %v3682_v31, %v11562_v9  ;;  %v4244_v24 = vcombine.high %v13606_v50, %v13606_v50 }
 0x29d   : > { %v13592_v2 = vpop.f32.mrf.mxu0  ;;  %17366 = vst [vmem:[#allocation177_spill] sm:$0xff] %v13603_v27  ;;  %v3796_v27 = vsel %vm1959_vm5, %v3757_v13, %v13588_v34  ;;  %17370 = vst [vmem:[#allocation181_spill] sm:$0xff] %v13625_v56  ;;  %v17396_v56 = vld [vmem:[#allocation74_spill] sm:$0xff] }
 0x29e   : > { %17369 = vst [vmem:[#allocation180_spill] sm:$0xff] %v13612_v53  ;;  %v4245_v23 = vcombine.high %v13612_v53, %v13612_v53  ;;  %v3853_v31 = vcombine.high %v13615_v54, %v13615_v54  ;;  %v4518_v49 = vcombine.high %v3796_v27, %v3796_v27  ;;  %17371 = vst [vmem:[#allocation182_spill] sm:$0xff] %v13631_v28  ;;  %v13639_v37 = vrot.slane %v4244_v24, 7 }
 0x29f   : > { %v10559_v41 = vpop.f32.mrf.mxu0  ;;  %v13642_v63 = vrot.slane %v3796_v27, %v11562_v9  ;;  %v17378_v27 = vrot.slane %v13566_v1, 7  ;;  %v17382_v18 = vrot.slane %v13612_v53, 7 }
 0x2a0   : > { %v3852_v41 = vrot.slane %v3838_v12, %v11562_v9  ;;  %v17372_v12 = vrot.slane %v13557_v38, 7  ;;  %17374 = vst [vmem:[#allocation184_spill] sm:$0xff] %v13639_v37  ;;  %v13646_v22 = vrot.slane %v4245_v23, 7  ;;  %v13649_v51 = vrot.slane %v4518_v49, %v11562_v9 }
 0x2a1   : > { %v13623_v45 = vpop.f32.mrf.mxu0  ;;  %17375 = vst [vmem:[#allocation185_spill] sm:$0xff] %v13642_v63  ;;  %v13658_v33 = vrot.slane %v17378_v27, 2  ;;  %v17380_v49 = vrot.slane %v13606_v50, 7  ;;  %v9975_v38 = vrot.slane %v13615_v54, 9  ;;  %v3666_v27 = vmax.f32 %v3625_v11, 0.0 }
 0x2a2   : > { %v3854_v13 = vcombine.high %v3852_v41, %v3852_v41  ;;  %v13637_v55 = vrot.slane %v17372_v12, 2  ;;  %17376 = vst [vmem:[#allocation186_spill] sm:$0xff] %v13646_v22  ;;  %17377 = vst [vmem:[#allocation187_spill] sm:$0xff] %v13649_v51  ;;  %v4546_v5 = vrot.slane %v3852_v41, 7  ;;  %v4533_v41 = vcombine.high %v13642_v63, %v13642_v63 }
 0x2a3   : > { %v10562_v48 = vpop.f32.mrf.mxu0  ;;  %17379 = vst [vmem:[#allocation188_spill] sm:$0xff] %v13658_v33  ;;  %v13665_v43 = vrot.slane %v17380_v49, 2  ;;  %v11376_v49 = vld [vmem:[%s16807_s3 + $0x8] ss:$0 sps:$4 sm:$0xff]   ;;  %v17384_v11 = vrot.slane %v13376_v14, 4  ;;  %v17385_v37 = vrot.slane %v13349_v58, 4 }
 0x2a4   : > { %17373 = vst [vmem:[#allocation183_spill] sm:$0xff] %v13637_v55  ;;  %v4543_v48 = vrot.slane %v3853_v31, 7  ;;  %v13660_v55 = vrot.slane %v3854_v13, 7  ;;  %v13669_v31 = vrot.slane %v17382_v18, 2  ;;  %v17388_v18 = vld [vmem:[#allocation44_spill] sm:$0xff]  ;;  %v7343_v28 = vsel %vm3432_vm9, %v11376_v49, 0 }
 0x2a5   : > { %v13653_v12 = vpop.f32.mrf.mxu0  ;;  %17381 = vst [vmem:[#allocation189_spill] sm:$0xff] %v13665_v43  ;;  %v3741_v43 = vrot.slane %v3666_v27, 4  ;;  %v3481_v50 = vsel %vm3432_vm9, %v17385_v37, %v17384_v11  ;;  %v17389_v51 = vrot.slane %v17388_v18, 2  ;;  %v3482_v27 = vrot.slane %v13415_v7, 4  ;;  %10661 = vmatpush3.bf16.msra.mxu0 %v7343_v28 }
 0x2a6   : > { %17383 = vst [vmem:[#allocation190_spill] sm:$0xff] %v13669_v31  ;;  %v4545_v13 = vrot.slane %v4543_v48, 2  ;;  %v4548_v31 = vrot.slane %v4546_v5, 2  ;;  %v4551_v53 = vrot.slane %v13660_v55, 2  ;;  %v17003_v11 = vrot.slane %v13449_v35, 4  ;;  %10662 = vmatprep.subr.bf16.mxu0 %v17168_v57 }
 0x2a7   : > { %v10563_v24 = vpop.f32.mrf.mxu0  ;;  %v3165_v22 = vadd.f32 %v13258_v19, %v17389_v51  ;;  %v3780_v37 = vsel %vm1959_vm5, %v3741_v43, %v13568_v42  ;;  %v17390_v51 = vld [vmem:[#allocation49_spill] sm:$0xff]  ;;  %v17392_v42 = vrot.slane %v13376_v14, 4  ;;  %v4544_v28 = vsel %vm13693_vm8, %v9975_v38, %v4543_v48 }
 0x2a8   : > { %v3642_v24 = vadd.f32 %v13528_v62, %v13536_v0  ;;  %v3578_v0 = vadd.f32 %v3481_v50, %v12775_v52  ;;  %v4547_v58 = vsel %vm13693_vm8, %v4545_v13, %v4546_v5  ;;  %v13709_v52 = vrot.slane %v3780_v37, %v11562_v9 }
 0x2a9   : > { %v13684_v1 = vpop.f32.mrf.mxu0  ;;  %v17391_v5 = vrot.slane %v17390_v51, 4  ;;  %v3483_v18 = vsel %vm3432_vm9, %v17392_v42, %v3482_v27  ;;  %v3485_v49 = vsel %vm3432_vm9, %v3482_v27, %v17003_v11  ;;  %v17394_v14 = vrot.slane %v13642_v63, 7 }
 0x2aa   : > { %v3683_v54 = vmax.f32 %v3642_v24, 0.0  ;;  %v4246_v24 = vcombine.high %v3780_v37, %v3780_v37  ;;  %v4550_v38 = vsel %vm13693_vm8, %v4548_v31, %v13660_v55  ;;  %v13742_v48 = vmul.f32 %v12883_v10, %v4547_v58 }
 0x2ab   : > { %v10566_v33 = vpop.f32.mrf.mxu0  ;;  %v3595_v13 = vadd.f32 %v17391_v5, %v3165_v22  ;;  %v13733_v51 = vrot.slane %v17394_v14, 2  ;;  %v13752_v63 = vmul.f32 %v12879_v3, %v4544_v28  ;;  %v5342_v16 = vmul.f32 %v17396_v56, %v4550_v38 }
 0x2ac   : > { %v3855_v50 = vcombine.high %v3683_v54, %v3683_v54  ;;  %v3862_v19 = vrot.slane %v3683_v54, %v11562_v9  ;;  %v3626_v33 = vadd.f32 %v13528_v62, %v3578_v0  ;;  %v13726_v54 = vrot.slane %v4533_v41, 7 }
 0x2ad   : > { %v13712_v7 = vpop.f32.mrf.mxu0  ;;  %v4261_v0 = vcombine.high %v13709_v52, %v13709_v52  ;;  %17395 = vst [vmem:[#allocation49_spill] sm:$0xff] %v13733_v51  ;;  %v13736_v5 = vrot.slane %v4246_v24, %v11562_v9  ;;  %v3643_v51 = vadd.f32 %v13528_v62, %v3595_v13  ;;  %v3579_v6 = vadd.f32 %v3483_v18, %v17399_v39 }
 0x2ae   : > { %17393 = vst [vmem:[#allocation44_spill] sm:$0xff] %v13726_v54  ;;  %v3869_v22 = vrot.slane %v3855_v50, %v11562_v9  ;;  %v3870_v27 = vcombine.high %v3862_v19, %v3862_v19  ;;  %v4552_v42 = vrot.slane %v3862_v19, 7  ;;  %v3667_v50 = vmax.f32 %v3626_v33, 0.0 }
 0x2af   : > { %v10567_v37 = vpop.f32.mrf.mxu0  ;;  %v13754_v55 = vrot.slane %v4261_v0, 7  ;;  %v4262_v33 = vcombine.high %v13736_v5, %v13736_v5  ;;  %v3684_v46 = vmax.f32 %v3643_v51, 0.0  ;;  %v17019_v38 = vrot.slane %v13736_v5, 7 }
 0x2b0   : > { %v3871_v11 = vcombine.high %v3869_v22, %v3869_v22  ;;  %v4553_v14 = vsel %vm13693_vm8, %v4551_v53, %v4552_v42  ;;  %v4555_v24 = vrot.slane %v3870_v27, 7  ;;  %v4558_v31 = vrot.slane %v3869_v22, 7 }
 0x2b1   : > { %v13745_v37 = vpop.f32.mrf.mxu0  ;;  %v4554_v41 = vrot.slane %v4552_v42, 2  ;;  %v5343_v53 = vmul.f32 %v17397_v29, %v4553_v14  ;;  %v17398_v27 = vrot.slane %v13709_v52, 7  ;;  %v3742_v0 = vrot.slane %v3667_v50, 4 }
 0x2b2   : > { %v4557_v28 = vrot.slane %v4555_v24, 2  ;;  %v4560_v22 = vrot.slane %v4558_v31, 2  ;;  %v13770_v40 = vrot.slane %v4262_v33, 7 }
 0x2b3   : > { %v10570_v58 = vpop.f32.mrf.mxu0  ;;  %v13764_v19 = vrot.slane %v17398_v27, 2  ;;  %v5665_v36 = vcombine.low %v5342_v16, %v5343_v53  ;;  %v3781_v14 = vsel %vm1959_vm5, %v3742_v0, %v3741_v43  ;;  %v4556_v27 = vsel %vm13693_vm8, %v4554_v41, %v4555_v24  ;;  %v17402_v53 = vld [vmem:[#allocation54_spill] sm:$0xff] }
 0x2b4   : > { %v4561_v58 = vrot.slane %v3871_v11, 7  ;;  %v4263_v50 = vcombine.high %v3781_v14, %v3781_v14  ;;  %v4559_v16 = vsel %vm13693_vm8, %v4557_v28, %v4558_v31  ;;  %v17401_v11 = vld [vmem:[#allocation53_spill] sm:$0xff]  ;;  %v3627_v43 = vadd.f32 %v13528_v62, %v3579_v6 }
 0x2b5   : > { %v3378_v54 = vpop.f32.mrf.mxu0  ;;  %v3758_v51 = vsel %vm1959_vm5, %v17401_v11, %v3684_v46  ;;  %v3580_v39 = vadd.f32 %v3485_v49, %v17402_v53  ;;  %v13794_v6 = vrot.slane %v17019_v38, 2 }
 0x2b6   : > { %v13775_v54 = vrot.slane %v3781_v14, %v11562_v9  ;;  %v4562_v18 = vsel %vm13693_vm8, %v4560_v22, %v4561_v58  ;;  %v4563_v33 = vrot.slane %v4561_v58, 2  ;;  %v13786_v41 = vrot.slane %v4263_v50, %v11562_v9 }
 0x2b7   : > { %v10571_v13 = vpop.f32.mrf.mxu0  ;;  %v3872_v24 = vcombine.high %v3758_v51, %v3758_v51  ;;  %v3879_v31 = vrot.slane %v3758_v51, %v11562_v9  ;;  %v3668_v28 = vmax.f32 %v3627_v43, 0.0  ;;  %v3628_v46 = vadd.f32 %v13528_v62, %v3580_v39 }
 0x2b8   : > { %17400 = vst [vmem:[#allocation3_spill] sm:$0xff] %v13775_v54  ;;  %17403 = vst [vmem:[#allocation53_spill] sm:$0xff] %v13786_v41  ;;  %v4278_v13 = vcombine.high %v13775_v54, %v13775_v54  ;;  %v13798_v22 = vmul.f32 %v12879_v3, %v4556_v27  ;;  %v13801_v58 = vmul.f32 %v12883_v10, %v4559_v16  ;;  %v17405_v27 = vrot.slane %v13775_v54, 7 }
 0x2b9   : > { %v3886_v14 = vrot.slane %v3872_v24, %v11562_v9  ;;  %v3887_v50 = vcombine.high %v3879_v31, %v3879_v31  ;;  %v4564_v11 = vrot.slane %v3879_v31, 7  ;;  %v3743_v51 = vrot.slane %v3668_v28, 4 }
 0x2ba   : > { %v13805_v43 = vmul.f32 %v17396_v56, %v4562_v18  ;;  %v4279_v53 = vcombine.high %v13786_v41, %v13786_v41  ;;  %v3669_v49 = vmax.f32 %v3628_v46, 0.0  ;;  %v13810_v42 = vrot.slane %v4278_v13, 7 }
 0x2bb   : > { %v4565_v16 = vsel %vm13693_vm8, %v4563_v33, %v4564_v11  ;;  %v3486_v24 = vrot.slane %v13478_v61, 4  ;;  %v13817_v31 = vrot.slane %v5665_v36, %v11562_v9  ;;  %v4566_v18 = vrot.slane %v4564_v11, 2 }
 0x2bc   : > { %17404 = vst [vmem:[#allocation54_spill] sm:$0xff] %v13810_v42  ;;  %v4567_v28 = vrot.slane %v3887_v50, 7  ;;  %v3782_v38 = vsel %vm1959_vm5, %v3743_v51, %v3742_v0  ;;  %v3888_v46 = vcombine.high %v3886_v14, %v3886_v14  ;;  %v4570_v13 = vrot.slane %v3886_v14, 7 }
 0x2bd   : > { %v4280_v56 = vcombine.high %v3782_v38, %v3782_v38  ;;  %v13824_v10 = vrot.slane %v17405_v27, 2  ;;  %v13826_v33 = vrot.slane %v4279_v53, 7  ;;  %v13829_v61 = vrot.slane %v3782_v38, %v11562_v9 }
 0x2be   : > { %v3744_v36 = vrot.slane %v3669_v49, 4  ;;  %v17408_v0 = vrot.slane %v13786_v41, 7  ;;  %v17411_v14 = vrot.slane %v13449_v35, 4  ;;  %v4568_v53 = vsel %vm13693_vm8, %v4566_v18, %v4567_v28  ;;  %v17412_v41 = vld [vmem:[#allocation62_spill] sm:$0xff] }
 0x2bf   : > { %17406 = vst [vmem:[#allocation191_spill] sm:$0xff] %v13824_v10  ;;  %17407 = vst [vmem:[#allocation192_spill] sm:$0xff] %v13829_v61  ;;  %v13837_v39 = vrot.slane %v4280_v56, %v11562_v9  ;;  %v4569_v10 = vrot.slane %v4567_v28, 2  ;;  %v4295_v38 = vcombine.high %v13829_v61, %v13829_v61  ;;  %v13847_v50 = vrot.slane %v4570_v13, 2 }
 0x2c0   : > { %v13834_v11 = vrot.slane %v17408_v0, 2  ;;  %v3487_v27 = vsel %vm3432_vm9, %v17411_v14, %v3486_v24  ;;  %v3783_v49 = vsel %vm1959_vm5, %v3744_v36, %v3743_v51  ;;  %v13849_v0 = vrot.slane %v3888_v46, 7 }
 0x2c1   : > { %17410 = vst [vmem:[#allocation194_spill] sm:$0xff] %v13837_v39  ;;  %v17030_v56 = vrot.slane %v13829_v61, 7  ;;  %v3581_v42 = vadd.f32 %v3487_v27, %v17412_v41  ;;  %v3488_v18 = vrot.slane %v13511_v4, 4  ;;  %v13857_v28 = vmul.f32 %v17397_v29, %v4565_v16 }
 0x2c2   : > { %17409 = vst [vmem:[#allocation193_spill] sm:$0xff] %v13834_v11  ;;  %v4297_v11 = vcombine.high %v3783_v49, %v3783_v49  ;;  %v4296_v51 = vcombine.high %v13837_v39, %v13837_v39  ;;  %v13861_v54 = vrot.slane %v4295_v38, 7  ;;  %v13864_v46 = vrot.slane %v3783_v49, %v11562_v9 }
 0x2c3   : > { %v13868_v35 = vsel %vm13693_vm8, %v4569_v10, %v4570_v13  ;;  %v13871_v14 = vmul.f32 %v12879_v3, %v4568_v53  ;;  %v3629_v4 = vadd.f32 %v13528_v62, %v3581_v42  ;;  %v3489_v41 = vsel %vm3432_vm9, %v3486_v24, %v3488_v18  ;;  %v17418_v24 = vld [vmem:[#allocation89_spill] sm:$0xff] }
 0x2c4   : > { %17413 = vst [vmem:[#allocation62_spill] sm:$0xff] %v13861_v54  ;;  %v13882_v38 = vrot.slane %v17030_v56, 2  ;;  %v13885_v10 = vrot.slane %v4297_v11, %v11562_v9  ;;  %v17416_v13 = vrot.slane %v13837_v39, 7  ;;  %v3582_v49 = vadd.f32 %v3489_v41, %v17418_v24 }
 0x2c5   : > { %v3670_v42 = vmax.f32 %v3629_v4, 0.0  ;;  %v3490_v29 = vrot.slane %v13538_v21, 4  ;;  %v13894_v3 = vrot.slane %v4296_v51, 7  ;;  %v4312_v56 = vcombine.high %v13864_v46, %v13864_v46  ;;  %v17419_v21 = vld [vmem:[#allocation110_spill] sm:$0xff] }
 0x2c6   : > { %17414 = vst [vmem:[#allocation195_spill] sm:$0xff] %v13882_v38  ;;  %17415 = vst [vmem:[#allocation196_spill] sm:$0xff] %v13885_v10  ;;  %v13889_v53 = vrot.slane %v17416_v13, 2  ;;  %v3492_v27 = vrot.slane %v13561_v8, 4  ;;  %v3630_v38 = vadd.f32 %v13528_v62, %v3582_v49  ;;  %v3494_v4 = vrot.slane %v13592_v2, 4  ;;  %v17420_v8 = vld [vmem:[#allocation116_spill] sm:$0xff] }
 0x2c7   : > { %v3745_v11 = vrot.slane %v3670_v42, 4  ;;  %v3491_v13 = vsel %vm3432_vm9, %v3488_v18, %v3490_v29  ;;  %v4313_v41 = vcombine.high %v13885_v10, %v13885_v10  ;;  %v17035_v16 = vrot.slane %v13623_v45, 4 }
 0x2c8   : > { %17417 = vst [vmem:[#allocation197_spill] sm:$0xff] %v13889_v53  ;;  %v3583_v24 = vadd.f32 %v3491_v13, %v17419_v21  ;;  %v3493_v51 = vsel %vm3432_vm9, %v3490_v29, %v3492_v27  ;;  %v3671_v39 = vmax.f32 %v3630_v38, 0.0  ;;  %v3495_v49 = vsel %vm3432_vm9, %v3492_v27, %v3494_v4 }
 0x2c9   : > { %v3784_v53 = vsel %vm1959_vm5, %v3745_v11, %v3744_v36  ;;  %v3584_v42 = vadd.f32 %v3493_v51, %v17420_v8  ;;  %v3585_v61 = vadd.f32 %v3495_v49, %v13247_v15  ;;  %v17036_v13 = vrot.slane %v13864_v46, 7 }
 0x2ca   : > { %v4314_v54 = vcombine.high %v3784_v53, %v3784_v53  ;;  %v13911_v18 = vrot.slane %v3784_v53, %v11562_v9  ;;  %v3631_v2 = vadd.f32 %v13528_v62, %v3583_v24  ;;  %v3746_v29 = vrot.slane %v3671_v39, 4 }
 0x2cb   : > { %v3632_v21 = vadd.f32 %v13528_v62, %v3584_v42  ;;  %v3497_v36 = vsel %vm3432_vm9, %v3494_v4, %v17035_v16  ;;  %v13920_v38 = vrot.slane %v4312_v56, 7  ;;  %v13931_v49 = vrot.slane %v4313_v41, 7 }
 0x2cc   : > { %17421 = vst [vmem:[#allocation89_spill] sm:$0xff] %v13911_v18  ;;  %v13924_v53 = vrot.slane %v4314_v54, %v11562_v9  ;;  %v3672_v51 = vmax.f32 %v3631_v2, 0.0  ;;  %v4329_v15 = vcombine.high %v13911_v18, %v13911_v18  ;;  %v3785_v24 = vsel %vm1959_vm5, %v3746_v29, %v3745_v11 }
 0x2cd   : > { %17422 = vst [vmem:[#allocation110_spill] sm:$0xff] %v13920_v38  ;;  %v3673_v39 = vmax.f32 %v3632_v21, 0.0  ;;  %v3586_v8 = vadd.f32 %v3497_v36, %v13265_v25  ;;  %17424 = vst [vmem:[#allocation198_spill] sm:$0xff] %v13931_v49  ;;  %v3633_v4 = vadd.f32 %v13528_v62, %v3585_v61  ;;  %v4331_v54 = vcombine.high %v3785_v24, %v3785_v24 }
 0x2ce   : > { %17423 = vst [vmem:[#allocation116_spill] sm:$0xff] %v13924_v53  ;;  %v4330_v56 = vcombine.high %v13924_v53, %v13924_v53  ;;  %v13937_v2 = vrot.slane %v3785_v24, %v11562_v9  ;;  %v3747_v16 = vrot.slane %v3672_v51, 4  ;;  %v13941_v11 = vrot.slane %v17036_v13, 2 }
 0x2cf   : > { %v3748_v27 = vrot.slane %v3673_v39, 4  ;;  %v17426_v41 = vrot.slane %v13885_v10, 7  ;;  %v13949_v42 = vrot.slane %v4329_v15, 7  ;;  %v13952_v61 = vrot.slane %v4331_v54, %v11562_v9 }
 0x2d0   : > { %17425 = vst [vmem:[#allocation199_spill] sm:$0xff] %v13941_v11  ;;  %v4346_v51 = vcombine.high %v13937_v2, %v13937_v2  ;;  %v3786_v24 = vsel %vm1959_vm5, %v3747_v16, %v3746_v29  ;;  %v13963_v15 = vrot.slane %v4330_v56, 7 }
 0x2d1   : > { %v13946_v21 = vrot.slane %v17426_v41, 2  ;;  %17428 = vst [vmem:[#allocation201_spill] sm:$0xff] %v13949_v42  ;;  %17429 = vst [vmem:[#allocation202_spill] sm:$0xff] %v13952_v61  ;;  %v4348_v13 = vcombine.high %v3786_v24, %v3786_v24  ;;  %v13959_v25 = vrot.slane %v3786_v24, %v11562_v9  ;;  %v3787_v41 = vsel %vm1959_vm5, %v3748_v27, %v3747_v16 }
 0x2d2   : > { %17431 = vst [vmem:[#allocation204_spill] sm:$0xff] %v13963_v15  ;;  %v13966_v10 = vrot.slane %v4346_v51, 7  ;;  %v4365_v39 = vcombine.high %v3787_v41, %v3787_v41  ;;  %v4347_v24 = vcombine.high %v13952_v61, %v13952_v61  ;;  %v13978_v36 = vrot.slane %v3787_v41, %v11562_v9 }
 0x2d3   : > { %17427 = vst [vmem:[#allocation200_spill] sm:$0xff] %v13946_v21  ;;  %17430 = vst [vmem:[#allocation203_spill] sm:$0xff] %v13959_v25  ;;  %v3674_v21 = vmax.f32 %v3633_v4, 0.0  ;;  %v13970_v29 = vrot.slane %v4348_v13, %v11562_v9  ;;  %v4363_v16 = vcombine.high %v13959_v25, %v13959_v25  ;;  %v17434_v4 = vrot.slane %v13911_v18, 7 }
 0x2d4   : > { %17433 = vst [vmem:[#allocation206_spill] sm:$0xff] %v13978_v36  ;;  %v17436_v13 = vrot.slane %v13924_v53, 7  ;;  %v13994_v41 = vrot.slane %v4365_v39, %v11562_v9  ;;  %v14007_v15 = vrot.slane %v4347_v24, 7  ;;  %v17444_v53 = vrot.slane %v13959_v25, 7 }
 0x2d5   : > { %17432 = vst [vmem:[#allocation205_spill] sm:$0xff] %v13970_v29  ;;  %v13982_v51 = vrot.slane %v17434_v4, 2  ;;  %v4364_v56 = vcombine.high %v13970_v29, %v13970_v29  ;;  %v4380_v4 = vcombine.high %v13978_v36, %v13978_v36  ;;  %v3749_v38 = vrot.slane %v3674_v21, 4 }
 0x2d6   : > { %v13987_v54 = vrot.slane %v17436_v13, 2  ;;  %17438 = vst [vmem:[#allocation209_spill] sm:$0xff] %v13994_v41  ;;  %17443 = vst [vmem:[#allocation212_spill] sm:$0xff] %v14007_v15  ;;  %v14011_v39 = vrot.slane %v17444_v53, 2  ;;  %v14013_v42 = vrot.slane %v4363_v16, 7  ;;  %v3634_v13 = vadd.f32 %v13528_v62, %v3586_v8 }
 0x2d7   : > { %17435 = vst [vmem:[#allocation207_spill] sm:$0xff] %v13982_v51  ;;  %v17439_v51 = vrot.slane %v13937_v2, 7  ;;  %v17448_v21 = vrot.slane %v13623_v45, 4  ;;  %v4381_v53 = vcombine.high %v13994_v41, %v13994_v41  ;;  %v14028_v16 = vrot.slane %v4380_v4, 7 }
 0x2d8   : > { %17437 = vst [vmem:[#allocation208_spill] sm:$0xff] %v13987_v54  ;;  %v17441_v54 = vrot.slane %v13952_v61, 7  ;;  %17445 = vst [vmem:[#allocation213_spill] sm:$0xff] %v14011_v39  ;;  %v17452_v39 = vld [vmem:[#allocation56_spill] sm:$0xff]  ;;  %v17454_v45 = vrot.slane %v13849_v0, 2  ;;  %v17455_v4 = vrot.slane %v13970_v29, 7 }
 0x2d9   : > { %v14000_v11 = vrot.slane %v17439_v51, 2  ;;  %17446 = vst [vmem:[#allocation214_spill] sm:$0xff] %v14013_v42  ;;  %17450 = vst [vmem:[#allocation216_spill] sm:$0xff] %v14028_v16  ;;  %v17453_v25 = vrot.slane %v17452_v39, 7  ;;  %v17465_v16 = vld [vmem:[#allocation64_spill] sm:$0xff] }
 0x2da   : > { %v14005_v49 = vrot.slane %v17441_v54, 2  ;;  %v17447_v54 = vrot.slane %v13653_v12, 4  ;;  %v14044_v61 = vrot.slane %v17455_v4, 2  ;;  %v17461_v4 = vld [vmem:[#allocation63_spill] sm:$0xff] }
 0x2db   : > { %17440 = vst [vmem:[#allocation210_spill] sm:$0xff] %v14000_v11  ;;  %v3788_v11 = vsel %vm1959_vm5, %v3749_v38, %v3748_v27  ;;  %v3675_v27 = vmax.f32 %v3634_v13, 0.0 }
 0x2dc   : > { %17442 = vst [vmem:[#allocation211_spill] sm:$0xff] %v14005_v49  ;;  %v3499_v24 = vsel %vm3432_vm9, %v17448_v21, %v17447_v54  ;;  %v14024_v49 = vrot.slane %v4364_v56, 7  ;;  %v4382_v18 = vcombine.high %v3788_v11, %v3788_v11  ;;  %v14031_v51 = vrot.slane %v3788_v11, %v11562_v9  ;;  %17456 = vst [vmem:[#allocation56_spill] sm:$0xff] %v14044_v61 }
 0x2dd   : > { %v3587_v8 = vadd.f32 %v3499_v24, %v13279_v30  ;;  %v4577_v56 = vsel %vm13693_vm8, %v17454_v45, %v17453_v25  ;;  %v17458_v30 = vrot.slane %v13978_v36, 7  ;;  %v3750_v24 = vrot.slane %v3675_v27, 4  ;;  %v17466_v36 = vld [vmem:[#allocation68_spill] sm:$0xff] }
 0x2de   : > { %17449 = vst [vmem:[#allocation215_spill] sm:$0xff] %v14024_v49  ;;  %17451 = vst [vmem:[#allocation217_spill] sm:$0xff] %v14031_v51  ;;  %v14047_v11 = vrot.slane %v4382_v18, %v11562_v9  ;;  %v14057_v54 = vrot.slane %v4381_v53, 7  ;;  %v5349_v61 = vmul.f32 %v17461_v4, %v13868_v35  ;;  %v11377_v18 = vld [vmem:[%s16807_s3 + $0xc] sm:$0xff]  }
 0x2df   : > { %v14051_v13 = vrot.slane %v17458_v30, 2  ;;  %v3635_v25 = vadd.f32 %v13528_v62, %v3587_v8  ;;  %v4397_v30 = vcombine.high %v14031_v51, %v14031_v51  ;;  %v3789_v27 = vsel %vm1959_vm5, %v3750_v24, %v3749_v38  ;;  %10575 = vmatpush3.bf16.msra.mxu1 %v11377_v18 }
 0x2e0   : > { %17457 = vst [vmem:[#allocation218_spill] sm:$0xff] %v14047_v11  ;;  %17460 = vst [vmem:[#allocation220_spill] sm:$0xff] %v14057_v54  ;;  %v17462_v8 = vcombine.low %v13752_v63, %v13742_v48  ;;  %v4398_v53 = vcombine.high %v14047_v11, %v14047_v11  ;;  %v4399_v45 = vcombine.high %v3789_v27, %v3789_v27  ;;  %10748 = vmatprep.subr.bf16.mxu1 %v17168_v57 }
 0x2e1   : > { %17459 = vst [vmem:[#allocation219_spill] sm:$0xff] %v14051_v13  ;;  %v3676_v39 = vmax.f32 %v3635_v25, 0.0  ;;  %v14074_v35 = vrot.slane %v3789_v27, %v11562_v9  ;;  %v17464_v13 = vsel %vm13693_vm8, %v13847_v50, %v13849_v0  ;;  %v5351_v63 = vmul.f32 %v17466_v36, %v4577_v56 }
 0x2e2   : > { %v5672_v21 = vrot.slane %v17462_v8, %v11562_v9  ;;  %v5350_v38 = vmul.f32 %v17465_v16, %v17464_v13  ;;  %v5682_v8 = vcombine.low %v13805_v43, %v13857_v28  ;;  %v14094_v50 = vrot.slane %v4399_v45, %v11562_v9 }
 0x2e3   : > { %17463 = vst [vmem:[#allocation63_spill] sm:$0xff] %v14074_v35  ;;  %v14082_v25 = vrot.slane %v3676_v39, 4  ;;  %v4414_v0 = vcombine.high %v14074_v35, %v14074_v35  ;;  %v14098_v13 = vrot.slane %v4397_v30, 7  ;;  %v17470_v43 = vcombine.low %v13798_v22, %v13801_v58 }
 0x2e4   : > { %v14086_v48 = vcombine.low %v5672_v21, %v13817_v31  ;;  %17468 = vst [vmem:[#allocation68_spill] sm:$0xff] %v14094_v50  ;;  %v5696_v56 = vrot.slane %v5682_v8, %v11562_v9  ;;  %v14107_v21 = vrot.slane %v4398_v53, 7  ;;  %v4415_v39 = vcombine.high %v14094_v50, %v14094_v50 }
 0x2e5   : > { %17469 = vst [vmem:[#allocation221_spill] sm:$0xff] %v14098_v13  ;;  %v3790_v31 = vsel %vm1959_vm5, %v14082_v25, %v3750_v24  ;;  %v5689_v28 = vrot.slane %v17470_v43, %v11562_v9  ;;  %v5698_v18 = vcombine.low %v13871_v14, %v5349_v61  ;;  %v14113_v30 = vrot.slane %v4414_v0, 7 }
 0x2e6   : > { %17467 = vst [vmem:[#allocation64_spill] sm:$0xff] %v14086_v48  ;;  %17471 = vst [vmem:[#allocation222_spill] sm:$0xff] %v14107_v21  ;;  %v17057_v24 = vrot.slane %v14094_v50, 7  ;;  %v5699_v27 = vcombine.low %v5350_v38, %v5351_v63  ;;  %v17474_v22 = vrot.slane %v13994_v41, 7  ;;  %v17476_v8 = vrot.slane %v14031_v51, 7 }
 0x2e7   : > { %17472 = vst [vmem:[#allocation223_spill] sm:$0xff] %v14113_v30  ;;  %v14116_v49 = vcombine.low %v5689_v28, %v5696_v56  ;;  %v4416_v45 = vcombine.high %v3790_v31, %v3790_v31  ;;  %v17478_v61 = vrot.slane %v14047_v11, 7  ;;  %v14133_v28 = vrot.slane %v3790_v31, %v11562_v9 }
 0x2e8   : > { %v14120_v58 = vrot.slane %v17474_v22, 2  ;;  %v14125_v43 = vrot.slane %v17476_v8, 2  ;;  %v5713_v38 = vrot.slane %v5699_v27, %v11562_v9  ;;  %v17481_v56 = vrot.slane %v14074_v35, 7 }
 0x2e9   : > { %17473 = vst [vmem:[#allocation224_spill] sm:$0xff] %v14116_v49  ;;  %v14130_v0 = vrot.slane %v17478_v61, 2  ;;  %17480 = vst [vmem:[#allocation228_spill] sm:$0xff] %v14133_v28  ;;  %v5706_v8 = vrot.slane %v5698_v18, %v11562_v9  ;;  %v6601_v53 = vrot.slane %v14116_v49, 2  ;;  %v14146_v61 = vrot.slane %v17057_v24, 2 }
 0x2ea   : > { %17475 = vst [vmem:[#allocation225_spill] sm:$0xff] %v14120_v58  ;;  %17477 = vst [vmem:[#allocation226_spill] sm:$0xff] %v14125_v43  ;;  %v14139_v22 = vrot.slane %v17481_v56, 2  ;;  %v14148_v31 = vrot.slane %v4415_v39, 7  ;;  %v6600_v27 = vrot.slane %v14086_v48, 2  ;;  %v14152_v63 = vrot.slane %v4416_v45, %v11562_v9  ;;  %v17501_v43 = vld [vmem:[#allocation80_spill] sm:$0xff] }
 0x2eb   : > { %17479 = vst [vmem:[#allocation227_spill] sm:$0xff] %v14130_v0  ;;  %17483 = vst [vmem:[#allocation230_spill] sm:$0xff] %v14146_v61  ;;  %v14154_v35 = vcombine.low %v5706_v8, %v5713_v38  ;;  %v6397_v56 = vrot.slane %v14116_v49, 1  ;;  %v3500_v18 = vrot.slane %v13684_v1, 4  ;;  %v4431_v14 = vcombine.high %v14133_v28, %v14133_v28  ;;  %v17488_v49 = vld [vmem:[#allocation67_spill] sm:$0xff]  ;;  %v17493_v61 = vld [vmem:[#allocation70_spill] sm:$0xff] }
 0x2ec   : > { %17482 = vst [vmem:[#allocation229_spill] sm:$0xff] %v14139_v22  ;;  %17484 = vst [vmem:[#allocation231_spill] sm:$0xff] %v14148_v31  ;;  %v6602_v24 = vsel %vm2207_vm4, %v6600_v27, %v6601_v53  ;;  %v6396_v39 = vrot.slane %v14086_v48, 1  ;;  %v17487_v38 = vrot.slane %v13653_v12, 4  ;;  %v17489_v22 = vld [vmem:[#allocation77_spill] sm:$0xff]  ;;  %v17490_v27 = vld [vmem:[#allocation60_spill] sm:$0xff] }
 0x2ed   : > { %17485 = vst [vmem:[#allocation232_spill] sm:$0xff] %v14152_v63  ;;  %17486 = vst [vmem:[#allocation233_spill] sm:$0xff] %v14154_v35  ;;  %v4580_v1 = vsel %vm13693_vm8, %v17489_v22, %v17488_v49  ;;  %v17491_v0 = vrot.slane %v17490_v27, 7  ;;  %v17492_v21 = vrot.slane %v17488_v49, 2  ;;  %v17494_v12 = vld [vmem:[#allocation78_spill] sm:$0xff]  ;;  %v17495_v11 = vrot.slane %v14154_v35, 2 }
 0x2ee   : > { %v3501_v8 = vsel %vm3432_vm9, %v17487_v38, %v3500_v18  ;;  %v6398_v30 = vsel %vm2002_vm3, %v6396_v39, %v6397_v56  ;;  %v4586_v38 = vsel %vm13693_vm8, %v17494_v12, %v17493_v61  ;;  %v17496_v39 = vrot.slane %v14154_v35, 1  ;;  %v17545_v31 = vld [vmem:[#allocation98_spill] sm:$0xff] }
 0x2ef   : > { %v3588_v50 = vadd.f32 %v3501_v8, %v13288_v60  ;;  %v4583_v45 = vsel %vm13693_vm8, %v17492_v21, %v17491_v0  ;;  %v6604_v22 = vsel %vm2207_vm4, %v6601_v53, %v17495_v11  ;;  %v17497_v8 = vld [vmem:[#allocation66_spill] sm:$0xff]  ;;  %v17499_v49 = vrot.slane %v17493_v61, 2  ;;  %v17500_v0 = vld [vmem:[#allocation76_spill] sm:$0xff]  ;;  %v17502_v53 = vld [vmem:[#allocation69_spill] sm:$0xff] }
 0x2f0   : > { %v6400_v60 = vsel %vm2002_vm3, %v6397_v56, %v17496_v39  ;;  %v17498_v27 = vrot.slane %v17497_v8, 7  ;;  %v4592_v12 = vsel %vm13693_vm8, %v17501_v43, %v17500_v0  ;;  %v11148_v13 = vpack.i.bf16 %v6604_v22, %v6602_v24  ;;  %v17505_v61 = vld [vmem:[#allocation81_spill] sm:$0xff]  ;;  %v17506_v8 = vld [vmem:[#allocation84_spill] sm:$0xff]  ;;  %v17511_v22 = vld [vmem:[#allocation58_spill] sm:$0xff] }
 0x2f1   : > { %v11143_v51 = vpack.i.bf16 %v6400_v60, %v6398_v30  ;;  %v3636_v11 = vadd.f32 %v13528_v62, %v3588_v50  ;;  %v17503_v58 = vrot.slane %v17502_v53, 7  ;;  %v17504_v56 = vrot.slane %v17500_v0, 2  ;;  %v17510_v50 = vld [vmem:[#allocation57_spill] sm:$0xff]  ;;  %v17512_v0 = vld [vmem:[#allocation59_spill] sm:$0xff] }
 0x2f2   : > { %v4589_v21 = vsel %vm13693_vm8, %v17499_v49, %v17498_v27  ;;  %v4598_v27 = vsel %vm13693_vm8, %v17506_v8, %v17505_v61  ;;  %v17507_v49 = vld [vmem:[#allocation71_spill] sm:$0xff]  ;;  %v17509_v43 = vrot.slane %v17505_v61, 2  ;;  %v5352_v24 = vmul.f32 %v17510_v50, %v4580_v1  ;;  %11149 = vrot.lane.b32.xlu1 %v11148_v13, %s11405_s28 }
 0x2f3   : > { %v4595_v39 = vsel %vm13693_vm8, %v17504_v56, %v17503_v58  ;;  %v17508_v54 = vrot.slane %v17507_v49, 7  ;;  %v5353_v60 = vmul.f32 %v17511_v22, %v4583_v45  ;;  %11144 = vrot.lane.b32.xlu0 %v11143_v51, %s11398_s9  ;;  %v3677_v58 = vmax.f32 %v3636_v11, 0.0  ;;  %v17513_v56 = vld [vmem:[#allocation61_spill] sm:$0xff]  ;;  %v17515_v61 = vld [vmem:[#allocation55_spill] sm:$0xff] }
 0x2f4   : > { %v5354_v53 = vmul.f32 %v17512_v0, %v4586_v38  ;;  %v5355_v8 = vmul.f32 %v17513_v56, %v4589_v21  ;;  %v17514_v49 = vld [vmem:[#allocation65_spill] sm:$0xff]  ;;  %v5357_v29 = vmul.f32 %v17515_v61, %v4595_v39  ;;  %v17076_v51 = vrot.slane %v13712_v7, 4 }
 0x2f5   : > { %v4601_v30 = vsel %vm13693_vm8, %v17509_v43, %v17508_v54  ;;  %v5356_v41 = vmul.f32 %v17514_v49, %v4592_v12  ;;  %v5358_v54 = vmul.f32 %v17461_v4, %v4598_v27  ;;  %v5715_v43 = vcombine.low %v5352_v24, %v5353_v60 }
 0x2f6   : > { %v5359_v1 = vmul.f32 %v17465_v16, %v4601_v30  ;;  %v3752_v42 = vrot.slane %v3677_v58, 4  ;;  %v5716_v13 = vcombine.low %v5354_v53, %v5355_v8  ;;  %v14229_v11 = vrot.slane %v4431_v14, 7  ;;  %v17520_v8 = vld [vmem:[#allocation83_spill] sm:$0xff] }
 0x2f7   : > { %v17075_v38 = vrot.slane %v14152_v63, 7  ;;  %v5732_v21 = vcombine.low %v5356_v41, %v5357_v29  ;;  %v5723_v39 = vrot.slane %v5715_v43, %v11562_v9  ;;  %v3503_v30 = vsel %vm3432_vm9, %v3500_v18, %v17076_v51  ;;  %v17534_v51 = vld [vmem:[#allocation91_spill] sm:$0xff] }
 0x2f8   : > { %17516 = vst [vmem:[#allocation67_spill] sm:$0xff] %v14229_v11  ;;  %v5733_v48 = vcombine.low %v5358_v54, %v5359_v1  ;;  %v3791_v12 = vsel %vm1959_vm5, %v3752_v42, %v14082_v25  ;;  %v5730_v27 = vrot.slane %v5716_v13, %v11562_v9  ;;  %v4432_v24 = vcombine.high %v14152_v63, %v14152_v63  ;;  %v17522_v1 = vld [vmem:[#allocation87_spill] sm:$0xff]  ;;  %v17543_v11 = vld [vmem:[#allocation94_spill] sm:$0xff] }
 0x2f9   : > { %v4433_v14 = vcombine.high %v3791_v12, %v3791_v12  ;;  %v5740_v60 = vrot.slane %v5732_v21, %v11562_v9  ;;  %v17517_v41 = vrot.slane %v14133_v28, 7  ;;  %v3589_v53 = vadd.f32 %v3503_v30, %v13304_v44 }
 0x2fa   : > { %v5747_v29 = vrot.slane %v5733_v48, %v11562_v9  ;;  %v14247_v25 = vcombine.low %v5723_v39, %v5730_v27  ;;  %v17521_v54 = vrot.slane %v17520_v8, 7  ;;  %v17523_v18 = vrot.slane %v17522_v1, 2 }
 0x2fb   : > { %v14245_v58 = vrot.slane %v17517_v41, 2  ;;  %v14259_v48 = vrot.slane %v17075_v38, 2  ;;  %v14262_v21 = vrot.slane %v3791_v12, %v11562_v9  ;;  %v14267_v44 = vrot.slane %v4433_v14, %v11562_v9  ;;  %v17528_v12 = vld [vmem:[#allocation79_spill] sm:$0xff] }
 0x2fc   : > { %17519 = vst [vmem:[#allocation60_spill] sm:$0xff] %v14247_v25  ;;  %v4613_v43 = vsel %vm13693_vm8, %v17523_v18, %v17521_v54  ;;  %v14264_v39 = vcombine.low %v5740_v60, %v5747_v29  ;;  %v6605_v27 = vrot.slane %v14247_v25, 2  ;;  %v6401_v30 = vrot.slane %v14247_v25, 1  ;;  %v17526_v54 = vld [vmem:[#allocation82_spill] sm:$0xff]  ;;  %v17527_v18 = vld [vmem:[#allocation85_spill] sm:$0xff] }
 0x2fd   : > { %17518 = vst [vmem:[#allocation77_spill] sm:$0xff] %v14245_v58  ;;  %17524 = vst [vmem:[#allocation70_spill] sm:$0xff] %v14259_v48  ;;  %v3637_v41 = vadd.f32 %v13528_v62, %v3589_v53  ;;  %v14272_v8 = vrot.slane %v4432_v24, 7  ;;  %v4604_v13 = vsel %vm13693_vm8, %v17527_v18, %v17526_v54  ;;  %v17529_v38 = vrot.slane %v17528_v12, 7  ;;  %v17531_v29 = vld [vmem:[#allocation93_spill] sm:$0xff]  ;;  %v17541_v58 = vld [vmem:[#allocation88_spill] sm:$0xff] }
 0x2fe   : > { %17525 = vst [vmem:[#allocation78_spill] sm:$0xff] %v14264_v39  ;;  %v17530_v60 = vrot.slane %v17526_v54, 2  ;;  %v4610_v45 = vsel %vm13693_vm8, %v17531_v29, %v17522_v1  ;;  %v17532_v62 = vrot.slane %v14154_v35, 2  ;;  %v17533_v18 = vrot.slane %v14154_v35, 1  ;;  %v17535_v25 = vld [vmem:[#allocation97_spill] sm:$0xff]  ;;  %v17536_v29 = vld [vmem:[#allocation86_spill] sm:$0xff] }
 0x2ff   : > { %v4616_v1 = vsel %vm13693_vm8, %v17535_v25, %v17534_v51  ;;  %v17537_v48 = vrot.slane %v17536_v29, 7  ;;  %v17539_v54 = vrot.slane %v14264_v39, 2  ;;  %v17542_v25 = vrot.slane %v17541_v58, 7 }
 0x300   : > { %v4607_v14 = vsel %vm13693_vm8, %v17530_v60, %v17529_v38  ;;  %v6606_v24 = vsel %vm2207_vm4, %v17532_v62, %v6605_v27  ;;  %v6402_v12 = vsel %vm2002_vm3, %v17533_v18, %v6401_v30  ;;  %v4448_v38 = vcombine.high %v14262_v21, %v14262_v21 }
 0x301   : > { %v3678_v60 = vmax.f32 %v3637_v41, 0.0  ;;  %v17538_v62 = vrot.slane %v17534_v51, 2  ;;  %v4449_v18 = vcombine.high %v14267_v44, %v14267_v44  ;;  %v6608_v35 = vsel %vm2207_vm4, %v6605_v27, %v17539_v54 }
 0x302   : > { %v17540_v41 = vrot.slane %v14264_v39, 1  ;;  %v17544_v29 = vrot.slane %v17543_v11, 2  ;;  %v11158_v28 = vpack.i.bf16 %v6608_v35, %v6606_v24  ;;  %v4622_v27 = vsel %vm13693_vm8, %v17545_v31, %v17543_v11 }
 0x303   : > { %v4619_v53 = vsel %vm13693_vm8, %v17538_v62, %v17537_v48  ;;  %v14322_v62 = vrot.slane %v3678_v60, 4  ;;  %v5360_v54 = vmul.f32 %v17466_v36, %v4604_v13  ;;  %v5362_v58 = vmul.f32 %v17511_v22, %v4610_v45 }
 0x304   : > { %v6404_v63 = vsel %vm2002_vm3, %v6401_v30, %v17540_v41  ;;  %v4625_v51 = vsel %vm13693_vm8, %v17544_v29, %v17542_v25  ;;  %v5361_v30 = vmul.f32 %v17510_v50, %v4607_v14  ;;  %v5363_v41 = vmul.f32 %v17512_v0, %v4613_v43  ;;  %11159 = vrot.lane.b32.xlu1 %v11158_v28, %s11405_s28 }
 0x305   : > { %v11153_v48 = vpack.i.bf16 %v6404_v63, %v6402_v12  ;;  %v3792_v35 = vsel %vm1959_vm5, %v14322_v62, %v3752_v42  ;;  %v5364_v63 = vmul.f32 %v17513_v56, %v4616_v1  ;;  %v5365_v31 = vmul.f32 %v17514_v49, %v4619_v53  ;;  %v17547_v12 = vld [vmem:[#allocation46_spill] sm:$0xff] }
 0x306   : > { %v4450_v11 = vcombine.high %v3792_v35, %v3792_v35  ;;  %v14340_v13 = vrot.slane %v3792_v35, %v11562_v9  ;;  %v5366_v45 = vmul.f32 %v17515_v61, %v4622_v27  ;;  %v5367_v43 = vmul.f32 %v17461_v4, %v4625_v51  ;;  %v11378_v51 = vld [vmem:[%s16807_s3] sm:$0xff]  }
 0x307   : > { %11154 = vrot.lane.b32.xlu0 %v11153_v48, %s11398_s9  ;;  %v5749_v14 = vcombine.low %v5360_v54, %v5361_v30  ;;  %v5750_v24 = vcombine.low %v5362_v58, %v5363_v41  ;;  %v5766_v28 = vcombine.low %v5364_v63, %v5365_v31  ;;  %v17548_v60 = vrot.slane %v17547_v12, 4  ;;  %10663 = vmatpush3.bf16.msra.mxu0 %v11378_v51 }
 0x308   : > { %17546 = vst [vmem:[#allocation66_spill] sm:$0xff] %v14340_v13  ;;  %v17089_v1 = vrot.slane %v14262_v21, 7  ;;  %v14349_v25 = vrot.slane %v4448_v38, 7  ;;  %v14352_v53 = vrot.slane %v4450_v11, %v11562_v9  ;;  %v5767_v29 = vcombine.low %v5366_v45, %v5367_v43  ;;  %v17552_v45 = vld [vmem:[#allocation47_spill] sm:$0xff]  ;;  %10836 = vmatprep.subr.bf16.mxu0 %v17168_v57 }
 0x309   : > { %v3386_v42 = vsel %vm1959_vm5, %v17548_v60, %v13745_v37  ;;  %v17087_v48 = vrot.slane %v14267_v44, 7  ;;  %v5757_v27 = vrot.slane %v5749_v14, %v11562_v9  ;;  %v5764_v54 = vrot.slane %v5750_v24, %v11562_v9 }
 0x30a   : > { %17549 = vst [vmem:[#allocation76_spill] sm:$0xff] %v14352_v53  ;;  %v3504_v30 = vrot.slane %v3386_v42, 4  ;;  %v14360_v37 = vrot.slane %v4449_v18, 7  ;;  %v4465_v38 = vcombine.high %v14340_v13, %v14340_v13  ;;  %v4466_v58 = vcombine.high %v14352_v53, %v14352_v53 }
 0x30b   : > { %v5774_v41 = vrot.slane %v5766_v28, %v11562_v9  ;;  %v14367_v35 = vcombine.low %v5757_v27, %v5764_v54  ;;  %v5781_v63 = vrot.slane %v5767_v29, %v11562_v9  ;;  %v17551_v31 = vrot.slane %v13712_v7, 4  ;;  %v17560_v27 = vld [vmem:[#allocation99_spill] sm:$0xff] }
 0x30c   : > { %v17553_v18 = vrot.slane %v17552_v45, 4  ;;  %v14379_v14 = vrot.slane %v17089_v1, 2  ;;  %v17088_v28 = vrot.slane %v14340_v13, 7  ;;  %v14391_v51 = vrot.slane %v17087_v48, 2 }
 0x30d   : > { %17550 = vst [vmem:[#allocation80_spill] sm:$0xff] %v14367_v35  ;;  %v3505_v11 = vsel %vm3432_vm9, %v17551_v31, %v3504_v30  ;;  %v14384_v60 = vcombine.low %v5774_v41, %v5781_v63  ;;  %v6609_v7 = vrot.slane %v14367_v35, 2  ;;  %v6405_v42 = vrot.slane %v14367_v35, 1  ;;  %v17567_v35 = vld [vmem:[#allocation106_spill] sm:$0xff] }
 0x30e   : > { %v3507_v43 = vsel %vm3432_vm9, %v3504_v30, %v17553_v18  ;;  %v3590_v12 = vadd.f32 %v3505_v11, %v13438_v32  ;;  %v14394_v54 = vrot.slane %v4465_v38, 7  ;;  %v11383_v32 = vld [vmem:[%s16806_s2] ss:$0 sm:$0xff]  ;;  %v17094_v41 = vrot.slane %v14352_v53, 7  ;;  %v17558_v18 = vld [vmem:[#allocation92_spill] sm:$0xff] }
 0x30f   : > { %17554 = vst [vmem:[#allocation69_spill] sm:$0xff] %v14384_v60  ;;  %v3591_v29 = vadd.f32 %v3507_v43, %v13447_v20  ;;  %v14400_v63 = vrot.slane %v4466_v58, 7  ;;  %v17090_v31 = vrot.slane %v14384_v60, 2  ;;  %v17095_v20 = vrot.slane %v14384_v60, 1 }
 0x310   : > { %17555 = vst [vmem:[#allocation81_spill] sm:$0xff] %v14394_v54  ;;  %v3638_v30 = vadd.f32 %v11383_v32, %v3590_v12  ;;  %v14406_v11 = vrot.slane %v17088_v28, 2  ;;  %v17559_v43 = vrot.slane %v17558_v18, 7  ;;  %v17561_v24 = vrot.slane %v17560_v27, 2 }
 0x311   : > { %17556 = vst [vmem:[#allocation84_spill] sm:$0xff] %v14400_v63  ;;  %v3639_v45 = vadd.f32 %v11383_v32, %v3591_v29  ;;  %v17562_v58 = vrot.slane %v14264_v39, 2  ;;  %v6612_v15 = vsel %vm2207_vm4, %v6609_v7, %v17090_v31  ;;  %v17563_v28 = vrot.slane %v14264_v39, 1  ;;  %v17565_v31 = vld [vmem:[#allocation100_spill] sm:$0xff] }
 0x312   : > { %17557 = vst [vmem:[#allocation71_spill] sm:$0xff] %v14406_v11  ;;  %v3679_v38 = vmax.f32 %v3638_v30, 0.0  ;;  %v4637_v12 = vsel %vm13693_vm8, %v17561_v24, %v17559_v43  ;;  %v6408_v32 = vsel %vm2002_vm3, %v6405_v42, %v17095_v20  ;;  %v17566_v39 = vrot.slane %v17565_v31, 7 }
 0x313   : > { %v6610_v48 = vsel %vm2207_vm4, %v17562_v58, %v6609_v7  ;;  %v6406_v29 = vsel %vm2002_vm3, %v17563_v28, %v6405_v42  ;;  %v3680_v1 = vmax.f32 %v3639_v45, 0.0  ;;  %v14429_v58 = vrot.slane %v17094_v41, 2  ;;  %v17569_v42 = vld [vmem:[#allocation95_spill] sm:$0xff]  ;;  %v17570_v45 = vld [vmem:[#allocation101_spill] sm:$0xff]  ;;  %v17580_v41 = vld [vmem:[#allocation108_spill] sm:$0xff] }
 0x314   : > { %v11168_v30 = vpack.i.bf16 %v6612_v15, %v6610_v48  ;;  %v11163_v18 = vpack.i.bf16 %v6408_v32, %v6406_v29  ;;  %v3754_v24 = vrot.slane %v3679_v38, 4  ;;  %v17568_v28 = vrot.slane %v17567_v35, 2  ;;  %v17571_v29 = vld [vmem:[#allocation90_spill] sm:$0xff]  ;;  %v17576_v7 = vld [vmem:[#allocation103_spill] sm:$0xff] }
 0x315   : > { %17564 = vst [vmem:[#allocation57_spill] sm:$0xff] %v14429_v58  ;;  %v3755_v15 = vrot.slane %v3680_v1, 4  ;;  %v4628_v38 = vsel %vm13693_vm8, %v17570_v45, %v17569_v42  ;;  %v17572_v31 = vrot.slane %v17571_v29, 7  ;;  %v17573_v32 = vrot.slane %v17569_v42, 2  ;;  %v17574_v1 = vld [vmem:[#allocation102_spill] sm:$0xff] }
 0x316   : > { %v4649_v57 = vsel %vm13693_vm8, %v17568_v28, %v17566_v39  ;;  %11169 = vrot.lane.b32.xlu1 %v11168_v30, %s11405_s28  ;;  %11164 = vrot.lane.b32.xlu0 %v11163_v18, %s11398_s9  ;;  %v3793_v48 = vsel %vm1959_vm5, %v3754_v24, %v14322_v62  ;;  %v4634_v62 = vsel %vm13693_vm8, %v17574_v1, %v17560_v27  ;;  %v17575_v18 = vld [vmem:[#allocation104_spill] sm:$0xff] }
 0x317   : > { %v4631_v39 = vsel %vm13693_vm8, %v17573_v32, %v17572_v31  ;;  %v4467_v28 = vcombine.high %v3793_v48, %v3793_v48  ;;  %v14453_v30 = vrot.slane %v3793_v48, %v11562_v9  ;;  %v4640_v45 = vsel %vm13693_vm8, %v17576_v7, %v17575_v18  ;;  %v17577_v31 = vld [vmem:[#allocation96_spill] sm:$0xff] }
 0x318   : > { %v3794_v29 = vsel %vm1959_vm5, %v3755_v15, %v3754_v24  ;;  %v3795_v42 = vsel %vm1959_vm5, %v13588_v34, %v3755_v15  ;;  %v17578_v32 = vrot.slane %v17577_v31, 7  ;;  %v17579_v48 = vrot.slane %v17575_v18, 2 }
 0x319   : > { %v4646_v27 = vsel %vm13693_vm8, %v17580_v41, %v17567_v35  ;;  %v14477_v1 = vrot.slane %v4467_v28, %v11562_v9  ;;  %v4482_v24 = vcombine.high %v14453_v30, %v14453_v30  ;;  %v4484_v7 = vcombine.high %v3794_v29, %v3794_v29 }
 0x31a   : > { %v4643_v43 = vsel %vm13693_vm8, %v17579_v48, %v17578_v32  ;;  %v14482_v34 = vrot.slane %v3794_v29, %v11562_v9  ;;  %v4501_v15 = vcombine.high %v3795_v42, %v3795_v42  ;;  %v5368_v18 = vmul.f32 %v17465_v16, %v4628_v38 }
 0x31b   : > { %17581 = vst [vmem:[#allocation58_spill] sm:$0xff] %v14477_v1  ;;  %v5369_v31 = vmul.f32 %v17466_v36, %v4631_v39  ;;  %v5370_v32 = vmul.f32 %v17510_v50, %v4634_v62  ;;  %v4483_v35 = vcombine.high %v14477_v1, %v14477_v1  ;;  %v14490_v41 = vrot.slane %v4484_v7, %v11562_v9 }
 0x31c   : > { %17582 = vst [vmem:[#allocation59_spill] sm:$0xff] %v14482_v34  ;;  %v4499_v28 = vcombine.high %v14482_v34, %v14482_v34  ;;  %v14495_v48 = vrot.slane %v3795_v42, %v11562_v9  ;;  %v14498_v29 = vrot.slane %v4501_v15, %v11562_v9  ;;  %v14501_v39 = vrot.slane %v4482_v24, 7 }
 0x31d   : > { %17583 = vst [vmem:[#allocation61_spill] sm:$0xff] %v14490_v41  ;;  %v4500_v20 = vcombine.high %v14490_v41, %v14490_v41  ;;  %v14506_v7 = vrot.slane %v4483_v35, 7  ;;  %v5371_v63 = vmul.f32 %v17511_v22, %v4637_v12  ;;  %v5372_v53 = vmul.f32 %v17512_v0, %v4640_v45 }
 0x31e   : > { %17584 = vst [vmem:[#allocation65_spill] sm:$0xff] %v14495_v48  ;;  %v14510_v42 = vrot.slane %v4499_v28, 7  ;;  %v5373_v24 = vmul.f32 %v17513_v56, %v4643_v43  ;;  %v4516_v62 = vcombine.high %v14495_v48, %v14495_v48  ;;  %v5374_v38 = vmul.f32 %v17514_v49, %v4646_v27 }
 0x31f   : > { %17585 = vst [vmem:[#allocation55_spill] sm:$0xff] %v14506_v7  ;;  %v5375_v35 = vmul.f32 %v17515_v61, %v4649_v57  ;;  %v5783_v11 = vcombine.low %v5368_v18, %v5369_v31  ;;  %v17587_v12 = vrot.slane %v14453_v30, 7  ;;  %v17588_v45 = vrot.slane %v14477_v1, 7  ;;  %v17617_v7 = vld [vmem:[#allocation115_spill] sm:$0xff] }
 0x320   : > { %17586 = vst [vmem:[#allocation83_spill] sm:$0xff] %v14510_v42  ;;  %v17590_v27 = vrot.slane %v14482_v34, 7  ;;  %v14535_v57 = vrot.slane %v4500_v20, 7  ;;  %v5784_v18 = vcombine.low %v5370_v32, %v5371_v63  ;;  %v5800_v1 = vcombine.low %v5372_v53, %v5373_v24  ;;  %v17594_v34 = vld [vmem:[#allocation112_spill] sm:$0xff]  ;;  %v17596_v32 = vld [vmem:[#allocation105_spill] sm:$0xff]  ;;  %v17600_v24 = vld [vmem:[#allocation114_spill] sm:$0xff] }
 0x321   : > { %v14523_v28 = vrot.slane %v17587_v12, 2  ;;  %v14528_v43 = vrot.slane %v17588_v45, 2  ;;  %v17592_v12 = vrot.slane %v14490_v41, 7  ;;  %v5791_v45 = vrot.slane %v5783_v11, %v11562_v9  ;;  %v17599_v53 = vld [vmem:[#allocation113_spill] sm:$0xff] }
 0x322   : > { %v14533_v13 = vrot.slane %v17590_v27, 2  ;;  %v5798_v54 = vrot.slane %v5784_v18, %v11562_v9  ;;  %v17595_v27 = vld [vmem:[#allocation111_spill] sm:$0xff]  ;;  %v5808_v63 = vrot.slane %v5800_v1, %v11562_v9  ;;  %v17597_v31 = vrot.slane %v17596_v32, 7 }
 0x323   : > { %17589 = vst [vmem:[#allocation87_spill] sm:$0xff] %v14528_v43  ;;  %v14540_v58 = vrot.slane %v17592_v12, 2  ;;  %v5801_v43 = vcombine.low %v5374_v38, %v5375_v35  ;;  %v4652_v20 = vsel %vm13693_vm8, %v17595_v27, %v17594_v34  ;;  %v17598_v12 = vrot.slane %v17594_v34, 2  ;;  %v17601_v38 = vld [vmem:[#allocation107_spill] sm:$0xff]  ;;  %v17605_v34 = vld [vmem:[#allocation117_spill] sm:$0xff] }
 0x324   : > { %17591 = vst [vmem:[#allocation82_spill] sm:$0xff] %v14533_v13  ;;  %v4658_v11 = vsel %vm13693_vm8, %v17600_v24, %v17599_v53  ;;  %v17602_v35 = vrot.slane %v17601_v38, 7  ;;  %v17603_v18 = vrot.slane %v17599_v53, 2  ;;  %v14566_v1 = vcombine.low %v5791_v45, %v5798_v54  ;;  %v17610_v53 = vld [vmem:[#allocation118_spill] sm:$0xff]  ;;  %v17611_v13 = vld [vmem:[#allocation121_spill] sm:$0xff] }
 0x325   : > { %17593 = vst [vmem:[#allocation85_spill] sm:$0xff] %v14540_v58  ;;  %v4655_v15 = vsel %vm13693_vm8, %v17598_v12, %v17597_v31  ;;  %v5815_v32 = vrot.slane %v5801_v43, %v11562_v9  ;;  %v17606_v58 = vld [vmem:[#allocation119_spill] sm:$0xff]  ;;  %v17607_v12 = vld [vmem:[#allocation109_spill] sm:$0xff]  ;;  %v17609_v24 = vrot.slane %v17605_v34, 2  ;;  %v4670_v54 = vsel %vm13693_vm8, %v17611_v13, %v17610_v53 }
 0x326   : > { %v4661_v27 = vsel %vm13693_vm8, %v17603_v18, %v17602_v35  ;;  %17604 = vst [vmem:[#allocation79_spill] sm:$0xff] %v14566_v1  ;;  %v4664_v31 = vsel %vm13693_vm8, %v17606_v58, %v17605_v34  ;;  %v17608_v41 = vrot.slane %v17607_v12, 7  ;;  %v17612_v45 = vrot.slane %v13126_v17, 7 }
 0x327   : > { %v17613_v43 = vrot.slane %v17610_v53, 2  ;;  %v5376_v58 = vmul.f32 %v17461_v4, %v4652_v20  ;;  %v5377_v18 = vmul.f32 %v17465_v16, %v4655_v15  ;;  %v14591_v34 = vcombine.low %v5808_v63, %v5815_v32 }
 0x328   : > { %v4667_v38 = vsel %vm13693_vm8, %v17609_v24, %v17608_v41  ;;  %v6613_v41 = vrot.slane %v14566_v1, 2  ;;  %v6409_v12 = vrot.slane %v14566_v1, 1  ;;  %v5378_v24 = vmul.f32 %v17466_v36, %v4658_v11 }
 0x329   : > { %v4673_v35 = vsel %vm13693_vm8, %v17613_v43, %v17612_v45  ;;  %17614 = vst [vmem:[#allocation93_spill] sm:$0xff] %v14591_v34  ;;  %v5379_v13 = vmul.f32 %v17510_v50, %v4661_v27  ;;  %v5380_v17 = vmul.f32 %v17511_v22, %v4664_v31  ;;  %v5381_v53 = vmul.f32 %v17512_v0, %v4667_v38 }
 0x32a   : > { %v5382_v45 = vmul.f32 %v17513_v56, %v4670_v54  ;;  %v17615_v20 = vrot.slane %v14384_v60, 2  ;;  %v6615_v63 = vrot.slane %v14591_v34, 2  ;;  %v17616_v32 = vrot.slane %v14384_v60, 1 }
 0x32b   : > { %v6411_v11 = vrot.slane %v14591_v34, 1  ;;  %v5383_v27 = vmul.f32 %v17514_v49, %v4673_v35  ;;  %v5817_v1 = vcombine.low %v5376_v58, %v5377_v18  ;;  %v5818_v31 = vcombine.low %v5378_v24, %v5379_v13  ;;  %v17620_v13 = vld [vmem:[#allocation123_spill] sm:$0xff] }
 0x32c   : > { %v6614_v15 = vsel %vm2207_vm4, %v17615_v20, %v6613_v41  ;;  %v6410_v43 = vsel %vm2002_vm3, %v17616_v32, %v6409_v12  ;;  %v5834_v42 = vcombine.low %v5380_v17, %v5381_v53  ;;  %v6616_v38 = vsel %vm2207_vm4, %v6613_v41, %v6615_v63  ;;  %v17621_v17 = vld [vmem:[#allocation127_spill] sm:$0xff] }
 0x32d   : > { %v6412_v54 = vsel %vm2002_vm3, %v6409_v12, %v6411_v11  ;;  %v4676_v20 = vsel %vm13693_vm8, %v13218_v59, %v13186_v26  ;;  %v17618_v60 = vrot.slane %v17617_v7, 7  ;;  %v17619_v32 = vrot.slane %v13186_v26, 2 }
 0x32e   : > { %v11178_v35 = vpack.i.bf16 %v6616_v38, %v6614_v15  ;;  %v11173_v58 = vpack.i.bf16 %v6412_v54, %v6410_v43  ;;  %v5825_v18 = vrot.slane %v5817_v1, %v11562_v9  ;;  %v5832_v41 = vrot.slane %v5818_v31, %v11562_v9  ;;  %v17627_v43 = vld [vmem:[#allocation120_spill] sm:$0xff]  ;;  %v17630_v38 = vld [vmem:[#allocation126_spill] sm:$0xff]  ;;  %v17631_v54 = vld [vmem:[#allocation131_spill] sm:$0xff] }
 0x32f   : > { %v4679_v34 = vsel %vm13693_vm8, %v17619_v32, %v17618_v60  ;;  %v5835_v24 = vcombine.low %v5382_v45, %v5383_v27  ;;  %v5842_v12 = vrot.slane %v5834_v42, %v11562_v9  ;;  %v4682_v59 = vsel %vm13693_vm8, %v17621_v17, %v17620_v13  ;;  %v17625_v42 = vld [vmem:[#allocation124_spill] sm:$0xff]  ;;  %v17626_v45 = vld [vmem:[#allocation130_spill] sm:$0xff] }
 0x330   : > { %v17622_v7 = vrot.slane %v13152_v47, 7  ;;  %v17623_v26 = vrot.slane %v17620_v13, 2  ;;  %v14634_v53 = vrot.slane %v4516_v62, 7  ;;  %11179 = vrot.lane.b32.xlu1 %v11178_v35, %s11405_s28  ;;  %11174 = vrot.lane.b32.xlu0 %v11173_v58, %s11398_s9  ;;  %v14638_v1 = vcombine.low %v5825_v18, %v5832_v41  ;;  %v17632_v35 = vld [vmem:[#allocation122_spill] sm:$0xff] }
 0x331   : > { %v4688_v15 = vsel %vm13693_vm8, %v17626_v45, %v17625_v42  ;;  %v17628_v47 = vrot.slane %v17627_v43, 7  ;;  %v17629_v27 = vrot.slane %v17625_v42, 2  ;;  %v5849_v62 = vrot.slane %v5835_v24, %v11562_v9 }
 0x332   : > { %v4685_v60 = vsel %vm13693_vm8, %v17623_v26, %v17622_v7  ;;  %17624 = vst [vmem:[#allocation91_spill] sm:$0xff] %v14638_v1  ;;  %v4694_v32 = vsel %vm13693_vm8, %v17631_v54, %v17630_v38  ;;  %v17633_v58 = vrot.slane %v17632_v35, 7  ;;  %v17634_v18 = vrot.slane %v17630_v38, 2 }
 0x333   : > { %v4691_v31 = vsel %vm13693_vm8, %v17629_v27, %v17628_v47  ;;  %v5384_v13 = vmul.f32 %v17515_v61, %v4676_v20  ;;  %v6617_v17 = vrot.slane %v14638_v1, 2  ;;  %v6413_v7 = vrot.slane %v14638_v1, 1  ;;  %v17659_v1 = vld [vmem:[#allocation150_spill] sm:$0xff] }
 0x334   : > { %v4697_v41 = vsel %vm13693_vm8, %v17634_v18, %v17633_v58  ;;  %v5385_v24 = vmul.f32 %v17461_v4, %v4679_v34  ;;  %v5386_v26 = vmul.f32 %v17465_v16, %v4682_v59  ;;  %v14666_v42 = vcombine.low %v5842_v12, %v5849_v62  ;;  %v17636_v58 = vld [vmem:[#allocation129_spill] sm:$0xff] }
 0x335   : > { %v5387_v45 = vmul.f32 %v17466_v36, %v4685_v60  ;;  %v5388_v43 = vmul.f32 %v17510_v50, %v4688_v15  ;;  %v5389_v47 = vmul.f32 %v17511_v22, %v4691_v31  ;;  %v6618_v27 = vsel %vm2207_vm4, %v6615_v63, %v6617_v17  ;;  %v17637_v15 = vld [vmem:[#allocation132_spill] sm:$0xff]  ;;  %v17638_v63 = vld [vmem:[#allocation125_spill] sm:$0xff] }
 0x336   : > { %17635 = vst [vmem:[#allocation97_spill] sm:$0xff] %v14666_v42  ;;  %v6414_v20 = vsel %vm2002_vm3, %v6411_v11, %v6413_v7  ;;  %v5390_v38 = vmul.f32 %v17512_v0, %v4694_v32  ;;  %v5391_v54 = vmul.f32 %v17513_v56, %v4697_v41  ;;  %v6619_v34 = vrot.slane %v14666_v42, 2 }
 0x337   : > { %v6415_v59 = vrot.slane %v14666_v42, 1  ;;  %v5851_v12 = vcombine.low %v5384_v13, %v5385_v24  ;;  %v5852_v62 = vcombine.low %v5386_v26, %v5387_v45  ;;  %v5868_v35 = vcombine.low %v5388_v43, %v5389_v47 }
 0x338   : > { %v5869_v60 = vcombine.low %v5390_v38, %v5391_v54  ;;  %v4700_v31 = vsel %vm13693_vm8, %v17637_v15, %v17636_v58  ;;  %v17639_v18 = vrot.slane %v17638_v63, 7  ;;  %v17640_v11 = vrot.slane %v17636_v58, 2  ;;  %v17642_v54 = vld [vmem:[#allocation134_spill] sm:$0xff] }
 0x339   : > { %v6620_v41 = vsel %vm2207_vm4, %v6617_v17, %v6619_v34  ;;  %v6416_v42 = vsel %vm2002_vm3, %v6413_v7, %v6415_v59  ;;  %v5859_v13 = vrot.slane %v5851_v12, %v11562_v9  ;;  %v5866_v24 = vrot.slane %v5852_v62, %v11562_v9  ;;  %v17643_v58 = vld [vmem:[#allocation138_spill] sm:$0xff]  ;;  %v17644_v17 = vld [vmem:[#allocation128_spill] sm:$0xff] }
 0x33a   : > { %v4703_v32 = vsel %vm13693_vm8, %v17640_v11, %v17639_v18  ;;  %v11188_v26 = vpack.i.bf16 %v6620_v41, %v6618_v27  ;;  %v11183_v45 = vpack.i.bf16 %v6416_v42, %v6414_v20  ;;  %v5876_v43 = vrot.slane %v5868_v35, %v11562_v9  ;;  %v17647_v27 = vld [vmem:[#allocation135_spill] sm:$0xff] }
 0x33b   : > { %v5883_v47 = vrot.slane %v5869_v60, %v11562_v9  ;;  %v14693_v38 = vcombine.low %v5859_v13, %v5866_v24  ;;  %v4706_v15 = vsel %vm13693_vm8, %v17643_v58, %v17642_v54  ;;  %v17645_v63 = vrot.slane %v17644_v17, 7  ;;  %v17648_v42 = vld [vmem:[#allocation139_spill] sm:$0xff]  ;;  %v17650_v60 = vld [vmem:[#allocation133_spill] sm:$0xff]  ;;  %v17653_v13 = vld [vmem:[#allocation140_spill] sm:$0xff] }
 0x33c   : > { %v17646_v7 = vrot.slane %v17642_v54, 2  ;;  %v4712_v20 = vsel %vm13693_vm8, %v17648_v42, %v17647_v27  ;;  %11189 = vrot.lane.b32.xlu1 %v11188_v26, %s11405_s28  ;;  %11184 = vrot.lane.b32.xlu0 %v11183_v45, %s11398_s9  ;;  %v17651_v18 = vrot.slane %v17650_v60, 7  ;;  %v17652_v11 = vrot.slane %v17647_v27, 2  ;;  %v17654_v24 = vld [vmem:[#allocation141_spill] sm:$0xff]  ;;  %v17655_v17 = vld [vmem:[#allocation136_spill] sm:$0xff] }
 0x33d   : > { %17641 = vst [vmem:[#allocation86_spill] sm:$0xff] %v14693_v38  ;;  %v14712_v35 = vcombine.low %v5876_v43, %v5883_v47  ;;  %v4718_v54 = vsel %vm13693_vm8, %v17654_v24, %v17653_v13  ;;  %v6621_v58 = vrot.slane %v14693_v38, 2  ;;  %v6417_v26 = vrot.slane %v14693_v38, 1 }
 0x33e   : > { %v4709_v12 = vsel %vm13693_vm8, %v17646_v7, %v17645_v63  ;;  %v4715_v41 = vsel %vm13693_vm8, %v17652_v11, %v17651_v18  ;;  %v17656_v45 = vrot.slane %v17655_v17, 7  ;;  %v17657_v43 = vrot.slane %v17653_v13, 2 }
 0x33f   : > { %17649 = vst [vmem:[#allocation88_spill] sm:$0xff] %v14712_v35  ;;  %v5392_v63 = vmul.f32 %v17514_v49, %v4700_v31  ;;  %v6623_v7 = vrot.slane %v14712_v35, 2  ;;  %v6419_v27 = vrot.slane %v14712_v35, 1  ;;  %v5393_v42 = vmul.f32 %v17515_v61, %v4703_v32 }
 0x340   : > { %v4721_v47 = vsel %vm13693_vm8, %v17657_v43, %v17656_v45  ;;  %v5394_v60 = vmul.f32 %v17461_v4, %v4706_v15  ;;  %v6622_v18 = vsel %vm2207_vm4, %v6619_v34, %v6621_v58  ;;  %v6418_v11 = vsel %vm2002_vm3, %v6415_v59, %v6417_v26  ;;  %v17658_v59 = vld [vmem:[#allocation144_spill] sm:$0xff] }
 0x341   : > { %v5395_v24 = vmul.f32 %v17465_v16, %v4709_v12  ;;  %v5396_v13 = vmul.f32 %v17466_v36, %v4712_v20  ;;  %v6624_v17 = vsel %vm2207_vm4, %v6621_v58, %v6623_v7  ;;  %v6420_v31 = vsel %vm2002_vm3, %v6417_v26, %v6419_v27  ;;  %v17660_v20 = vld [vmem:[#allocation137_spill] sm:$0xff] }
 0x342   : > { %v5397_v45 = vmul.f32 %v17510_v50, %v4715_v41  ;;  %v5398_v43 = vmul.f32 %v17511_v22, %v4718_v54  ;;  %v11198_v62 = vpack.i.bf16 %v6624_v17, %v6622_v18  ;;  %v11193_v32 = vpack.i.bf16 %v6420_v31, %v6418_v11  ;;  %v17668_v31 = vld [vmem:[#allocation148_spill] sm:$0xff] }
 0x343   : > { %v5399_v15 = vmul.f32 %v17512_v0, %v4721_v47  ;;  %v5885_v35 = vcombine.low %v5392_v63, %v5393_v42  ;;  %v5886_v34 = vcombine.low %v5394_v60, %v5395_v24  ;;  %v4724_v12 = vsel %vm13693_vm8, %v17659_v1, %v17658_v59  ;;  %v17663_v42 = vld [vmem:[#allocation147_spill] sm:$0xff]  ;;  %v17664_v60 = vld [vmem:[#allocation153_spill] sm:$0xff]  ;;  %v17665_v24 = vld [vmem:[#allocation142_spill] sm:$0xff] }
 0x344   : > { %v5902_v38 = vcombine.low %v5396_v13, %v5397_v45  ;;  %v17661_v58 = vrot.slane %v17660_v20, 7  ;;  %v17662_v26 = vrot.slane %v17658_v59, 2  ;;  %11199 = vrot.lane.b32.xlu1 %v11198_v62, %s11405_s28  ;;  %11194 = vrot.lane.b32.xlu0 %v11193_v32, %s11398_s9  ;;  %v4730_v1 = vsel %vm13693_vm8, %v17664_v60, %v17663_v42  ;;  %v17669_v45 = vld [vmem:[#allocation154_spill] sm:$0xff]  ;;  %v17670_v32 = vld [vmem:[#allocation145_spill] sm:$0xff]  ;;  %v17674_v20 = vld [vmem:[#allocation155_spill] sm:$0xff] }
 0x345   : > { %v5893_v47 = vrot.slane %v5885_v35, %v11562_v9  ;;  %v5903_v63 = vcombine.low %v5398_v43, %v5399_v15  ;;  %v5900_v18 = vrot.slane %v5886_v34, %v11562_v9  ;;  %v17666_v13 = vrot.slane %v17665_v24, 7  ;;  %v17673_v59 = vld [vmem:[#allocation157_spill] sm:$0xff] }
 0x346   : > { %v4727_v41 = vsel %vm13693_vm8, %v17662_v26, %v17661_v58  ;;  %v5910_v11 = vrot.slane %v5902_v38, %v11562_v9  ;;  %v17667_v17 = vrot.slane %v17663_v42, 2  ;;  %v4736_v35 = vsel %vm13693_vm8, %v17669_v45, %v17668_v31  ;;  %v17675_v26 = vld [vmem:[#allocation143_spill] sm:$0xff] }
 0x347   : > { %v5917_v43 = vrot.slane %v5903_v63, %v11562_v9  ;;  %v17671_v15 = vrot.slane %v17670_v32, 7  ;;  %v17672_v34 = vrot.slane %v17668_v31, 2  ;;  %v4742_v58 = vsel %vm13693_vm8, %v17674_v20, %v17673_v59 }
 0x348   : > { %v4733_v62 = vsel %vm13693_vm8, %v17667_v17, %v17666_v13  ;;  %v17676_v42 = vrot.slane %v17675_v26, 7  ;;  %v17677_v60 = vrot.slane %v17673_v59, 2  ;;  %v14793_v63 = vcombine.low %v5893_v47, %v5900_v18 }
 0x349   : > { %v4739_v38 = vsel %vm13693_vm8, %v17672_v34, %v17671_v15  ;;  %v5400_v13 = vmul.f32 %v17513_v56, %v4724_v12  ;;  %v5401_v17 = vmul.f32 %v17514_v49, %v4727_v41  ;;  %v5402_v31 = vmul.f32 %v17515_v61, %v4730_v1 }
 0x34a   : > { %v4745_v24 = vsel %vm13693_vm8, %v17677_v60, %v17676_v42  ;;  %17678 = vst [vmem:[#allocation94_spill] sm:$0xff] %v14793_v63  ;;  %v14798_v45 = vcombine.low %v5910_v11, %v5917_v43  ;;  %v5403_v32 = vmul.f32 %v17461_v4, %v4733_v62  ;;  %v5404_v15 = vmul.f32 %v17465_v16, %v4736_v35 }
 0x34b   : > { %v5405_v34 = vmul.f32 %v17466_v36, %v4739_v38  ;;  %v6625_v59 = vrot.slane %v14793_v63, 2  ;;  %v6421_v20 = vrot.slane %v14793_v63, 1  ;;  %v5406_v47 = vmul.f32 %v17510_v50, %v4742_v58  ;;  %v17704_v63 = vld [vmem:[#allocation168_spill] sm:$0xff] }
 0x34c   : > { %17679 = vst [vmem:[#allocation98_spill] sm:$0xff] %v14798_v45  ;;  %v5407_v12 = vmul.f32 %v17511_v22, %v4745_v24  ;;  %v6627_v41 = vrot.slane %v14798_v45, 2  ;;  %v6423_v1 = vrot.slane %v14798_v45, 1  ;;  %v5919_v18 = vcombine.low %v5400_v13, %v5401_v17 }
 0x34d   : > { %v5920_v11 = vcombine.low %v5402_v31, %v5403_v32  ;;  %v6626_v62 = vsel %vm2207_vm4, %v6623_v7, %v6625_v59  ;;  %v6422_v35 = vsel %vm2002_vm3, %v6419_v27, %v6421_v20  ;;  %v5936_v43 = vcombine.low %v5404_v15, %v5405_v34  ;;  %v17681_v7 = vld [vmem:[#allocation151_spill] sm:$0xff]  ;;  %v17682_v27 = vld [vmem:[#allocation156_spill] sm:$0xff]  ;;  %v17683_v32 = vld [vmem:[#allocation146_spill] sm:$0xff] }
 0x34e   : > { %v5937_v38 = vcombine.low %v5406_v47, %v5407_v12  ;;  %v6628_v26 = vsel %vm2207_vm4, %v6625_v59, %v6627_v41  ;;  %v6424_v42 = vsel %vm2002_vm3, %v6421_v20, %v6423_v1  ;;  %v5927_v58 = vrot.slane %v5919_v18, %v11562_v9  ;;  %v17686_v20 = vld [vmem:[#allocation159_spill] sm:$0xff]  ;;  %v17687_v47 = vld [vmem:[#allocation158_spill] sm:$0xff] }
 0x34f   : > { %v5934_v60 = vrot.slane %v5920_v11, %v11562_v9  ;;  %v11208_v24 = vpack.i.bf16 %v6628_v26, %v6626_v62  ;;  %v11203_v54 = vpack.i.bf16 %v6424_v42, %v6422_v35  ;;  %v5944_v45 = vrot.slane %v5936_v43, %v11562_v9  ;;  %v17691_v35 = vld [vmem:[#allocation149_spill] sm:$0xff]  ;;  %v17694_v42 = vld [vmem:[#allocation162_spill] sm:$0xff] }
 0x350   : > { %v5951_v13 = vrot.slane %v5937_v38, %v11562_v9  ;;  %v4748_v31 = vsel %vm13693_vm8, %v17682_v27, %v17681_v7  ;;  %v17684_v15 = vrot.slane %v17683_v32, 7  ;;  %v17685_v34 = vrot.slane %v17681_v7, 2  ;;  %v17696_v27 = vld [vmem:[#allocation152_spill] sm:$0xff]  ;;  %v17699_v32 = vld [vmem:[#allocation163_spill] sm:$0xff] }
 0x351   : > { %v14817_v17 = vcombine.low %v5927_v58, %v5934_v60  ;;  %v4754_v12 = vsel %vm13693_vm8, %v17687_v47, %v17686_v20  ;;  %v17688_v18 = vrot.slane %v14495_v48, 7  ;;  %11209 = vrot.lane.b32.xlu1 %v11208_v24, %s11405_s28  ;;  %11204 = vrot.lane.b32.xlu0 %v11203_v54, %s11398_s9  ;;  %v17692_v43 = vrot.slane %v17691_v35, 7  ;;  %v17695_v58 = vld [vmem:[#allocation165_spill] sm:$0xff] }
 0x352   : > { %v4751_v59 = vsel %vm13693_vm8, %v17685_v34, %v17684_v15  ;;  %v14839_v62 = vcombine.low %v5944_v45, %v5951_v13  ;;  %v17693_v38 = vrot.slane %v17686_v20, 2  ;;  %v4760_v60 = vsel %vm13693_vm8, %v17695_v58, %v17694_v42  ;;  %v17700_v15 = vld [vmem:[#allocation166_spill] sm:$0xff] }
 0x353   : > { %17680 = vst [vmem:[#allocation46_spill] sm:$0xff] %v14817_v17  ;;  %v14835_v11 = vrot.slane %v17688_v18, 2  ;;  %v6629_v7 = vrot.slane %v14817_v17, 2  ;;  %v6425_v24 = vrot.slane %v14817_v17, 1  ;;  %v17697_v54 = vrot.slane %v17696_v27, 7  ;;  %v17701_v18 = vld [vmem:[#allocation160_spill] sm:$0xff] }
 0x354   : > { %17690 = vst [vmem:[#allocation92_spill] sm:$0xff] %v14839_v62  ;;  %v4757_v26 = vsel %vm13693_vm8, %v17693_v38, %v17692_v43  ;;  %v17698_v45 = vrot.slane %v17694_v42, 2  ;;  %v4766_v34 = vsel %vm13693_vm8, %v17700_v15, %v17699_v32  ;;  %v6631_v20 = vrot.slane %v14839_v62, 2 }
 0x355   : > { %17689 = vst [vmem:[#allocation47_spill] sm:$0xff] %v14835_v11  ;;  %v6427_v47 = vrot.slane %v14839_v62, 1  ;;  %v17702_v35 = vrot.slane %v17701_v18, 7  ;;  %v17703_v43 = vrot.slane %v17699_v32, 2  ;;  %v5408_v42 = vmul.f32 %v17512_v0, %v4748_v31 }
 0x356   : > { %v4763_v13 = vsel %vm13693_vm8, %v17698_v45, %v17697_v54  ;;  %v6630_v58 = vsel %vm2207_vm4, %v6627_v41, %v6629_v7  ;;  %v6426_v27 = vsel %vm2002_vm3, %v6423_v1, %v6425_v24  ;;  %v5409_v54 = vmul.f32 %v17513_v56, %v4751_v59 }
 0x357   : > { %v4769_v38 = vsel %vm13693_vm8, %v17703_v43, %v17702_v35  ;;  %v5410_v45 = vmul.f32 %v17514_v49, %v4754_v12  ;;  %v6632_v15 = vsel %vm2207_vm4, %v6629_v7, %v6631_v20  ;;  %v6428_v62 = vsel %vm2002_vm3, %v6425_v24, %v6427_v47  ;;  %v17705_v12 = vld [vmem:[#allocation167_spill] sm:$0xff] }
 0x358   : > { %v5411_v18 = vmul.f32 %v17515_v61, %v4757_v26  ;;  %v5412_v32 = vmul.f32 %v17461_v4, %v4760_v60  ;;  %v11218_v17 = vpack.i.bf16 %v6632_v15, %v6630_v58  ;;  %v11213_v35 = vpack.i.bf16 %v6428_v62, %v6426_v27  ;;  %v17707_v60 = vld [vmem:[#allocation161_spill] sm:$0xff]  ;;  %v17711_v58 = vld [vmem:[#allocation170_spill] sm:$0xff]  ;;  %v17712_v15 = vld [vmem:[#allocation164_spill] sm:$0xff] }
 0x359   : > { %v5413_v31 = vmul.f32 %v17465_v16, %v4763_v13  ;;  %v5414_v41 = vmul.f32 %v17466_v36, %v4766_v34  ;;  %v5415_v1 = vmul.f32 %v17510_v50, %v4769_v38  ;;  %v5953_v43 = vcombine.low %v5408_v42, %v5409_v54  ;;  %v17710_v42 = vld [vmem:[#allocation171_spill] sm:$0xff] }
 0x35a   : > { %v5954_v59 = vcombine.low %v5410_v45, %v5411_v18  ;;  %v4772_v7 = vsel %vm13693_vm8, %v17705_v12, %v17704_v63  ;;  %v17706_v26 = vcombine.high %v14498_v29, %v14498_v29  ;;  %11219 = vrot.lane.b32.xlu1 %v11218_v17, %s11405_s28  ;;  %11214 = vrot.lane.b32.xlu0 %v11213_v35, %s11398_s9  ;;  %v17708_v13 = vrot.slane %v17707_v60, 7  ;;  %v17716_v12 = vld [vmem:[#allocation173_spill] sm:$0xff] }
 0x35b   : > { %v5970_v62 = vcombine.low %v5412_v32, %v5413_v31  ;;  %v17709_v34 = vrot.slane %v17704_v63, 2  ;;  %v4778_v27 = vsel %vm13693_vm8, %v17711_v58, %v17710_v42  ;;  %v5961_v54 = vrot.slane %v5953_v43, %v11562_v9  ;;  %v17715_v31 = vld [vmem:[#allocation45_spill] sm:$0xff]  ;;  %v17723_v58 = vld [vmem:[#allocation50_spill] sm:$0xff] }
 0x35c   : > { %v14890_v24 = vrot.slane %v17706_v26, 7  ;;  %v5968_v45 = vrot.slane %v5954_v59, %v11562_v9  ;;  %v5971_v17 = vcombine.low %v5414_v41, %v5415_v1  ;;  %v17713_v18 = vrot.slane %v17712_v15, 7  ;;  %v17717_v60 = vld [vmem:[#allocation169_spill] sm:$0xff]  ;;  %v17720_v1 = vld [vmem:[#allocation51_spill] sm:$0xff]  ;;  %v17721_v59 = vld [vmem:[#allocation174_spill] sm:$0xff] }
 0x35d   : > { %v4775_v38 = vsel %vm13693_vm8, %v17709_v34, %v17708_v13  ;;  %v17714_v32 = vrot.slane %v17710_v42, 2  ;;  %v5978_v35 = vrot.slane %v5970_v62, %v11562_v9  ;;  %v4784_v26 = vsel %vm13693_vm8, %v17716_v12, %v17715_v31 }
 0x35e   : > { %v17718_v13 = vrot.slane %v17717_v60, 7  ;;  %v17719_v43 = vrot.slane %v17715_v31, 2  ;;  %v4790_v34 = vsel %vm13693_vm8, %v17721_v59, %v17720_v1  ;;  %v14927_v42 = vcombine.low %v5961_v54, %v5968_v45 }
 0x35f   : > { %v4781_v63 = vsel %vm13693_vm8, %v17714_v32, %v17713_v18  ;;  %v5985_v62 = vrot.slane %v5971_v17, %v11562_v9  ;;  %v17724_v15 = vrot.slane %v17723_v58, 7  ;;  %v17725_v18 = vrot.slane %v17720_v1, 2 }
 0x360   : > { %v4787_v41 = vsel %vm13693_vm8, %v17719_v43, %v17718_v13  ;;  %17722 = vst [vmem:[#allocation99_spill] sm:$0xff] %v14927_v42  ;;  %v5416_v31 = vmul.f32 %v17511_v22, %v4772_v7  ;;  %v5417_v12 = vmul.f32 %v17512_v0, %v4775_v38  ;;  %v5418_v60 = vmul.f32 %v17513_v56, %v4778_v27 }
 0x361   : > { %v4793_v32 = vsel %vm13693_vm8, %v17725_v18, %v17724_v15  ;;  %v5419_v13 = vmul.f32 %v17514_v49, %v4781_v63  ;;  %v5420_v54 = vmul.f32 %v17515_v61, %v4784_v26  ;;  %v14941_v45 = vcombine.low %v5978_v35, %v5985_v62 }
 0x362   : > { %v6633_v17 = vrot.slane %v14927_v42, 2  ;;  %v6429_v43 = vrot.slane %v14927_v42, 1  ;;  %v5421_v1 = vmul.f32 %v17461_v4, %v4787_v41  ;;  %v5422_v59 = vmul.f32 %v17465_v16, %v4790_v34  ;;  %v17750_v42 = vld [vmem:[#allocation189_spill] sm:$0xff] }
 0x363   : > { %17726 = vst [vmem:[#allocation100_spill] sm:$0xff] %v14941_v45  ;;  %v5423_v7 = vmul.f32 %v17466_v36, %v4793_v32  ;;  %v5987_v58 = vcombine.low %v5416_v31, %v5417_v12  ;;  %v5988_v38 = vcombine.low %v5418_v60, %v5419_v13  ;;  %v6635_v63 = vrot.slane %v14941_v45, 2  ;;  %v17727_v31 = vld [vmem:[#allocation175_spill] sm:$0xff]  ;;  %v17728_v12 = vld [vmem:[#allocation176_spill] sm:$0xff] }
 0x364   : > { %v6634_v27 = vsel %vm2207_vm4, %v6631_v20, %v6633_v17  ;;  %v6430_v26 = vsel %vm2002_vm3, %v6427_v47, %v6429_v43  ;;  %v6431_v35 = vrot.slane %v14941_v45, 1  ;;  %v6004_v18 = vcombine.low %v5420_v54, %v5421_v1  ;;  %v17729_v60 = vld [vmem:[#allocation52_spill] sm:$0xff]  ;;  %v17733_v1 = vld [vmem:[#allocation181_spill] sm:$0xff] }
 0x365   : > { %v5995_v62 = vrot.slane %v5987_v58, %v11562_v9  ;;  %v6002_v15 = vrot.slane %v5988_v38, %v11562_v9  ;;  %v6005_v41 = vcombine.low %v5422_v59, %v5423_v7  ;;  %v6636_v34 = vsel %vm2207_vm4, %v6633_v17, %v6635_v63  ;;  %v17734_v59 = vld [vmem:[#allocation183_spill] sm:$0xff] }
 0x366   : > { %v6432_v32 = vsel %vm2002_vm3, %v6429_v43, %v6431_v35  ;;  %v4796_v20 = vsel %vm13693_vm8, %v17728_v12, %v17727_v31  ;;  %v17730_v13 = vrot.slane %v17729_v60, 7  ;;  %v17731_v47 = vrot.slane %v17727_v31, 2  ;;  %v17735_v12 = vld [vmem:[#allocation48_spill] sm:$0xff] }
 0x367   : > { %v11228_v45 = vpack.i.bf16 %v6636_v34, %v6634_v27  ;;  %v11223_v38 = vpack.i.bf16 %v6432_v32, %v6430_v26  ;;  %v14966_v54 = vcombine.low %v5995_v62, %v6002_v15  ;;  %v6012_v17 = vrot.slane %v6004_v18, %v11562_v9  ;;  %v17738_v27 = vld [vmem:[#allocation179_spill] sm:$0xff]  ;;  %v17739_v26 = vld [vmem:[#allocation177_spill] sm:$0xff] }
 0x368   : > { %v4799_v58 = vsel %vm13693_vm8, %v17731_v47, %v17730_v13  ;;  %v6019_v43 = vrot.slane %v6005_v41, %v11562_v9  ;;  %v4802_v7 = vsel %vm13693_vm8, %v17734_v59, %v17733_v1  ;;  %v17736_v60 = vrot.slane %v17735_v12, 7  ;;  %v17740_v41 = vld [vmem:[#allocation172_spill] sm:$0xff] }
 0x369   : > { %17732 = vst [vmem:[#allocation106_spill] sm:$0xff] %v14966_v54  ;;  %v17737_v31 = vrot.slane %v17733_v1, 2  ;;  %v4808_v62 = vsel %vm13693_vm8, %v17739_v26, %v17738_v27  ;;  %11229 = vrot.lane.b32.xlu1 %v11228_v45, %s11405_s28  ;;  %11224 = vrot.lane.b32.xlu0 %v11223_v38, %s11398_s9  ;;  %v6637_v15 = vrot.slane %v14966_v54, 2  ;;  %v6433_v18 = vrot.slane %v14966_v54, 1  ;;  %v17743_v1 = vld [vmem:[#allocation182_spill] sm:$0xff]  ;;  %v17744_v59 = vld [vmem:[#allocation188_spill] sm:$0xff] }
 0x36a   : > { %v17741_v34 = vrot.slane %v17740_v41, 7  ;;  %v17742_v32 = vrot.slane %v17738_v27, 2  ;;  %v4814_v12 = vsel %vm13693_vm8, %v17744_v59, %v17743_v1  ;;  %v17746_v45 = vld [vmem:[#allocation178_spill] sm:$0xff]  ;;  %v5424_v41 = vmul.f32 %v17510_v50, %v4796_v20 }
 0x36b   : > { %v4805_v13 = vsel %vm13693_vm8, %v17737_v31, %v17736_v60  ;;  %v14998_v60 = vcombine.low %v6012_v17, %v6019_v43  ;;  %v17747_v38 = vrot.slane %v17746_v45, 7  ;;  %v17748_v31 = vrot.slane %v17743_v1, 2 }
 0x36c   : > { %v4811_v47 = vsel %vm13693_vm8, %v17742_v32, %v17741_v34  ;;  %v5425_v27 = vmul.f32 %v17511_v22, %v4799_v58  ;;  %v6638_v34 = vsel %vm2207_vm4, %v6635_v63, %v6637_v15  ;;  %v6434_v32 = vsel %vm2002_vm3, %v6431_v35, %v6433_v18 }
 0x36d   : > { %17745 = vst [vmem:[#allocation95_spill] sm:$0xff] %v14998_v60  ;;  %v4817_v26 = vsel %vm13693_vm8, %v17748_v31, %v17747_v38  ;;  %v5426_v54 = vmul.f32 %v17512_v0, %v4802_v7  ;;  %v5427_v17 = vmul.f32 %v17513_v56, %v4805_v13  ;;  %v6639_v43 = vrot.slane %v14998_v60, 2  ;;  %v17749_v13 = vld [vmem:[#allocation184_spill] sm:$0xff] }
 0x36e   : > { %v6435_v59 = vrot.slane %v14998_v60, 1  ;;  %v5428_v1 = vmul.f32 %v17514_v49, %v4808_v62  ;;  %v5429_v45 = vmul.f32 %v17515_v61, %v4811_v47  ;;  %v5430_v20 = vmul.f32 %v17461_v4, %v4814_v12 }
 0x36f   : > { %v5431_v58 = vmul.f32 %v17465_v16, %v4817_v26  ;;  %v6021_v38 = vcombine.low %v5424_v41, %v5425_v27  ;;  %v6022_v63 = vcombine.low %v5426_v54, %v5427_v17  ;;  %v6640_v35 = vsel %vm2207_vm4, %v6637_v15, %v6639_v43  ;;  %v17751_v54 = vld [vmem:[#allocation180_spill] sm:$0xff]  ;;  %v17754_v27 = vld [vmem:[#allocation186_spill] sm:$0xff] }
 0x370   : > { %v6436_v7 = vsel %vm2002_vm3, %v6433_v18, %v6435_v59  ;;  %v6038_v31 = vcombine.low %v5428_v1, %v5429_v45  ;;  %v4820_v60 = vsel %vm13693_vm8, %v17750_v42, %v17749_v13  ;;  %v11238_v11 = vpack.i.bf16 %v6640_v35, %v6638_v34  ;;  %v17755_v17 = vld [vmem:[#allocation190_spill] sm:$0xff] }
 0x371   : > { %v11233_v62 = vpack.i.bf16 %v6436_v7, %v6434_v32  ;;  %v6029_v47 = vrot.slane %v6021_v38, %v11562_v9  ;;  %v6036_v12 = vrot.slane %v6022_v63, %v11562_v9  ;;  %v6039_v48 = vcombine.low %v5430_v20, %v5431_v58  ;;  %v17760_v7 = vld [vmem:[#allocation3_spill] sm:$0xff] }
 0x372   : > { %v6046_v26 = vrot.slane %v6038_v31, %v11562_v9  ;;  %v17752_v41 = vrot.slane %v17751_v54, 7  ;;  %v17753_v15 = vrot.slane %v17749_v13, 2  ;;  %v4826_v42 = vsel %vm13693_vm8, %v17755_v17, %v17754_v27  ;;  %11239 = vrot.lane.b32.xlu1 %v11238_v11, %s11405_s28 }
 0x373   : > { %11234 = vrot.lane.b32.xlu0 %v11233_v62, %s11398_s9  ;;  %v15040_v32 = vcombine.low %v6029_v47, %v6036_v12  ;;  %v17756_v1 = vrot.slane %v13709_v52, 7  ;;  %v17757_v45 = vrot.slane %v17754_v27, 2  ;;  %v4832_v58 = vsel %vm13693_vm8, %v13764_v19, %v13754_v55 }
 0x374   : > { %v4823_v18 = vsel %vm13693_vm8, %v17753_v15, %v17752_v41  ;;  %v6053_v38 = vrot.slane %v6039_v48, %v11562_v9  ;;  %v17758_v11 = vrot.slane %v13736_v5, 7  ;;  %v17759_v63 = vrot.slane %v13754_v55, 2 }
 0x375   : > { %v4829_v20 = vsel %vm13693_vm8, %v17757_v45, %v17756_v1  ;;  %v4838_v52 = vsel %vm13693_vm8, %v13794_v6, %v13770_v40  ;;  %v17761_v31 = vrot.slane %v17760_v7, 7  ;;  %v17762_v13 = vrot.slane %v13770_v40, 2  ;;  %v17763_v45 = vld [vmem:[#allocation54_spill] sm:$0xff] }
 0x376   : > { %v4835_v35 = vsel %vm13693_vm8, %v17759_v63, %v17758_v11  ;;  %v6641_v48 = vrot.slane %v15040_v32, 2  ;;  %v6437_v5 = vrot.slane %v15040_v32, 1  ;;  %v5432_v55 = vmul.f32 %v17466_v36, %v4820_v60 }
 0x377   : > { %v4841_v19 = vsel %vm13693_vm8, %v17762_v13, %v17761_v31  ;;  %v5433_v62 = vmul.f32 %v17510_v50, %v4823_v18  ;;  %v15073_v47 = vcombine.low %v6046_v26, %v6053_v38  ;;  %v5434_v12 = vmul.f32 %v17511_v22, %v4826_v42 }
 0x378   : > { %v5435_v6 = vmul.f32 %v17512_v0, %v4829_v20  ;;  %v5436_v54 = vmul.f32 %v17513_v56, %v4832_v58  ;;  %v6642_v40 = vsel %vm2207_vm4, %v6639_v43, %v6641_v48  ;;  %v6438_v41 = vsel %vm2002_vm3, %v6435_v59, %v6437_v5  ;;  %v17764_v20 = vld [vmem:[#allocation191_spill] sm:$0xff]  ;;  %v17765_v58 = vld [vmem:[#allocation53_spill] sm:$0xff] }
 0x379   : > { %v5437_v15 = vmul.f32 %v17514_v49, %v4835_v35  ;;  %v5438_v27 = vmul.f32 %v17515_v61, %v4838_v52  ;;  %v6643_v60 = vrot.slane %v15073_v47, 2  ;;  %v6439_v18 = vrot.slane %v15073_v47, 1 }
 0x37a   : > { %v5439_v26 = vmul.f32 %v17461_v4, %v4841_v19  ;;  %v6055_v17 = vcombine.low %v5432_v55, %v5433_v62  ;;  %v6056_v42 = vcombine.low %v5434_v12, %v5435_v6  ;;  %v4844_v43 = vsel %vm13693_vm8, %v17764_v20, %v17763_v45  ;;  %v17768_v12 = vld [vmem:[#allocation193_spill] sm:$0xff] }
 0x37b   : > { %v6072_v1 = vcombine.low %v5436_v54, %v5437_v15  ;;  %v17766_v59 = vrot.slane %v17765_v58, 7  ;;  %v17767_v38 = vrot.slane %v17763_v45, 2  ;;  %v6644_v63 = vsel %vm2207_vm4, %v6641_v48, %v6643_v60  ;;  %v17769_v54 = vld [vmem:[#allocation192_spill] sm:$0xff]  ;;  %v17778_v58 = vld [vmem:[#allocation197_spill] sm:$0xff] }
 0x37c   : > { %v6440_v35 = vsel %vm2002_vm3, %v6437_v5, %v6439_v18  ;;  %v6063_v52 = vrot.slane %v6055_v17, %v11562_v9  ;;  %v6073_v7 = vcombine.low %v5438_v27, %v5439_v26  ;;  %v11248_v31 = vpack.i.bf16 %v6644_v63, %v6642_v40  ;;  %v17772_v40 = vld [vmem:[#allocation62_spill] sm:$0xff] }
 0x37d   : > { %v4847_v11 = vsel %vm13693_vm8, %v17767_v38, %v17766_v59  ;;  %v11243_v13 = vpack.i.bf16 %v6440_v35, %v6438_v41  ;;  %v6070_v19 = vrot.slane %v6056_v42, %v11562_v9  ;;  %v6080_v55 = vrot.slane %v6072_v1, %v11562_v9  ;;  %v17773_v41 = vld [vmem:[#allocation195_spill] sm:$0xff]  ;;  %v17775_v1 = vld [vmem:[#allocation194_spill] sm:$0xff] }
 0x37e   : > { %v6087_v62 = vrot.slane %v6073_v7, %v11562_v9  ;;  %v4850_v6 = vsel %vm13693_vm8, %v17768_v12, %v13826_v33  ;;  %v17770_v48 = vrot.slane %v17769_v54, 7  ;;  %v17771_v5 = vrot.slane %v13826_v33, 2  ;;  %11249 = vrot.lane.b32.xlu1 %v11248_v31, %s11405_s28 }
 0x37f   : > { %v4856_v27 = vsel %vm13693_vm8, %v17773_v41, %v17772_v40  ;;  %v17774_v26 = vrot.slane %v14498_v29, 7  ;;  %11244 = vrot.lane.b32.xlu0 %v11243_v13, %s11398_s9  ;;  %v15121_v42 = vcombine.low %v6063_v52, %v6070_v19  ;;  %v17776_v33 = vrot.slane %v17775_v1, 7 }
 0x380   : > { %v4853_v15 = vsel %vm13693_vm8, %v17771_v5, %v17770_v48  ;;  %v17777_v45 = vrot.slane %v17772_v40, 2  ;;  %v4862_v59 = vsel %vm13693_vm8, %v17778_v58, %v13894_v3  ;;  %v15133_v38 = vcombine.low %v6080_v55, %v6087_v62 }
 0x381   : > { %v15117_v17 = vrot.slane %v17774_v26, 2  ;;  %v17779_v63 = vrot.slane %v13864_v46, 7  ;;  %v17780_v35 = vrot.slane %v13894_v3, 2  ;;  %v5440_v7 = vmul.f32 %v17465_v16, %v4844_v43 }
 0x382   : > { %v4859_v20 = vsel %vm13693_vm8, %v17777_v45, %v17776_v33  ;;  %v5441_v31 = vmul.f32 %v17466_v36, %v4847_v11  ;;  %v6645_v13 = vrot.slane %v15121_v42, 2  ;;  %v6441_v19 = vrot.slane %v15121_v42, 1 }
 0x383   : > { %v4865_v52 = vsel %vm13693_vm8, %v17780_v35, %v17779_v63  ;;  %v5442_v12 = vmul.f32 %v17510_v50, %v4850_v6  ;;  %v5443_v55 = vmul.f32 %v17511_v22, %v4853_v15  ;;  %v6647_v62 = vrot.slane %v15133_v38, 2 }
 0x384   : > { %v6443_v46 = vrot.slane %v15133_v38, 1  ;;  %v5444_v3 = vmul.f32 %v17512_v0, %v4856_v27  ;;  %v5445_v54 = vmul.f32 %v17513_v56, %v4859_v20  ;;  %v6646_v43 = vsel %vm2207_vm4, %v6643_v60, %v6645_v13  ;;  %v17781_v20 = vld [vmem:[#allocation110_spill] sm:$0xff] }
 0x385   : > { %v6442_v11 = vsel %vm2002_vm3, %v6439_v18, %v6441_v19  ;;  %v5446_v48 = vmul.f32 %v17514_v49, %v4862_v59  ;;  %v5447_v5 = vmul.f32 %v17515_v61, %v4865_v52  ;;  %v6648_v6 = vsel %vm2207_vm4, %v6645_v13, %v6647_v62  ;;  %v17782_v18 = vld [vmem:[#allocation199_spill] sm:$0xff]  ;;  %v17783_v59 = vld [vmem:[#allocation196_spill] sm:$0xff] }
 0x386   : > { %v6444_v15 = vsel %vm2002_vm3, %v6441_v19, %v6443_v46  ;;  %v6089_v40 = vcombine.low %v5440_v7, %v5441_v31  ;;  %v6090_v41 = vcombine.low %v5442_v12, %v5443_v55  ;;  %v11258_v26 = vpack.i.bf16 %v6648_v6, %v6646_v43  ;;  %v17786_v19 = vld [vmem:[#allocation198_spill] sm:$0xff]  ;;  %v17787_v12 = vld [vmem:[#allocation200_spill] sm:$0xff]  ;;  %v17792_v6 = vld [vmem:[#allocation207_spill] sm:$0xff] }
 0x387   : > { %v11253_v1 = vpack.i.bf16 %v6444_v15, %v6442_v11  ;;  %v6106_v33 = vcombine.low %v5444_v3, %v5445_v54  ;;  %v6107_v27 = vcombine.low %v5446_v48, %v5447_v5  ;;  %v4868_v58 = vsel %vm13693_vm8, %v17782_v18, %v17781_v20  ;;  %v17788_v54 = vld [vmem:[#allocation89_spill] sm:$0xff] }
 0x388   : > { %v6097_v45 = vrot.slane %v6089_v40, %v11562_v9  ;;  %v6104_v60 = vrot.slane %v6090_v41, %v11562_v9  ;;  %v17784_v63 = vrot.slane %v17783_v59, 7  ;;  %v17785_v35 = vrot.slane %v17781_v20, 2  ;;  %11259 = vrot.lane.b32.xlu1 %v11258_v26, %s11405_s28  ;;  %v17791_v5 = vld [vmem:[#allocation201_spill] sm:$0xff]  ;;  %v17793_v40 = vld [vmem:[#allocation116_spill] sm:$0xff] }
 0x389   : > { %11254 = vrot.lane.b32.xlu0 %v11253_v1, %s11398_s9  ;;  %v6114_v31 = vrot.slane %v6106_v33, %v11562_v9  ;;  %v6121_v13 = vrot.slane %v6107_v27, %v11562_v9  ;;  %v4874_v55 = vsel %vm13693_vm8, %v17787_v12, %v17786_v19  ;;  %v17789_v43 = vrot.slane %v17788_v54, 7  ;;  %v17796_v27 = vld [vmem:[#allocation204_spill] sm:$0xff] }
 0x38a   : > { %v4871_v52 = vsel %vm13693_vm8, %v17785_v35, %v17784_v63  ;;  %v15178_v3 = vcombine.low %v6097_v45, %v6104_v60  ;;  %v17790_v11 = vrot.slane %v17786_v19, 2  ;;  %v4880_v15 = vsel %vm13693_vm8, %v17792_v6, %v17791_v5  ;;  %v17797_v45 = vld [vmem:[#allocation208_spill] sm:$0xff] }
 0x38b   : > { %v17794_v41 = vrot.slane %v17793_v40, 7  ;;  %v17795_v26 = vrot.slane %v17791_v5, 2  ;;  %v15196_v33 = vcombine.low %v6114_v31, %v6121_v13  ;;  %v4886_v60 = vsel %vm13693_vm8, %v17797_v45, %v17796_v27 }
 0x38c   : > { %v4877_v48 = vsel %vm13693_vm8, %v17790_v11, %v17789_v43  ;;  %v17798_v20 = vrot.slane %v13937_v2, 7  ;;  %v17799_v18 = vrot.slane %v17796_v27, 2  ;;  %v5448_v63 = vmul.f32 %v17461_v4, %v4868_v58 }
 0x38d   : > { %v4883_v1 = vsel %vm13693_vm8, %v17795_v26, %v17794_v41  ;;  %v6649_v35 = vrot.slane %v15178_v3, 2  ;;  %v6445_v19 = vrot.slane %v15178_v3, 1  ;;  %v5449_v31 = vmul.f32 %v17465_v16, %v4871_v52 }
 0x38e   : > { %v4889_v59 = vsel %vm13693_vm8, %v17799_v18, %v17798_v20  ;;  %v5450_v13 = vmul.f32 %v17466_v36, %v4874_v55  ;;  %v6651_v12 = vrot.slane %v15196_v33, 2  ;;  %v6447_v54 = vrot.slane %v15196_v33, 1 }
 0x38f   : > { %v5451_v2 = vmul.f32 %v17510_v50, %v4877_v48  ;;  %v5452_v43 = vmul.f32 %v17511_v22, %v4880_v15  ;;  %v6650_v11 = vsel %vm2207_vm4, %v6647_v62, %v6649_v35  ;;  %v6446_v58 = vsel %vm2002_vm3, %v6443_v46, %v6445_v19  ;;  %v17800_v46 = vld [vmem:[#allocation210_spill] sm:$0xff] }
 0x390   : > { %v5453_v5 = vmul.f32 %v17512_v0, %v4883_v1  ;;  %v5454_v6 = vmul.f32 %v17513_v56, %v4886_v60  ;;  %v6652_v52 = vsel %vm2207_vm4, %v6649_v35, %v6651_v12  ;;  %v6448_v55 = vsel %vm2002_vm3, %v6445_v19, %v6447_v54  ;;  %v17801_v60 = vld [vmem:[#allocation202_spill] sm:$0xff]  ;;  %v17804_v19 = vld [vmem:[#allocation212_spill] sm:$0xff] }
 0x391   : > { %v5455_v40 = vmul.f32 %v17514_v49, %v4889_v59  ;;  %v6123_v41 = vcombine.low %v5448_v63, %v5449_v31  ;;  %v11268_v26 = vpack.i.bf16 %v6652_v52, %v6650_v11  ;;  %v11263_v27 = vpack.i.bf16 %v6448_v55, %v6446_v58  ;;  %v17805_v31 = vld [vmem:[#allocation211_spill] sm:$0xff]  ;;  %v17810_v52 = vld [vmem:[#allocation214_spill] sm:$0xff]  ;;  %v17811_v55 = vld [vmem:[#allocation213_spill] sm:$0xff] }
 0x392   : > { %v6124_v48 = vcombine.low %v5450_v13, %v5451_v2  ;;  %v6140_v45 = vcombine.low %v5452_v43, %v5453_v5  ;;  %v4892_v1 = vsel %vm13693_vm8, %v17800_v46, %v13966_v10  ;;  %v17802_v20 = vrot.slane %v17801_v60, 7  ;;  %v17806_v2 = vld [vmem:[#allocation64_spill] sm:$0xff]  ;;  %v17807_v11 = vld [vmem:[#allocation203_spill] sm:$0xff] }
 0x393   : > { %v6131_v15 = vrot.slane %v6123_v41, %v11562_v9  ;;  %v6141_v62 = vcombine.low %v5454_v6, %v5455_v40  ;;  %v17803_v18 = vrot.slane %v13966_v10, 2  ;;  %11269 = vrot.lane.b32.xlu1 %v11268_v26, %s11405_s28  ;;  %11264 = vrot.lane.b32.xlu0 %v11263_v27, %s11398_s9  ;;  %v4898_v13 = vsel %vm13693_vm8, %v17805_v31, %v17804_v19  ;;  %v17812_v41 = vld [vmem:[#allocation205_spill] sm:$0xff]  ;;  %v17816_v46 = vld [vmem:[#allocation56_spill] sm:$0xff] }
 0x394   : > { %v6138_v63 = vrot.slane %v6124_v48, %v11562_v9  ;;  %v6148_v35 = vrot.slane %v6140_v45, %v11562_v9  ;;  %v17808_v58 = vrot.slane %v17807_v11, 7  ;;  %v17809_v5 = vrot.slane %v17804_v19, 2 }
 0x395   : > { %v4895_v59 = vsel %vm13693_vm8, %v17803_v18, %v17802_v20  ;;  %v6155_v10 = vrot.slane %v6141_v62, %v11562_v9  ;;  %v4904_v40 = vsel %vm13693_vm8, %v17811_v55, %v17810_v52  ;;  %v17813_v26 = vrot.slane %v17812_v41, 7  ;;  %v17815_v62 = vld [vmem:[#allocation215_spill] sm:$0xff]  ;;  %v17817_v20 = vld [vmem:[#allocation206_spill] sm:$0xff] }
 0x396   : > { %v4901_v6 = vsel %vm13693_vm8, %v17809_v5, %v17808_v58  ;;  %v17814_v27 = vrot.slane %v17810_v52, 2  ;;  %v15261_v45 = vcombine.low %v6131_v15, %v6138_v63  ;;  %v4910_v60 = vsel %vm13693_vm8, %v17816_v46, %v17815_v62 }
 0x397   : > { %v17818_v18 = vrot.slane %v17817_v20, 7  ;;  %v17819_v19 = vrot.slane %v17815_v62, 2  ;;  %v5456_v11 = vmul.f32 %v17515_v61, %v4892_v1  ;;  %v15274_v58 = vcombine.low %v6148_v35, %v6155_v10 }
 0x398   : > { %v4907_v48 = vsel %vm13693_vm8, %v17814_v27, %v17813_v26  ;;  %v5457_v5 = vmul.f32 %v17461_v4, %v4895_v59  ;;  %v5458_v15 = vmul.f32 %v17465_v16, %v4898_v13  ;;  %v5459_v63 = vmul.f32 %v17466_v36, %v4901_v6 }
 0x399   : > { %v4913_v31 = vsel %vm13693_vm8, %v17819_v19, %v17818_v18  ;;  %17820 = vst [vmem:[#allocation101_spill] sm:$0xff] %v15274_v58  ;;  %v6653_v52 = vrot.slane %v15261_v45, 2  ;;  %v6449_v55 = vrot.slane %v15261_v45, 1  ;;  %v5460_v41 = vmul.f32 %v17510_v50, %v4904_v40  ;;  %v15291_v18 = vpop.permute.xlu1 %11149 }
 0x39a   : > { %v5461_v26 = vmul.f32 %v17511_v22, %v4907_v48  ;;  %v6655_v27 = vrot.slane %v15274_v58, 2  ;;  %v6451_v1 = vrot.slane %v15274_v58, 1  ;;  %v5462_v35 = vmul.f32 %v17512_v0, %v4910_v60  ;;  %v17843_v58 = vld [vmem:[#allocation229_spill] sm:$0xff] }
 0x39b   : > { %v5463_v59 = vmul.f32 %v17513_v56, %v4913_v31  ;;  %v6654_v13 = vsel %vm2207_vm4, %v6651_v12, %v6653_v52  ;;  %v6450_v10 = vsel %vm2002_vm3, %v6447_v54, %v6449_v55  ;;  %v6157_v6 = vcombine.low %v5456_v11, %v5457_v5  ;;  %v17821_v11 = vld [vmem:[#allocation216_spill] sm:$0xff]  ;;  %v17822_v5 = vld [vmem:[#allocation219_spill] sm:$0xff] }
 0x39c   : > { %v6158_v62 = vcombine.low %v5458_v15, %v5459_v63  ;;  %v6656_v46 = vsel %vm2207_vm4, %v6653_v52, %v6655_v27  ;;  %v6452_v40 = vsel %vm2002_vm3, %v6449_v55, %v6451_v1  ;;  %v6174_v20 = vcombine.low %v5460_v41, %v5461_v26  ;;  %v17823_v63 = vld [vmem:[#allocation209_spill] sm:$0xff] }
 0x39d   : > { %v6175_v48 = vcombine.low %v5462_v35, %v5463_v59  ;;  %v11278_v19 = vpack.i.bf16 %v6656_v46, %v6654_v13  ;;  %v11273_v43 = vpack.i.bf16 %v6452_v40, %v6450_v10  ;;  %v6165_v60 = vrot.slane %v6157_v6, %v11562_v9  ;;  %v17826_v35 = vld [vmem:[#allocation220_spill] sm:$0xff]  ;;  %v17827_v59 = vld [vmem:[#allocation225_spill] sm:$0xff] }
 0x39e   : > { %v6172_v31 = vrot.slane %v6158_v62, %v11562_v9  ;;  %v6182_v12 = vrot.slane %v6174_v20, %v11562_v9  ;;  %v4916_v15 = vsel %vm13693_vm8, %v17822_v5, %v17821_v11  ;;  %v17824_v52 = vrot.slane %v17823_v63, 7  ;;  %v17828_v10 = vld [vmem:[#allocation217_spill] sm:$0xff]  ;;  %v17837_v63 = vld [vmem:[#allocation222_spill] sm:$0xff] }
 0x39f   : > { %v6189_v54 = vrot.slane %v6175_v48, %v11562_v9  ;;  %v17825_v55 = vrot.slane %v17821_v11, 2  ;;  %11279 = vrot.lane.b32.xlu1 %v11278_v19, %s11405_s28  ;;  %11274 = vrot.lane.b32.xlu0 %v11273_v43, %s11398_s9  ;;  %v4922_v13 = vsel %vm13693_vm8, %v17827_v59, %v17826_v35  ;;  %v17829_v6 = vrot.slane %v17828_v10, 7  ;;  %v17832_v48 = vld [vmem:[#allocation221_spill] sm:$0xff]  ;;  %v17833_v43 = vld [vmem:[#allocation226_spill] sm:$0xff] }
 0x3a0   : > { %v15309_v26 = vcombine.low %v6165_v60, %v6172_v31  ;;  %v17830_v62 = vrot.slane %v17826_v35, 2  ;;  %v4928_v19 = vsel %vm13693_vm8, %v17833_v43, %v17832_v48  ;;  %v17834_v60 = vld [vmem:[#allocation218_spill] sm:$0xff]  ;;  %v17836_v11 = vrot.slane %v17832_v48, 2  ;;  %v17839_v35 = vld [vmem:[#allocation63_spill] sm:$0xff] }
 0x3a1   : > { %v4919_v41 = vsel %vm13693_vm8, %v17825_v55, %v17824_v52  ;;  %v15322_v20 = vcombine.low %v6182_v12, %v6189_v54  ;;  %v17835_v31 = vrot.slane %v17834_v60, 7  ;;  %v17838_v52 = vld [vmem:[#allocation227_spill] sm:$0xff]  ;;  %v17840_v59 = vrot.slane %v17839_v35, 7 }
 0x3a2   : > { %v4925_v46 = vsel %vm13693_vm8, %v17830_v62, %v17829_v6  ;;  %v4934_v55 = vsel %vm13693_vm8, %v17838_v52, %v17837_v63  ;;  %v6657_v12 = vrot.slane %v15309_v26, 2  ;;  %v6453_v54 = vrot.slane %v15309_v26, 1 }
 0x3a3   : > { %17831 = vst [vmem:[#allocation90_spill] sm:$0xff] %v15322_v20  ;;  %v4931_v5 = vsel %vm13693_vm8, %v17836_v11, %v17835_v31  ;;  %v17841_v10 = vrot.slane %v17837_v63, 2  ;;  %v5464_v62 = vmul.f32 %v17514_v49, %v4916_v15  ;;  %v6659_v48 = vrot.slane %v15322_v20, 2 }
 0x3a4   : > { %v6455_v43 = vrot.slane %v15322_v20, 1  ;;  %v5465_v60 = vmul.f32 %v17515_v61, %v4919_v41  ;;  %v5466_v31 = vmul.f32 %v17461_v4, %v4922_v13  ;;  %v6658_v11 = vsel %vm2207_vm4, %v6655_v27, %v6657_v12 }
 0x3a5   : > { %v4937_v6 = vsel %vm13693_vm8, %v17841_v10, %v17840_v59  ;;  %v6454_v52 = vsel %vm2002_vm3, %v6451_v1, %v6453_v54  ;;  %v5467_v35 = vmul.f32 %v17465_v16, %v4925_v46  ;;  %v5468_v63 = vmul.f32 %v17466_v36, %v4928_v19  ;;  %v17842_v1 = vld [vmem:[#allocation223_spill] sm:$0xff]  ;;  %v17844_v19 = vld [vmem:[#allocation68_spill] sm:$0xff] }
 0x3a6   : > { %v6660_v59 = vsel %vm2207_vm4, %v6657_v12, %v6659_v48  ;;  %v6456_v15 = vsel %vm2002_vm3, %v6453_v54, %v6455_v43  ;;  %v5469_v10 = vmul.f32 %v17510_v50, %v4931_v5  ;;  %v5470_v40 = vmul.f32 %v17511_v22, %v4934_v55 }
 0x3a7   : > { %v11288_v7 = vpack.i.bf16 %v6660_v59, %v6658_v11  ;;  %v11283_v41 = vpack.i.bf16 %v6456_v15, %v6454_v52  ;;  %v5471_v13 = vmul.f32 %v17512_v0, %v4937_v6  ;;  %v6191_v34 = vcombine.low %v5464_v62, %v5465_v60  ;;  %v17847_v62 = vld [vmem:[#allocation231_spill] sm:$0xff]  ;;  %v17848_v60 = vld [vmem:[#allocation230_spill] sm:$0xff] }
 0x3a8   : > { %v6192_v27 = vcombine.low %v5466_v31, %v5467_v35  ;;  %v6208_v20 = vcombine.low %v5468_v63, %v5469_v10  ;;  %v4940_v46 = vsel %vm13693_vm8, %v17843_v58, %v17842_v1  ;;  %v17845_v12 = vrot.slane %v17844_v19, 7  ;;  %v17849_v35 = vld [vmem:[#allocation228_spill] sm:$0xff] }
 0x3a9   : > { %v17846_v54 = vrot.slane %v17842_v1, 2  ;;  %11289 = vrot.lane.b32.xlu1 %v11288_v7, %s11405_s28  ;;  %11284 = vrot.lane.b32.xlu0 %v11283_v41, %s11398_s9  ;;  %v6199_v55 = vrot.slane %v6191_v34, %v11562_v9  ;;  %v6209_v6 = vcombine.low %v5470_v40, %v5471_v13  ;;  %v4946_v31 = vsel %vm13693_vm8, %v17848_v60, %v17847_v62  ;;  %v17852_v34 = vld [vmem:[#allocation67_spill] sm:$0xff]  ;;  %v17853_v40 = vld [vmem:[#allocation77_spill] sm:$0xff]  ;;  %v17854_v41 = vld [vmem:[#allocation232_spill] sm:$0xff] }
 0x3aa   : > { %v11151_v58 = vunpack.i.l.bf16 %v15291_v18  ;;  %v6206_v11 = vrot.slane %v6192_v27, %v11562_v9  ;;  %v6216_v52 = vrot.slane %v6208_v20, %v11562_v9  ;;  %v17850_v63 = vrot.slane %v17849_v35, 7  ;;  %v17857_v1 = vld [vmem:[#allocation70_spill] sm:$0xff] }
 0x3ab   : > { %v4943_v5 = vsel %vm13693_vm8, %v17846_v54, %v17845_v12  ;;  %v17851_v7 = vrot.slane %v17847_v62, 2  ;;  %v4952_v15 = vsel %vm13693_vm8, %v17853_v40, %v17852_v34  ;;  %v6223_v10 = vrot.slane %v6209_v6, %v11562_v9 }
 0x3ac   : > { %v17855_v13 = vrot.slane %v17854_v41, 7  ;;  %v17856_v27 = vrot.slane %v17852_v34, 2  ;;  %v4958_v19 = vsel %vm13693_vm8, %v17857_v1, %v14272_v8  ;;  %v17858_v12 = vrot.slane %v14262_v21, 7 }
 0x3ad   : > { %v4949_v59 = vsel %vm13693_vm8, %v17851_v7, %v17850_v63  ;;  %v17859_v54 = vrot.slane %v14272_v8, 2  ;;  %v15407_v6 = vcombine.low %v6199_v55, %v6206_v11  ;;  %v5472_v60 = vmul.f32 %v17513_v56, %v4940_v46 }
 0x3ae   : > { %v4955_v20 = vsel %vm13693_vm8, %v17856_v27, %v17855_v13  ;;  %v5473_v35 = vmul.f32 %v17514_v49, %v4943_v5  ;;  %v5474_v63 = vmul.f32 %v17515_v61, %v4946_v31  ;;  %v15412_v7 = vcombine.low %v6216_v52, %v6223_v10 }
 0x3af   : > { %v4961_v62 = vsel %vm13693_vm8, %v17859_v54, %v17858_v12  ;;  %v5475_v34 = vmul.f32 %v17461_v4, %v4949_v59  ;;  %v5476_v40 = vmul.f32 %v17465_v16, %v4952_v15  ;;  %v5477_v21 = vmul.f32 %v17466_v36, %v4955_v20  ;;  %v15429_v12 = vpop.permute.xlu0 %11144 }
 0x3b0   : > { %v6661_v8 = vrot.slane %v15407_v6, 2  ;;  %v6457_v41 = vrot.slane %v15407_v6, 1  ;;  %v5478_v55 = vmul.f32 %v17510_v50, %v4958_v19  ;;  %v5479_v46 = vmul.f32 %v17511_v22, %v4961_v62 }
 0x3b1   : > { %v6663_v5 = vrot.slane %v15412_v7, 2  ;;  %v6459_v31 = vrot.slane %v15412_v7, 1  ;;  %v6225_v11 = vcombine.low %v5472_v60, %v5473_v35  ;;  %v6226_v52 = vcombine.low %v5474_v63, %v5475_v34 }
 0x3b2   : > { %v6662_v59 = vsel %vm2207_vm4, %v6659_v48, %v6661_v8  ;;  %v6458_v15 = vsel %vm2002_vm3, %v6455_v43, %v6457_v41  ;;  %v6242_v10 = vcombine.low %v5476_v40, %v5477_v21  ;;  %v6243_v13 = vcombine.low %v5478_v55, %v5479_v46  ;;  %v17865_v55 = vld [vmem:[#allocation81_spill] sm:$0xff]  ;;  %v17866_v46 = vld [vmem:[#allocation71_spill] sm:$0xff] }
 0x3b3   : > { %v6664_v27 = vsel %vm2207_vm4, %v6661_v8, %v6663_v5  ;;  %v6460_v20 = vsel %vm2002_vm3, %v6457_v41, %v6459_v31  ;;  %v6233_v1 = vrot.slane %v6225_v11, %v11562_v9  ;;  %v6240_v19 = vrot.slane %v6226_v52, %v11562_v9  ;;  %v17862_v41 = vld [vmem:[#allocation66_spill] sm:$0xff] }
 0x3b4   : > { %v11298_v54 = vpack.i.bf16 %v6664_v27, %v6662_v59  ;;  %v11293_v62 = vpack.i.bf16 %v6460_v20, %v6458_v15  ;;  %v6250_v60 = vrot.slane %v6242_v10, %v11562_v9  ;;  %v6257_v48 = vrot.slane %v6243_v13, %v11562_v9  ;;  %v17867_v15 = vld [vmem:[#allocation76_spill] sm:$0xff]  ;;  %v17871_v20 = vld [vmem:[#allocation57_spill] sm:$0xff] }
 0x3b5   : > { %v15433_v35 = vcombine.low %v6233_v1, %v6240_v19  ;;  %v4964_v43 = vsel %vm13693_vm8, %v14379_v14, %v14349_v25  ;;  %v17860_v63 = vrot.slane %v14267_v44, 7  ;;  %v17861_v34 = vrot.slane %v14349_v25, 2  ;;  %v17870_v27 = vld [vmem:[#allocation84_spill] sm:$0xff] }
 0x3b6   : > { %v4970_v21 = vsel %vm13693_vm8, %v14391_v51, %v14360_v37  ;;  %11299 = vrot.lane.b32.xlu1 %v11298_v54, %s11405_s28  ;;  %11294 = vrot.lane.b32.xlu0 %v11293_v62, %s11398_s9  ;;  %v15451_v8 = vcombine.low %v6250_v60, %v6257_v48  ;;  %v17863_v14 = vrot.slane %v17862_v41, 7  ;;  %v17864_v44 = vrot.slane %v14360_v37, 2 }
 0x3b7   : > { %v4967_v40 = vsel %vm13693_vm8, %v17861_v34, %v17860_v63  ;;  %v4976_v11 = vsel %vm13693_vm8, %v17866_v46, %v17865_v55  ;;  %v11147_v51 = vunpack.i.h.bf16 %v15429_v12  ;;  %v6665_v52 = vrot.slane %v15433_v35, 2 }
 0x3b8   : > { %v4973_v25 = vsel %vm13693_vm8, %v17864_v44, %v17863_v14  ;;  %v6461_v59 = vrot.slane %v15433_v35, 1  ;;  %v17868_v10 = vrot.slane %v17867_v15, 7  ;;  %v17869_v13 = vrot.slane %v17865_v55, 2 }
 0x3b9   : > { %v4982_v1 = vsel %vm13693_vm8, %v17871_v20, %v17870_v27  ;;  %v6667_v19 = vrot.slane %v15451_v8, 2  ;;  %v6463_v54 = vrot.slane %v15451_v8, 1  ;;  %v17872_v62 = vrot.slane %v14453_v30, 7 }
 0x3ba   : > { %v4979_v37 = vsel %vm13693_vm8, %v17869_v13, %v17868_v10  ;;  %v17873_v60 = vrot.slane %v17870_v27, 2  ;;  %v5480_v63 = vmul.f32 %v17512_v0, %v4964_v43  ;;  %v6666_v34 = vsel %vm2207_vm4, %v6663_v5, %v6665_v52 }
 0x3bb   : > { %v6462_v41 = vsel %vm2002_vm3, %v6459_v31, %v6461_v59  ;;  %v5481_v14 = vmul.f32 %v17513_v56, %v4967_v40  ;;  %v5482_v44 = vmul.f32 %v17514_v49, %v4970_v21  ;;  %v6668_v55 = vsel %vm2207_vm4, %v6665_v52, %v6667_v19  ;;  %v17878_v52 = vld [vmem:[#allocation87_spill] sm:$0xff] }
 0x3bc   : > { %v4985_v48 = vsel %vm13693_vm8, %v17873_v60, %v17872_v62  ;;  %v6464_v46 = vsel %vm2002_vm3, %v6461_v59, %v6463_v54  ;;  %v5483_v30 = vmul.f32 %v17515_v61, %v4973_v25  ;;  %v5484_v15 = vmul.f32 %v17461_v4, %v4976_v11  ;;  %v17874_v25 = vld [vmem:[#allocation58_spill] sm:$0xff]  ;;  %v17879_v62 = vld [vmem:[#allocation59_spill] sm:$0xff] }
 0x3bd   : > { %v11308_v10 = vpack.i.bf16 %v6668_v55, %v6666_v34  ;;  %v11303_v13 = vpack.i.bf16 %v6464_v46, %v6462_v41  ;;  %v5485_v43 = vmul.f32 %v17465_v16, %v4979_v37  ;;  %v5486_v5 = vmul.f32 %v17466_v36, %v4982_v1  ;;  %v17882_v34 = vld [vmem:[#allocation83_spill] sm:$0xff]  ;;  %v17883_v41 = vld [vmem:[#allocation82_spill] sm:$0xff] }
 0x3be   : > { %v5487_v31 = vmul.f32 %v17510_v50, %v4985_v48  ;;  %v6259_v27 = vcombine.low %v5480_v63, %v5481_v14  ;;  %v6260_v40 = vcombine.low %v5482_v44, %v5483_v30  ;;  %v4988_v21 = vsel %vm13693_vm8, %v14523_v28, %v14501_v39  ;;  %v17877_v50 = vld [vmem:[#allocation55_spill] sm:$0xff]  ;;  %v17884_v44 = vld [vmem:[#allocation61_spill] sm:$0xff] }
 0x3bf   : > { %11309 = vrot.lane.b32.xlu1 %v11308_v10, %s11405_s28  ;;  %11304 = vrot.lane.b32.xlu0 %v11303_v13, %s11398_s9  ;;  %v6276_v4 = vcombine.low %v5484_v15, %v5485_v43  ;;  %v17875_v11 = vrot.slane %v17874_v25, 7  ;;  %v17876_v16 = vrot.slane %v14501_v39, 2  ;;  %v4994_v59 = vsel %vm13693_vm8, %v17878_v52, %v17877_v50  ;;  %v17887_v15 = vld [vmem:[#allocation85_spill] sm:$0xff] }
 0x3c0   : > { %v11146_v37 = vunpack.i.l.bf16 %v15429_v12  ;;  %v6267_v28 = vrot.slane %v6259_v27, %v11562_v9  ;;  %v6274_v20 = vrot.slane %v6260_v40, %v11562_v9  ;;  %v6277_v1 = vcombine.low %v5486_v5, %v5487_v31  ;;  %v17888_v5 = vld [vmem:[#allocation65_spill] sm:$0xff] }
 0x3c1   : > { %v4991_v36 = vsel %vm13693_vm8, %v17876_v16, %v17875_v11  ;;  %v17880_v60 = vrot.slane %v17879_v62, 7  ;;  %v17881_v48 = vrot.slane %v17877_v50, 2  ;;  %v6284_v63 = vrot.slane %v6276_v4, %v11562_v9  ;;  %v17892_v62 = vld [vmem:[#allocation73_spill] sm:$0xff] }
 0x3c2   : > { %v5000_v14 = vsel %vm13693_vm8, %v17883_v41, %v17882_v34  ;;  %v17885_v55 = vrot.slane %v17884_v44, 7  ;;  %v17886_v46 = vrot.slane %v17882_v34, 2  ;;  %v5006_v10 = vsel %vm13693_vm8, %v17887_v15, %v14535_v57  ;;  %v17894_v44 = vld [vmem:[#allocation47_spill] sm:$0xff] }
 0x3c3   : > { %v4997_v39 = vsel %vm13693_vm8, %v17881_v48, %v17880_v60  ;;  %v15536_v13 = vcombine.low %v6267_v28, %v6274_v20  ;;  %v6291_v43 = vrot.slane %v6277_v1, %v11562_v9  ;;  %v17889_v31 = vrot.slane %v17888_v5, 7  ;;  %v17893_v48 = vld [vmem:[#allocation74_spill] sm:$0xff] }
 0x3c4   : > { %v5003_v30 = vsel %vm13693_vm8, %v17886_v46, %v17885_v55  ;;  %v17890_v27 = vrot.slane %v14535_v57, 2  ;;  %v5488_v4 = vmul.f32 %v17511_v22, %v4988_v21  ;;  %v5489_v25 = vmul.f32 %v17512_v0, %v4991_v36  ;;  %v17891_v57 = vld [vmem:[#allocation72_spill] sm:$0xff] }
 0x3c5   : > { %v5490_v11 = vmul.f32 %v17513_v56, %v4994_v59  ;;  %v5491_v16 = vmul.f32 %v17514_v49, %v4997_v39  ;;  %v5492_v50 = vmul.f32 %v17515_v61, %v5000_v14  ;;  %v15550_v52 = vcombine.low %v6284_v63, %v6291_v43 }
 0x3c6   : > { %v5009_v40 = vsel %vm13693_vm8, %v17890_v27, %v17889_v31  ;;  %v6669_v28 = vrot.slane %v15536_v13, 2  ;;  %v6465_v20 = vrot.slane %v15536_v13, 1  ;;  %v5493_v1 = vmul.f32 %v17891_v57, %v5003_v30  ;;  %v17897_v27 = vld [vmem:[#allocation185_spill] sm:$0xff] }
 0x3c7   : > { %v5494_v60 = vmul.f32 %v17892_v62, %v5006_v10  ;;  %v5495_v22 = vmul.f32 %v17893_v48, %v5009_v40  ;;  %v6293_v21 = vcombine.low %v5488_v4, %v5489_v25  ;;  %v6294_v0 = vcombine.low %v5490_v11, %v5491_v16  ;;  %v17900_v4 = vld [vmem:[#allocation44_spill] sm:$0xff]  ;;  %v17901_v25 = vld [vmem:[#allocation49_spill] sm:$0xff] }
 0x3c8   : > { %v6670_v56 = vsel %vm2207_vm4, %v6667_v19, %v6669_v28  ;;  %v6671_v49 = vrot.slane %v15550_v52, 2  ;;  %v6466_v61 = vsel %vm2002_vm3, %v6463_v54, %v6465_v20  ;;  %v6467_v36 = vrot.slane %v15550_v52, 1 }
 0x3c9   : > { %v6301_v59 = vrot.slane %v6293_v21, %v11562_v9  ;;  %v6308_v39 = vrot.slane %v6294_v0, %v11562_v9  ;;  %v6310_v63 = vcombine.low %v5492_v50, %v5493_v1  ;;  %v6311_v34 = vcombine.low %v5494_v60, %v5495_v22  ;;  %v17902_v50 = vld [vmem:[#allocation187_spill] sm:$0xff] }
 0x3ca   : > { %v6672_v41 = vsel %vm2207_vm4, %v6669_v28, %v6671_v49  ;;  %v6468_v14 = vsel %vm2002_vm3, %v6465_v20, %v6467_v36  ;;  %v5012_v19 = vsel %vm13693_vm8, %v17894_v44, %v14634_v53  ;;  %v17895_v54 = vrot.slane %v14498_v29, 7  ;;  %v17905_v1 = vld [vmem:[#allocation75_spill] sm:$0xff] }
 0x3cb   : > { %v17896_v55 = vrot.slane %v14634_v53, 2  ;;  %v11318_v30 = vpack.i.bf16 %v6672_v41, %v6670_v56  ;;  %v11313_v15 = vpack.i.bf16 %v6468_v14, %v6466_v61  ;;  %v15575_v10 = vcombine.low %v6301_v59, %v6308_v39  ;;  %v11155_v61 = vpop.permute.xlu0 %11154 }
 0x3cc   : > { %v6318_v43 = vrot.slane %v6310_v63, %v11562_v9  ;;  %v6325_v5 = vrot.slane %v6311_v34, %v11562_v9  ;;  %v5018_v31 = vsel %vm13693_vm8, %v15117_v17, %v14890_v24  ;;  %v17898_v29 = vrot.slane %v17897_v27, 7  ;;  %v11160_v27 = vpop.permute.xlu1 %11159 }
 0x3cd   : > { %v5015_v46 = vsel %vm13693_vm8, %v17896_v55, %v17895_v54  ;;  %v17899_v53 = vrot.slane %v14890_v24, 2  ;;  %v5024_v11 = vsel %vm13693_vm8, %v17901_v25, %v17900_v4  ;;  %11319 = vrot.lane.b32.xlu1 %v11318_v30, %s11405_s28  ;;  %11314 = vrot.lane.b32.xlu0 %v11313_v15, %s11398_s9  ;;  %v6673_v16 = vrot.slane %v15575_v10, 2 }
 0x3ce   : > { %v6469_v17 = vrot.slane %v15575_v10, 1  ;;  %v17903_v28 = vrot.slane %v17902_v50, 7  ;;  %v17904_v24 = vrot.slane %v17900_v4, 2  ;;  %v5496_v60 = vmul.f32 %v17905_v1, %v5012_v19 }
 0x3cf   : > { %v5021_v40 = vsel %vm13693_vm8, %v17899_v53, %v17898_v29  ;;  %v15604_v22 = vcombine.low %v6318_v43, %v6325_v5  ;;  %v5497_v21 = vmul.f32 %v17891_v57, %v5015_v46  ;;  %v5498_v0 = vmul.f32 %v17892_v62, %v5018_v31  ;;  %v17906_v62 = vld [vmem:[#allocation224_spill] sm:$0xff] }
 0x3d0   : > { %v5027_v20 = vsel %vm13693_vm8, %v17904_v24, %v17903_v28  ;;  %v5499_v56 = vmul.f32 %v17893_v48, %v5021_v40  ;;  %v6674_v59 = vsel %vm2207_vm4, %v6671_v49, %v6673_v16  ;;  %v6470_v39 = vsel %vm2002_vm3, %v6467_v36, %v6469_v17  ;;  %v17909_v28 = vld [vmem:[#allocation60_spill] sm:$0xff] }
 0x3d1   : > { %v5500_v63 = vmul.f32 %v17905_v1, %v5024_v11  ;;  %v5501_v23 = vmul.f32 %v17891_v57, %v5027_v20  ;;  %v6675_v34 = vrot.slane %v15604_v22, 2  ;;  %v6471_v41 = vrot.slane %v15604_v22, 1  ;;  %v11379_v57 = vld [vmem:[%s16807_s3 + $0x20] ss:$0 sps:$4 sm:$0xff]  }
 0x3d2   : > { %v6327_v14 = vcombine.low %v5496_v60, %v5497_v21  ;;  %v6328_v44 = vcombine.low %v5498_v0, %v5499_v56  ;;  %v6805_v48 = vsel %vm2453_vm7, %v17906_v62, %v11147_v51  ;;  %v6804_v49 = vsel %vm2453_vm7, %v17806_v2, %v11146_v37  ;;  %v17910_v20 = vld [vmem:[#allocation233_spill] sm:$0xff]  ;;  %v11380_v56 = vld [vmem:[%s16807_s3 + $0x18] sm:$0xff]  }
 0x3d3   : > { %v6344_v19 = vcombine.low %v5500_v63, %v5501_v23  ;;  %v11157_v36 = vunpack.i.h.bf16 %v11155_v61  ;;  %v6676_v54 = vsel %vm2207_vm4, %v6673_v16, %v6675_v34  ;;  %v6472_v55 = vsel %vm2002_vm3, %v6469_v17, %v6471_v41 }
 0x3d4   : > { %v6335_v46 = vrot.slane %v6327_v14, %v11562_v9  ;;  %v6342_v30 = vrot.slane %v6328_v44, %v11562_v9  ;;  %v11328_v15 = vpack.i.bf16 %v6676_v54, %v6674_v59  ;;  %v11323_v51 = vpack.i.bf16 %v6472_v55, %v6470_v39  ;;  %v11165_v39 = vpop.permute.xlu0 %11164  ;;  %v17913_v54 = vld [vmem:[#allocation78_spill] sm:$0xff] }
 0x3d5   : > { %v15631_v12 = vrot.slane %v6344_v19, %v11562_v9  ;;  %v17907_v37 = vunpack.i.h.bf16 %v15291_v18  ;;  %v6846_v31 = vsel %vm6845_vm10, %v6804_v49, %v11151_v58  ;;  %v11156_v29 = vunpack.i.l.bf16 %v11155_v61  ;;  %v8005_v49 = vld [vmem:[%s16809_s5] sm:$0x3] }
 0x3d6   : > { %v15636_v5 = vcombine.low %v6335_v46, %v6342_v30  ;;  %11329 = vrot.lane.b32.xlu1 %v11328_v15, %s11405_s28  ;;  %11324 = vrot.lane.b32.xlu0 %v11323_v51, %s11398_s9  ;;  %v17908_v53 = vrot.slane %v17806_v2, 4  ;;  %v7554_v25 = vsel %vm3432_vm9, %v11379_v57, 0  ;;  %v11162_v17 = vunpack.i.h.bf16 %v11160_v27 }
 0x3d7   : > { %v6847_v43 = vsel %vm6845_vm10, %v6805_v48, %v17907_v37  ;;  %v11161_v50 = vunpack.i.l.bf16 %v11160_v27  ;;  %v6807_v24 = vsel %vm2453_vm7, %v17909_v28, %v11157_v36  ;;  %v6806_v2 = vsel %vm2453_vm7, %v17910_v20, %v11156_v29  ;;  %v17912_v36 = vld [vmem:[#allocation80_spill] sm:$0xff] }
 0x3d8   : > { %v6355_v40 = vsel %vm1959_vm5, %v17908_v53, %v15631_v12  ;;  %v15647_v4 = vpack.c.bf16 %v6847_v43, %v6846_v31  ;;  %v6677_v18 = vrot.slane %v15636_v5, 2  ;;  %v6473_v58 = vrot.slane %v15636_v5, 1  ;;  %v11175_v46 = vpop.permute.xlu0 %11174 }
 0x3d9   : > { %v6679_v11 = vrot.slane %v6355_v40, 2  ;;  %v6475_v16 = vrot.slane %v6355_v40, 1  ;;  %v17911_v63 = vmov 0.0   ;;  %v6849_v23 = vsel %vm6845_vm10, %v6807_v24, %v11162_v17  ;;  %v17914_v40 = vld [vmem:[#allocation79_spill] sm:$0xff] }
 0x3da   : > { %10577 = vmatmul.mubr.msk.bf16.vlgmr.msra.gmra.mxu1 %vm6924_vm11, %v15647_v4  ;;  %10665 = vmatmul.mubr.msk.bf16.vlgmr.msra.gmra.mxu0 %vm6924_vm11, %v15647_v4  ;;  %v6678_v1 = vsel %vm2207_vm4, %v6675_v34, %v6677_v18  ;;  %v6474_v21 = vsel %vm2002_vm3, %v6471_v41, %v6473_v58  ;;  %v6848_v34 = vsel %vm6845_vm10, %v6806_v2, %v11161_v50  ;;  %v11170_v41 = vpop.permute.xlu1 %11169  ;;  %v11167_v14 = vunpack.i.h.bf16 %v11165_v39 }
 0x3db   : > { %v6680_v60 = vsel %vm2207_vm4, %v6677_v18, %v6679_v11  ;;  %v6476_v0 = vsel %vm2002_vm3, %v6473_v58, %v6475_v16  ;;  %10749 = vmatpush3.bf16.msra.mxu1 %v7554_v25  ;;  %10580 = vmatprep.mubr.msk.bf16.mxu1 %vm11399_vm6, %v17911_v63  ;;  %v11166_v44 = vunpack.i.l.bf16 %v11165_v39  ;;  %v15676_v19 = vpack.c.bf16 %v6849_v23, %v6848_v34  ;;  %v17915_v18 = vld [vmem:[#allocation69_spill] sm:$0xff] }
 0x3dc   : > { %v11338_v61 = vpack.i.bf16 %v6680_v60, %v6678_v1  ;;  %v11333_v59 = vpack.i.bf16 %v6476_v0, %v6474_v21  ;;  %10668 = vmatprep.mubr.msk.bf16.mxu0 %vm11399_vm6, %v17911_v63  ;;  %10750 = vmatprep.subr.bf16.mxu1 %v17911_v63  ;;  %v11172_v62 = vunpack.i.h.bf16 %v11170_v41  ;;  %v11171_v48 = vunpack.i.l.bf16 %v11170_v41  ;;  %v11185_v58 = vpop.permute.xlu0 %11184  ;;  %v17916_v60 = vld [vmem:[#allocation91_spill] sm:$0xff]  ;;  %v17917_v0 = vld [vmem:[#allocation93_spill] sm:$0xff] }
 0x3dd   : > { %v6809_v57 = vsel %vm2453_vm7, %v17912_v36, %v11167_v14  ;;  %v6808_v55 = vsel %vm2453_vm7, %v17913_v54, %v11166_v44  ;;  %vm8258_vm3 = vcmask 1041408   ;;  %v11177_v43 = vunpack.i.h.bf16 %v11175_v46  ;;  %v17919_v36 = vld [vmem:[#allocation97_spill] sm:$0xff] }
 0x3de   : > { %11339 = vrot.lane.b32.xlu1 %v11338_v61, %s11405_s28  ;;  %11334 = vrot.lane.b32.xlu0 %v11333_v59, %s11398_s9  ;;  %v8260_v30 = vsel %vm8258_vm3, %v8005_v49, 0  ;;  %v6851_v15 = vsel %vm6845_vm10, %v6809_v57, %v11172_v62  ;;  %v6850_v51 = vsel %vm6845_vm10, %v6808_v55, %v11171_v48  ;;  %v11180_v37 = vpop.permute.xlu1 %11179  ;;  %v11176_v31 = vunpack.i.l.bf16 %v11175_v46  ;;  %v17918_v48 = vld [vmem:[#allocation86_spill] sm:$0xff] }
 0x3df   : > { %10751 = vmatpush3.bf16.msra.mxu1 %v11380_v56  ;;  %10837 = vmatpush3.bf16.msra.mxu0 %v8260_v30  ;;  %v15697_v27 = vpack.c.bf16 %v6851_v15, %v6850_v51  ;;  %v11182_v29 = vunpack.i.h.bf16 %v11180_v37  ;;  %v11181_v53 = vunpack.i.l.bf16 %v11180_v37  ;;  %v6811_v25 = vsel %vm2453_vm7, %v17914_v40, %v11177_v43  ;;  %v17921_v40 = vld [vmem:[#allocation88_spill] sm:$0xff] }
 0x3e0   : > { %v11187_v28 = vunpack.i.h.bf16 %v11185_v58  ;;  %v11186_v24 = vunpack.i.l.bf16 %v11185_v58  ;;  %v11195_v61 = vpop.permute.xlu0 %11194 }
 0x3e1   : > { %v11197_v34 = vunpack.i.h.bf16 %v11195_v61  ;;  %v11196_v41 = vunpack.i.l.bf16 %v11195_v61 }
 0x3e2   : > { %6761 = vrot.lane.b32.xlu1 %v6679_v11, %s11405_s28  ;;  %6557 = vrot.lane.b32.xlu0 %v6475_v16, %s11398_s9  ;;  %v6810_v11 = vsel %vm2453_vm7, %v17915_v18, %v11176_v31  ;;  %v6853_v16 = vsel %vm6845_vm10, %v6811_v25, %v11182_v29  ;;  %v11190_v50 = vpop.permute.xlu1 %11189  ;;  %v6813_v21 = vsel %vm2453_vm7, %v17916_v60, %v11187_v28  ;;  %v17920_v29 = vld [vmem:[#allocation94_spill] sm:$0xff] }
 0x3e3   : > { %10581 = vmatmul.mubr.msk.bf16.gmra.mxu1 %vm6924_vm11, %v15676_v19  ;;  %10669 = vmatmul.mubr.msk.bf16.gmra.mxu0 %vm6924_vm11, %v15676_v19  ;;  %v6852_v17 = vsel %vm6845_vm10, %v6810_v11, %v11181_v53  ;;  %v11192_v2 = vunpack.i.h.bf16 %v11190_v50  ;;  %v11191_v1 = vunpack.i.l.bf16 %v11190_v50  ;;  %v6812_v56 = vsel %vm2453_vm7, %v17917_v0, %v11186_v24 }
 0x3e4   : > { %10584 = vmatprep.mubr.msk.bf16.mxu1 %vm11399_vm6, %v17911_v63  ;;  %10672 = vmatprep.mubr.msk.bf16.mxu0 %vm11399_vm6, %v17911_v63  ;;  %v15713_v20 = vpack.c.bf16 %v6853_v16, %v6852_v17  ;;  %v6815_v49 = vsel %vm2453_vm7, %v17918_v48, %v11197_v34  ;;  %v6814_v57 = vsel %vm2453_vm7, %v17919_v36, %v11196_v41  ;;  %v11205_v54 = vpop.permute.xlu0 %11204  ;;  %v17924_v48 = vld [vmem:[#allocation99_spill] sm:$0xff]  ;;  %v17925_v36 = vld [vmem:[#allocation92_spill] sm:$0xff] }
 0x3e5   : > { %v6855_v59 = vsel %vm6845_vm10, %v6813_v21, %v11192_v2  ;;  %v6854_v39 = vsel %vm6845_vm10, %v6812_v56, %v11191_v1  ;;  %v11207_v15 = vunpack.i.h.bf16 %v11205_v54  ;;  %v11206_v51 = vunpack.i.l.bf16 %v11205_v54  ;;  %v17922_v1 = vld [vmem:[#allocation46_spill] sm:$0xff] }
 0x3e6   : > { %v11200_v23 = vpop.permute.xlu1 %11199  ;;  %v15729_v14 = vpack.c.bf16 %v6855_v59, %v6854_v39  ;;  %v17923_v21 = vld [vmem:[#allocation98_spill] sm:$0xff] }
 0x3e7   : > { %v11202_v44 = vunpack.i.h.bf16 %v11200_v23  ;;  %v11201_v62 = vunpack.i.l.bf16 %v11200_v23  ;;  %v6817_v53 = vsel %vm2453_vm7, %v17920_v29, %v11207_v15  ;;  %v6816_v25 = vsel %vm2453_vm7, %v17921_v40, %v11206_v51 }
 0x3e8   : > { %v11215_v18 = vpop.permute.xlu0 %11214 }
 0x3e9   : > { %v6857_v55 = vsel %vm6845_vm10, %v6815_v49, %v11202_v44  ;;  %v6856_v46 = vsel %vm6845_vm10, %v6814_v57, %v11201_v62  ;;  %v11217_v17 = vunpack.i.h.bf16 %v11215_v18  ;;  %v11216_v50 = vunpack.i.l.bf16 %v11215_v18 }
 0x3ea   : > { %v11210_v30 = vpop.permute.xlu1 %11209  ;;  %v15745_v37 = vpack.c.bf16 %v6857_v55, %v6856_v46 }
 0x3eb   : > { %10585 = vmatmul.mubr.msk.bf16.gmra.mxu1 %vm6924_vm11, %v15697_v27  ;;  %10673 = vmatmul.mubr.msk.bf16.gmra.mxu0 %vm6924_vm11, %v15697_v27  ;;  %v11212_v43 = vunpack.i.h.bf16 %v11210_v30  ;;  %v11211_v31 = vunpack.i.l.bf16 %v11210_v30  ;;  %v6819_v60 = vsel %vm2453_vm7, %v17922_v1, %v11217_v17  ;;  %v6818_v0 = vsel %vm2453_vm7, %v17923_v21, %v11216_v50 }
 0x3ec   : > { %10588 = vmatprep.mubr.msk.bf16.mxu1 %vm11399_vm6, %v17911_v63  ;;  %10676 = vmatprep.mubr.msk.bf16.mxu0 %vm11399_vm6, %v17911_v63  ;;  %v11225_v56 = vpop.permute.xlu0 %11224 }
 0x3ed   : > { %v6859_v11 = vsel %vm6845_vm10, %v6817_v53, %v11212_v43  ;;  %v6858_v58 = vsel %vm6845_vm10, %v6816_v25, %v11211_v31  ;;  %v11227_v23 = vunpack.i.h.bf16 %v11225_v56  ;;  %v11226_v34 = vunpack.i.l.bf16 %v11225_v56  ;;  %v17926_v53 = vld [vmem:[#allocation106_spill] sm:$0xff]  ;;  %v17927_v25 = vld [vmem:[#allocation100_spill] sm:$0xff] }
 0x3ee   : > { %v11220_v16 = vpop.permute.xlu1 %11219  ;;  %v15761_v28 = vpack.c.bf16 %v6859_v11, %v6858_v58 }
 0x3ef   : > { %v11222_v24 = vunpack.i.h.bf16 %v11220_v16  ;;  %v11221_v2 = vunpack.i.l.bf16 %v11220_v16  ;;  %v6821_v49 = vsel %vm2453_vm7, %v17924_v48, %v11227_v23  ;;  %v6820_v57 = vsel %vm2453_vm7, %v17925_v36, %v11226_v34 }
 0x3f0   : > { %v11235_v54 = vpop.permute.xlu0 %11234 }
 0x3f1   : > { %v6861_v61 = vsel %vm6845_vm10, %v6819_v60, %v11222_v24  ;;  %v6860_v59 = vsel %vm6845_vm10, %v6818_v0, %v11221_v2  ;;  %v11237_v15 = vunpack.i.h.bf16 %v11235_v54  ;;  %v11236_v51 = vunpack.i.l.bf16 %v11235_v54  ;;  %v17928_v0 = vld [vmem:[#allocation95_spill] sm:$0xff] }
 0x3f2   : > { %v11230_v39 = vpop.permute.xlu1 %11229  ;;  %v15777_v41 = vpack.c.bf16 %v6861_v61, %v6860_v59 }
 0x3f3   : > { %10589 = vmatmul.mubr.msk.bf16.gmra.mxu1 %vm6924_vm11, %v15713_v20  ;;  %10677 = vmatmul.mubr.msk.bf16.gmra.mxu0 %vm6924_vm11, %v15713_v20  ;;  %v11232_v44 = vunpack.i.h.bf16 %v11230_v39  ;;  %v11231_v62 = vunpack.i.l.bf16 %v11230_v39  ;;  %v6823_v40 = vsel %vm2453_vm7, %v17926_v53, %v11237_v15  ;;  %v6822_v18 = vsel %vm2453_vm7, %v17927_v25, %v11236_v51 }
 0x3f4   : > { %10592 = vmatprep.mubr.msk.bf16.mxu1 %vm11399_vm6, %v17911_v63  ;;  %10680 = vmatprep.mubr.msk.bf16.mxu0 %vm11399_vm6, %v17911_v63  ;;  %v11245_v11 = vpop.permute.xlu0 %11244 }
 0x3f5   : > { %v6863_v55 = vsel %vm6845_vm10, %v6821_v49, %v11232_v44  ;;  %v6862_v46 = vsel %vm6845_vm10, %v6820_v57, %v11231_v62  ;;  %v11247_v50 = vunpack.i.h.bf16 %v11245_v11  ;;  %v11246_v24 = vunpack.i.l.bf16 %v11245_v11 }
 0x3f6   : > { %v11240_v30 = vpop.permute.xlu1 %11239  ;;  %v15793_v43 = vpack.c.bf16 %v6863_v55, %v6862_v46 }
 0x3f7   : > { %v11242_v31 = vunpack.i.h.bf16 %v11240_v30  ;;  %v11241_v29 = vunpack.i.l.bf16 %v11240_v30  ;;  %v6825_v21 = vsel %vm2453_vm7, %v15040_v32, %v11247_v50  ;;  %v6824_v56 = vsel %vm2453_vm7, %v17928_v0, %v11246_v24 }
 0x3f9   : > { %v6865_v58 = vsel %vm6845_vm10, %v6823_v40, %v11242_v31  ;;  %v6864_v16 = vsel %vm6845_vm10, %v6822_v18, %v11241_v29 }
 0x3fa   : > { %v11250_v17 = vpop.permute.xlu1 %11249  ;;  %v15809_v2 = vpack.c.bf16 %v6865_v58, %v6864_v16 }
 0x3fb   : > { %10593 = vmatmul.mubr.msk.bf16.gmra.mxu1 %vm6924_vm11, %v15729_v14  ;;  %10681 = vmatmul.mubr.msk.bf16.gmra.mxu0 %vm6924_vm11, %v15729_v14  ;;  %v11252_v1 = vunpack.i.h.bf16 %v11250_v17  ;;  %v11251_v60 = vunpack.i.l.bf16 %v11250_v17  ;;  %v11255_v61 = vpop.permute.xlu0 %11254 }
 0x3fc   : > { %10596 = vmatprep.mubr.msk.bf16.mxu1 %vm11399_vm6, %v17911_v63  ;;  %10684 = vmatprep.mubr.msk.bf16.mxu0 %vm11399_vm6, %v17911_v63  ;;  %v11257_v23 = vunpack.i.h.bf16 %v11255_v61  ;;  %v11256_v34 = vunpack.i.l.bf16 %v11255_v61 }
 0x3fd   : > { %v6867_v59 = vsel %vm6845_vm10, %v6825_v21, %v11252_v1  ;;  %v6866_v32 = vsel %vm6845_vm10, %v6824_v56, %v11251_v60 }
 0x3fe   : > { %v11260_v39 = vpop.permute.xlu1 %11259  ;;  %v15825_v44 = vpack.c.bf16 %v6867_v59, %v6866_v32  ;;  %v6827_v49 = vsel %vm2453_vm7, %v15121_v42, %v11257_v23  ;;  %v6826_v36 = vsel %vm2453_vm7, %v15073_v47, %v11256_v34  ;;  %v17929_v32 = vld [vmem:[#allocation101_spill] sm:$0xff] }
 0x3ff   : > { %v11262_v62 = vunpack.i.h.bf16 %v11260_v39  ;;  %v11261_v48 = vunpack.i.l.bf16 %v11260_v39 }
 0x401   : > { %v6869_v54 = vsel %vm6845_vm10, %v6827_v49, %v11262_v62  ;;  %v6868_v42 = vsel %vm6845_vm10, %v6826_v36, %v11261_v48 }
 0x402   : > { %v15841_v30 = vpack.c.bf16 %v6869_v54, %v6868_v42 }
 0x403   : > { %10597 = vmatmul.mubr.msk.bf16.gmra.mxu1 %vm6924_vm11, %v15745_v37  ;;  %10685 = vmatmul.mubr.msk.bf16.gmra.mxu0 %vm6924_vm11, %v15745_v37 }
 0x404   : > { %10600 = vmatprep.mubr.msk.bf16.mxu1 %vm11399_vm6, %v17911_v63  ;;  %10688 = vmatprep.mubr.msk.bf16.mxu0 %vm11399_vm6, %v17911_v63 }
 0x405   : > { %v11265_v57 = vpop.permute.xlu0 %11264  ;;  %v11270_v55 = vpop.permute.xlu1 %11269 }
 0x406   : > { %v11267_v46 = vunpack.i.h.bf16 %v11265_v57  ;;  %v11266_v47 = vunpack.i.l.bf16 %v11265_v57  ;;  %v11272_v15 = vunpack.i.h.bf16 %v11270_v55  ;;  %v11271_v51 = vunpack.i.l.bf16 %v11270_v55  ;;  %v17930_v55 = vld [vmem:[#allocation90_spill] sm:$0xff] }
 0x408   : > { %v6829_v31 = vsel %vm2453_vm7, %v15178_v3, %v11267_v46  ;;  %v6828_v29 = vsel %vm2453_vm7, %v15133_v38, %v11266_v47 }
 0x409   : > { %v6871_v40 = vsel %vm6845_vm10, %v6829_v31, %v11272_v15  ;;  %v6870_v3 = vsel %vm6845_vm10, %v6828_v29, %v11271_v51 }
 0x40a   : > { %v15857_v11 = vpack.c.bf16 %v6871_v40, %v6870_v3 }
 0x40b   : > { %10601 = vmatmul.mubr.msk.bf16.gmra.mxu1 %vm6924_vm11, %v15761_v28  ;;  %10689 = vmatmul.mubr.msk.bf16.gmra.mxu0 %vm6924_vm11, %v15761_v28 }
 0x40c   : > { %10604 = vmatprep.mubr.msk.bf16.mxu1 %vm11399_vm6, %v17911_v63  ;;  %10692 = vmatprep.mubr.msk.bf16.mxu0 %vm11399_vm6, %v17911_v63 }
 0x411   : > { %v11275_v53 = vpop.permute.xlu0 %11274  ;;  %v11280_v25 = vpop.permute.xlu1 %11279 }
 0x412   : > { %v11277_v18 = vunpack.i.h.bf16 %v11275_v53  ;;  %v11276_v38 = vunpack.i.l.bf16 %v11275_v53  ;;  %v11282_v58 = vunpack.i.h.bf16 %v11280_v25  ;;  %v11281_v16 = vunpack.i.l.bf16 %v11280_v25 }
 0x413   : > { %10605 = vmatmul.mubr.msk.bf16.gmra.mxu1 %vm6924_vm11, %v15777_v41  ;;  %10693 = vmatmul.mubr.msk.bf16.gmra.mxu0 %vm6924_vm11, %v15777_v41 }
 0x414   : > { %10608 = vmatprep.mubr.msk.bf16.mxu1 %vm11399_vm6, %v17911_v63  ;;  %10696 = vmatprep.mubr.msk.bf16.mxu0 %vm11399_vm6, %v17911_v63  ;;  %v6831_v17 = vsel %vm2453_vm7, %v15261_v45, %v11277_v18  ;;  %v6830_v50 = vsel %vm2453_vm7, %v15196_v33, %v11276_v38 }
 0x415   : > { %v6873_v1 = vsel %vm6845_vm10, %v6831_v17, %v11282_v58  ;;  %v6872_v45 = vsel %vm6845_vm10, %v6830_v50, %v11281_v16 }
 0x416   : > { %v15873_v0 = vpack.c.bf16 %v6873_v1, %v6872_v45 }
 0x41b   : > { %10609 = vmatmul.mubr.msk.bf16.gmra.mxu1 %vm6924_vm11, %v15793_v43  ;;  %10697 = vmatmul.mubr.msk.bf16.gmra.mxu0 %vm6924_vm11, %v15793_v43  ;;  %v11285_v24 = vpop.permute.xlu0 %11284  ;;  %v11290_v60 = vpop.permute.xlu1 %11289 }
 0x41c   : > { %10612 = vmatprep.mubr.msk.bf16.mxu1 %vm11399_vm6, %v17911_v63  ;;  %10700 = vmatprep.mubr.msk.bf16.mxu0 %vm11399_vm6, %v17911_v63  ;;  %v11287_v21 = vunpack.i.h.bf16 %v11285_v24  ;;  %v11286_v33 = vunpack.i.l.bf16 %v11285_v24  ;;  %v11292_v56 = vunpack.i.h.bf16 %v11290_v60  ;;  %v11291_v61 = vunpack.i.l.bf16 %v11290_v60 }
 0x41e   : > { %v6833_v59 = vsel %vm2453_vm7, %v15309_v26, %v11287_v21  ;;  %v6832_v39 = vsel %vm2453_vm7, %v17929_v32, %v11286_v33 }
 0x41f   : > { %v6875_v34 = vsel %vm6845_vm10, %v6833_v59, %v11292_v56  ;;  %v6874_v26 = vsel %vm6845_vm10, %v6832_v39, %v11291_v61 }
 0x420   : > { %v15889_v36 = vpack.c.bf16 %v6875_v34, %v6874_v26 }
 0x423   : > { %10613 = vmatmul.mubr.msk.bf16.gmra.mxu1 %vm6924_vm11, %v15809_v2  ;;  %10701 = vmatmul.mubr.msk.bf16.gmra.mxu0 %vm6924_vm11, %v15809_v2 }
 0x424   : > { %10616 = vmatprep.mubr.msk.bf16.mxu1 %vm11399_vm6, %v17911_v63  ;;  %10704 = vmatprep.mubr.msk.bf16.mxu0 %vm11399_vm6, %v17911_v63 }
 0x428   : > { %v11295_v23 = vpop.permute.xlu0 %11294  ;;  %v11300_v62 = vpop.permute.xlu1 %11299 }
 0x429   : > { %v11297_v48 = vunpack.i.h.bf16 %v11295_v23  ;;  %v11296_v49 = vunpack.i.l.bf16 %v11295_v23  ;;  %v11302_v57 = vunpack.i.h.bf16 %v11300_v62  ;;  %v11301_v54 = vunpack.i.l.bf16 %v11300_v62 }
 0x42b   : > { %10617 = vmatmul.mubr.msk.bf16.gmra.mxu1 %vm6924_vm11, %v15825_v44  ;;  %10705 = vmatmul.mubr.msk.bf16.gmra.mxu0 %vm6924_vm11, %v15825_v44  ;;  %v6835_v42 = vsel %vm2453_vm7, %v15407_v6, %v11297_v48  ;;  %v6834_v46 = vsel %vm2453_vm7, %v17930_v55, %v11296_v49 }
 0x42c   : > { %10620 = vmatprep.mubr.msk.bf16.mxu1 %vm11399_vm6, %v17911_v63  ;;  %10708 = vmatprep.mubr.msk.bf16.mxu0 %vm11399_vm6, %v17911_v63  ;;  %v6877_v15 = vsel %vm6845_vm10, %v6835_v42, %v11302_v57  ;;  %v6876_v6 = vsel %vm6845_vm10, %v6834_v46, %v11301_v54 }
 0x42d   : > { %v15905_v53 = vpack.c.bf16 %v6877_v15, %v6876_v6  ;;  %v17932_v6 = vld [vmem:[#allocation25_spill] sm:$0xff] }
 0x431   : > { %v11305_v47 = vpop.permute.xlu0 %11304  ;;  %v11310_v51 = vpop.permute.xlu1 %11309 }
 0x432   : > { %v11307_v31 = vunpack.i.h.bf16 %v11305_v47  ;;  %v11306_v29 = vunpack.i.l.bf16 %v11305_v47  ;;  %v11312_v40 = vunpack.i.h.bf16 %v11310_v51  ;;  %v11311_v3 = vunpack.i.l.bf16 %v11310_v51 }
 0x433   : > { %10621 = vmatmul.mubr.msk.bf16.gmra.mxu1 %vm6924_vm11, %v15841_v30  ;;  %10709 = vmatmul.mubr.msk.bf16.gmra.mxu0 %vm6924_vm11, %v15841_v30 }
 0x434   : > { %10624 = vmatprep.mubr.msk.bf16.mxu1 %vm11399_vm6, %v17911_v63  ;;  %10712 = vmatprep.mubr.msk.bf16.mxu0 %vm11399_vm6, %v17911_v63  ;;  %v6837_v25 = vsel %vm2453_vm7, %v15433_v35, %v11307_v31  ;;  %v6836_v18 = vsel %vm2453_vm7, %v15412_v7, %v11306_v29  ;;  %v17933_v31 = vld [vmem:[#allocation26_spill] sm:$0xff]  ;;  %v17934_v29 = vld [vmem:[#allocation27_spill] sm:$0xff] }
 0x435   : > { %v6879_v58 = vsel %vm6845_vm10, %v6837_v25, %v11312_v40  ;;  %v6878_v35 = vsel %vm6845_vm10, %v6836_v18, %v11311_v3  ;;  %v7985_v40 = vpack.c.bf16 %v17934_v29, %v17933_v31  ;;  %v17941_v29 = vld [vmem:[#allocation34_spill] sm:$0xff] }
 0x436   : > { %v15921_v50 = vpack.c.bf16 %v6879_v58, %v6878_v35 }
 0x437   : > { %v8016_v35 = vshrl.u32 %v7985_v40, 16 }
 0x43b   : > { %10625 = vmatmul.mubr.msk.bf16.gmra.mxu1 %vm6924_vm11, %v15857_v11  ;;  %10713 = vmatmul.mubr.msk.bf16.gmra.mxu0 %vm6924_vm11, %v15857_v11 }
 0x43c   : > { %10628 = vmatprep.mubr.msk.bf16.mxu1 %vm11399_vm6, %v17911_v63  ;;  %10716 = vmatprep.mubr.msk.bf16.mxu0 %vm11399_vm6, %v17911_v63 }
 0x43f   : > { %v11315_v38 = vpop.permute.xlu0 %11314  ;;  %v11320_v16 = vpop.permute.xlu1 %11319 }
 0x440   : > { %v11317_v17 = vunpack.i.h.bf16 %v11315_v38  ;;  %v11316_v7 = vunpack.i.l.bf16 %v11315_v38  ;;  %v11322_v24 = vunpack.i.h.bf16 %v11320_v16  ;;  %v11321_v1 = vunpack.i.l.bf16 %v11320_v16 }
 0x441   : > { %v8019_v16 = vshll.u32 %v7985_v40, 16  ;;  %v17942_v40 = vld [vmem:[#allocation35_spill] sm:$0xff] }
 0x442   : > { %v6839_v45 = vsel %vm2453_vm7, %v15536_v13, %v11317_v17  ;;  %v6838_v60 = vsel %vm2453_vm7, %v15451_v8, %v11316_v7 }
 0x443   : > { %10629 = vmatmul.mubr.msk.bf16.gmra.mxu1 %vm6924_vm11, %v15873_v0  ;;  %10717 = vmatmul.mubr.msk.bf16.gmra.mxu0 %vm6924_vm11, %v15873_v0  ;;  %v6881_v33 = vsel %vm6845_vm10, %v6839_v45, %v11322_v24  ;;  %v6880_v13 = vsel %vm6845_vm10, %v6838_v60, %v11321_v1  ;;  %v8018_v24 = vrot.slane %v8016_v35, 1  ;;  %v8021_v1 = vrot.slane %v8019_v16, 2  ;;  %v17935_v45 = vld [vmem:[#allocation28_spill] sm:$0xff]  ;;  %v17936_v60 = vld [vmem:[#allocation29_spill] sm:$0xff] }
 0x444   : > { %10632 = vmatprep.mubr.msk.bf16.mxu1 %vm11399_vm6, %v17911_v63  ;;  %10720 = vmatprep.mubr.msk.bf16.mxu0 %vm11399_vm6, %v17911_v63  ;;  %v15937_v59 = vpack.c.bf16 %v6881_v33, %v6880_v13  ;;  %v17944_v35 = vld [vmem:[#allocation37_spill] sm:$0xff] }
 0x448   : > { %v11325_v21 = vpop.permute.xlu0 %11324  ;;  %v11330_v56 = vpop.permute.xlu1 %11329 }
 0x449   : > { %v11327_v61 = vunpack.i.h.bf16 %v11325_v21  ;;  %v11326_v8 = vunpack.i.l.bf16 %v11325_v21  ;;  %v11332_v32 = vunpack.i.h.bf16 %v11330_v56  ;;  %v11331_v39 = vunpack.i.l.bf16 %v11330_v56 }
 0x44a   : > { %v7986_v21 = vpack.c.bf16 %v17936_v60, %v17935_v45  ;;  %v8022_v56 = vor.u32 %v8021_v1, %v8018_v24 }
 0x44b   : > { %10633 = vmatmul.mubr.msk.bf16.gmra.mxu1 %vm6924_vm11, %v15889_v36  ;;  %10721 = vmatmul.mubr.msk.bf16.gmra.mxu0 %vm6924_vm11, %v15889_v36  ;;  %v6841_v23 = vsel %vm2453_vm7, %v15575_v10, %v11327_v61  ;;  %v6840_v34 = vsel %vm2453_vm7, %v15550_v52, %v11326_v8 }
 0x44c   : > { %10636 = vmatprep.mubr.msk.bf16.mxu1 %vm11399_vm6, %v17911_v63  ;;  %10724 = vmatprep.mubr.msk.bf16.mxu0 %vm11399_vm6, %v17911_v63  ;;  %v6883_v62 = vsel %vm6845_vm10, %v6841_v23, %v11332_v32  ;;  %v6882_v10 = vsel %vm6845_vm10, %v6840_v34, %v11331_v39  ;;  %v8025_v61 = vshrl.u32 %v7986_v21, 16  ;;  %v8028_v8 = vshll.u32 %v7986_v21, 16  ;;  %v17937_v34 = vld [vmem:[#allocation30_spill] sm:$0xff] }
 0x44d   : > { %v15953_v57 = vpack.c.bf16 %v6883_v62, %v6882_v10 }
 0x44e   : > { %v8027_v39 = vrot.slane %v8025_v61, 1  ;;  %v8030_v23 = vrot.slane %v8028_v8, 2 }
 0x450   : > { %v11335_v26 = vpop.permute.xlu0 %11334  ;;  %v11340_v48 = vpop.permute.xlu1 %11339  ;;  %v8031_v10 = vor.u32 %v8030_v23, %v8027_v39  ;;  %v17945_v39 = vld [vmem:[#allocation38_spill] sm:$0xff]  ;;  %v17946_v23 = vld [vmem:[#allocation39_spill] sm:$0xff] }
 0x451   : > { %v11337_v49 = vunpack.i.h.bf16 %v11335_v26  ;;  %v11336_v52 = vunpack.i.l.bf16 %v11335_v26  ;;  %v11342_v54 = vunpack.i.h.bf16 %v11340_v48  ;;  %v11341_v42 = vunpack.i.l.bf16 %v11340_v48  ;;  %v17938_v26 = vld [vmem:[#allocation31_spill] sm:$0xff] }
 0x452   : > { %v7987_v62 = vpack.c.bf16 %v17938_v26, %v17937_v34 }
 0x453   : > { %10637 = vmatmul.mubr.msk.bf16.gmra.mxu1 %vm6924_vm11, %v15905_v53  ;;  %10725 = vmatmul.mubr.msk.bf16.gmra.mxu0 %vm6924_vm11, %v15905_v53  ;;  %v6843_v55 = vsel %vm2453_vm7, %v15636_v5, %v11337_v49  ;;  %v6842_v46 = vsel %vm2453_vm7, %v15604_v22, %v11336_v52  ;;  %v17931_v5 = vld [vmem:[#allocation24_spill] sm:$0xff]  ;;  %v8032_v52 = vsel %vm8006_vm12, %v8022_v56, %v8031_v10 }
 0x454   : > { %10640 = vmatprep.mubr.msk.bf16.mxu1 %vm11399_vm6, %v17911_v63  ;;  %10728 = vmatprep.mubr.msk.bf16.mxu0 %vm11399_vm6, %v17911_v63  ;;  %v6885_v47 = vsel %vm6845_vm10, %v6843_v55, %v11342_v54  ;;  %v6884_v15 = vsel %vm6845_vm10, %v6842_v46, %v11341_v42  ;;  %v7984_v51 = vpack.c.bf16 %v17932_v6, %v17931_v5  ;;  %v6558_v22 = vpop.permute.xlu0 %6557  ;;  %v6762_v25 = vpop.permute.xlu1 %6761  ;;  %v8034_v48 = vshrl.u32 %v7987_v62, 16  ;;  %v17939_v55 = vld [vmem:[#allocation32_spill] sm:$0xff]  ;;  %v17940_v46 = vld [vmem:[#allocation33_spill] sm:$0xff] }
 0x455   : > { %v15973_v3 = vpack.c.bf16 %v6885_v47, %v6884_v15  ;;  %v6844_v18 = vsel %vm2453_vm7, %v15631_v12, %v6558_v22  ;;  %v8037_v49 = vshll.u32 %v7987_v62, 16  ;;  %v7988_v47 = vpack.c.bf16 %v17940_v46, %v17939_v55 }
 0x456   : > { %v8008_v38 = vshrl.u32 %v7984_v51, 16  ;;  %v8011_v58 = vshll.u32 %v7984_v51, 16  ;;  %v6886_v17 = vsel %vm6845_vm10, %v6844_v18, %v6762_v25  ;;  %v8036_v54 = vrot.slane %v8034_v48, 1 }
 0x457   : > { %v15988_v33 = vpack.c.bf16 %v6886_v17, %v6886_v17  ;;  %v8039_v42 = vrot.slane %v8037_v49, 2  ;;  %v8043_v15 = vshrl.u32 %v7988_v47, 16  ;;  %v8046_v6 = vshll.u32 %v7988_v47, 16 }
 0x458   : > { %v8010_v7 = vrot.slane %v8008_v38, 1  ;;  %v8013_v12 = vrot.slane %v8011_v58, 2  ;;  %v7989_v25 = vpack.c.bf16 %v17942_v40, %v17941_v29  ;;  %v17943_v58 = vld [vmem:[#allocation36_spill] sm:$0xff] }
 0x459   : > { %v8045_v22 = vrot.slane %v8043_v15, 1  ;;  %v8048_v31 = vrot.slane %v8046_v6, 2  ;;  %v7990_v16 = vpack.c.bf16 %v17944_v35, %v17943_v58 }
 0x45a   : > { %v8014_v13 = vor.u32 %v8013_v12, %v8010_v7  ;;  %v8052_v18 = vshrl.u32 %v7989_v25, 16  ;;  %v8055_v38 = vshll.u32 %v7989_v25, 16 }
 0x45b   : > { %10641 = vmatmul.mubr.msk.bf16.gmra.mxu1 %vm6924_vm11, %v15921_v50  ;;  %10729 = vmatmul.mubr.msk.bf16.gmra.mxu0 %vm6924_vm11, %v15921_v50  ;;  %v8061_v1 = vshrl.u32 %v7990_v16, 16  ;;  %v8064_v45 = vshll.u32 %v7990_v16, 16 }
 0x45c   : > { %10644 = vmatprep.mubr.msk.bf16.mxu1 %vm11399_vm6, %v17911_v63  ;;  %10732 = vmatprep.mubr.msk.bf16.mxu0 %vm11399_vm6, %v17911_v63  ;;  %v8023_v32 = vsel %vm8006_vm12, %v8014_v13, %v8022_v56  ;;  %v8054_v7 = vrot.slane %v8052_v18, 1  ;;  %v8057_v12 = vrot.slane %v8055_v38, 2 }
 0x45d   : > { %v8063_v8 = vrot.slane %v8061_v1, 1 }
 0x45e   : > { %v8058_v13 = vor.u32 %v8057_v12, %v8054_v7 }
 0x463   : > { %10645 = vmatmul.mubr.msk.bf16.gmra.mxu1 %vm6924_vm11, %v15937_v59  ;;  %10733 = vmatmul.mubr.msk.bf16.gmra.mxu0 %vm6924_vm11, %v15937_v59 }
 0x464   : > { %10648 = vmatprep.mubr.msk.bf16.mxu1 %vm11399_vm6, %v17911_v63  ;;  %10736 = vmatprep.mubr.msk.bf16.mxu0 %vm11399_vm6, %v17911_v63 }
 0x46b   : > { %10649 = vmatmul.mubr.msk.bf16.gmra.mxu1 %vm6924_vm11, %v15953_v57  ;;  %10737 = vmatmul.mubr.msk.bf16.gmra.mxu0 %vm6924_vm11, %v15953_v57 }
 0x46c   : > { %10652 = vmatprep.mubr.msk.bf16.mxu1 %vm11399_vm6, %v17911_v63  ;;  %10740 = vmatprep.mubr.msk.bf16.mxu0 %vm11399_vm6, %v17911_v63 }
 0x473   : > { %10653 = vmatmul.mubr.msk.bf16.gmra.mxu1 %vm6924_vm11, %v15973_v3  ;;  %10741 = vmatmul.mubr.msk.bf16.gmra.mxu0 %vm6924_vm11, %v15973_v3 }
 0x474   : > { %10656 = vmatprep.mubr.msk.bf16.mxu1 %vm11399_vm6, %v17911_v63  ;;  %10744 = vmatprep.mubr.msk.bf16.mxu0 %vm11399_vm6, %v17911_v63 }
 0x47b   : > { %10657 = vmatmul.mubr.msk.bf16.gmra.mxu1 %vm6924_vm11, %v15988_v33  ;;  %10745 = vmatmul.mubr.msk.bf16.gmra.mxu0 %vm6924_vm11, %v15988_v33 }
 0x47c   : > { %10752 = vmatprep.mubr.msk.bf16.mxu1 %vm11399_vm6, %v17911_v63  ;;  %10838 = vmatprep.mubr.msk.bf16.mxu0 %vm11399_vm6, %v17911_v63 }
 0x483   : > { %10753 = vmatmul.mubr.msk.bf16.vlgmr.msra.gmra.mxu1 %vm6924_vm11, %v15647_v4  ;;  %10839 = vmatmul.mubr.msk.bf16.vlgmr.msra.gmra.mxu0 %vm280_vm0, %v8023_v32  ;;  %v8040_v4 = vor.u32 %v8039_v42, %v8036_v54  ;;  %v8066_v32 = vrot.slane %v8064_v45, 2 }
 0x484   : > { %10756 = vmatprep.mubr.msk.bf16.mxu1 %vm11399_vm6, %v17911_v63  ;;  %10842 = vmatprep.mubr.msk.bf16.mxu0 %vm11399_vm6, %v17911_v63 }
 0x485   : > { %v8041_v51 = vsel %vm8006_vm12, %v8031_v10, %v8040_v4  ;;  %v8067_v49 = vor.u32 %v8066_v32, %v8063_v8 }
 0x48b   : > { %10757 = vmatmul.mubr.msk.bf16.gmra.mxu1 %vm6924_vm11, %v15676_v19  ;;  %10843 = vmatmul.mubr.msk.bf16.gmra.mxu0 %vm280_vm0, %v8032_v52  ;;  %v8049_v19 = vor.u32 %v8048_v31, %v8045_v22  ;;  %v17947_v22 = vld [vmem:[#allocation40_spill] sm:$0xff]  ;;  %v17948_v31 = vld [vmem:[#allocation42_spill] sm:$0xff] }
 0x48c   : > { %10760 = vmatprep.mubr.msk.bf16.mxu1 %vm11399_vm6, %v17911_v63  ;;  %10846 = vmatprep.mubr.msk.bf16.mxu0 %vm11399_vm6, %v17911_v63  ;;  %v7992_v29 = vpack.c.bf16 %v17948_v31, %v17947_v22  ;;  %v17951_v22 = vld [vmem:[#allocation4_spill] sm:$0xff]  ;;  %v17952_v31 = vld [vmem:[#allocation5_spill] sm:$0xff] }
 0x48d   : > { %v8050_v17 = vsel %vm8006_vm12, %v8040_v4, %v8049_v19  ;;  %v8059_v62 = vsel %vm8006_vm12, %v8049_v19, %v8058_v13  ;;  %v8068_v4 = vsel %vm8006_vm12, %v8058_v13, %v8067_v49 }
 0x48e   : > { %v8082_v7 = vshll.u32 %v7992_v29, 16 }
 0x493   : > { %10761 = vmatmul.mubr.msk.bf16.gmra.mxu1 %vm6924_vm11, %v15697_v27  ;;  %10847 = vmatmul.mubr.msk.bf16.gmra.mxu0 %vm280_vm0, %v8041_v51 }
 0x494   : > { %10764 = vmatprep.mubr.msk.bf16.mxu1 %vm11399_vm6, %v17911_v63  ;;  %10850 = vmatprep.mubr.msk.bf16.mxu0 %vm11399_vm6, %v17911_v63 }
 0x49a   : > { %v7025_v24 = vpop.f32.mrf.mxu1  ;;  %v7379_v27 = vpop.f32.mrf.mxu0 }
 0x49b   : > { %10765 = vmatmul.mubr.msk.bf16.gmra.mxu1 %vm6924_vm11, %v15713_v20  ;;  %10851 = vmatmul.mubr.msk.bf16.gmra.mxu0 %vm280_vm0, %v8050_v17  ;;  %v7991_v20 = vpack.c.bf16 %v17946_v23, %v17945_v39  ;;  %v8079_v17 = vshrl.u32 %v7992_v29, 16  ;;  %v8084_v39 = vrot.slane %v8082_v7, 2  ;;  %v7994_v29 = vpack.c.bf16 %v17952_v31, %v17951_v22 }
 0x49c   : > { %v10578_v60 = vpop.f32.mrf.mxu1  ;;  %v10666_v21 = vpop.f32.mrf.mxu0  ;;  %10768 = vmatprep.mubr.msk.bf16.mxu1 %vm11399_vm6, %v17911_v63  ;;  %10854 = vmatprep.mubr.msk.bf16.mxu0 %vm11399_vm6, %v17911_v63 }
 0x49d   : > { %v8070_v52 = vshrl.u32 %v7991_v20, 16  ;;  %v8073_v54 = vshll.u32 %v7991_v20, 16  ;;  %v17949_v60 = vld [vmem:[#allocation41_spill] sm:$0xff]  ;;  %v17950_v21 = vld [vmem:[#allocation43_spill] sm:$0xff]  ;;  %v8081_v32 = vrot.slane %v8079_v17, 1 }
 0x49e   : > { %v7027_v56 = vpop.f32.mrf.mxu1  ;;  %v7382_v61 = vpop.f32.mrf.mxu0  ;;  %v7993_v13 = vpack.c.bf16 %v17950_v21, %v17949_v60 }
 0x49f   : > { %v8072_v15 = vrot.slane %v8070_v52, 1  ;;  %v8075_v51 = vrot.slane %v8073_v54, 2 }
 0x4a0   : > { %v10579_v34 = vpop.f32.mrf.mxu1  ;;  %v10667_v26 = vpop.f32.mrf.mxu0  ;;  %v8091_v52 = vshll.u32 %v7993_v13, 16 }
 0x4a1   : > { %v8076_v16 = vor.u32 %v8075_v51, %v8072_v15 }
 0x4a3   : > { %v7031_v10 = vpop.f32.mrf.mxu1  ;;  %v7387_v48 = vpop.f32.mrf.mxu0  ;;  %10769 = vmatmul.mubr.msk.bf16.gmra.mxu1 %vm6924_vm11, %v15729_v14  ;;  %10855 = vmatmul.mubr.msk.bf16.gmra.mxu0 %vm280_vm0, %v8059_v62  ;;  %v8077_v8 = vsel %vm8006_vm12, %v8067_v49, %v8076_v16  ;;  %v8085_v49 = vor.u32 %v8084_v39, %v8081_v32  ;;  %v17953_v32 = vld [vmem:[#allocation6_spill] sm:$0xff]  ;;  %v17954_v39 = vld [vmem:[#allocation7_spill] sm:$0xff] }
 0x4a4   : > { %10772 = vmatprep.mubr.msk.bf16.mxu1 %vm11399_vm6, %v17911_v63  ;;  %10858 = vmatprep.mubr.msk.bf16.mxu0 %vm11399_vm6, %v17911_v63  ;;  %v7233_v6 = vrot.slane %v7031_v10, 2 }
 0x4a5   : > { %v10582_v42 = vpop.f32.mrf.mxu1  ;;  %v10670_v55 = vpop.f32.mrf.mxu0  ;;  %v8086_v51 = vsel %vm8006_vm12, %v8076_v16, %v8085_v49  ;;  %v8097_v16 = vshrl.u32 %v7994_v29, 16 }
 0x4a7   : > { %v7034_v46 = vpop.f32.mrf.mxu1  ;;  %v7390_v47 = vpop.f32.mrf.mxu0 }
 0x4a8   : > { %v7234_v14 = vrot.slane %v7034_v46, 2 }
 0x4a9   : > { %v10583_v40 = vpop.f32.mrf.mxu1  ;;  %v10671_v25 = vpop.f32.mrf.mxu0 }
 0x4aa   : > { %v7235_v19 = vsel %vm2207_vm4, %v7233_v6, %v7234_v14  ;;  %v8093_v6 = vrot.slane %v8091_v52, 2 }
 0x4ab   : > { %v16052_v18 = vadd.f32 %v7379_v27, %v7235_v19  ;;  %v7039_v38 = vpop.f32.mrf.mxu1  ;;  %v7395_v58 = vpop.f32.mrf.mxu0  ;;  %10773 = vmatmul.mubr.msk.bf16.gmra.mxu1 %vm6924_vm11, %v15745_v37  ;;  %10859 = vmatmul.mubr.msk.bf16.gmra.mxu0 %vm280_vm0, %v8068_v4 }
 0x4ac   : > { %v7236_v35 = vrot.slane %v7039_v38, 2  ;;  %10776 = vmatprep.mubr.msk.bf16.mxu1 %vm11399_vm6, %v17911_v63  ;;  %10862 = vmatprep.mubr.msk.bf16.mxu0 %vm11399_vm6, %v17911_v63 }
 0x4ad   : > { %v10586_v12 = vpop.f32.mrf.mxu1  ;;  %v10674_v24 = vpop.f32.mrf.mxu0 }
 0x4ae   : > { %v7237_v27 = vsel %vm2207_vm4, %v7234_v14, %v7236_v35  ;;  %v8100_v12 = vshll.u32 %v7994_v29, 16 }
 0x4af   : > { %v16062_v1 = vadd.f32 %v7382_v61, %v7237_v27  ;;  %v7042_v45 = vpop.f32.mrf.mxu1  ;;  %v7398_v37 = vpop.f32.mrf.mxu0  ;;  %v8088_v61 = vshrl.u32 %v7993_v13, 16 }
 0x4b0   : > { %v7238_v56 = vrot.slane %v7042_v45, 2 }
 0x4b1   : > { %v10587_v23 = vpop.f32.mrf.mxu1  ;;  %v10675_v20 = vpop.f32.mrf.mxu0  ;;  %v8090_v15 = vrot.slane %v8088_v61, 1 }
 0x4b2   : > { %v7239_v34 = vsel %vm2207_vm4, %v7236_v35, %v7238_v56  ;;  %v7995_v23 = vpack.c.bf16 %v17954_v39, %v17953_v32 }
 0x4b3   : > { %v16068_v26 = vadd.f32 %v7387_v48, %v7239_v34  ;;  %v7047_v62 = vpop.f32.mrf.mxu1  ;;  %v7403_v10 = vpop.f32.mrf.mxu0  ;;  %10777 = vmatmul.mubr.msk.bf16.gmra.mxu1 %vm6924_vm11, %v15761_v28  ;;  %10863 = vmatmul.mubr.msk.bf16.gmra.mxu0 %vm280_vm0, %v8077_v8  ;;  %v8102_v8 = vrot.slane %v8100_v12, 2 }
 0x4b4   : > { %v7240_v54 = vrot.slane %v7047_v62, 2  ;;  %10780 = vmatprep.mubr.msk.bf16.mxu1 %vm11399_vm6, %v17911_v63  ;;  %10866 = vmatprep.mubr.msk.bf16.mxu0 %vm11399_vm6, %v17911_v63 }
 0x4b5   : > { %v10590_v42 = vpop.f32.mrf.mxu1  ;;  %v10678_v48 = vpop.f32.mrf.mxu0 }
 0x4b6   : > { %v7241_v55 = vsel %vm2207_vm4, %v7238_v56, %v7240_v54  ;;  %v8099_v56 = vrot.slane %v8097_v16, 1  ;;  %v8106_v42 = vshrl.u32 %v7995_v23, 16  ;;  %v8109_v48 = vshll.u32 %v7995_v23, 16 }
 0x4b7   : > { %v16078_v46 = vadd.f32 %v7390_v47, %v7241_v55  ;;  %v7050_v4 = vpop.f32.mrf.mxu1  ;;  %v7406_v28 = vpop.f32.mrf.mxu0  ;;  %v8094_v47 = vor.u32 %v8093_v6, %v8090_v15 }
 0x4b8   : > { %v7242_v14 = vrot.slane %v7050_v4, 2 }
 0x4b9   : > { %v10591_v40 = vpop.f32.mrf.mxu1  ;;  %v10679_v25 = vpop.f32.mrf.mxu0  ;;  %v8095_v21 = vsel %vm8006_vm12, %v8085_v49, %v8094_v47  ;;  %v8103_v49 = vor.u32 %v8102_v8, %v8099_v56 }
 0x4ba   : > { %v7243_v19 = vsel %vm2207_vm4, %v7240_v54, %v7242_v14  ;;  %v8108_v40 = vrot.slane %v8106_v42, 1  ;;  %v8111_v25 = vrot.slane %v8109_v48, 2 }
 0x4bb   : > { %v16084_v38 = vadd.f32 %v7395_v58, %v7243_v19  ;;  %v7055_v35 = vpop.f32.mrf.mxu1  ;;  %v7411_v17 = vpop.f32.mrf.mxu0  ;;  %10781 = vmatmul.mubr.msk.bf16.gmra.mxu1 %vm6924_vm11, %v15777_v41  ;;  %10867 = vmatmul.mubr.msk.bf16.gmra.mxu0 %vm280_vm0, %v8086_v51  ;;  %v17956_v51 = vld [vmem:[#allocation9_spill] sm:$0xff]  ;;  %v8104_v29 = vsel %vm8006_vm12, %v8094_v47, %v8103_v49 }
 0x4bc   : > { %v7244_v7 = vrot.slane %v7055_v35, 2  ;;  %10784 = vmatprep.mubr.msk.bf16.mxu1 %vm11399_vm6, %v17911_v63  ;;  %10870 = vmatprep.mubr.msk.bf16.mxu0 %vm11399_vm6, %v17911_v63  ;;  %v8112_v47 = vor.u32 %v8111_v25, %v8108_v40 }
 0x4bd   : > { %v10594_v24 = vpop.f32.mrf.mxu1  ;;  %v10682_v58 = vpop.f32.mrf.mxu0 }
 0x4be   : > { %v7245_v27 = vsel %vm2207_vm4, %v7242_v14, %v7244_v7  ;;  %v17955_v14 = vld [vmem:[#allocation8_spill] sm:$0xff]  ;;  %v8113_v23 = vsel %vm8006_vm12, %v8103_v49, %v8112_v47 }
 0x4bf   : > { %v16094_v45 = vadd.f32 %v7398_v37, %v7245_v27  ;;  %v7058_v60 = vpop.f32.mrf.mxu1  ;;  %v7414_v41 = vpop.f32.mrf.mxu0  ;;  %v7996_v22 = vpack.c.bf16 %v17956_v51, %v17955_v14 }
 0x4c0   : > { %v7246_v13 = vrot.slane %v7058_v60, 2 }
 0x4c1   : > { %v10595_v20 = vpop.f32.mrf.mxu1  ;;  %v10683_v34 = vpop.f32.mrf.mxu0  ;;  %v8118_v58 = vshll.u32 %v7996_v22, 16 }
 0x4c2   : > { %v7247_v62 = vsel %vm2207_vm4, %v7244_v7, %v7246_v13  ;;  %v17957_v20 = vld [vmem:[#allocation10_spill] sm:$0xff]  ;;  %v17958_v34 = vld [vmem:[#allocation11_spill] sm:$0xff] }
 0x4c3   : > { %v16100_v61 = vadd.f32 %v7403_v10, %v7247_v62  ;;  %v7063_v52 = vpop.f32.mrf.mxu1  ;;  %v7419_v54 = vpop.f32.mrf.mxu0  ;;  %10785 = vmatmul.mubr.msk.bf16.gmra.mxu1 %vm6924_vm11, %v15793_v43  ;;  %10871 = vmatmul.mubr.msk.bf16.gmra.mxu0 %vm280_vm0, %v8095_v21  ;;  %v8120_v32 = vrot.slane %v8118_v58, 2  ;;  %v7997_v62 = vpack.c.bf16 %v17958_v34, %v17957_v20  ;;  %v17961_v34 = vld [vmem:[#allocation14_spill] sm:$0xff] }
 0x4c4   : > { %v7248_v37 = vrot.slane %v7063_v52, 2  ;;  %10788 = vmatprep.mubr.msk.bf16.mxu1 %vm11399_vm6, %v17911_v63  ;;  %10874 = vmatprep.mubr.msk.bf16.mxu0 %vm11399_vm6, %v17911_v63 }
 0x4c5   : > { %v10598_v55 = vpop.f32.mrf.mxu1  ;;  %v10686_v10 = vpop.f32.mrf.mxu0  ;;  %v8124_v49 = vshrl.u32 %v7997_v62, 16 }
 0x4c6   : > { %v7249_v4 = vsel %vm2207_vm4, %v7246_v13, %v7248_v37 }
 0x4c7   : > { %v16110_v15 = vadd.f32 %v7406_v28, %v7249_v4  ;;  %v7066_v6 = vpop.f32.mrf.mxu1  ;;  %v7422_v43 = vpop.f32.mrf.mxu0  ;;  %v8115_v28 = vshrl.u32 %v7996_v22, 16  ;;  %v8126_v25 = vrot.slane %v8124_v49, 1 }
 0x4c8   : > { %v7250_v31 = vrot.slane %v7066_v6, 2  ;;  %v8127_v6 = vshll.u32 %v7997_v62, 16  ;;  %v17962_v62 = vld [vmem:[#allocation15_spill] sm:$0xff] }
 0x4c9   : > { %v10599_v19 = vpop.f32.mrf.mxu1  ;;  %v10687_v35 = vpop.f32.mrf.mxu0  ;;  %v8117_v8 = vrot.slane %v8115_v28, 1 }
 0x4ca   : > { %v7251_v7 = vsel %vm2207_vm4, %v7248_v37, %v7250_v31  ;;  %v8129_v19 = vrot.slane %v8127_v6, 2  ;;  %v17959_v35 = vld [vmem:[#allocation12_spill] sm:$0xff] }
 0x4cb   : > { %v16116_v16 = vadd.f32 %v7411_v17, %v7251_v7  ;;  %v7071_v12 = vpop.f32.mrf.mxu1  ;;  %v7427_v24 = vpop.f32.mrf.mxu0  ;;  %10789 = vmatmul.mubr.msk.bf16.gmra.mxu1 %vm6924_vm11, %v15809_v2  ;;  %10875 = vmatmul.mubr.msk.bf16.gmra.mxu0 %vm280_vm0, %v8104_v29  ;;  %v17960_v7 = vld [vmem:[#allocation13_spill] sm:$0xff] }
 0x4cc   : > { %v7252_v27 = vrot.slane %v7071_v12, 2  ;;  %10792 = vmatprep.mubr.msk.bf16.mxu1 %vm11399_vm6, %v17911_v63  ;;  %10878 = vmatprep.mubr.msk.bf16.mxu0 %vm11399_vm6, %v17911_v63  ;;  %v7998_v12 = vpack.c.bf16 %v17960_v7, %v17959_v35 }
 0x4cd   : > { %v10602_v60 = vpop.f32.mrf.mxu1  ;;  %v10690_v17 = vpop.f32.mrf.mxu0 }
 0x4ce   : > { %v7253_v21 = vsel %vm2207_vm4, %v7250_v31, %v7252_v27 }
 0x4cf   : > { %v16126_v13 = vadd.f32 %v7414_v41, %v7253_v21  ;;  %v7074_v56 = vpop.f32.mrf.mxu1  ;;  %v7430_v2 = vpop.f32.mrf.mxu0  ;;  %v8121_v41 = vor.u32 %v8120_v32, %v8117_v8  ;;  %v8136_v8 = vshll.u32 %v7998_v12, 16 }
 0x4d0   : > { %v7254_v39 = vrot.slane %v7074_v56, 2  ;;  %v8133_v56 = vshrl.u32 %v7998_v12, 16 }
 0x4d1   : > { %v10603_v52 = vpop.f32.mrf.mxu1  ;;  %v10691_v37 = vpop.f32.mrf.mxu0  ;;  %v8122_v29 = vsel %vm8006_vm12, %v8112_v47, %v8121_v41  ;;  %v8130_v47 = vor.u32 %v8129_v19, %v8126_v25 }
 0x4d2   : > { %v7255_v42 = vsel %vm2207_vm4, %v7252_v27, %v7254_v39  ;;  %v7999_v52 = vpack.c.bf16 %v17962_v62, %v17961_v34 }
 0x4d3   : > { %v16132_v48 = vadd.f32 %v7419_v54, %v7255_v42  ;;  %v7079_v55 = vpop.f32.mrf.mxu1  ;;  %v7435_v10 = vpop.f32.mrf.mxu0  ;;  %10793 = vmatmul.mubr.msk.bf16.gmra.mxu1 %vm6924_vm11, %v15825_v44  ;;  %10879 = vmatmul.mubr.msk.bf16.gmra.mxu0 %vm280_vm0, %v8113_v23  ;;  %v8131_v42 = vsel %vm8006_vm12, %v8121_v41, %v8130_v47 }
 0x4d4   : > { %v7256_v4 = vrot.slane %v7079_v55, 2  ;;  %10796 = vmatprep.mubr.msk.bf16.mxu1 %vm11399_vm6, %v17911_v63  ;;  %10882 = vmatprep.mubr.msk.bf16.mxu0 %vm11399_vm6, %v17911_v63  ;;  %v8135_v55 = vrot.slane %v8133_v56, 1 }
 0x4d5   : > { %v10606_v14 = vpop.f32.mrf.mxu1  ;;  %v10694_v54 = vpop.f32.mrf.mxu0 }
 0x4d6   : > { %v7257_v51 = vsel %vm2207_vm4, %v7254_v39, %v7256_v4 }
 0x4d7   : > { %v16142_v22 = vadd.f32 %v7422_v43, %v7257_v51  ;;  %v7082_v31 = vpop.f32.mrf.mxu1  ;;  %v7438_v44 = vpop.f32.mrf.mxu0 }
 0x4d8   : > { %v7258_v40 = vrot.slane %v7082_v31, 2 }
 0x4d9   : > { %v10607_v28 = vpop.f32.mrf.mxu1  ;;  %v10695_v58 = vpop.f32.mrf.mxu0 }
 0x4da   : > { %v7259_v27 = vsel %vm2207_vm4, %v7256_v4, %v7258_v40  ;;  %v8138_v4 = vrot.slane %v8136_v8, 2 }
 0x4db   : > { %v16148_v60 = vadd.f32 %v7427_v24, %v7259_v27  ;;  %v7087_v17 = vpop.f32.mrf.mxu1  ;;  %v7443_v21 = vpop.f32.mrf.mxu0  ;;  %10797 = vmatmul.mubr.msk.bf16.gmra.mxu1 %vm6924_vm11, %v15841_v30  ;;  %10883 = vmatmul.mubr.msk.bf16.gmra.mxu0 %vm280_vm0, %v8122_v29  ;;  %v8145_v29 = vshll.u32 %v7999_v52, 16 }
 0x4dc   : > { %v7260_v43 = vrot.slane %v7087_v17, 2  ;;  %10800 = vmatprep.mubr.msk.bf16.mxu1 %vm11399_vm6, %v17911_v63  ;;  %10886 = vmatprep.mubr.msk.bf16.mxu0 %vm11399_vm6, %v17911_v63  ;;  %v8139_v41 = vor.u32 %v8138_v4, %v8135_v55  ;;  %v17963_v17 = vld [vmem:[#allocation16_spill] sm:$0xff] }
 0x4dd   : > { %v10610_v32 = vpop.f32.mrf.mxu1  ;;  %v10698_v24 = vpop.f32.mrf.mxu0  ;;  %v8147_v28 = vrot.slane %v8145_v29, 2  ;;  %v17966_v29 = vld [vmem:[#allocation20_spill] sm:$0xff] }
 0x4de   : > { %v7261_v39 = vsel %vm2207_vm4, %v7258_v40, %v7260_v43  ;;  %v8140_v27 = vsel %vm8006_vm12, %v8130_v47, %v8139_v41 }
 0x4df   : > { %v16158_v23 = vadd.f32 %v7430_v2, %v7261_v39  ;;  %v7090_v20 = vpop.f32.mrf.mxu1  ;;  %v7446_v30 = vpop.f32.mrf.mxu0  ;;  %v8142_v2 = vshrl.u32 %v7999_v52, 16 }
 0x4e0   : > { %v7262_v37 = vrot.slane %v7090_v20, 2 }
 0x4e1   : > { %v10611_v49 = vpop.f32.mrf.mxu1  ;;  %v10699_v6 = vpop.f32.mrf.mxu0  ;;  %v8144_v12 = vrot.slane %v8142_v2, 1  ;;  %v17965_v2 = vld [vmem:[#allocation18_spill] sm:$0xff] }
 0x4e2   : > { %v7263_v14 = vsel %vm2207_vm4, %v7260_v43, %v7262_v37  ;;  %v17964_v43 = vld [vmem:[#allocation17_spill] sm:$0xff] }
 0x4e3   : > { %v16164_v54 = vadd.f32 %v7435_v10, %v7263_v14  ;;  %v7095_v51 = vpop.f32.mrf.mxu1  ;;  %v7451_v31 = vpop.f32.mrf.mxu0  ;;  %10801 = vmatmul.mubr.msk.bf16.gmra.mxu1 %vm6924_vm11, %v15857_v11  ;;  %10887 = vmatmul.mubr.msk.bf16.gmra.mxu0 %vm280_vm0, %v8131_v42  ;;  %v8000_v56 = vpack.c.bf16 %v17964_v43, %v17963_v17 }
 0x4e4   : > { %v7264_v40 = vrot.slane %v7095_v51, 2  ;;  %10804 = vmatprep.mubr.msk.bf16.mxu1 %vm11399_vm6, %v17911_v63  ;;  %10890 = vmatprep.mubr.msk.bf16.mxu0 %vm11399_vm6, %v17911_v63 }
 0x4e5   : > { %v10614_v25 = vpop.f32.mrf.mxu1  ;;  %v10702_v10 = vpop.f32.mrf.mxu0  ;;  %v8151_v47 = vshrl.u32 %v8000_v56, 16  ;;  %v8154_v52 = vshll.u32 %v8000_v56, 16 }
 0x4e6   : > { %v7265_v19 = vsel %vm2207_vm4, %v7262_v37, %v7264_v40 }
 0x4e7   : > { %v16174_v35 = vadd.f32 %v7438_v44, %v7265_v19  ;;  %v7098_v7 = vpop.f32.mrf.mxu1  ;;  %v7454_v11 = vpop.f32.mrf.mxu0  ;;  %v8148_v44 = vor.u32 %v8147_v28, %v8144_v12  ;;  %v8153_v14 = vrot.slane %v8151_v47, 1  ;;  %v8156_v51 = vrot.slane %v8154_v52, 2 }
 0x4e8   : > { %v7266_v58 = vrot.slane %v7098_v7, 2 }
 0x4e9   : > { %v10615_v8 = vpop.f32.mrf.mxu1  ;;  %v10703_v32 = vpop.f32.mrf.mxu0  ;;  %v8149_v49 = vsel %vm8006_vm12, %v8139_v41, %v8148_v44  ;;  %v8157_v41 = vor.u32 %v8156_v51, %v8153_v14 }
 0x4ea   : > { %v7267_v24 = vsel %vm2207_vm4, %v7264_v40, %v7266_v58  ;;  %v8001_v40 = vpack.c.bf16 %v17966_v29, %v17965_v2  ;;  %v17967_v32 = vld [vmem:[#allocation19_spill] sm:$0xff] }
 0x4eb   : > { %v16180_v39 = vadd.f32 %v7443_v21, %v7267_v24  ;;  %v7103_v20 = vpop.f32.mrf.mxu1  ;;  %v7459_v34 = vpop.f32.mrf.mxu0  ;;  %10805 = vmatmul.mubr.msk.bf16.gmra.mxu1 %vm6924_vm11, %v15873_v0  ;;  %10891 = vmatmul.mubr.msk.bf16.gmra.mxu0 %vm280_vm0, %v8140_v27  ;;  %v17968_v24 = vld [vmem:[#allocation22_spill] sm:$0xff]  ;;  %v8158_v47 = vsel %vm8006_vm12, %v8148_v44, %v8157_v41 }
 0x4ec   : > { %v7268_v62 = vrot.slane %v7103_v20, 2  ;;  %10808 = vmatprep.mubr.msk.bf16.mxu1 %vm11399_vm6, %v17911_v63  ;;  %10894 = vmatprep.mubr.msk.bf16.mxu0 %vm11399_vm6, %v17911_v63  ;;  %v8163_v27 = vshll.u32 %v8001_v40, 16  ;;  %v8002_v20 = vpack.c.bf16 %v17968_v24, %v17967_v32 }
 0x4ed   : > { %v10618_v37 = vpop.f32.mrf.mxu1  ;;  %v10706_v21 = vpop.f32.mrf.mxu0 }
 0x4ee   : > { %v7269_v42 = vsel %vm2207_vm4, %v7266_v58, %v7268_v62  ;;  %v8160_v58 = vshrl.u32 %v8001_v40, 16  ;;  %v8165_v37 = vrot.slane %v8163_v27, 2  ;;  %v8172_v51 = vshll.u32 %v8002_v20, 16 }
 0x4ef   : > { %v16190_v55 = vadd.f32 %v7446_v30, %v7269_v42  ;;  %v7106_v4 = vpop.f32.mrf.mxu1  ;;  %v7462_v0 = vpop.f32.mrf.mxu0 }
 0x4f0   : > { %v7270_v6 = vrot.slane %v7106_v4, 2  ;;  %v8162_v52 = vrot.slane %v8160_v58, 1 }
 0x4f1   : > { %v10619_v25 = vpop.f32.mrf.mxu1  ;;  %v10707_v10 = vpop.f32.mrf.mxu0 }
 0x4f2   : > { %v7271_v19 = vsel %vm2207_vm4, %v7268_v62, %v7270_v6  ;;  %v8166_v44 = vor.u32 %v8165_v37, %v8162_v52  ;;  %v17970_v52 = vld [vmem:[#allocation21_spill] sm:$0xff] }
 0x4f3   : > { %v16196_v7 = vadd.f32 %v7451_v31, %v7271_v19  ;;  %v7111_v12 = vpop.f32.mrf.mxu1  ;;  %v7467_v28 = vpop.f32.mrf.mxu0  ;;  %10809 = vmatmul.mubr.msk.bf16.gmra.mxu1 %vm6924_vm11, %v15889_v36  ;;  %10895 = vmatmul.mubr.msk.bf16.gmra.mxu0 %vm280_vm0, %v8149_v49  ;;  %v17971_v37 = vrot.slane %v17970_v52, 4 }
 0x4f4   : > { %v7272_v30 = vrot.slane %v7111_v12, 2  ;;  %10812 = vmatprep.mubr.msk.bf16.mxu1 %vm11399_vm6, %v17911_v63  ;;  %10898 = vmatprep.mubr.msk.bf16.mxu0 %vm11399_vm6, %v17911_v63  ;;  %v8174_v12 = vrot.slane %v8172_v51, 2  ;;  %v8167_v58 = vsel %vm8006_vm12, %v8157_v41, %v8166_v44 }
 0x4f5   : > { %v10622_v17 = vpop.f32.mrf.mxu1  ;;  %v10710_v31 = vpop.f32.mrf.mxu0 }
 0x4f6   : > { %v7273_v43 = vsel %vm2207_vm4, %v7270_v6, %v7272_v30  ;;  %v7981_v31 = vrot.slane %v17931_v5, 4  ;;  %v17969_v5 = vld [vmem:[#allocation23_spill] sm:$0xff] }
 0x4f7   : > { %v16206_v56 = vadd.f32 %v7454_v11, %v7273_v43  ;;  %v7114_v8 = vpop.f32.mrf.mxu1  ;;  %v7470_v36 = vpop.f32.mrf.mxu0  ;;  %v8169_v11 = vshrl.u32 %v8002_v20, 16  ;;  %v8178_v41 = vshrl.u32 %v17969_v5, 16 }
 0x4f8   : > { %v7274_v62 = vrot.slane %v7114_v8, 2 }
 0x4f9   : > { %v10623_v21 = vpop.f32.mrf.mxu1  ;;  %v10711_v42 = vpop.f32.mrf.mxu0  ;;  %v8171_v19 = vrot.slane %v8169_v11, 1 }
 0x4fa   : > { %v7275_v4 = vsel %vm2207_vm4, %v7272_v30, %v7274_v62 }
 0x4fb   : > { %v16212_v49 = vadd.f32 %v7459_v34, %v7275_v4  ;;  %v7119_v14 = vpop.f32.mrf.mxu1  ;;  %v7475_v6 = vpop.f32.mrf.mxu0  ;;  %10813 = vmatmul.mubr.msk.bf16.gmra.mxu1 %vm6924_vm11, %v15905_v53  ;;  %10899 = vmatmul.mubr.msk.bf16.gmra.mxu0 %vm280_vm0, %v8158_v47 }
 0x4fc   : > { %v7276_v2 = vrot.slane %v7119_v14, 2  ;;  %10816 = vmatprep.mubr.msk.bf16.mxu1 %vm11399_vm6, %v17911_v63  ;;  %10902 = vmatprep.mubr.msk.bf16.mxu0 %vm11399_vm6, %v17911_v63 }
 0x4fd   : > { %v10626_v29 = vpop.f32.mrf.mxu1  ;;  %v10714_v34 = vpop.f32.mrf.mxu0 }
 0x4fe   : > { %v7277_v40 = vsel %vm2207_vm4, %v7274_v62, %v7276_v2 }
 0x4ff   : > { %v16222_v25 = vadd.f32 %v7462_v0, %v7277_v40  ;;  %v7122_v10 = vpop.f32.mrf.mxu1  ;;  %v7478_v53 = vpop.f32.mrf.mxu0  ;;  %v8175_v0 = vor.u32 %v8174_v12, %v8171_v19 }
 0x500   : > { %v7278_v30 = vrot.slane %v7122_v10, 2 }
 0x501   : > { %v10627_v27 = vpop.f32.mrf.mxu1  ;;  %v10715_v17 = vpop.f32.mrf.mxu0  ;;  %v8176_v11 = vsel %vm8006_vm12, %v8166_v44, %v8175_v0 }
 0x502   : > { %v7279_v43 = vsel %vm2207_vm4, %v7276_v2, %v7278_v30  ;;  %v8180_v2 = vrot.slane %v8178_v41, 1 }
 0x503   : > { %v16227_v8 = vadd.f32 %v7467_v28, %v7279_v43  ;;  %v7127_v32 = vpop.f32.mrf.mxu1  ;;  %v7483_v24 = vpop.f32.mrf.mxu0  ;;  %10817 = vmatmul.mubr.msk.bf16.gmra.mxu1 %vm6924_vm11, %v15921_v50  ;;  %10903 = vmatmul.mubr.msk.bf16.gmra.mxu0 %vm280_vm0, %v8167_v58  ;;  %v8181_v28 = vshll.u32 %v17969_v5, 16  ;;  %v7983_v50 = vsel %vm1959_vm5, %v7981_v31, %v17971_v37 }
 0x504   : > { %v7280_v20 = vrot.slane %v7127_v32, 2  ;;  %10820 = vmatprep.mubr.msk.bf16.mxu1 %vm11399_vm6, %v17911_v63  ;;  %10906 = vmatprep.mubr.msk.bf16.mxu0 %vm11399_vm6, %v17911_v63  ;;  %v8004_v34 = vpack.c.bf16 %v7983_v50, %v7983_v50 }
 0x505   : > { %v10630_v62 = vpop.f32.mrf.mxu1  ;;  %v10718_v47 = vpop.f32.mrf.mxu0  ;;  %v8183_v29 = vrot.slane %v8181_v28, 2 }
 0x506   : > { %v7281_v21 = vsel %vm2207_vm4, %v7278_v30, %v7280_v20  ;;  %v8187_v30 = vshrl.u32 %v8004_v34, 16  ;;  %v8190_v17 = vshll.u32 %v8004_v34, 16 }
 0x507   : > { %v16242_v42 = vadd.f32 %v7470_v36, %v7281_v21  ;;  %v7130_v4 = vpop.f32.mrf.mxu1  ;;  %v7486_v14 = vpop.f32.mrf.mxu0  ;;  %v8184_v44 = vor.u32 %v8183_v29, %v8180_v2 }
 0x508   : > { %v7282_v51 = vrot.slane %v7130_v4, 2  ;;  %v8189_v28 = vrot.slane %v8187_v30, 1  ;;  %v8192_v62 = vrot.slane %v8190_v17, 2 }
 0x509   : > { %v10631_v40 = vpop.f32.mrf.mxu1  ;;  %v10719_v10 = vpop.f32.mrf.mxu0  ;;  %v8185_v41 = vsel %vm8006_vm12, %v8175_v0, %v8184_v44 }
 0x50a   : > { %v7283_v19 = vsel %vm2207_vm4, %v7280_v20, %v7282_v51  ;;  %v8193_v0 = vor.u32 %v8192_v62, %v8189_v28 }
 0x50b   : > { %v16246_v12 = vadd.f32 %v7475_v6, %v7283_v19  ;;  %v7135_v58 = vpop.f32.mrf.mxu1  ;;  %v7491_v27 = vpop.f32.mrf.mxu0  ;;  %10821 = vmatmul.mubr.msk.bf16.gmra.mxu1 %vm6924_vm11, %v15937_v59  ;;  %10907 = vmatmul.mubr.msk.bf16.gmra.mxu0 %vm280_vm0, %v8176_v11 }
 0x50c   : > { %v7284_v36 = vrot.slane %v7135_v58, 2  ;;  %10824 = vmatprep.mubr.msk.bf16.mxu1 %vm11399_vm6, %v17911_v63  ;;  %10910 = vmatprep.mubr.msk.bf16.mxu0 %vm11399_vm6, %v17911_v63 }
 0x50d   : > { %v10634_v31 = vpop.f32.mrf.mxu1  ;;  %v10722_v6 = vpop.f32.mrf.mxu0 }
 0x50e   : > { %v7285_v43 = vsel %vm2207_vm4, %v7282_v51, %v7284_v36 }
 0x50f   : > { %v16256_v32 = vadd.f32 %v7478_v53, %v7285_v43  ;;  %v7138_v20 = vpop.f32.mrf.mxu1  ;;  %v7494_v59 = vpop.f32.mrf.mxu0 }
 0x510   : > { %v7286_v5 = vrot.slane %v7138_v20, 2 }
 0x511   : > { %v10635_v47 = vpop.f32.mrf.mxu1  ;;  %v10723_v52 = vpop.f32.mrf.mxu0 }
 0x512   : > { %v7287_v37 = vsel %vm2207_vm4, %v7284_v36, %v7286_v5 }
 0x513   : > { %v16260_v50 = vadd.f32 %v7483_v24, %v7287_v37  ;;  %v7143_v21 = vpop.f32.mrf.mxu1  ;;  %v7499_v4 = vpop.f32.mrf.mxu0  ;;  %10825 = vmatmul.mubr.msk.bf16.gmra.mxu1 %vm6924_vm11, %v15953_v57  ;;  %10911 = vmatmul.mubr.msk.bf16.gmra.mxu0 %vm280_vm0, %v8185_v41  ;;  %v8194_v57 = vsel %vm8006_vm12, %v8184_v44, %v8193_v0 }
 0x514   : > { %v7288_v53 = vrot.slane %v7143_v21, 2  ;;  %10828 = vmatprep.mubr.msk.bf16.mxu1 %vm11399_vm6, %v17911_v63  ;;  %10914 = vmatprep.mubr.msk.bf16.mxu0 %vm11399_vm6, %v17911_v63 }
 0x515   : > { %v10638_v11 = vpop.f32.mrf.mxu1  ;;  %v10726_v51 = vpop.f32.mrf.mxu0 }
 0x516   : > { %v7289_v24 = vsel %vm2207_vm4, %v7286_v5, %v7288_v53 }
 0x517   : > { %v16270_v2 = vadd.f32 %v7486_v14, %v7289_v24  ;;  %v7146_v29 = vpop.f32.mrf.mxu1  ;;  %v7502_v34 = vpop.f32.mrf.mxu0 }
 0x518   : > { %v7290_v40 = vrot.slane %v7146_v29, 2 }
 0x519   : > { %v10639_v10 = vpop.f32.mrf.mxu1  ;;  %v10727_v19 = vpop.f32.mrf.mxu0 }
 0x51a   : > { %v7291_v58 = vsel %vm2207_vm4, %v7288_v53, %v7290_v40 }
 0x51b   : > { %v16274_v36 = vadd.f32 %v7491_v27, %v7291_v58  ;;  %v7151_v30 = vpop.f32.mrf.mxu1  ;;  %v7507_v17 = vpop.f32.mrf.mxu0  ;;  %10829 = vmatmul.mubr.msk.bf16.gmra.mxu1 %vm6924_vm11, %v15973_v3  ;;  %10915 = vmatmul.mubr.msk.bf16.gmra.mxu0 %vm280_vm0, %v8194_v57 }
 0x51c   : > { %v7292_v14 = vrot.slane %v7151_v30, 2  ;;  %10832 = vmatprep.mubr.msk.bf16.mxu1 %vm11399_vm6, %v17911_v63  ;;  %10918 = vmatprep.mubr.msk.bf16.mxu0 %vm11399_vm6, %v17911_v63 }
 0x51d   : > { %v10642_v44 = vpop.f32.mrf.mxu1  ;;  %v10730_v31 = vpop.f32.mrf.mxu0 }
 0x51e   : > { %v7293_v6 = vsel %vm2207_vm4, %v7290_v40, %v7292_v14 }
 0x51f   : > { %v16284_v27 = vadd.f32 %v7494_v59, %v7293_v6  ;;  %v7154_v43 = vpop.f32.mrf.mxu1  ;;  %v7510_v20 = vpop.f32.mrf.mxu0 }
 0x520   : > { %v7294_v5 = vrot.slane %v7154_v43, 2 }
 0x521   : > { %v10643_v41 = vpop.f32.mrf.mxu1  ;;  %v10731_v3 = vpop.f32.mrf.mxu0 }
 0x522   : > { %v7295_v28 = vsel %vm2207_vm4, %v7292_v14, %v7294_v5 }
 0x523   : > { %v16287_v62 = vadd.f32 %v7499_v4, %v7295_v28  ;;  %v7159_v47 = vpop.f32.mrf.mxu1  ;;  %v7515_v52 = vpop.f32.mrf.mxu0  ;;  %10833 = vmatmul.mubr.msk.bf16.gmra.mxu1 %vm6924_vm11, %v15988_v33  ;;  %10919 = vmatmul.mubr.msk.bf16.gmra.mxu0 %vm280_vm0, %v8193_v0 }
 0x524   : > { %v7296_v63 = vrot.slane %v7159_v47, 2 }
 0x525   : > { %v10646_v37 = vpop.f32.mrf.mxu1  ;;  %v10734_v59 = vpop.f32.mrf.mxu0 }
 0x526   : > { %v7297_v21 = vsel %vm2207_vm4, %v7294_v5, %v7296_v63 }
 0x527   : > { %v16293_v53 = vadd.f32 %v7502_v34, %v7297_v21  ;;  %v7162_v11 = vpop.f32.mrf.mxu1  ;;  %v7518_v51 = vpop.f32.mrf.mxu0 }
 0x528   : > { %v7298_v24 = vrot.slane %v7162_v11, 2 }
 0x529   : > { %v10647_v29 = vpop.f32.mrf.mxu1  ;;  %v10735_v4 = vpop.f32.mrf.mxu0 }
 0x52a   : > { %v7299_v40 = vsel %vm2207_vm4, %v7296_v63, %v7298_v24 }
 0x52b   : > { %v16296_v57 = vadd.f32 %v7507_v17, %v7299_v40  ;;  %v7167_v10 = vpop.f32.mrf.mxu1  ;;  %v7523_v33 = vpop.f32.mrf.mxu0 }
 0x52c   : > { %v7300_v19 = vrot.slane %v7167_v10, 2 }
 0x52d   : > { %v10650_v0 = vpop.f32.mrf.mxu1  ;;  %v10738_v58 = vpop.f32.mrf.mxu0 }
 0x52e   : > { %v7301_v30 = vsel %vm2207_vm4, %v7298_v24, %v7300_v19 }
 0x52f   : > { %v16299_v14 = vadd.f32 %v7510_v20, %v7301_v30  ;;  %v7170_v34 = vpop.f32.mrf.mxu1  ;;  %v7525_v44 = vpop.f32.mrf.mxu0 }
 0x530   : > { %v7302_v31 = vrot.slane %v7170_v34, 2 }
 0x531   : > { %v10651_v6 = vpop.f32.mrf.mxu1  ;;  %v10739_v43 = vpop.f32.mrf.mxu0 }
 0x532   : > { %v7303_v5 = vsel %vm2207_vm4, %v7300_v19, %v7302_v31 }
 0x533   : > { %v16302_v41 = vadd.f32 %v7515_v52, %v7303_v5  ;;  %v7175_v17 = vpop.f32.mrf.mxu1  ;;  %v7529_v3 = vpop.f32.mrf.mxu0 }
 0x534   : > { %v7304_v28 = vrot.slane %v7175_v17, 2 }
 0x535   : > { %17972 = vst [vmem:[#allocation102_spill] sm:$0xff] %v16302_v41  ;;  %v10654_v47 = vpop.f32.mrf.mxu1  ;;  %v10742_v63 = vpop.f32.mrf.mxu0 }
 0x536   : > { %v7305_v37 = vsel %vm2207_vm4, %v7302_v31, %v7304_v28 }
 0x537   : > { %v16305_v59 = vadd.f32 %v7518_v51, %v7305_v37  ;;  %v7178_v20 = vpop.f32.mrf.mxu1  ;;  %v7531_v21 = vpop.f32.mrf.mxu0 }
 0x539   : > { %17973 = vst [vmem:[#allocation104_spill] sm:$0xff] %v16305_v59  ;;  %v10655_v11 = vpop.f32.mrf.mxu1  ;;  %v10743_v24 = vpop.f32.mrf.mxu0 }
 0x53b   : > { %v7182_v29 = vpop.f32.mrf.mxu1  ;;  %v7535_v4 = vpop.f32.mrf.mxu0 }
 0x53d   : > { %v10658_v40 = vpop.f32.mrf.mxu1  ;;  %v10746_v10 = vpop.f32.mrf.mxu0 }
 0x53f   : > { %v7184_v33 = vpop.f32.mrf.mxu1  ;;  %v7537_v52 = vpop.f32.mrf.mxu0 }
 0x541   : > { %v10659_v19 = vpop.f32.mrf.mxu1  ;;  %v10747_v0 = vpop.f32.mrf.mxu0 }
 0x543   : > { %v16307_v58 = vpop.f32.mrf.mxu1  ;;  %v8296_v30 = vpop.f32.mrf.mxu0 }
 0x545   : > { %v10754_v34 = vpop.f32.mrf.mxu1  ;;  %v10840_v44 = vpop.f32.mrf.mxu0 }
 0x546   : > { %v16319_v34 = vld [vmem:[%s16808_s4] ss:$0 sm:$0xff] }
 0x547   : > { %v7593_v31 = vpop.f32.mrf.mxu1  ;;  %v8299_v51 = vpop.f32.mrf.mxu0 }
 0x549   : > { %v10755_v6 = vpop.f32.mrf.mxu1  ;;  %v10841_v43 = vpop.f32.mrf.mxu0 }
 0x54b   : > { %v7597_v5 = vpop.f32.mrf.mxu1  ;;  %v8304_v17 = vpop.f32.mrf.mxu0 }
 0x54d   : > { %v10758_v3 = vpop.f32.mrf.mxu1  ;;  %v10844_v28 = vpop.f32.mrf.mxu0 }
 0x54f   : > { %v7599_v47 = vpop.f32.mrf.mxu1  ;;  %v16309_v63 = vpop.f32.mrf.mxu0 }
 0x550   : > { %v16328_v47 = vld [vmem:[%s16810_s6] ss:$0 sm:$0xff] }
 0x551   : > { %v10759_v37 = vpop.f32.mrf.mxu1  ;;  %v10845_v20 = vpop.f32.mrf.mxu0 }
 0x553   : > { %v7603_v21 = vpop.f32.mrf.mxu1  ;;  %v16311_v11 = vpop.f32.mrf.mxu0 }
 0x554   : > { %v7792_v10 = vrot.slane %v7603_v21, 4 }
 0x555   : > { %v10762_v24 = vpop.f32.mrf.mxu1  ;;  %v10848_v29 = vpop.f32.mrf.mxu0 }
 0x557   : > { %v7606_v4 = vpop.f32.mrf.mxu1  ;;  %v16313_v40 = vpop.f32.mrf.mxu0 }
 0x558   : > { %v7793_v33 = vrot.slane %v7606_v4, 4 }
 0x559   : > { %v10763_v52 = vpop.f32.mrf.mxu1  ;;  %v10849_v19 = vpop.f32.mrf.mxu0 }
 0x55a   : > { %v7794_v0 = vsel %vm3432_vm9, %v7792_v10, %v7793_v33 }
 0x55b   : > { %v7901_v44 = vadd.f32 %v7794_v0, %v16052_v18  ;;  %v7611_v31 = vpop.f32.mrf.mxu1  ;;  %v16322_v6 = vpop.f32.mrf.mxu0 }
 0x55c   : > { %v7795_v43 = vrot.slane %v7611_v31, 4 }
 0x55d   : > { %v7944_v5 = vadd.f32 %v16319_v34, %v7901_v44  ;;  %v10766_v3 = vpop.f32.mrf.mxu1  ;;  %v10852_v28 = vpop.f32.mrf.mxu0 }
 0x55e   : > { %v7796_v37 = vsel %vm3432_vm9, %v7793_v33, %v7795_v43 }
 0x55f   : > { %v8457_v20 = vadd.f32 %v8296_v30, %v7944_v5  ;;  %v7902_v21 = vadd.f32 %v7796_v37, %v16062_v1  ;;  %v7614_v24 = vpop.f32.mrf.mxu1  ;;  %v16332_v18 = vpop.f32.mrf.mxu0 }
 0x560   : > { %v7797_v29 = vrot.slane %v7614_v24, 4 }
 0x561   : > { %v8500_v4 = vadd.f32 %v16328_v47, %v8457_v20  ;;  %v7945_v10 = vadd.f32 %v16319_v34, %v7902_v21  ;;  %v10767_v52 = vpop.f32.mrf.mxu1  ;;  %v10853_v19 = vpop.f32.mrf.mxu0 }
 0x562   : > { %v7798_v0 = vsel %vm3432_vm9, %v7795_v43, %v7797_v29 }
 0x563   : > { %v8536_v44 = vmax.f32 %v8500_v4, 0.0  ;;  %v8458_v31 = vadd.f32 %v8299_v51, %v7945_v10  ;;  %v7903_v3 = vadd.f32 %v7798_v0, %v16068_v26  ;;  %v7619_v33 = vpop.f32.mrf.mxu1  ;;  %v16338_v30 = vpop.f32.mrf.mxu0 }
 0x564   : > { %v7799_v1 = vrot.slane %v7619_v33, 4 }
 0x565   : > { %v8608_v5 = vcombine.high %v8536_v44, %v8536_v44  ;;  %v8615_v28 = vrot.slane %v8536_v44, %v11562_v9  ;;  %v8501_v37 = vadd.f32 %v16328_v47, %v8458_v31  ;;  %v7946_v20 = vadd.f32 %v16319_v34, %v7903_v3  ;;  %v10770_v21 = vpop.f32.mrf.mxu1  ;;  %v10856_v24 = vpop.f32.mrf.mxu0 }
 0x566   : > { %v7800_v52 = vsel %vm3432_vm9, %v7797_v29, %v7799_v1 }
 0x567   : > { %v8622_v43 = vrot.slane %v8608_v5, %v11562_v9  ;;  %v8623_v51 = vcombine.high %v8615_v28, %v8615_v28  ;;  %v8537_v26 = vmax.f32 %v8501_v37, 0.0  ;;  %v8459_v4 = vadd.f32 %v8304_v17, %v7946_v20  ;;  %v7622_v10 = vpop.f32.mrf.mxu1  ;;  %v16345_v19 = vpop.f32.mrf.mxu0 }
 0x568   : > { %v7904_v0 = vadd.f32 %v7800_v52, %v16078_v46  ;;  %v7801_v44 = vrot.slane %v7622_v10, 4 }
 0x569   : > { %v8624_v33 = vcombine.high %v8622_v43, %v8622_v43  ;;  %v9212_v31 = vcombine.low %v8615_v28, %v8623_v51  ;;  %v8625_v59 = vcombine.high %v8537_v26, %v8537_v26  ;;  %v8632_v3 = vrot.slane %v8537_v26, %v11562_v9  ;;  %v10771_v21 = vpop.f32.mrf.mxu1  ;;  %v10857_v24 = vpop.f32.mrf.mxu0 }
 0x56a   : > { %v8502_v29 = vadd.f32 %v16328_v47, %v8459_v4  ;;  %v7947_v5 = vadd.f32 %v16319_v34, %v7904_v0  ;;  %v7802_v37 = vsel %vm3432_vm9, %v7799_v1, %v7801_v44 }
 0x56b   : > { %v9213_v17 = vcombine.low %v8622_v43, %v8624_v33  ;;  %v8639_v20 = vrot.slane %v8625_v59, %v11562_v9  ;;  %v8640_v41 = vcombine.high %v8632_v3, %v8632_v3  ;;  %v7627_v46 = vpop.f32.mrf.mxu1  ;;  %v16354_v52 = vpop.f32.mrf.mxu0  ;;  %v7905_v26 = vadd.f32 %v7802_v37, %v16084_v38 }
 0x56c   : > { %v8538_v28 = vmax.f32 %v8502_v29, 0.0  ;;  %v8460_v51 = vadd.f32 %v16309_v63, %v7947_v5  ;;  %v7803_v10 = vrot.slane %v7627_v46, 4  ;;  %v9220_v4 = vrot.slane %v9212_v31, %v11562_v9 }
 0x56d   : > { %v9227_v0 = vrot.slane %v9213_v17, %v11562_v9  ;;  %v8641_v21 = vcombine.high %v8639_v20, %v8639_v20  ;;  %v9229_v1 = vcombine.low %v8632_v3, %v8640_v41  ;;  %v10774_v24 = vpop.f32.mrf.mxu1  ;;  %v10860_v43 = vpop.f32.mrf.mxu0  ;;  %v7948_v33 = vadd.f32 %v16319_v34, %v7905_v26 }
 0x56e   : > { %v8642_v59 = vcombine.high %v8538_v28, %v8538_v28  ;;  %v8649_v63 = vrot.slane %v8538_v28, %v11562_v9  ;;  %v8503_v38 = vadd.f32 %v16328_v47, %v8460_v51  ;;  %v7804_v5 = vsel %vm3432_vm9, %v7801_v44, %v7803_v10 }
 0x56f   : > { %v9228_v31 = vcombine.low %v9220_v4, %v9227_v0  ;;  %v9230_v29 = vcombine.low %v8639_v20, %v8641_v21  ;;  %v7630_v41 = vpop.f32.mrf.mxu1  ;;  %v16369_v3 = vpop.f32.mrf.mxu0  ;;  %v8461_v24 = vadd.f32 %v16311_v11, %v7948_v33  ;;  %v9237_v28 = vrot.slane %v9229_v1, %v11562_v9 }
 0x570   : > { %v8656_v37 = vrot.slane %v8642_v59, %v11562_v9  ;;  %v8657_v17 = vcombine.high %v8649_v63, %v8649_v63  ;;  %v8539_v46 = vmax.f32 %v8503_v38, 0.0  ;;  %v7906_v26 = vadd.f32 %v7804_v5, %v16094_v45 }
 0x571   : > { %9788 = vst.msk [vmem:[%s16363_s22] sm:$0xff] %vm2453_vm7, %v9228_v31  ;;  %v9244_v51 = vrot.slane %v9230_v29, %v11562_v9  ;;  %v7805_v20 = vrot.slane %v7630_v41, 4  ;;  %v10775_v44 = vpop.f32.mrf.mxu1  ;;  %v10861_v4 = vpop.f32.mrf.mxu0  ;;  %v8504_v11 = vadd.f32 %v16328_v47, %v8461_v24 }
 0x572   : > { %v9246_v0 = vcombine.low %v8657_v17, %v8656_v37  ;;  %v8658_v21 = vcombine.high %v8656_v37, %v8656_v37  ;;  %v8659_v43 = vcombine.high %v8539_v46, %v8539_v46  ;;  %v8666_v59 = vrot.slane %v8539_v46, %v11562_v9 }
 0x573   : > { %v9245_v63 = vcombine.low %v9237_v28, %v9244_v51  ;;  %v7949_v38 = vadd.f32 %v16319_v34, %v7906_v26  ;;  %v7806_v1 = vsel %vm3432_vm9, %v7803_v10, %v7805_v20  ;;  %v7635_v33 = vpop.f32.mrf.mxu1  ;;  %v16382_v31 = vpop.f32.mrf.mxu0  ;;  %v8540_v41 = vmax.f32 %v8504_v11, 0.0 }
 0x574   : > { %v8673_v45 = vrot.slane %v8659_v43, %v11562_v9  ;;  %v8674_v29 = vcombine.high %v8666_v59, %v8666_v59  ;;  %v9247_v5 = vcombine.low %v8658_v21, %v8666_v59  ;;  %v7907_v17 = vadd.f32 %v7806_v1, %v16100_v61 }
 0x575   : > { %9789 = vst.msk [vmem:[%s16363_s22 + $0x8] sm:$0xff] %vm2453_vm7, %v9245_v63  ;;  %v8462_v37 = vadd.f32 %v16313_v40, %v7949_v38  ;;  %v7807_v46 = vrot.slane %v7635_v33, 4  ;;  %v10778_v24 = vpop.f32.mrf.mxu1  ;;  %v10864_v28 = vpop.f32.mrf.mxu0  ;;  %v9254_v51 = vrot.slane %v9246_v0, %v11562_v9  ;;  %v8676_v4 = vcombine.high %v8540_v41, %v8540_v41 }
 0x576   : > { %v9261_v10 = vrot.slane %v9247_v5, %v11562_v9  ;;  %v9263_v26 = vcombine.low %v8674_v29, %v8673_v45  ;;  %v8675_v44 = vcombine.high %v8673_v45, %v8673_v45  ;;  %v8683_v21 = vrot.slane %v8540_v41, %v11562_v9 }
 0x577   : > { %v8505_v43 = vadd.f32 %v16328_v47, %v8462_v37  ;;  %v7950_v59 = vadd.f32 %v16319_v34, %v7907_v17  ;;  %v7638_v40 = vpop.f32.mrf.mxu1  ;;  %v16394_v63 = vpop.f32.mrf.mxu0  ;;  %v7808_v11 = vsel %vm3432_vm9, %v7805_v20, %v7807_v46  ;;  %v8690_v0 = vrot.slane %v8676_v4, %v11562_v9 }
 0x578   : > { %v9262_v61 = vcombine.low %v9254_v51, %v9261_v10  ;;  %v7809_v38 = vrot.slane %v7638_v40, 4  ;;  %v9264_v1 = vcombine.low %v8675_v44, %v8683_v21  ;;  %v9271_v41 = vrot.slane %v9263_v26, %v11562_v9 }
 0x579   : > { %v8541_v33 = vmax.f32 %v8505_v43, 0.0  ;;  %v8463_v45 = vadd.f32 %v16322_v6, %v7950_v59  ;;  %v10779_v29 = vpop.f32.mrf.mxu1  ;;  %v10865_v5 = vpop.f32.mrf.mxu0  ;;  %v7908_v37 = vadd.f32 %v7808_v11, %v16110_v15  ;;  %v8691_v24 = vcombine.high %v8690_v0, %v8690_v0 }
 0x57a   : > { %9790 = vst.msk [vmem:[%s16363_s22 + $0x10] sm:$0xff] %vm2453_vm7, %v9262_v61  ;;  %v7810_v17 = vsel %vm3432_vm9, %v7807_v46, %v7809_v38  ;;  %v9278_v20 = vrot.slane %v9264_v1, %v11562_v9 }
 0x57b   : > { %v8692_v28 = vcombine.high %v8541_v33, %v8541_v33  ;;  %v8699_v51 = vrot.slane %v8541_v33, %v11562_v9  ;;  %v7643_v10 = vpop.f32.mrf.mxu1  ;;  %v16406_v44 = vpop.f32.mrf.mxu0  ;;  %v8506_v6 = vadd.f32 %v16328_v47, %v8463_v45  ;;  %v7951_v26 = vadd.f32 %v16319_v34, %v7908_v37 }
 0x57c   : > { %v7909_v4 = vadd.f32 %v7810_v17, %v16116_v16  ;;  %v7811_v21 = vrot.slane %v7643_v10, 4  ;;  %v9279_v15 = vcombine.low %v9271_v41, %v9278_v20  ;;  %v9280_v43 = vcombine.low %v8690_v0, %v8691_v24 }
 0x57d   : > { %v8706_v46 = vrot.slane %v8692_v28, %v11562_v9  ;;  %v8707_v59 = vcombine.high %v8699_v51, %v8699_v51  ;;  %v10782_v40 = vpop.f32.mrf.mxu1  ;;  %v10868_v61 = vpop.f32.mrf.mxu0  ;;  %v8542_v11 = vmax.f32 %v8506_v6, 0.0  ;;  %v8464_v1 = vadd.f32 %v16332_v18, %v7951_v26 }
 0x57e   : > { %v7952_v33 = vadd.f32 %v16319_v34, %v7909_v4  ;;  %v7812_v29 = vsel %vm3432_vm9, %v7809_v38, %v7811_v21  ;;  %v9288_v45 = vrot.slane %v9280_v43, %v11562_v9  ;;  %9791 = vst.msk [vmem:[%s16363_s22 + $0x18] sm:$0xff] %vm2453_vm7, %v9279_v15 }
 0x57f   : > { %v8708_v16 = vcombine.high %v8706_v46, %v8706_v46  ;;  %v9281_v5 = vcombine.low %v8699_v51, %v8707_v59  ;;  %v7910_v0 = vadd.f32 %v7812_v29, %v16126_v13  ;;  %v7646_v41 = vpop.f32.mrf.mxu1  ;;  %v16419_v37 = vpop.f32.mrf.mxu0  ;;  %v8709_v17 = vcombine.high %v8542_v11, %v8542_v11 }
 0x580   : > { %v8716_v24 = vrot.slane %v8542_v11, %v11562_v9  ;;  %v8507_v18 = vadd.f32 %v16328_v47, %v8464_v1  ;;  %v8465_v20 = vadd.f32 %v16338_v30, %v7952_v33  ;;  %v7813_v6 = vrot.slane %v7646_v41, 4 }
 0x581   : > { %v9295_v38 = vrot.slane %v9281_v5, %v11562_v9  ;;  %v9297_v28 = vcombine.low %v8706_v46, %v8708_v16  ;;  %v7953_v10 = vadd.f32 %v16319_v34, %v7910_v0  ;;  %v10783_v26 = vpop.f32.mrf.mxu1  ;;  %v10869_v51 = vpop.f32.mrf.mxu0  ;;  %v8723_v13 = vrot.slane %v8709_v17, %v11562_v9 }
 0x582   : > { %v8724_v4 = vcombine.high %v8716_v24, %v8716_v24  ;;  %v8543_v15 = vmax.f32 %v8507_v18, 0.0  ;;  %v8508_v43 = vadd.f32 %v16328_v47, %v8465_v20  ;;  %v7814_v61 = vsel %vm3432_vm9, %v7811_v21, %v7813_v6 }
 0x583   : > { %v9296_v59 = vcombine.low %v9288_v45, %v9295_v38  ;;  %v9305_v40 = vrot.slane %v9297_v28, %v11562_v9  ;;  %v8466_v30 = vadd.f32 %v16345_v19, %v7953_v10  ;;  %v7651_v46 = vpop.f32.mrf.mxu1  ;;  %v16431_v11 = vpop.f32.mrf.mxu0  ;;  %v8725_v1 = vcombine.high %v8723_v13, %v8723_v13 }
 0x584   : > { %v9298_v33 = vcombine.low %v8716_v24, %v8724_v4  ;;  %v8726_v29 = vcombine.high %v8543_v15, %v8543_v15  ;;  %v8733_v16 = vrot.slane %v8543_v15, %v11562_v9  ;;  %v8544_v5 = vmax.f32 %v8508_v43, 0.0 }
 0x585   : > { %9792 = vst.msk [vmem:[%s16363_s22 + $0x20] sm:$0xff] %vm2453_vm7, %v9296_v59  ;;  %v8509_v0 = vadd.f32 %v16328_v47, %v8466_v30  ;;  %v7911_v45 = vadd.f32 %v7814_v61, %v16132_v48  ;;  %v7815_v41 = vrot.slane %v7651_v46, 4  ;;  %v10786_v17 = vpop.f32.mrf.mxu1  ;;  %v10872_v19 = vpop.f32.mrf.mxu0 }
 0x586   : > { %v9312_v21 = vrot.slane %v9298_v33, %v11562_v9  ;;  %v8740_v18 = vrot.slane %v8726_v29, %v11562_v9  ;;  %v8741_v20 = vcombine.high %v8733_v16, %v8733_v16  ;;  %v9314_v38 = vcombine.low %v8725_v1, %v8733_v16 }
 0x587   : > { %v8743_v24 = vcombine.high %v8544_v5, %v8544_v5  ;;  %v8750_v28 = vrot.slane %v8544_v5, %v11562_v9  ;;  %v8545_v10 = vmax.f32 %v8509_v0, 0.0  ;;  %v7954_v26 = vadd.f32 %v16319_v34, %v7911_v45  ;;  %v7654_v51 = vpop.f32.mrf.mxu1  ;;  %v16442_v13 = vpop.f32.mrf.mxu0 }
 0x588   : > { %v9313_v48 = vcombine.low %v9305_v40, %v9312_v21  ;;  %v9315_v4 = vcombine.low %v8741_v20, %v8740_v18  ;;  %v9322_v15 = vrot.slane %v9314_v38, %v11562_v9  ;;  %v8742_v43 = vcombine.high %v8740_v18, %v8740_v18 }
 0x589   : > { %v8757_v59 = vrot.slane %v8743_v24, %v11562_v9  ;;  %v8758_v30 = vcombine.high %v8750_v28, %v8750_v28  ;;  %v8759_v61 = vcombine.high %v8545_v10, %v8545_v10  ;;  %v8766_v46 = vrot.slane %v8545_v10, %v11562_v9  ;;  %v10787_v1 = vpop.f32.mrf.mxu1  ;;  %v10873_v33 = vpop.f32.mrf.mxu0 }
 0x58a   : > { %9793 = vst.msk [vmem:[%s16363_s22 + $0x28] sm:$0xff] %vm2453_vm7, %v9313_v48  ;;  %v9329_v29 = vrot.slane %v9315_v4, %v11562_v9  ;;  %v9331_v16 = vcombine.low %v8742_v43, %v8750_v28  ;;  %v8467_v5 = vadd.f32 %v16354_v52, %v7954_v26  ;;  %v7816_v40 = vsel %vm3432_vm9, %v7813_v6, %v7815_v41 }
 0x58b   : > { %v9332_v0 = vcombine.low %v8758_v30, %v8757_v59  ;;  %v8773_v45 = vrot.slane %v8759_v61, %v11562_v9  ;;  %v8774_v17 = vcombine.high %v8766_v46, %v8766_v46  ;;  %v7912_v19 = vadd.f32 %v7816_v40, %v16142_v22  ;;  %v7659_v21 = vpop.f32.mrf.mxu1  ;;  %v16454_v18 = vpop.f32.mrf.mxu0 }
 0x58c   : > { %v9330_v20 = vcombine.low %v9322_v15, %v9329_v29  ;;  %v9339_v38 = vrot.slane %v9331_v16, %v11562_v9  ;;  %v8510_v24 = vadd.f32 %v16328_v47, %v8467_v5  ;;  %v7817_v28 = vrot.slane %v7654_v51, 4 }
 0x58d   : > { %v9346_v52 = vrot.slane %v9332_v0, %v11562_v9  ;;  %v8775_v10 = vcombine.high %v8773_v45, %v8773_v45  ;;  %v9348_v6 = vcombine.low %v8766_v46, %v8774_v17  ;;  %v7955_v26 = vadd.f32 %v16319_v34, %v7912_v19  ;;  %v10790_v48 = vpop.f32.mrf.mxu1  ;;  %v10876_v4 = vpop.f32.mrf.mxu0 }
 0x58e   : > { %9794 = vst.msk [vmem:[%s16363_s22 + $0x30] sm:$0xff] %vm2453_vm7, %v9330_v20  ;;  %v8546_v22 = vmax.f32 %v8510_v24, 0.0  ;;  %v7818_v43 = vsel %vm3432_vm9, %v7815_v41, %v7817_v28  ;;  %v7819_v15 = vrot.slane %v7659_v21, 4 }
 0x58f   : > { %v9347_v59 = vcombine.low %v9339_v38, %v9346_v52  ;;  %v9349_v30 = vcombine.low %v8773_v45, %v8775_v10  ;;  %v9356_v61 = vrot.slane %v9348_v6, %v11562_v9  ;;  %v8468_v51 = vadd.f32 %v16369_v3, %v7955_v26  ;;  %v7662_v1 = vpop.f32.mrf.mxu1  ;;  %v16465_v33 = vpop.f32.mrf.mxu0 }
 0x590   : > { %v8776_v46 = vcombine.high %v8546_v22, %v8546_v22  ;;  %v8783_v29 = vrot.slane %v8546_v22, %v11562_v9  ;;  %v7913_v16 = vadd.f32 %v7818_v43, %v16148_v60  ;;  %v7820_v5 = vsel %vm3432_vm9, %v7817_v28, %v7819_v15 }
 0x591   : > { %9795 = vst.msk [vmem:[%s16363_s22 + $0x38] sm:$0xff] %vm2453_vm7, %v9347_v59  ;;  %v9363_v41 = vrot.slane %v9349_v30, %v11562_v9  ;;  %v8511_v40 = vadd.f32 %v16328_v47, %v8468_v51  ;;  %v7914_v0 = vadd.f32 %v7820_v5, %v16158_v23  ;;  %v7821_v45 = vrot.slane %v7662_v1, 4  ;;  %v10791_v3 = vpop.f32.mrf.mxu1  ;;  %v10877_v17 = vpop.f32.mrf.mxu0 }
 0x592   : > { %v8790_v19 = vrot.slane %v8776_v46, %v11562_v9  ;;  %v8791_v21 = vcombine.high %v8783_v29, %v8783_v29  ;;  %v7956_v20 = vadd.f32 %v16319_v34, %v7913_v16 }
 0x593   : > { %v9364_v60 = vcombine.low %v9356_v61, %v9363_v41  ;;  %v8547_v38 = vmax.f32 %v8511_v40, 0.0  ;;  %v7957_v24 = vadd.f32 %v16319_v34, %v7914_v0  ;;  %v7822_v28 = vsel %vm3432_vm9, %v7819_v15, %v7821_v45  ;;  %v7667_v52 = vpop.f32.mrf.mxu1  ;;  %v16479_v10 = vpop.f32.mrf.mxu0 }
 0x594   : > { %v8792_v6 = vcombine.high %v8790_v19, %v8790_v19  ;;  %v9365_v23 = vcombine.low %v8783_v29, %v8791_v21  ;;  %v8469_v26 = vadd.f32 %v16382_v31, %v7956_v20  ;;  %v7915_v48 = vadd.f32 %v7822_v28, %v16164_v54 }
 0x595   : > { %9796 = vst.msk [vmem:[%s16363_s22 + $0x40] sm:$0xff] %vm2453_vm7, %v9364_v60  ;;  %v8793_v4 = vcombine.high %v8547_v38, %v8547_v38  ;;  %v8800_v22 = vrot.slane %v8547_v38, %v11562_v9  ;;  %v8470_v43 = vadd.f32 %v16394_v63, %v7957_v24  ;;  %v7823_v59 = vrot.slane %v7667_v52, 4  ;;  %v10794_v30 = vpop.f32.mrf.mxu1  ;;  %v10880_v61 = vpop.f32.mrf.mxu0 }
 0x596   : > { %v9366_v15 = vcombine.low %v8790_v19, %v8792_v6  ;;  %v9373_v51 = vrot.slane %v9365_v23, %v11562_v9  ;;  %v8512_v1 = vadd.f32 %v16328_v47, %v8469_v26  ;;  %v7958_v46 = vadd.f32 %v16319_v34, %v7915_v48 }
 0x597   : > { %v8807_v31 = vrot.slane %v8793_v4, %v11562_v9  ;;  %v8808_v54 = vcombine.high %v8800_v22, %v8800_v22  ;;  %v8513_v29 = vadd.f32 %v16328_v47, %v8470_v43  ;;  %v7824_v16 = vsel %vm3432_vm9, %v7821_v45, %v7823_v59  ;;  %v7670_v5 = vpop.f32.mrf.mxu1  ;;  %v16493_v41 = vpop.f32.mrf.mxu0 }
 0x598   : > { %v9380_v63 = vrot.slane %v9366_v15, %v11562_v9  ;;  %v8548_v40 = vmax.f32 %v8512_v1, 0.0  ;;  %v8471_v0 = vadd.f32 %v16406_v44, %v7958_v46  ;;  %v7916_v3 = vadd.f32 %v7824_v16, %v16174_v35 }
 0x599   : > { %v9382_v17 = vcombine.low %v8808_v54, %v8807_v31  ;;  %v8809_v19 = vcombine.high %v8807_v31, %v8807_v31  ;;  %v8549_v21 = vmax.f32 %v8513_v29, 0.0  ;;  %v7825_v20 = vrot.slane %v7670_v5, 4  ;;  %v10795_v60 = vpop.f32.mrf.mxu1  ;;  %v10881_v38 = vpop.f32.mrf.mxu0 }
 0x59a   : > { %v9381_v24 = vcombine.low %v9373_v51, %v9380_v63  ;;  %v8810_v28 = vcombine.high %v8548_v40, %v8548_v40  ;;  %v8817_v45 = vrot.slane %v8548_v40, %v11562_v9  ;;  %v8514_v52 = vadd.f32 %v16328_v47, %v8471_v0 }
 0x59b   : > { %v9390_v6 = vrot.slane %v9382_v17, %v11562_v9  ;;  %v8827_v23 = vcombine.high %v8549_v21, %v8549_v21  ;;  %v8834_v44 = vrot.slane %v8549_v21, %v11562_v9  ;;  %v7959_v35 = vadd.f32 %v16319_v34, %v7916_v3  ;;  %v7675_v26 = vpop.f32.mrf.mxu1  ;;  %v16503_v48 = vpop.f32.mrf.mxu0 }
 0x59c   : > { %9797 = vst.msk [vmem:[%s16363_s22 + $0x48] sm:$0xff] %vm2453_vm7, %v9381_v24  ;;  %v8824_v4 = vrot.slane %v8810_v28, %v11562_v9  ;;  %v8825_v22 = vcombine.high %v8817_v45, %v8817_v45  ;;  %v9383_v43 = vcombine.low %v8809_v19, %v8817_v45  ;;  %v8550_v30 = vmax.f32 %v8514_v52, 0.0 }
 0x59d   : > { %v8841_v61 = vrot.slane %v8827_v23, %v11562_v9  ;;  %v8472_v15 = vadd.f32 %v16419_v37, %v7959_v35  ;;  %v7826_v51 = vsel %vm3432_vm9, %v7823_v59, %v7825_v20  ;;  %v7827_v1 = vrot.slane %v7675_v26, 4  ;;  %v10798_v46 = vpop.f32.mrf.mxu1  ;;  %v10884_v31 = vpop.f32.mrf.mxu0 }
 0x59e   : > { %v9397_v54 = vrot.slane %v9383_v43, %v11562_v9  ;;  %v9399_v29 = vcombine.low %v8825_v22, %v8824_v4  ;;  %v8826_v16 = vcombine.high %v8824_v4, %v8824_v4  ;;  %v8843_v5 = vcombine.high %v8550_v30, %v8550_v30 }
 0x59f   : > { %v8842_v63 = vcombine.high %v8841_v61, %v8841_v61  ;;  %v8850_v40 = vrot.slane %v8550_v30, %v11562_v9  ;;  %v8515_v0 = vadd.f32 %v16328_v47, %v8472_v15  ;;  %v7917_v3 = vadd.f32 %v7826_v51, %v16180_v39  ;;  %v7678_v17 = vpop.f32.mrf.mxu1  ;;  %v16515_v37 = vpop.f32.mrf.mxu0 }
 0x5a0   : > { %v9398_v59 = vcombine.low %v9390_v6, %v9397_v54  ;;  %v9407_v19 = vrot.slane %v9399_v29, %v11562_v9  ;;  %v9400_v21 = vcombine.low %v8826_v16, %v8834_v44  ;;  %v8857_v60 = vrot.slane %v8843_v5, %v11562_v9 }
 0x5a1   : > { %v9416_v38 = vcombine.low %v8841_v61, %v8842_v63  ;;  %v8858_v24 = vcombine.high %v8850_v40, %v8850_v40  ;;  %v8551_v28 = vmax.f32 %v8515_v0, 0.0  ;;  %v7960_v45 = vadd.f32 %v16319_v34, %v7917_v3  ;;  %v10799_v52 = vpop.f32.mrf.mxu1  ;;  %v10885_v23 = vpop.f32.mrf.mxu0 }
 0x5a2   : > { %9798 = vst.msk [vmem:[%s16363_s22 + $0x50] sm:$0xff] %vm2453_vm7, %v9398_v59  ;;  %v9414_v39 = vrot.slane %v9400_v21, %v11562_v9  ;;  %v8859_v35 = vcombine.high %v8857_v60, %v8857_v60  ;;  %v7828_v26 = vsel %vm3432_vm9, %v7825_v20, %v7827_v1  ;;  %v7829_v6 = vrot.slane %v7678_v17, 4 }
 0x5a3   : > { %v9424_v4 = vrot.slane %v9416_v38, %v11562_v9  ;;  %v9417_v44 = vcombine.low %v8850_v40, %v8858_v24  ;;  %v8860_v22 = vcombine.high %v8551_v28, %v8551_v28  ;;  %v8867_v43 = vrot.slane %v8551_v28, %v11562_v9  ;;  %v7683_v30 = vpop.f32.mrf.mxu1  ;;  %v16526_v61 = vpop.f32.mrf.mxu0 }
 0x5a4   : > { %v9415_v15 = vcombine.low %v9407_v19, %v9414_v39  ;;  %v9433_v51 = vcombine.low %v8857_v60, %v8859_v35  ;;  %v8473_v46 = vadd.f32 %v16431_v11, %v7960_v45  ;;  %v7918_v31 = vadd.f32 %v7828_v26, %v16190_v55 }
 0x5a5   : > { %v9431_v54 = vrot.slane %v9417_v44, %v11562_v9  ;;  %v8874_v20 = vrot.slane %v8860_v22, %v11562_v9  ;;  %v8875_v29 = vcombine.high %v8867_v43, %v8867_v43  ;;  %v7830_v16 = vsel %vm3432_vm9, %v7827_v1, %v7829_v6  ;;  %v10802_v5 = vpop.f32.mrf.mxu1  ;;  %v10888_v63 = vpop.f32.mrf.mxu0 }
 0x5a6   : > { %9799 = vst.msk [vmem:[%s16363_s22 + $0x58] sm:$0xff] %vm2453_vm7, %v9415_v15  ;;  %v8516_v40 = vadd.f32 %v16328_v47, %v8473_v46  ;;  %v7961_v0 = vadd.f32 %v16319_v34, %v7918_v31  ;;  %v7919_v11 = vadd.f32 %v7830_v16, %v16196_v7  ;;  %v7831_v59 = vrot.slane %v7683_v30, 4 }
 0x5a7   : > { %v9432_v3 = vcombine.low %v9424_v4, %v9431_v54  ;;  %v8876_v55 = vcombine.high %v8874_v20, %v8874_v20  ;;  %v9434_v17 = vcombine.low %v8867_v43, %v8875_v29  ;;  %v7686_v19 = vpop.f32.mrf.mxu1  ;;  %v16538_v21 = vpop.f32.mrf.mxu0  ;;  %v9441_v28 = vrot.slane %v9433_v51, %v11562_v9 }
 0x5a8   : > { %v8552_v60 = vmax.f32 %v8516_v40, 0.0  ;;  %v8474_v1 = vadd.f32 %v16442_v13, %v7961_v0  ;;  %v7962_v38 = vadd.f32 %v16319_v34, %v7919_v11  ;;  %v7833_v24 = vrot.slane %v7686_v19, 4 }
 0x5a9   : > { %9800 = vst.msk [vmem:[%s16363_s22 + $0x60] sm:$0xff] %vm2453_vm7, %v9432_v3  ;;  %v9448_v45 = vrot.slane %v9434_v17, %v11562_v9  ;;  %v7832_v7 = vsel %vm3432_vm9, %v7829_v6, %v7831_v59  ;;  %v10803_v52 = vpop.f32.mrf.mxu1  ;;  %v10889_v23 = vpop.f32.mrf.mxu0 }
 0x5aa   : > { %v8877_v39 = vcombine.high %v8552_v60, %v8552_v60  ;;  %v8884_v35 = vrot.slane %v8552_v60, %v11562_v9  ;;  %v8517_v26 = vadd.f32 %v16328_v47, %v8474_v1  ;;  %v8475_v13 = vadd.f32 %v16454_v18, %v7962_v38 }
 0x5ab   : > { %v9449_v4 = vcombine.low %v9441_v28, %v9448_v45  ;;  %v7920_v44 = vadd.f32 %v7832_v7, %v16206_v56  ;;  %v7834_v22 = vsel %vm3432_vm9, %v7831_v59, %v7833_v24  ;;  %v7691_v43 = vpop.f32.mrf.mxu1  ;;  %v16552_v30 = vpop.f32.mrf.mxu0 }
 0x5ac   : > { %v8891_v6 = vrot.slane %v8877_v39, %v11562_v9  ;;  %v8892_v15 = vcombine.high %v8884_v35, %v8884_v35  ;;  %v9450_v51 = vcombine.low %v8876_v55, %v8884_v35  ;;  %v8553_v46 = vmax.f32 %v8517_v26, 0.0 }
 0x5ad   : > { %9801 = vst.msk [vmem:[%s16363_s22 + $0x68] sm:$0xff] %vm2453_vm7, %v9449_v4  ;;  %v8518_v31 = vadd.f32 %v16328_v47, %v8475_v13  ;;  %v7963_v54 = vadd.f32 %v16319_v34, %v7920_v44  ;;  %v7921_v18 = vadd.f32 %v7834_v22, %v16212_v49  ;;  %v7835_v20 = vrot.slane %v7691_v43, 4  ;;  %v10806_v56 = vpop.f32.mrf.mxu1  ;;  %v10892_v29 = vpop.f32.mrf.mxu0 }
 0x5ae   : > { %v9451_v16 = vcombine.low %v8892_v15, %v8891_v6  ;;  %v9458_v5 = vrot.slane %v9450_v51, %v11562_v9  ;;  %v8893_v63 = vcombine.high %v8891_v6, %v8891_v6  ;;  %v8894_v40 = vcombine.high %v8553_v46, %v8553_v46 }
 0x5af   : > { %v8901_v0 = vrot.slane %v8553_v46, %v11562_v9  ;;  %v8554_v11 = vmax.f32 %v8518_v31, 0.0  ;;  %v8476_v3 = vadd.f32 %v16465_v33, %v7963_v54  ;;  %v7964_v55 = vadd.f32 %v16319_v34, %v7921_v18  ;;  %v16564_v17 = vpop.f32.mrf.mxu1  ;;  %v16566_v59 = vpop.f32.mrf.mxu0 }
 0x5b0   : > { %v9465_v49 = vrot.slane %v9451_v16, %v11562_v9  ;;  %v8908_v19 = vrot.slane %v8894_v40, %v11562_v9  ;;  %v7836_v60 = vsel %vm3432_vm9, %v7833_v24, %v7835_v20  ;;  %v7837_v1 = vrot.slane %v16564_v17, 4 }
 0x5b1   : > { %v8909_v38 = vcombine.high %v8901_v0, %v8901_v0  ;;  %v9467_v28 = vcombine.low %v8893_v63, %v8901_v0  ;;  %v8910_v45 = vcombine.high %v8554_v11, %v8554_v11  ;;  %v8917_v33 = vrot.slane %v8554_v11, %v11562_v9  ;;  %v10807_v7 = vpop.f32.mrf.mxu1  ;;  %v10893_v52 = vpop.f32.mrf.mxu0 }
 0x5b2   : > { %v9466_v23 = vcombine.low %v9458_v5, %v9465_v49  ;;  %v8519_v39 = vadd.f32 %v16328_v47, %v8476_v3  ;;  %v8477_v35 = vadd.f32 %v16479_v10, %v7964_v55  ;;  %v7922_v26 = vadd.f32 %v7836_v60, %v16222_v25 }
 0x5b3   : > { %v9468_v13 = vcombine.low %v8909_v38, %v8908_v19  ;;  %v9475_v24 = vrot.slane %v9467_v28, %v11562_v9  ;;  %v8924_v4 = vrot.slane %v8910_v45, %v11562_v9  ;;  %v8925_v44 = vcombine.high %v8917_v33, %v8917_v33  ;;  %v16578_v22 = vpop.f32.mrf.mxu1  ;;  %v16580_v43 = vpop.f32.mrf.mxu0 }
 0x5b4   : > { %9802 = vst.msk [vmem:[%s16363_s22 + $0x70] sm:$0xff] %vm2453_vm7, %v9466_v23  ;;  %v8555_v6 = vmax.f32 %v8519_v39, 0.0  ;;  %v8520_v15 = vadd.f32 %v16328_v47, %v8477_v35  ;;  %v7965_v51 = vadd.f32 %v16319_v34, %v7922_v26  ;;  %v7838_v10 = vsel %vm3432_vm9, %v7835_v20, %v7837_v1 }
 0x5b5   : > { %v9482_v25 = vrot.slane %v9468_v13, %v11562_v9  ;;  %v8926_v46 = vcombine.high %v8924_v4, %v8924_v4  ;;  %v9484_v31 = vcombine.low %v8917_v33, %v8925_v44  ;;  %v7923_v54 = vadd.f32 %v7838_v10, %v16227_v8  ;;  %v10810_v18 = vpop.f32.mrf.mxu1  ;;  %v10896_v56 = vpop.f32.mrf.mxu0 }
 0x5b6   : > { %v8927_v29 = vcombine.high %v8555_v6, %v8555_v6  ;;  %v8934_v16 = vrot.slane %v8555_v6, %v11562_v9  ;;  %v8556_v5 = vmax.f32 %v8520_v15, 0.0  ;;  %v8478_v63 = vadd.f32 %v16493_v41, %v7965_v51 }
 0x5b7   : > { %v9483_v40 = vcombine.low %v9475_v24, %v9482_v25  ;;  %v9485_v0 = vcombine.low %v8924_v4, %v8926_v46  ;;  %v9492_v11 = vrot.slane %v9484_v31, %v11562_v9  ;;  %v7966_v20 = vadd.f32 %v16319_v34, %v7923_v54  ;;  %v7702_v3 = vpop.f32.mrf.mxu1  ;;  %v16593_v55 = vpop.f32.mrf.mxu0 }
 0x5b8   : > { %v8941_v8 = vrot.slane %v8927_v29, %v11562_v9  ;;  %v8942_v17 = vcombine.high %v8934_v16, %v8934_v16  ;;  %v8944_v49 = vcombine.high %v8556_v5, %v8556_v5  ;;  %v8951_v19 = vrot.slane %v8556_v5, %v11562_v9 }
 0x5b9   : > { %9803 = vst.msk [vmem:[%s16363_s22 + $0x78] sm:$0xff] %vm2453_vm7, %v9483_v40  ;;  %v9499_v60 = vrot.slane %v9485_v0, %v11562_v9  ;;  %v8521_v41 = vadd.f32 %v16328_v47, %v8478_v63  ;;  %v8479_v38 = vadd.f32 %v16503_v48, %v7966_v20  ;;  %v7839_v28 = vrot.slane %v16578_v22, 4  ;;  %v10811_v45 = vpop.f32.mrf.mxu1  ;;  %v10897_v33 = vpop.f32.mrf.mxu0 }
 0x5ba   : > { %v8943_v7 = vcombine.high %v8941_v8, %v8941_v8  ;;  %v9501_v52 = vcombine.low %v8934_v16, %v8942_v17  ;;  %v8958_v23 = vrot.slane %v8944_v49, %v11562_v9  ;;  %v8959_v39 = vcombine.high %v8951_v19, %v8951_v19 }
 0x5bb   : > { %v9500_v35 = vcombine.low %v9492_v11, %v9499_v60  ;;  %v8557_v26 = vmax.f32 %v8521_v41, 0.0  ;;  %v8522_v13 = vadd.f32 %v16328_v47, %v8479_v38  ;;  %v7840_v24 = vsel %vm3432_vm9, %v7837_v1, %v7839_v28  ;;  %v7707_v4 = vpop.f32.mrf.mxu1  ;;  %v16606_v44 = vpop.f32.mrf.mxu0 }
 0x5bc   : > { %v9502_v48 = vcombine.low %v8941_v8, %v8943_v7  ;;  %v9509_v22 = vrot.slane %v9501_v52, %v11562_v9  ;;  %v9518_v6 = vcombine.low %v8959_v39, %v8958_v23  ;;  %v8960_v15 = vcombine.high %v8958_v23, %v8958_v23 }
 0x5bd   : > { %9804 = vst.msk [vmem:[%s16363_s22 + $0x80] sm:$0xff] %vm2453_vm7, %v9500_v35  ;;  %v8961_v51 = vcombine.high %v8557_v26, %v8557_v26  ;;  %v8968_v10 = vrot.slane %v8557_v26, %v11562_v9  ;;  %v8558_v25 = vmax.f32 %v8522_v13, 0.0  ;;  %v7924_v46 = vadd.f32 %v7840_v24, %v16242_v42  ;;  %v10814_v31 = vpop.f32.mrf.mxu1  ;;  %v10900_v54 = vpop.f32.mrf.mxu0 }
 0x5be   : > { %v9516_v1 = vrot.slane %v9502_v48, %v11562_v9  ;;  %v9526_v18 = vrot.slane %v9518_v6, %v11562_v9  ;;  %v7841_v56 = vrot.slane %v7702_v3, 4  ;;  %v7843_v29 = vrot.slane %v7707_v4, 4 }
 0x5bf   : > { %v8975_v16 = vrot.slane %v8961_v51, %v11562_v9  ;;  %v8976_v5 = vcombine.high %v8968_v10, %v8968_v10  ;;  %v9519_v63 = vcombine.low %v8960_v15, %v8968_v10  ;;  %v8978_v40 = vcombine.high %v8558_v25, %v8558_v25  ;;  %v7710_v0 = vpop.f32.mrf.mxu1  ;;  %v16616_v11 = vpop.f32.mrf.mxu0 }
 0x5c0   : > { %v9517_v20 = vcombine.low %v9509_v22, %v9516_v1  ;;  %v8985_v42 = vrot.slane %v8558_v25, %v11562_v9  ;;  %v7967_v8 = vadd.f32 %v16319_v34, %v7924_v46  ;;  %v7842_v17 = vsel %vm3432_vm9, %v7839_v28, %v7841_v56 }
 0x5c1   : > { %v9533_v49 = vrot.slane %v9519_v63, %v11562_v9  ;;  %v9535_v3 = vcombine.low %v8976_v5, %v8975_v16  ;;  %v8977_v19 = vcombine.high %v8975_v16, %v8975_v16  ;;  %v8992_v60 = vrot.slane %v8978_v40, %v11562_v9  ;;  %v10815_v41 = vpop.f32.mrf.mxu1  ;;  %v10901_v38 = vpop.f32.mrf.mxu0 }
 0x5c2   : > { %9805 = vst.msk [vmem:[%s16363_s22 + $0x88] sm:$0xff] %vm2453_vm7, %v9517_v20  ;;  %v8480_v45 = vadd.f32 %v16515_v37, %v7967_v8  ;;  %v7925_v33 = vadd.f32 %v7842_v17, %v16246_v12  ;;  %v7844_v7 = vsel %vm3432_vm9, %v7841_v56, %v7843_v29  ;;  %v7845_v52 = vrot.slane %v7710_v0, 4  ;;  %v16656_v56 = vld [vmem:[%s16810_s6] ss:$0 sm:$0xff] }
 0x5c3   : > { %v9534_v23 = vcombine.low %v9526_v18, %v9533_v49  ;;  %v8993_v28 = vcombine.high %v8992_v60, %v8992_v60  ;;  %v9536_v39 = vcombine.low %v8977_v19, %v8985_v42  ;;  %v7715_v35 = vpop.f32.mrf.mxu1  ;;  %v16628_v26 = vpop.f32.mrf.mxu0  ;;  %v7926_v4 = vadd.f32 %v7844_v7, %v16256_v32  ;;  %v16643_v32 = vld [vmem:[%s16808_s4] ss:$0 sm:$0xff] }
 0x5c4   : > { %v8523_v13 = vadd.f32 %v16328_v47, %v8480_v45  ;;  %v7968_v24 = vadd.f32 %v16319_v34, %v7925_v33  ;;  %v7846_v48 = vsel %vm3432_vm9, %v7843_v29, %v7845_v52  ;;  %v9543_v37 = vrot.slane %v9535_v3, %v11562_v9 }
 0x5c5   : > { %9806 = vst.msk [vmem:[%s16363_s22 + $0x90] sm:$0xff] %vm2453_vm7, %v9534_v23  ;;  %v9550_v12 = vrot.slane %v9536_v39, %v11562_v9  ;;  %v7927_v22 = vadd.f32 %v7846_v48, %v16260_v50  ;;  %v7847_v6 = vrot.slane %v7715_v35, 4  ;;  %v10818_v15 = vpop.f32.mrf.mxu1  ;;  %v10904_v51 = vpop.f32.mrf.mxu0  ;;  %v7969_v34 = vadd.f32 %v16643_v32, %v7926_v4 }
 0x5c6   : > { %v8559_v10 = vmax.f32 %v8523_v13, 0.0  ;;  %v8481_v47 = vadd.f32 %v16526_v61, %v7968_v24  ;;  %v9552_v46 = vcombine.low %v8992_v60, %v8993_v28  ;;  %v7753_v5 = vrot.slane %v16307_v58, 4 }
 0x5c7   : > { %v9551_v25 = vcombine.low %v9543_v37, %v9550_v12  ;;  %v7970_v31 = vadd.f32 %v16643_v32, %v7927_v22  ;;  %v7848_v50 = vsel %vm3432_vm9, %v7845_v52, %v7847_v6  ;;  %v16648_v54 = vpop.f32.mrf.mxu1  ;;  %v16650_v1 = vpop.f32.mrf.mxu0  ;;  %v8482_v16 = vadd.f32 %v16538_v21, %v7969_v34 }
 0x5c8   : > { %v8994_v18 = vcombine.high %v8559_v10, %v8559_v10  ;;  %v9001_v61 = vrot.slane %v8559_v10, %v11562_v9  ;;  %v8524_v29 = vadd.f32 %v16656_v56, %v8481_v47  ;;  %v7928_v40 = vadd.f32 %v7848_v50, %v16270_v2 }
 0x5c9   : > { %9807 = vst.msk [vmem:[%s16363_s22 + $0x98] sm:$0xff] %vm2453_vm7, %v9551_v25  ;;  %v8483_v63 = vadd.f32 %v16552_v30, %v7970_v31  ;;  %v7849_v0 = vrot.slane %v16648_v54, 4  ;;  %v10819_v20 = vpop.f32.mrf.mxu1  ;;  %v10905_v42 = vpop.f32.mrf.mxu0  ;;  %v8525_v3 = vadd.f32 %v16656_v56, %v8482_v16  ;;  %v9560_v21 = vrot.slane %v9552_v46, %v11562_v9 }
 0x5ca   : > { %v9008_v8 = vrot.slane %v8994_v18, %v11562_v9  ;;  %v9009_v17 = vcombine.high %v9001_v61, %v9001_v61  ;;  %v8560_v49 = vmax.f32 %v8524_v29, 0.0  ;;  %v7971_v60 = vadd.f32 %v16643_v32, %v7928_v40 }
 0x5cb   : > { %v8526_v19 = vadd.f32 %v16656_v56, %v8483_v63  ;;  %v7850_v30 = vsel %vm3432_vm9, %v7847_v6, %v7849_v0  ;;  %v16672_v41 = vpop.f32.mrf.mxu1  ;;  %v16674_v2 = vpop.f32.mrf.mxu0  ;;  %v8561_v52 = vmax.f32 %v8525_v3, 0.0 }
 0x5cc   : > { %v9010_v38 = vcombine.high %v9008_v8, %v9008_v8  ;;  %v9553_v45 = vcombine.low %v9001_v61, %v9009_v17  ;;  %v9011_v33 = vcombine.high %v8560_v49, %v8560_v49  ;;  %v9018_v7 = vrot.slane %v8560_v49, %v11562_v9 }
 0x5cd   : > { %v8562_v23 = vmax.f32 %v8526_v19, 0.0  ;;  %v8484_v28 = vadd.f32 %v16566_v59, %v7971_v60  ;;  %v7929_v39 = vadd.f32 %v7850_v30, %v16274_v36  ;;  %v10822_v35 = vpop.f32.mrf.mxu1  ;;  %v10908_v13 = vpop.f32.mrf.mxu0  ;;  %v9028_v12 = vcombine.high %v8561_v52, %v8561_v52 }
 0x5ce   : > { %v9567_v24 = vrot.slane %v9553_v45, %v11562_v9  ;;  %v9569_v4 = vcombine.low %v9008_v8, %v9010_v38  ;;  %v9025_v48 = vrot.slane %v9011_v33, %v11562_v9  ;;  %v9026_v37 = vcombine.high %v9018_v7, %v9018_v7 }
 0x5cf   : > { %v9035_v22 = vrot.slane %v8561_v52, %v11562_v9  ;;  %v9045_v6 = vcombine.high %v8562_v23, %v8562_v23  ;;  %v9052_v15 = vrot.slane %v8562_v23, %v11562_v9  ;;  %v7726_v51 = vpop.f32.mrf.mxu1  ;;  %v16683_v10 = vpop.f32.mrf.mxu0  ;;  %v9042_v25 = vrot.slane %v9028_v12, %v11562_v9 }
 0x5d0   : > { %v9568_v59 = vcombine.low %v9560_v21, %v9567_v24  ;;  %v9577_v36 = vrot.slane %v9569_v4, %v11562_v9  ;;  %v9027_v47 = vcombine.high %v9025_v48, %v9025_v48  ;;  %v9570_v34 = vcombine.low %v9018_v7, %v9026_v37 }
 0x5d1   : > { %v9043_v46 = vcombine.high %v9035_v22, %v9035_v22  ;;  %v9059_v31 = vrot.slane %v9045_v6, %v11562_v9  ;;  %v9060_v50 = vcombine.high %v9052_v15, %v9052_v15  ;;  %v10823_v54 = vpop.f32.mrf.mxu1  ;;  %v10909_v18 = vpop.f32.mrf.mxu0  ;;  %v8527_v16 = vadd.f32 %v16656_v56, %v8484_v28 }
 0x5d2   : > { %9808 = vst.msk [vmem:[%s16363_s22 + $0xa0] sm:$0xff] %vm2453_vm7, %v9568_v59  ;;  %v9584_v61 = vrot.slane %v9570_v34, %v11562_v9  ;;  %v9586_v29 = vcombine.low %v9027_v47, %v9035_v22  ;;  %v7972_v63 = vadd.f32 %v16643_v32, %v7929_v39  ;;  %v9044_v20 = vcombine.high %v9042_v25, %v9042_v25 }
 0x5d3   : > { %v9587_v40 = vcombine.low %v9043_v46, %v9042_v25  ;;  %v9604_v42 = vcombine.low %v9060_v50, %v9059_v31  ;;  %v7851_v8 = vrot.slane %v16672_v41, 4  ;;  %v7731_v17 = vpop.f32.mrf.mxu1  ;;  %v8440_v49 = vpop.f32.mrf.mxu0  ;;  %v8563_v19 = vmax.f32 %v8527_v16, 0.0 }
 0x5d4   : > { %v9585_v3 = vcombine.low %v9577_v36, %v9584_v61  ;;  %v9594_v21 = vrot.slane %v9586_v29, %v11562_v9  ;;  %v8485_v60 = vadd.f32 %v16580_v43, %v7972_v63  ;;  %v9603_v38 = vcombine.low %v9044_v20, %v9052_v15 }
 0x5d5   : > { %v9601_v30 = vrot.slane %v9587_v40, %v11562_v9  ;;  %v9618_v45 = vrot.slane %v9604_v42, %v11562_v9  ;;  %v7852_v33 = vsel %vm3432_vm9, %v7849_v0, %v7851_v8  ;;  %v10826_v7 = vpop.f32.mrf.mxu1  ;;  %v10912_v52 = vpop.f32.mrf.mxu0  ;;  %v9061_v41 = vcombine.high %v8563_v19, %v8563_v19 }
 0x5d6   : > { %9809 = vst.msk [vmem:[%s16363_s22 + $0xa8] sm:$0xff] %vm2453_vm7, %v9585_v3  ;;  %v9068_v23 = vrot.slane %v8563_v19, %v11562_v9  ;;  %v8528_v28 = vadd.f32 %v16656_v56, %v8485_v60  ;;  %v7930_v39 = vadd.f32 %v7852_v33, %v16284_v27  ;;  %v9611_v35 = vrot.slane %v9603_v38, %v11562_v9 }
 0x5d7   : > { %v9602_v43 = vcombine.low %v9594_v21, %v9601_v30  ;;  %v7853_v13 = vrot.slane %v7726_v51, 4  ;;  %v7855_v24 = vrot.slane %v7731_v17, 4  ;;  %v7734_v4 = vpop.f32.mrf.mxu1  ;;  %v8442_v48 = vpop.f32.mrf.mxu0  ;;  %v9075_v0 = vrot.slane %v9061_v41, %v11562_v9 }
 0x5d8   : > { %v9076_v37 = vcombine.high %v9068_v23, %v9068_v23  ;;  %v8564_v12 = vmax.f32 %v8528_v28, 0.0  ;;  %v7973_v22 = vadd.f32 %v16643_v32, %v7930_v39  ;;  %v9619_v6 = vcombine.low %v9611_v35, %v9618_v45 }
 0x5d9   : > { %9810 = vst.msk [vmem:[%s16363_s22 + $0xb0] sm:$0xff] %vm2453_vm7, %v9602_v43  ;;  %v7854_v15 = vsel %vm3432_vm9, %v7851_v8, %v7853_v13  ;;  %v7856_v27 = vsel %vm3432_vm9, %v7853_v13, %v7855_v24  ;;  %v7857_v59 = vrot.slane %v7734_v4, 4  ;;  %v10827_v36 = vpop.f32.mrf.mxu1  ;;  %v10913_v51 = vpop.f32.mrf.mxu0  ;;  %v9077_v47 = vcombine.high %v9075_v0, %v9075_v0 }
 0x5da   : > { %v9620_v34 = vcombine.low %v9068_v23, %v9076_v37  ;;  %v9078_v25 = vcombine.high %v8564_v12, %v8564_v12  ;;  %v9085_v46 = vrot.slane %v8564_v12, %v11562_v9  ;;  %9811 = vst.msk [vmem:[%s16363_s22 + $0xb8] sm:$0xff] %vm2453_vm7, %v9619_v6  ;;  %v8486_v31 = vadd.f32 %v16593_v55, %v7973_v22 }
 0x5db   : > { %v7931_v50 = vadd.f32 %v7854_v15, %v16287_v62  ;;  %v7932_v54 = vadd.f32 %v7856_v27, %v16293_v53  ;;  %v7858_v18 = vsel %vm3432_vm9, %v7855_v24, %v7857_v59  ;;  %v7739_v61 = vpop.f32.mrf.mxu1  ;;  %v8446_v29 = vpop.f32.mrf.mxu0  ;;  %v9621_v16 = vcombine.low %v9075_v0, %v9077_v47 }
 0x5dc   : > { %v9628_v63 = vrot.slane %v9620_v34, %v11562_v9  ;;  %v9092_v40 = vrot.slane %v9078_v25, %v11562_v9  ;;  %v9093_v20 = vcombine.high %v9085_v46, %v9085_v46  ;;  %v8529_v42 = vadd.f32 %v16656_v56, %v8486_v31 }
 0x5dd   : > { %v7974_v8 = vadd.f32 %v16643_v32, %v7931_v50  ;;  %v7975_v55 = vadd.f32 %v16643_v32, %v7932_v54  ;;  %v7933_v62 = vadd.f32 %v7858_v18, %v16296_v57  ;;  %v10830_v17 = vpop.f32.mrf.mxu1  ;;  %v10916_v53 = vpop.f32.mrf.mxu0  ;;  %v9635_v49 = vrot.slane %v9621_v16, %v11562_v9 }
 0x5de   : > { %v9094_v3 = vcombine.high %v9092_v40, %v9092_v40  ;;  %v9637_v21 = vcombine.low %v9085_v46, %v9093_v20  ;;  %v7859_v19 = vrot.slane %v7739_v61, 4  ;;  %v8565_v60 = vmax.f32 %v8529_v42, 0.0 }
 0x5df   : > { %v8487_v30 = vadd.f32 %v16606_v44, %v7974_v8  ;;  %v8488_v38 = vadd.f32 %v16616_v11, %v7975_v55  ;;  %v7976_v45 = vadd.f32 %v16643_v32, %v7933_v62  ;;  %v16728_v33 = vpop.f32.mrf.mxu1  ;;  %v8448_v7 = vpop.f32.mrf.mxu0  ;;  %v9636_v52 = vcombine.low %v9628_v63, %v9635_v49 }
 0x5e0   : > { %v9638_v57 = vcombine.low %v9092_v40, %v9094_v3  ;;  %v9645_v41 = vrot.slane %v9637_v21, %v11562_v9  ;;  %v7860_v23 = vsel %vm3432_vm9, %v7857_v59, %v7859_v19  ;;  %v9095_v28 = vcombine.high %v8565_v60, %v8565_v60 }
 0x5e1   : > { %v9102_v39 = vrot.slane %v8565_v60, %v11562_v9  ;;  %v8530_v43 = vadd.f32 %v16656_v56, %v8487_v30  ;;  %v8531_v44 = vadd.f32 %v16656_v56, %v8488_v38  ;;  %v10831_v35 = vpop.f32.mrf.mxu1  ;;  %v10917_v11 = vpop.f32.mrf.mxu0  ;;  %9812 = vst.msk [vmem:[%s16363_s22 + $0xc0] sm:$0xff] %vm2453_vm7, %v9636_v52  ;;  %v8489_v24 = vadd.f32 %v16628_v26, %v7976_v45 }
 0x5e2   : > { %v9652_v13 = vrot.slane %v9638_v57, %v11562_v9  ;;  %v7934_v4 = vadd.f32 %v7860_v23, %v16299_v14  ;;  %v7861_v48 = vrot.slane %v16728_v33, 4  ;;  %v9109_v0 = vrot.slane %v9095_v28, %v11562_v9 }
 0x5e3   : > { %v9110_v37 = vcombine.high %v9102_v39, %v9102_v39  ;;  %v8566_v12 = vmax.f32 %v8530_v43, 0.0  ;;  %v8567_v22 = vmax.f32 %v8531_v44, 0.0  ;;  %v7747_v6 = vpop.f32.mrf.mxu1  ;;  %v8452_v15 = vpop.f32.mrf.mxu0  ;;  %v8532_v59 = vadd.f32 %v16656_v56, %v8489_v24 }
 0x5e4   : > { %v9653_v27 = vcombine.low %v9645_v41, %v9652_v13  ;;  %v7977_v36 = vadd.f32 %v16643_v32, %v7934_v4  ;;  %v7862_v26 = vsel %vm3432_vm9, %v7859_v19, %v7861_v48  ;;  %v9111_v51 = vcombine.high %v9109_v0, %v9109_v0 }
 0x5e5   : > { %v9654_v14 = vcombine.low %v9110_v37, %v9109_v0  ;;  %v9112_v47 = vcombine.high %v8566_v12, %v8566_v12  ;;  %v9119_v34 = vrot.slane %v8566_v12, %v11562_v9  ;;  %v10834_v25 = vpop.f32.mrf.mxu1  ;;  %v10920_v46 = vpop.f32.mrf.mxu0  ;;  %v9129_v31 = vcombine.high %v8567_v22, %v8567_v22 }
 0x5e6   : > { %9813 = vst.msk [vmem:[%s16363_s22 + $0xc8] sm:$0xff] %vm2453_vm7, %v9653_v27  ;;  %v9136_v50 = vrot.slane %v8567_v22, %v11562_v9  ;;  %v8568_v54 = vmax.f32 %v8532_v59, 0.0  ;;  %v8490_v18 = vadd.f32 %v16650_v1, %v7977_v36  ;;  %v17974_v1 = vld [vmem:[#allocation102_spill] sm:$0xff]  ;;  %v7754_v13 = vsel %vm1959_vm5, %v7753_v5, %v7747_v6  ;;  %v17975_v6 = vld [vmem:[#allocation104_spill] sm:$0xff] }
 0x5e7   : > { %v9662_v61 = vrot.slane %v9654_v14, %v11562_v9  ;;  %v9126_v29 = vrot.slane %v9112_v47, %v11562_v9  ;;  %v9127_v16 = vcombine.high %v9119_v34, %v9119_v34  ;;  %v9655_v63 = vcombine.low %v9111_v51, %v9119_v34  ;;  %v7750_v40 = vpop.f32.mrf.mxu1  ;;  %v8454_v20 = vpop.f32.mrf.mxu0 }
 0x5e8   : > { %v9143_v42 = vrot.slane %v9129_v31, %v11562_v9  ;;  %v9145_v8 = vcombine.high %v8568_v54, %v8568_v54  ;;  %v9152_v55 = vrot.slane %v8568_v54, %v11562_v9  ;;  %v8533_v62 = vadd.f32 %v16656_v56, %v8490_v18 }
 0x5e9   : > { %v9669_v17 = vrot.slane %v9655_v63, %v11562_v9  ;;  %v9671_v53 = vcombine.low %v9127_v16, %v9126_v29  ;;  %v9128_v49 = vcombine.high %v9126_v29, %v9126_v29  ;;  %v7935_v3 = vadd.f32 %v7862_v26, %v17974_v1  ;;  %v10835_v21 = vpop.f32.mrf.mxu1  ;;  %v10921_v19 = vpop.f32.mrf.mxu0 }
 0x5ea   : > { %v9144_v60 = vcombine.high %v9143_v42, %v9143_v42  ;;  %v9159_v30 = vrot.slane %v9145_v8, %v11562_v9  ;;  %v9160_v38 = vcombine.high %v9152_v55, %v9152_v55  ;;  %v8569_v45 = vmax.f32 %v8533_v62, 0.0 }
 0x5eb   : > { %v9670_v7 = vcombine.low %v9662_v61, %v9669_v17  ;;  %v9679_v52 = vrot.slane %v9671_v53, %v11562_v9  ;;  %v9672_v57 = vcombine.low %v9128_v49, %v9136_v50  ;;  %v7978_v41 = vadd.f32 %v16643_v32, %v7935_v3 }
 0x5ec   : > { %v9688_v23 = vcombine.low %v9143_v42, %v9144_v60  ;;  %v9161_v28 = vcombine.high %v9159_v30, %v9159_v30  ;;  %v9689_v39 = vcombine.low %v9152_v55, %v9160_v38  ;;  %v9162_v43 = vcombine.high %v8569_v45, %v8569_v45 }
 0x5ed   : > { %9814 = vst.msk [vmem:[%s16363_s22 + $0xd0] sm:$0xff] %vm2453_vm7, %v9670_v7  ;;  %v9686_v44 = vrot.slane %v9672_v57, %v11562_v9  ;;  %v9169_v35 = vrot.slane %v8569_v45, %v11562_v9  ;;  %v8491_v11 = vadd.f32 %v16674_v2, %v7978_v41  ;;  %v7863_v27 = vrot.slane %v7754_v13, 4 }
 0x5ee   : > { %v9696_v24 = vrot.slane %v9688_v23, %v11562_v9  ;;  %v9703_v4 = vrot.slane %v9689_v39, %v11562_v9  ;;  %v9705_v0 = vcombine.low %v9159_v30, %v9161_v28  ;;  %v9176_v37 = vrot.slane %v9162_v43, %v11562_v9 }
 0x5ef   : > { %v9687_v12 = vcombine.low %v9679_v52, %v9686_v44  ;;  %v9177_v22 = vcombine.high %v9169_v35, %v9169_v35  ;;  %v8534_v15 = vadd.f32 %v16656_v56, %v8491_v11  ;;  %v7864_v5 = vsel %vm3432_vm9, %v7861_v48, %v7863_v27 }
 0x5f0   : > { %v9704_v59 = vcombine.low %v9696_v24, %v9703_v4  ;;  %v9178_v2 = vcombine.high %v9176_v37, %v9176_v37  ;;  %v7936_v26 = vadd.f32 %v7864_v5, %v17975_v6  ;;  %v9713_v14 = vrot.slane %v9705_v0, %v11562_v9 }
 0x5f1   : > { %9815 = vst.msk [vmem:[%s16363_s22 + $0xd8] sm:$0xff] %vm2453_vm7, %v9687_v12  ;;  %v9706_v58 = vcombine.low %v9169_v35, %v9177_v22  ;;  %v8570_v36 = vmax.f32 %v8534_v15, 0.0 }
 0x5f2   : > { %9816 = vst.msk [vmem:[%s16363_s22 + $0xe0] sm:$0xff] %vm2453_vm7, %v9704_v59  ;;  %v7979_v25 = vadd.f32 %v16643_v32, %v7936_v26 }
 0x5f3   : > { %v9720_v51 = vrot.slane %v9706_v58, %v11562_v9  ;;  %v9179_v47 = vcombine.high %v8570_v36, %v8570_v36  ;;  %v9186_v34 = vrot.slane %v8570_v36, %v11562_v9 }
 0x5f4   : > { %v8492_v48 = vadd.f32 %v16683_v10, %v7979_v25 }
 0x5f5   : > { %v9721_v46 = vcombine.low %v9713_v14, %v9720_v51  ;;  %v9193_v31 = vrot.slane %v9179_v47, %v11562_v9  ;;  %v9194_v33 = vcombine.high %v9186_v34, %v9186_v34  ;;  %v9722_v50 = vcombine.low %v9178_v2, %v9186_v34 }
 0x5f6   : > { %v8535_v18 = vadd.f32 %v16656_v56, %v8492_v48 }
 0x5f7   : > { %9817 = vst.msk [vmem:[%s16363_s22 + $0xe8] sm:$0xff] %vm2453_vm7, %v9721_v46  ;;  %v9723_v54 = vcombine.low %v9194_v33, %v9193_v31  ;;  %v9730_v61 = vrot.slane %v9722_v50, %v11562_v9  ;;  %v9195_v16 = vcombine.high %v9193_v31, %v9193_v31 }
 0x5f8   : > { %v8571_v32 = vmax.f32 %v8535_v18, 0.0 }
 0x5f9   : > { %v9737_v29 = vrot.slane %v9723_v54, %v11562_v9 }
 0x5fa   : > { %v9196_v40 = vcombine.high %v8571_v32, %v8571_v32  ;;  %v9203_v20 = vrot.slane %v8571_v32, %v11562_v9 }
 0x5fb   : > { %v9738_v63 = vcombine.low %v9730_v61, %v9737_v29 }
 0x5fc   : > { %v9210_v10 = vrot.slane %v9196_v40, %v11562_v9  ;;  %v9211_v42 = vcombine.high %v9203_v20, %v9203_v20  ;;  %v9739_v8 = vcombine.low %v9195_v16, %v9203_v20 }
 0x5fd   : > { %9818 = vst.msk [vmem:[%s16363_s22 + $0xf0] sm:$0xff] %vm2453_vm7, %v9738_v63 }
 0x5fe   : > { %v9740_v55 = vcombine.low %v9211_v42, %v9210_v10  ;;  %v9747_v56 = vrot.slane %v9739_v8, %v11562_v9 }
 0x600   : > { %v9754_v62 = vrot.slane %v9740_v55, %v11562_v9 }
 0x602   : > { %v9755_v17 = vcombine.low %v9747_v56, %v9754_v62 }
 0x604   : > { %9819 = vst.msk [vmem:[%s16363_s22 + $0xf8] sm:$0xff] %vm2453_vm7, %v9755_v17 }
 0x605 PF: > { %s17_s24 = sadd.s32 1, %s11393_s24  }
 0x606   : > { %p14_p4 = scmp.ge.s32.totalorder %s17_s24, 4  }
 0x608   :  { %16 = sbr.rel (!%p14_p4) target bundleno = 1 (0x1), region = 84 }

</bundles_post_ra>
